<compile_context>
chip_gen: v5e
topology: v5e:2x2
jax: 0.10.0
libtpu: 0.0.40
codegen_flags: <defaults>
</compile_context>

<pallas_src>
import jax
import jax.numpy as jnp
from jax.experimental import pallas as pl
from jax.experimental.pallas import tpu as pltpu

LAST_CHANNEL = 960    # mobilenet_v3_large.lastconv_output_channels
HIDDEN = 1000         # first Linear of the speed head
HIDDEN_PAD = 1024     # lane-aligned padding of HIDDEN


def _round_up(x, m):
    return (x + m - 1) // m * m


def _speed_head_kernel(xt_ref, w1_ref, b1_ref, w2_ref, b2_ref, out_ref):
    """Linear(960->1000) + Hardswish + Dropout(id) + Linear(1000->1), batch on lanes.

    xt_ref : [C, tile_b]      bf16  pooled features, batch on the lane axis
    w1_ref : [HIDDEN_PAD, C]  bf16  PyTorch [out, in] layout; rows >= 1000 are zero
    b1_ref : [HIDDEN_PAD, 1]  f32
    w2_ref : [HIDDEN_PAD, 1]  f32   second Linear's weight as a column
    b2_ref : [1, 1]           f32
    out_ref: [1, tile_b]      f32   lane-dense per-tile result
    """
    # Linear(960 -> 1000/1024): bf16 MXU matmul, f32 accumulate.
    h = jnp.dot(w1_ref[...], xt_ref[...], preferred_element_type=jnp.float32)
    h = h + b1_ref[...]                                    # [HIDDEN_PAD, tile_b]

    # Hardswish: x * relu6(x + 3) / 6  (f32 on the VPU). Padded rows stay exactly 0.
    h = h * jnp.clip(h + 3.0, 0.0, 6.0) * (1.0 / 6.0)

    # Dropout(p=0.2, inplace=True): identity at inference.

    # Linear(1000 -> 1): broadcast-multiply + sublane reduce (no N=1 MXU matmul);
    # result is already lane-dense over the batch tile.
    out_ref[...] = jnp.sum(h * w2_ref[...], axis=0, keepdims=True) + b2_ref[...]


def neural_network_forward(x_feat_nchw, w1, b1, w2, b2, *, tile_b=128):
    """Forward pass of the `speed` head.

    x_feat_nchw: [B, C, H, W] f32 -- output of the (not reimplemented) backbone.
    w1: [HIDDEN, C], b1: [HIDDEN], w2: [1, HIDDEN], b2: [1]  (PyTorch Linear layouts)
    Returns {'speed': [B] f32}, matching the PyTorch module's output dict.
    """
    B, C, H, W = x_feat_nchw.shape
    assert C == LAST_CHANNEL

    # AdaptiveAvgPool2d(1) + flatten(start_dim=1): hoisted out of the kernel (pure XLA).
    pooled = jnp.mean(x_feat_nchw, axis=(2, 3))             # [B, C] f32

    # Batch tile lives on the lane axis; pad B so the grid divides evenly.
    tb = min(tile_b, _round_up(B, 8))
    b_pad = _round_up(B, tb)

    xt = jnp.zeros((C, b_pad), jnp.bfloat16)
    xt = xt.at[:, :B].set(pooled.astype(jnp.bfloat16).T)    # [C, B_pad] bf16

    # Zero-pad the head to HIDDEN_PAD (exact: padded rows contribute 0 to the output).
    w1p = jnp.zeros((HIDDEN_PAD, C), jnp.bfloat16).at[:HIDDEN, :].set(
        w1.astype(jnp.bfloat16))
    b1p = jnp.zeros((HIDDEN_PAD, 1), jnp.float32).at[:HIDDEN, 0].set(
        b1.astype(jnp.float32))
    w2p = jnp.zeros((HIDDEN_PAD, 1), jnp.float32).at[:HIDDEN, 0].set(
        w2.reshape(-1).astype(jnp.float32))
    b2p = b2.reshape(1, 1).astype(jnp.float32)

    out = pl.pallas_call(
        _speed_head_kernel,
        out_shape=jax.ShapeDtypeStruct((1, b_pad), jnp.float32),
        grid=(b_pad // tb,),
        in_specs=[
            pl.BlockSpec((C, tb), lambda i: (0, i)),          # batch tile of pooled feats
            pl.BlockSpec((HIDDEN_PAD, C), lambda i: (0, 0)),  # weights: constant index ->
            pl.BlockSpec((HIDDEN_PAD, 1), lambda i: (0, 0)),  # VMEM-resident across tiles
            pl.BlockSpec((HIDDEN_PAD, 1), lambda i: (0, 0)),
            pl.BlockSpec((1, 1), lambda i: (0, 0)),
        ],
        out_specs=pl.BlockSpec((1, tb), lambda i: (0, i)),
        compiler_params=pltpu.CompilerParams(
            dimension_semantics=("parallel",),   # shard batch tiles across TCs on v7x
            vmem_limit_bytes=32 * 1024 * 1024,   # ~6 MiB footprint; safe on v5e/v6e/v7x
        ),
    )(xt, w1p, b1p, w2p, b2p)

    return {"speed": out[0, :B]}                              # .squeeze(-1)


if __name__ == "__main__":
    key = jax.random.PRNGKey(0)
    k_x, k_w1, k_b1, k_w2, k_b2 = jax.random.split(key, 5)

    # Small, module-consistent shapes: batch=2, backbone output 960 x 7 x 7.
    B, C, H, W = 2, LAST_CHANNEL, 7, 7
    x_feat = jax.random.normal(k_x, (B, C, H, W), dtype=jnp.float32)

    # Deterministic parameter init (PyTorch-Linear-style uniform bounds, [out, in] layout).
    bound1 = 1.0 / (C ** 0.5)
    w1 = jax.random.uniform(k_w1, (HIDDEN, C), jnp.float32, -bound1, bound1)
    b1 = jax.random.uniform(k_b1, (HIDDEN,), jnp.float32, -bound1, bound1)
    bound2 = 1.0 / (HIDDEN ** 0.5)
    w2 = jax.random.uniform(k_w2, (1, HIDDEN), jnp.float32, -bound2, bound2)
    b2 = jax.random.uniform(k_b2, (1,), jnp.float32, -bound2, bound2)

    out = neural_network_forward(x_feat, w1, b1, w2, b2)
    speed = jax.block_until_ready(out["speed"])
    assert speed.shape == (B,)

    # bf16-consistent pure-JAX reference (kernel runs the first GEMM in bf16).
    pooled_ref = x_feat.mean(axis=(2, 3))                      # [B, C]
    h_ref = jnp.dot(pooled_ref.astype(jnp.bfloat16), w1.T.astype(jnp.bfloat16),
                    preferred_element_type=jnp.float32) + b1
    h_ref = h_ref * jnp.clip(h_ref + 3.0, 0.0, 6.0) / 6.0
    speed_ref = h_ref @ w2.reshape(-1) + b2[0]
    assert jnp.allclose(speed, speed_ref, atol=5e-3, rtol=5e-3), (
        float(jnp.max(jnp.abs(speed - speed_ref))))

    print("KERNEL_OK")
</pallas_src>

<mosaic_0001>
module attributes {stable_mosaic.version = 11 : i64} {
  func.func @_speed_head_kernel(%arg0: i32, %arg1: memref<960x8xbf16, #tpu.memory_space<vmem>>, %arg2: memref<1024x960xbf16, #tpu.memory_space<vmem>>, %arg3: memref<1024x1xf32, #tpu.memory_space<vmem>>, %arg4: memref<1024x1xf32, #tpu.memory_space<vmem>>, %arg5: memref<1x1xf32, #tpu.memory_space<vmem>>, %arg6: memref<1x8xf32, #tpu.memory_space<vmem>>) attributes {dimension_semantics = [#tpu.dimension_semantics<parallel>], iteration_bounds = array<i64: 1>, scalar_prefetch = 0 : i64, scratch_operands = 0 : i64, tpu.core_type = #tpu.core_type<tc>, window_params = [{transform_indices = @transform_0, window_bounds = array<i64: 960, 8>}, {pipeline_mode = #tpu.pipeline_mode<synchronous>, transform_indices = @transform_1, window_bounds = array<i64: 1024, 960>}, {pipeline_mode = #tpu.pipeline_mode<synchronous>, transform_indices = @transform_2, window_bounds = array<i64: 1024, 1>}, {pipeline_mode = #tpu.pipeline_mode<synchronous>, transform_indices = @transform_3, window_bounds = array<i64: 1024, 1>}, {pipeline_mode = #tpu.pipeline_mode<synchronous>, transform_indices = @transform_4, window_bounds = array<i64: 1, 1>}, {transform_indices = @transform_5, window_bounds = array<i64: 1, 8>}]} {
    %c0 = arith.constant 0 : index
    %c0_0 = arith.constant 0 : index
    %0 = vector.load %arg2[%c0, %c0_0] : memref<1024x960xbf16, #tpu.memory_space<vmem>>, vector<1024x960xbf16>
    %c0_1 = arith.constant 0 : index
    %c0_2 = arith.constant 0 : index
    %1 = vector.load %arg1[%c0_1, %c0_2] : memref<960x8xbf16, #tpu.memory_space<vmem>>, vector<960x8xbf16>
    %cst = arith.constant dense<0.000000e+00> : vector<1024x8xf32>
    %2 = tpu.matmul %0, %1, %cst {dimension_numbers = #tpu.dot_dimension_numbers<[1], [0], [0], [1], [0, 0, 1, 1], [], []>} : vector<1024x960xbf16>, vector<960x8xbf16>, vector<1024x8xf32> -> vector<1024x8xf32>
    %c0_3 = arith.constant 0 : index
    %c0_4 = arith.constant 0 : index
    %3 = vector.load %arg3[%c0_3, %c0_4] : memref<1024x1xf32, #tpu.memory_space<vmem>>, vector<1024x1xf32>
    %4 = vector.broadcast %3 : vector<1024x1xf32> to vector<1024x8xf32>
    %5 = arith.addf %2, %4 : vector<1024x8xf32>
    %cst_5 = arith.constant 3.000000e+00 : f32
    %6 = vector.broadcast %cst_5 : f32 to vector<1024x8xf32>
    %7 = arith.addf %5, %6 : vector<1024x8xf32>
    %cst_6 = arith.constant 0.000000e+00 : f32
    %cst_7 = arith.constant 6.000000e+00 : f32
    %8 = vector.broadcast %cst_6 : f32 to vector<1024x8xf32>
    %9 = arith.maximumf %8, %7 : vector<1024x8xf32>
    %10 = vector.broadcast %cst_7 : f32 to vector<1024x8xf32>
    %11 = arith.minimumf %10, %9 : vector<1024x8xf32>
    %12 = arith.mulf %5, %11 : vector<1024x8xf32>
    %cst_8 = arith.constant 0.166666672 : f32
    %13 = vector.broadcast %cst_8 : f32 to vector<1024x8xf32>
    %14 = arith.mulf %12, %13 : vector<1024x8xf32>
    %c0_9 = arith.constant 0 : index
    %c0_10 = arith.constant 0 : index
    %15 = vector.load %arg4[%c0_9, %c0_10] : memref<1024x1xf32, #tpu.memory_space<vmem>>, vector<1024x1xf32>
    %16 = vector.broadcast %15 : vector<1024x1xf32> to vector<1024x8xf32>
    %17 = arith.mulf %14, %16 : vector<1024x8xf32>
    %cst_11 = arith.constant dense<0.000000e+00> : vector<8xf32>
    %18 = vector.multi_reduction <add>, %17, %cst_11 [0] : vector<1024x8xf32> to vector<8xf32>
    %19 = vector.shape_cast %18 : vector<8xf32> to vector<1x8xf32>
    %c0_12 = arith.constant 0 : index
    %c0_13 = arith.constant 0 : index
    %20 = vector.load %arg5[%c0_12, %c0_13] : memref<1x1xf32, #tpu.memory_space<vmem>>, vector<1x1xf32>
    %21 = vector.broadcast %20 : vector<1x1xf32> to vector<1x8xf32>
    %22 = arith.addf %19, %21 : vector<1x8xf32>
    %c0_14 = arith.constant 0 : index
    %c0_15 = arith.constant 0 : index
    %23 = vector.load %arg6[%c0_14, %c0_15] : memref<1x8xf32, #tpu.memory_space<vmem>>, vector<1x8xf32>
    tpu.vector_store %arg6[%c0_14, %c0_15], %22 {strides = array<i32>} : memref<1x8xf32, #tpu.memory_space<vmem>>, vector<1x8xf32>,
    return
  }
  func.func @transform_0(%arg0: i32) -> (i32, i32) {
    %c0_i32 = arith.constant 0 : i32
    %c0_i32_0 = arith.constant 0 : i32
    return %c0_i32, %arg0 : i32, i32
  }
  func.func @transform_1(%arg0: i32) -> (i32, i32) {
    %c0_i32 = arith.constant 0 : i32
    %c0_i32_0 = arith.constant 0 : i32
    %c0_i32_1 = arith.constant 0 : i32
    return %c0_i32, %c0_i32_0 : i32, i32
  }
  func.func @transform_2(%arg0: i32) -> (i32, i32) {
    %c0_i32 = arith.constant 0 : i32
    %c0_i32_0 = arith.constant 0 : i32
    %c0_i32_1 = arith.constant 0 : i32
    return %c0_i32, %c0_i32_0 : i32, i32
  }
  func.func @transform_3(%arg0: i32) -> (i32, i32) {
    %c0_i32 = arith.constant 0 : i32
    %c0_i32_0 = arith.constant 0 : i32
    %c0_i32_1 = arith.constant 0 : i32
    return %c0_i32, %c0_i32_0 : i32, i32
  }
  func.func @transform_4(%arg0: i32) -> (i32, i32) {
    %c0_i32 = arith.constant 0 : i32
    %c0_i32_0 = arith.constant 0 : i32
    %c0_i32_1 = arith.constant 0 : i32
    return %c0_i32, %c0_i32_0 : i32, i32
  }
  func.func @transform_5(%arg0: i32) -> (i32, i32) {
    %c0_i32 = arith.constant 0 : i32
    %c0_i32_0 = arith.constant 0 : i32
    return %c0_i32, %arg0 : i32, i32
  }
}

</mosaic_0001>

<bundles_post_ra>
// kernel: tpu_custom_call.1
= control target key start
LH: loop header
LB: loop body
LE: loop exit
PB: predicated region body
PF: predicated region fallthrough
CT: control target
= control target key end

     0   :  { %s16518_s0 = inlined_call_operand.vmem [shape: bf16[960,8], index: 0, kind: input, shape index: {}]   ;;  %s16519_s1 = inlined_call_operand.vmem [shape: bf16[1024,960], index: 1, kind: input, shape index: {}]   ;;  %s16520_s2 = inlined_call_operand.vmem [shape: f32[1024,1], index: 2, kind: input, shape index: {}]   ;;  %s16521_s3 = inlined_call_operand.vmem [shape: f32[1024,1], index: 3, kind: input, shape index: {}]   ;;  %s16522_s4 = inlined_call_operand.<no memory space> [shape: f32[1,1], index: 4, kind: input, shape index: {}]   ;;  %s16523_s5 = inlined_call_operand.hbm [shape: f32[1,8], index: 5, kind: output, shape index: {}]  }
   0x1   :  { %v10_v0 = vstv %s16522_s4 }
   0x2   :  { %11 = vst [vmem:[#allocation2] sm:$0x1] %v10_v0 }
   0x3   :  { %v11800_v1 = vld [vmem:[%s16518_s0 + $0x38] sm:$0xff]  ;;  %v11799_v5 = vld [vmem:[%s16518_s0 + $0x30] sm:$0xff]  ;;  %v11884_v9 = vmov 0   ;;  %v11798_v10 = vld [vmem:[%s16518_s0 + $0x28] sm:$0xff] }
   0x4   :  { %v11808_v2 = vld [vmem:[%s16518_s0 + $0x78] sm:$0xff]  ;;  %4473 = vmatpush.bf16.msra.mxu0 %v11800_v1  ;;  %v11807_v6 = vld [vmem:[%s16518_s0 + $0x70] sm:$0xff]  ;;  %11855 = vset.pattern.permute.xlu0 %v11884_v9  ;;  %v11806_v11 = vld [vmem:[%s16518_s0 + $0x68] sm:$0xff] }
   0x5   :  { %v11816_v3 = vld [vmem:[%s16518_s0 + $0xb8] sm:$0xff]  ;;  %4802 = vmatpush.bf16.msra.mxu1 %v11808_v2  ;;  %v11815_v7 = vld [vmem:[%s16518_s0 + $0xb0] sm:$0xff]  ;;  %11856 = vset.pattern.permute.xlu1 %v11884_v9  ;;  %v11814_v12 = vld [vmem:[%s16518_s0 + $0xa8] sm:$0xff] }
   0x6   :  { %v11824_v4 = vld [vmem:[%s16518_s0 + $0xf8] sm:$0xff]  ;;  %5131 = vmatpush.bf16.msra.mxu2 %v11816_v3  ;;  %v11823_v8 = vld [vmem:[%s16518_s0 + $0xf0] sm:$0xff]  ;;  %11857 = vset.pattern.permute.xlu2 %v11884_v9  ;;  %v11822_v13 = vld [vmem:[%s16518_s0 + $0xe8] sm:$0xff] }
   0x7   :  { %5460 = vmatpush.bf16.msra.mxu3 %v11824_v4  ;;  %v11797_v14 = vld [vmem:[%s16518_s0 + $0x20] sm:$0xff]  ;;  %v11796_v18 = vld [vmem:[%s16518_s0 + $0x18] sm:$0xff] }
   0x8   :  { %4474 = vmatpush.bf16.msra.mxu0 %v11799_v5  ;;  %v11805_v15 = vld [vmem:[%s16518_s0 + $0x60] sm:$0xff]  ;;  %v11804_v19 = vld [vmem:[%s16518_s0 + $0x58] sm:$0xff] }
   0x9   :  { %4803 = vmatpush.bf16.msra.mxu1 %v11807_v6  ;;  %v11813_v16 = vld [vmem:[%s16518_s0 + $0xa0] sm:$0xff]  ;;  %v11812_v21 = vld [vmem:[%s16518_s0 + $0x98] sm:$0xff] }
   0xa   :  { %5132 = vmatpush.bf16.msra.mxu2 %v11815_v7  ;;  %v11821_v17 = vld [vmem:[%s16518_s0 + $0xe0] sm:$0xff]  ;;  %v11820_v22 = vld [vmem:[%s16518_s0 + $0xd8] sm:$0xff] }
   0xb   :  { %5461 = vmatpush.bf16.msra.mxu3 %v11823_v8  ;;  %v656_v20 = vld [vmem:[%s16520_s2] sm:$0xff] }
   0xc   :  { %4475 = vmatpush.bf16.msra.mxu0 %v11798_v10  ;;  %786 = vperm.xlu0 %11855, %v656_v20  }
   0xd   :  { %4804 = vmatpush.bf16.msra.mxu1 %v11806_v11 }
   0xe   :  { %5133 = vmatpush.bf16.msra.mxu2 %v11814_v12 }
   0xf   :  { %5462 = vmatpush.bf16.msra.mxu3 %v11822_v13 }
  0x10   :  { %4476 = vmatpush.bf16.msra.mxu0 %v11797_v14 }
  0x11   :  { %4805 = vmatpush.bf16.msra.mxu1 %v11805_v15 }
  0x12   :  { %5134 = vmatpush.bf16.msra.mxu2 %v11813_v16 }
  0x13   :  { %5463 = vmatpush.bf16.msra.mxu3 %v11821_v17 }
  0x14   :  { %12 = vsyncpa [#allocation4], 0  ;;  %4477 = vmatpush.bf16.msra.mxu0 %v11796_v18  ;;  %v11795_v23 = vld [vmem:[%s16518_s0 + $0x10] sm:$0xff]  ;;  %v657_v28 = vld [vmem:[%s16520_s2 + $0x8] sm:$0xff]  ;;  %vm4280_vm0 = vcmask 523264   ;;  %vm8641_vm1 = vcmask 64512  }
  0x15   :  { %4806 = vmatpush.bf16.msra.mxu1 %v11804_v19  ;;  %v11803_v24 = vld [vmem:[%s16518_s0 + $0x50] sm:$0xff]  ;;  %v11794_v29 = vld [vmem:[%s16518_s0 + $0x8] sm:$0xff]  ;;  %v11793_v33 = vld [vmem:[%s16518_s0] sm:$0xff]  ;;  %791 = vperm.xlu0 %11855, %v657_v28   ;;  %s8920_s8 = sshll.u32 %s16523_s5, 4  ;;  %vm8911_vm2 = vcmask 57344   ;;  %s8921_s8 = int_to_ptr.hbm [resolvable:$true] %s8920_s8 }
  0x16   :  { %v658_v25 = vld [vmem:[%s16520_s2 + $0x10] sm:$0xff]  ;;  %5135 = vmatpush.bf16.msra.mxu2 %v11812_v21  ;;  %v11802_v30 = vld [vmem:[%s16518_s0 + $0x48] sm:$0xff]  ;;  %v11801_v34 = vld [vmem:[%s16518_s0 + $0x40] sm:$0xff] }
  0x17   :  { %5464 = vmatpush.bf16.msra.mxu3 %v11820_v22  ;;  %v11811_v26 = vld [vmem:[%s16518_s0 + $0x90] sm:$0xff]  ;;  %796 = vperm.xlu1 %11856, %v658_v25   ;;  %v11810_v31 = vld [vmem:[%s16518_s0 + $0x88] sm:$0xff]  ;;  %v11809_v35 = vld [vmem:[%s16518_s0 + $0x80] sm:$0xff] }
  0x18   :  { %v11819_v27 = vld [vmem:[%s16518_s0 + $0xd0] sm:$0xff]  ;;  %4478 = vmatpush.bf16.msra.mxu0 %v11795_v23  ;;  %v11818_v32 = vld [vmem:[%s16518_s0 + $0xc8] sm:$0xff]  ;;  %v11817_v36 = vld [vmem:[%s16518_s0 + $0xc0] sm:$0xff] }
  0x19   :  { %4807 = vmatpush.bf16.msra.mxu1 %v11803_v24  ;;  %v8931_v37 = vld [vmem:[%s16519_s1] sm:$0xf]  ;;  %v11281_v39 = vld [vmem:[%s16519_s1 + $0x4] sm:$0xf]  ;;  %v8939_v41 = vld [vmem:[%s16519_s1 + $0x8] sm:$0xf] }
  0x1a   :  { %5136 = vmatpush.bf16.msra.mxu2 %v11811_v26  ;;  %v11285_v38 = vld [vmem:[%s16519_s1 + $0x1c] sm:$0xf0]  ;;  %v8933_v40 = vld [vmem:[%s16519_s1 + $0x20] sm:$0xf0]  ;;  %v11286_v42 = vld [vmem:[%s16519_s1 + $0x24] sm:$0xf0] }
  0x1b   :  { %5465 = vmatpush.bf16.msra.mxu3 %v11819_v27  ;;  %v11282_v43 = vld [vmem:[%s16519_s1 + $0xc] sm:$0xf]  ;;  %v11848_v45 = vld [vmem:[%s16518_s0 + $0x1b8] sm:$0xff]  ;;  %v8932_v47 = vor.u32 %v11285_v38, %v8931_v37  ;;  %v8936_v48 = vor.u32 %v11281_v39, %v8933_v40  ;;  %v8940_v49 = vor.u32 %v11286_v42, %v8939_v41  ;;  %v8963_v54 = vld [vmem:[%s16519_s1 + $0x40] sm:$0xf] }
  0x1c   :  { %4479 = vmatpush.bf16.msra.mxu0 %v11794_v29  ;;  %v8941_v44 = vld [vmem:[%s16519_s1 + $0x28] sm:$0xf0]  ;;  %v11832_v46 = vld [vmem:[%s16518_s0 + $0x138] sm:$0xff]  ;;  %v11293_v55 = vld [vmem:[%s16519_s1 + $0x5c] sm:$0xf0] }
  0x1d   :  { %4808 = vmatpush.bf16.msra.mxu1 %v11802_v30  ;;  %v8944_v50 = vor.u32 %v11282_v43, %v8941_v44  ;;  %v11852_v51 = vld [vmem:[%s16518_s0 + $0x1d8] sm:$0xff]  ;;  %v11289_v56 = vld [vmem:[%s16519_s1 + $0x44] sm:$0xf]  ;;  %v8971_v58 = vld [vmem:[%s16519_s1 + $0x48] sm:$0xf]  ;;  %v8964_v62 = vor.u32 %v11293_v55, %v8963_v54 }
  0x1e   :  { %5137 = vmatpush.bf16.msra.mxu2 %v11810_v31  ;;  %v11840_v52 = vld [vmem:[%s16518_s0 + $0x178] sm:$0xff]  ;;  %v8965_v57 = vld [vmem:[%s16519_s1 + $0x60] sm:$0xf0]  ;;  %v11294_v59 = vld [vmem:[%s16519_s1 + $0x64] sm:$0xf0] }
  0x1f   :  { %5466 = vmatpush.bf16.msra.mxu3 %v11818_v32  ;;  %v659_v53 = vld [vmem:[%s16520_s2 + $0x18] sm:$0xff]  ;;  %v11290_v60 = vld [vmem:[%s16519_s1 + $0x4c] sm:$0xf]  ;;  %v8968_v63 = vor.u32 %v11289_v56, %v8965_v57  ;;  %v8972_v0 = vor.u32 %v11294_v59, %v8971_v58  ;;  %v662_v2 = vld [vmem:[%s16520_s2 + $0x30] sm:$0xff] }
  0x20   :  { %4480 = vmatpush.bf16.msra.mxu0 %v11793_v33  ;;  %801 = vperm.xlu1 %11856, %v659_v53   ;;  %v8973_v61 = vld [vmem:[%s16519_s1 + $0x68] sm:$0xf0]  ;;  %v8995_v3 = vld [vmem:[%s16519_s1 + $0x80] sm:$0xf]  ;;  %v11297_v5 = vld [vmem:[%s16519_s1 + $0x84] sm:$0xf] }
  0x21   :  { %4809 = vmatpush.bf16.msra.mxu1 %v11801_v34  ;;  %v8976_v1 = vor.u32 %v11290_v60, %v8973_v61  ;;  %816 = vperm.xlu0 %11855, %v662_v2   ;;  %v11301_v4 = vld [vmem:[%s16519_s1 + $0x9c] sm:$0xf0]  ;;  %v8997_v6 = vld [vmem:[%s16519_s1 + $0xa0] sm:$0xf0]  ;;  %v9003_v7 = vld [vmem:[%s16519_s1 + $0x88] sm:$0xf] }
  0x22   :  { %5138 = vmatpush.bf16.msra.mxu2 %v11809_v35  ;;  %v11302_v8 = vld [vmem:[%s16519_s1 + $0xa4] sm:$0xf0]  ;;  %v11298_v9 = vld [vmem:[%s16519_s1 + $0x8c] sm:$0xf]  ;;  %v8996_v11 = vor.u32 %v11301_v4, %v8995_v3  ;;  %v9000_v12 = vor.u32 %v11297_v5, %v8997_v6  ;;  %v660_v15 = vld [vmem:[%s16520_s2 + $0x20] sm:$0xff] }
  0x23   :  { %5467 = vmatpush.bf16.msra.mxu3 %v11817_v36  ;;  %4481 = vmatmul.bf16.vlgmr.msra.gmra.mxu0 %v8932_v47  ;;  %v9005_v10 = vld [vmem:[%s16519_s1 + $0xa8] sm:$0xf0]  ;;  %v9004_v13 = vor.u32 %v11302_v8, %v9003_v7  ;;  %v663_v16 = vld [vmem:[%s16520_s2 + $0x38] sm:$0xff]  ;;  %v9027_v18 = vld [vmem:[%s16519_s1 + $0xc0] sm:$0xf] }
  0x24   :  { %5789 = vmatpush.bf16.msrb.mxu0 %v11832_v46  ;;  %4810 = vmatmul.bf16.vlgmr.msra.gmra.mxu1 %v8936_v48  ;;  %v9008_v14 = vor.u32 %v11298_v9, %v9005_v10  ;;  %v661_v17 = vld [vmem:[%s16520_s2 + $0x28] sm:$0xff]  ;;  %v11309_v19 = vld [vmem:[%s16519_s1 + $0xdc] sm:$0xf0]  ;;  %v11305_v20 = vld [vmem:[%s16519_s1 + $0xc4] sm:$0xf] }
  0x25   :  { %5139 = vmatmul.bf16.vlgmr.msra.gmra.mxu2 %v8940_v49  ;;  %6118 = vmatpush.bf16.msrb.mxu1 %v11840_v52  ;;  %v9029_v21 = vld [vmem:[%s16519_s1 + $0xe0] sm:$0xf0]  ;;  %v9035_v22 = vld [vmem:[%s16519_s1 + $0xc8] sm:$0xf]  ;;  %v11306_v24 = vld [vmem:[%s16519_s1 + $0xcc] sm:$0xf]  ;;  %v9028_v26 = vor.u32 %v11309_v19, %v9027_v18 }
  0x26   :  { %6447 = vmatpush.bf16.msrb.mxu2 %v11848_v45  ;;  %5468 = vmatmul.bf16.vlgmr.msra.gmra.mxu3 %v8944_v50  ;;  %v11310_v23 = vld [vmem:[%s16519_s1 + $0xe4] sm:$0xf0]  ;;  %v9037_v25 = vld [vmem:[%s16519_s1 + $0xe8] sm:$0xf0]  ;;  %v9032_v27 = vor.u32 %v11305_v20, %v9029_v21  ;;  %v666_v31 = vld [vmem:[%s16520_s2 + $0x50] sm:$0xff] }
  0x27   :  { %6780 = vmatpush.bf16.msrb.mxu3 %v11852_v51  ;;  %806 = vperm.xlu2 %11857, %v660_v15   ;;  %v9036_v28 = vor.u32 %v11310_v23, %v9035_v22  ;;  %v9040_v29 = vor.u32 %v11306_v24, %v9037_v25  ;;  %v665_v30 = vld [vmem:[%s16520_s2 + $0x48] sm:$0xff]  ;;  %v9059_v32 = vld [vmem:[%s16519_s1 + $0x100] sm:$0xf]  ;;  %v11313_v34 = vld [vmem:[%s16519_s1 + $0x104] sm:$0xf] }
  0x28   :  { %821 = vperm.xlu1 %11856, %v663_v16   ;;  %v11317_v33 = vld [vmem:[%s16519_s1 + $0x11c] sm:$0xf0]  ;;  %v9061_v35 = vld [vmem:[%s16519_s1 + $0x120] sm:$0xf0]  ;;  %v9067_v36 = vld [vmem:[%s16519_s1 + $0x108] sm:$0xf] }
  0x29   :  { %831 = vperm.xlu0 %11855, %v665_v30   ;;  %v11318_v37 = vld [vmem:[%s16519_s1 + $0x124] sm:$0xf0]  ;;  %v11314_v38 = vld [vmem:[%s16519_s1 + $0x10c] sm:$0xf]  ;;  %v9060_v40 = vor.u32 %v11317_v33, %v9059_v32  ;;  %v9064_v41 = vor.u32 %v11313_v34, %v9061_v35  ;;  %v664_v44 = vld [vmem:[%s16520_s2 + $0x40] sm:$0xff] }
  0x2a   :  { %v9069_v39 = vld [vmem:[%s16519_s1 + $0x128] sm:$0xf0]  ;;  %v9068_v42 = vor.u32 %v11318_v37, %v9067_v36  ;;  %v668_v45 = vld [vmem:[%s16520_s2 + $0x60] sm:$0xff]  ;;  %v9099_v50 = vld [vmem:[%s16519_s1 + $0x148] sm:$0xf] }
  0x2b   :  { %v9072_v43 = vor.u32 %v11314_v38, %v9069_v39  ;;  %v9091_v46 = vld [vmem:[%s16519_s1 + $0x140] sm:$0xf]  ;;  %v11321_v48 = vld [vmem:[%s16519_s1 + $0x144] sm:$0xf]  ;;  %v11326_v51 = vld [vmem:[%s16519_s1 + $0x164] sm:$0xf0] }
  0x2c   :  { %v11325_v47 = vld [vmem:[%s16519_s1 + $0x15c] sm:$0xf0]  ;;  %v9093_v49 = vld [vmem:[%s16519_s1 + $0x160] sm:$0xf0]  ;;  %v11322_v52 = vld [vmem:[%s16519_s1 + $0x14c] sm:$0xf]  ;;  %v9100_v56 = vor.u32 %v11326_v51, %v9099_v50 }
  0x2d   :  { %v9101_v53 = vld [vmem:[%s16519_s1 + $0x168] sm:$0xf0]  ;;  %v9092_v54 = vor.u32 %v11325_v47, %v9091_v46  ;;  %v9096_v55 = vor.u32 %v11321_v48, %v9093_v49  ;;  %v667_v59 = vld [vmem:[%s16520_s2 + $0x58] sm:$0xff]  ;;  %v9123_v60 = vld [vmem:[%s16519_s1 + $0x180] sm:$0xf] }
  0x2e   :  { %v9104_v57 = vor.u32 %v11322_v52, %v9101_v53  ;;  %v669_v58 = vld [vmem:[%s16520_s2 + $0x68] sm:$0xff]  ;;  %v11333_v61 = vld [vmem:[%s16519_s1 + $0x19c] sm:$0xf0]  ;;  %v11847_v8 = vld [vmem:[%s16518_s0 + $0x1b0] sm:$0xff] }
  0x2f   :  { %811 = vperm.xlu2 %11857, %v661_v17   ;;  %v11330_v2 = vld [vmem:[%s16519_s1 + $0x18c] sm:$0xf]  ;;  %v9124_v4 = vor.u32 %v11333_v61, %v9123_v60  ;;  %v11831_v9 = vld [vmem:[%s16518_s0 + $0x130] sm:$0xff]  ;;  %v671_v10 = vld [vmem:[%s16520_s2 + $0x78] sm:$0xff]  ;;  %6448 = vmatpush.bf16.msrb.mxu2 %v11847_v8 }
  0x30   :  { %836 = vperm.xlu1 %11856, %v666_v31   ;;  %v9133_v3 = vld [vmem:[%s16519_s1 + $0x1a8] sm:$0xf0]  ;;  %5790 = vmatpush.bf16.msrb.mxu0 %v11831_v9  ;;  %v9157_v15 = vld [vmem:[%s16519_s1 + $0x1e0] sm:$0xf0]  ;;  %v9163_v16 = vld [vmem:[%s16519_s1 + $0x1c8] sm:$0xf] }
  0x31   :  { %846 = vperm.xlu0 %11855, %v668_v45   ;;  %v9136_v7 = vor.u32 %v11330_v2, %v9133_v3  ;;  %v11342_v17 = vld [vmem:[%s16519_s1 + $0x1e4] sm:$0xf0]  ;;  %v11338_v18 = vld [vmem:[%s16519_s1 + $0x1cc] sm:$0xf]  ;;  %v672_v24 = vld [vmem:[%s16520_s2 + $0x80] sm:$0xff] }
  0x32   :  { %v9165_v19 = vld [vmem:[%s16519_s1 + $0x1e8] sm:$0xf0]  ;;  %v9164_v22 = vor.u32 %v11342_v17, %v9163_v16  ;;  %v670_v25 = vld [vmem:[%s16520_s2 + $0x70] sm:$0xff]  ;;  %v9189_v30 = vld [vmem:[%s16519_s1 + $0x220] sm:$0xf0] }
  0x33   :  { %4486 = vmatmul.bf16.gmra.mxu0 %v8964_v62  ;;  %v11329_v62 = vld [vmem:[%s16519_s1 + $0x184] sm:$0xf]  ;;  %v9168_v23 = vor.u32 %v11338_v18, %v9165_v19  ;;  %v9195_v31 = vld [vmem:[%s16519_s1 + $0x208] sm:$0xf]  ;;  %v11346_v33 = vld [vmem:[%s16519_s1 + $0x20c] sm:$0xf] }
  0x34   :  { %4815 = vmatmul.bf16.gmra.mxu1 %v8968_v63  ;;  %v9125_v63 = vld [vmem:[%s16519_s1 + $0x1a0] sm:$0xf0]  ;;  %v11350_v32 = vld [vmem:[%s16519_s1 + $0x224] sm:$0xf0]  ;;  %v9197_v34 = vld [vmem:[%s16519_s1 + $0x228] sm:$0xf0] }
  0x35   :  { %5144 = vmatmul.bf16.gmra.mxu2 %v8972_v0  ;;  %v9131_v0 = vld [vmem:[%s16519_s1 + $0x188] sm:$0xf]  ;;  %v9128_v5 = vor.u32 %v11329_v62, %v9125_v63  ;;  %v9196_v39 = vor.u32 %v11350_v32, %v9195_v31  ;;  %v11354_v62 = vld [vmem:[%s16519_s1 + $0x24c] sm:$0xf] }
  0x36   :  { %5473 = vmatmul.bf16.gmra.mxu3 %v8976_v1  ;;  %v11334_v1 = vld [vmem:[%s16519_s1 + $0x1a4] sm:$0xf0]  ;;  %v9229_v63 = vld [vmem:[%s16519_s1 + $0x268] sm:$0xf0] }
  0x37   :  { %826 = vperm.xlu2 %11857, %v664_v44   ;;  %v9132_v6 = vor.u32 %v11334_v1, %v9131_v0  ;;  %v675_v44 = vld [vmem:[%s16520_s2 + $0x98] sm:$0xff]  ;;  %v9227_v60 = vld [vmem:[%s16519_s1 + $0x248] sm:$0xf]  ;;  %v9232_v8 = vor.u32 %v11354_v62, %v9229_v63  ;;  %v9293_v62 = vld [vmem:[%s16519_s1 + $0x2e8] sm:$0xf0] }
  0x38   :  { %851 = vperm.xlu1 %11856, %v669_v58   ;;  %v11353_v58 = vld [vmem:[%s16519_s1 + $0x244] sm:$0xf]  ;;  %v11358_v61 = vld [vmem:[%s16519_s1 + $0x264] sm:$0xf0] }
  0x39   :  { %861 = vperm.xlu0 %11855, %v671_v10  }
  0x3f   :  { %841 = vperm.xlu2 %11857, %v667_v59   ;;  %v9221_v59 = vld [vmem:[%s16519_s1 + $0x260] sm:$0xf0] }
  0x40   :  { %866 = vperm.xlu1 %11856, %v672_v24   ;;  %v9224_v3 = vor.u32 %v11353_v58, %v9221_v59  ;;  %v9285_v58 = vld [vmem:[%s16519_s1 + $0x2e0] sm:$0xf0]  ;;  %v9291_v59 = vld [vmem:[%s16519_s1 + $0x2c8] sm:$0xf] }
  0x43   :  { %4491 = vmatmul.bf16.gmra.mxu0 %v8996_v11  ;;  %v11839_v11 = vld [vmem:[%s16518_s0 + $0x170] sm:$0xff] }
  0x44   :  { %4820 = vmatmul.bf16.gmra.mxu1 %v9000_v12  ;;  %v9155_v12 = vld [vmem:[%s16519_s1 + $0x1c0] sm:$0xf] }
  0x45   :  { %5149 = vmatmul.bf16.gmra.mxu2 %v9004_v13  ;;  %v11341_v13 = vld [vmem:[%s16519_s1 + $0x1dc] sm:$0xf0]  ;;  %6119 = vmatpush.bf16.msrb.mxu1 %v11839_v11 }
  0x46   :  { %5478 = vmatmul.bf16.gmra.mxu3 %v9008_v14  ;;  %v11337_v14 = vld [vmem:[%s16519_s1 + $0x1c4] sm:$0xf]  ;;  %v9156_v20 = vor.u32 %v11341_v13, %v9155_v12  ;;  %v677_v12 = vld [vmem:[%s16520_s2 + $0xa8] sm:$0xff] }
  0x47   :  { %v9160_v21 = vor.u32 %v11337_v14, %v9157_v15  ;;  %856 = vperm.xlu2 %11857, %v670_v25   ;;  %v11361_v25 = vld [vmem:[%s16519_s1 + $0x284] sm:$0xf] }
  0x48   :  { %881 = vperm.xlu1 %11856, %v675_v44  }
  0x53   :  { %4496 = vmatmul.bf16.gmra.mxu0 %v9028_v26  ;;  %v9187_v26 = vld [vmem:[%s16519_s1 + $0x200] sm:$0xf] }
  0x54   :  { %4825 = vmatmul.bf16.gmra.mxu1 %v9032_v27  ;;  %v11349_v27 = vld [vmem:[%s16519_s1 + $0x21c] sm:$0xf0] }
  0x55   :  { %5154 = vmatmul.bf16.gmra.mxu2 %v9036_v28  ;;  %v9188_v35 = vor.u32 %v11349_v27, %v9187_v26  ;;  %v9253_v26 = vld [vmem:[%s16519_s1 + $0x2a0] sm:$0xf0]  ;;  %v9259_v27 = vld [vmem:[%s16519_s1 + $0x288] sm:$0xf] }
  0x56   :  { %5483 = vmatmul.bf16.gmra.mxu3 %v9040_v29  ;;  %v11345_v29 = vld [vmem:[%s16519_s1 + $0x204] sm:$0xf] }
  0x57   :  { %v9192_v36 = vor.u32 %v11345_v29, %v9189_v30  ;;  %v11362_v29 = vld [vmem:[%s16519_s1 + $0x28c] sm:$0xf] }
  0x58   :  { %v9261_v30 = vld [vmem:[%s16519_s1 + $0x2a8] sm:$0xf0] }
  0x63   :  { %4501 = vmatmul.bf16.gmra.mxu0 %v9060_v40  ;;  %v9200_v40 = vor.u32 %v11346_v33, %v9197_v34  ;;  %v9256_v34 = vor.u32 %v11361_v25, %v9253_v26  ;;  %v9315_v25 = vld [vmem:[%s16519_s1 + $0x300] sm:$0xf] }
  0x64   :  { %4830 = vmatmul.bf16.gmra.mxu1 %v9064_v41  ;;  %v674_v41 = vld [vmem:[%s16520_s2 + $0x90] sm:$0xff]  ;;  %v11381_v26 = vld [vmem:[%s16519_s1 + $0x31c] sm:$0xf0] }
  0x65   :  { %5159 = vmatmul.bf16.gmra.mxu2 %v9068_v42  ;;  %876 = vperm.xlu0 %11855, %v674_v41  }
  0x66   :  { %5488 = vmatmul.bf16.gmra.mxu3 %v9072_v43 }
  0x6d   :  { %891 = vperm.xlu0 %11855, %v677_v12  }
  0x73   :  { %4506 = vmatmul.bf16.gmra.mxu0 %v9092_v54  ;;  %v9219_v54 = vld [vmem:[%s16519_s1 + $0x240] sm:$0xf] }
  0x74   :  { %4835 = vmatmul.bf16.gmra.mxu1 %v9096_v55  ;;  %v11357_v55 = vld [vmem:[%s16519_s1 + $0x25c] sm:$0xf0] }
  0x75   :  { %5164 = vmatmul.bf16.gmra.mxu2 %v9100_v56  ;;  %v673_v56 = vld [vmem:[%s16520_s2 + $0x88] sm:$0xff]  ;;  %v9220_v2 = vor.u32 %v11357_v55, %v9219_v54  ;;  %v9283_v55 = vld [vmem:[%s16519_s1 + $0x2c0] sm:$0xf] }
  0x76   :  { %5493 = vmatmul.bf16.gmra.mxu3 %v9104_v57  ;;  %871 = vperm.xlu2 %11857, %v673_v56   ;;  %v11373_v56 = vld [vmem:[%s16519_s1 + $0x2dc] sm:$0xf0] }
  0x7e   :  { %v787_v28 = vpop.permute.xlu0 %786 }
  0x81   :  { %v807_v24 = vpop.permute.xlu2 %806 }
  0x83   :  { %4511 = vmatmul.bf16.gmra.mxu0 %v9124_v4 }
  0x84   :  { %4840 = vmatmul.bf16.gmra.mxu1 %v9128_v5 }
  0x85   :  { %5169 = vmatmul.bf16.gmra.mxu2 %v9132_v6 }
  0x86   :  { %5498 = vmatmul.bf16.gmra.mxu3 %v9136_v7  ;;  %v9228_v7 = vor.u32 %v11358_v61, %v9227_v60  ;;  %v11374_v60 = vld [vmem:[%s16519_s1 + $0x2e4] sm:$0xf0]  ;;  %v11370_v61 = vld [vmem:[%s16519_s1 + $0x2cc] sm:$0xf] }
  0x87   :  { %v792_v45 = vpop.permute.xlu0 %791 }
  0x89   :  { %v797_v57 = vpop.permute.xlu1 %796  ;;  %v812_v44 = vpop.permute.xlu2 %811 }
  0x92   :  { %v802_v13 = vpop.permute.xlu1 %801 }
  0x93   :  { %4516 = vmatmul.bf16.gmra.mxu0 %v9156_v20  ;;  %v817_v63 = vpop.permute.xlu0 %816 }
  0x94   :  { %4845 = vmatmul.bf16.gmra.mxu1 %v9160_v21 }
  0x95   :  { %5174 = vmatmul.bf16.gmra.mxu2 %v9164_v22  ;;  %v9251_v22 = vld [vmem:[%s16519_s1 + $0x280] sm:$0xf] }
  0x96   :  { %5503 = vmatmul.bf16.gmra.mxu3 %v9168_v23  ;;  %v11365_v23 = vld [vmem:[%s16519_s1 + $0x29c] sm:$0xf0] }
  0x97   :  { %v9252_v33 = vor.u32 %v11365_v23, %v9251_v22 }
  0xa0   :  { %v4482_v37 = vpop.f32.mrf.mxu0 }
  0xa1   :  { %v4811_v38 = vpop.f32.mrf.mxu1  ;;  %v4483_v42 = vadd.f32 %v4482_v37, %v787_v28  ;;  %v11366_v28 = vld [vmem:[%s16519_s1 + $0x2a4] sm:$0xf0] }
  0xa3   :  { %v4812_v43 = vadd.f32 %v4811_v38, %v4483_v42  ;;  %4521 = vmatmul.bf16.gmra.mxu0 %v9188_v35  ;;  %v9260_v38 = vor.u32 %v11366_v28, %v9259_v27  ;;  %v679_v27 = vld [vmem:[%s16520_s2 + $0xb8] sm:$0xff]  ;;  %v11377_v28 = vld [vmem:[%s16519_s1 + $0x304] sm:$0xf] }
  0xa4   :  { %4850 = vmatmul.bf16.gmra.mxu1 %v9192_v36 }
  0xa5   :  { %5179 = vmatmul.bf16.gmra.mxu2 %v9196_v39  ;;  %v9264_v39 = vor.u32 %v11362_v29, %v9261_v30  ;;  %v9317_v29 = vld [vmem:[%s16519_s1 + $0x320] sm:$0xf0]  ;;  %v9323_v30 = vld [vmem:[%s16519_s1 + $0x308] sm:$0xf] }
  0xa6   :  { %5508 = vmatmul.bf16.gmra.mxu3 %v9200_v40  ;;  %v678_v40 = vld [vmem:[%s16520_s2 + $0xb0] sm:$0xff] }
  0xa7   :  { %896 = vperm.xlu1 %11856, %v678_v40  }
  0xa8   :  { %v5140_v46 = vpop.f32.mrf.mxu2  ;;  %v4484_v49 = vpop.f32.mrf.mxu0 }
  0xa9   :  { %v5469_v47 = vpop.f32.mrf.mxu3  ;;  %v5141_v48 = vadd.f32 %v5140_v46, %v4812_v43  ;;  %v4813_v50 = vpop.f32.mrf.mxu1  ;;  %v4485_v51 = vadd.f32 %v4484_v49, %v792_v45 }
  0xab   :  { %v12309_v52 = vadd.f32 %v5469_v47, %v5141_v48  ;;  %v4814_v53 = vadd.f32 %v4813_v50, %v4485_v51  ;;  %v676_v50 = vld [vmem:[%s16520_s2 + $0xa0] sm:$0xff] }
  0xac   :  { %886 = vperm.xlu2 %11857, %v676_v50  }
  0xb0   :  { %v5142_v0 = vpop.f32.mrf.mxu2  ;;  %v4487_v5 = vpop.f32.mrf.mxu0 }
  0xb1   :  { %v5471_v1 = vpop.f32.mrf.mxu3  ;;  %v5143_v4 = vadd.f32 %v5142_v0, %v4814_v53  ;;  %v4816_v6 = vpop.f32.mrf.mxu1  ;;  %v4488_v9 = vadd.f32 %v4487_v5, %v797_v57  ;;  %v11369_v57 = vld [vmem:[%s16519_s1 + $0x2c4] sm:$0xf] }
  0xb3   :  { %v12338_v10 = vadd.f32 %v5471_v1, %v5143_v4  ;;  %v4817_v11 = vadd.f32 %v4816_v6, %v4488_v9  ;;  %4526 = vmatmul.bf16.gmra.mxu0 %v9220_v2  ;;  %v9284_v2 = vor.u32 %v11373_v56, %v9283_v55  ;;  %v680_v9 = vld [vmem:[%s16520_s2 + $0xc0] sm:$0xff] }
  0xb4   :  { %4855 = vmatmul.bf16.gmra.mxu1 %v9224_v3  ;;  %v9288_v3 = vor.u32 %v11369_v57, %v9285_v58  ;;  %906 = vperm.xlu0 %11855, %v680_v9  }
  0xb5   :  { %5184 = vmatmul.bf16.gmra.mxu2 %v9228_v7  ;;  %v9292_v7 = vor.u32 %v11374_v60, %v9291_v59  ;;  %901 = vperm.xlu2 %11857, %v679_v27   ;;  %v9347_v60 = vld [vmem:[%s16519_s1 + $0x340] sm:$0xf] }
  0xb6   :  { %5513 = vmatmul.bf16.gmra.mxu3 %v9232_v8  ;;  %v9296_v8 = vor.u32 %v11370_v61, %v9293_v62  ;;  %v11389_v61 = vld [vmem:[%s16519_s1 + $0x35c] sm:$0xf0]  ;;  %v11385_v62 = vld [vmem:[%s16519_s1 + $0x344] sm:$0xf] }
  0xb8   :  { %v5145_v14 = vpop.f32.mrf.mxu2  ;;  %v4489_v17 = vpop.f32.mrf.mxu0 }
  0xb9   :  { %v5474_v15 = vpop.f32.mrf.mxu3  ;;  %v5146_v16 = vadd.f32 %v5145_v14, %v4817_v11  ;;  %v4818_v18 = vpop.f32.mrf.mxu1  ;;  %v4490_v19 = vadd.f32 %v4489_v17, %v802_v13  ;;  %v681_v14 = vld [vmem:[%s16520_s2 + $0xc8] sm:$0xff] }
  0xba   :  { %911 = vperm.xlu1 %11856, %v681_v14  }
  0xbb   :  { %v12343_v20 = vadd.f32 %v5474_v15, %v5146_v16  ;;  %v4819_v21 = vadd.f32 %v4818_v18, %v4490_v19  ;;  %v822_v15 = vpop.permute.xlu1 %821 }
  0xc0   :  { %v5147_v31 = vpop.f32.mrf.mxu2  ;;  %v4492_v36 = vpop.f32.mrf.mxu0 }
  0xc1   :  { %v5476_v32 = vpop.f32.mrf.mxu3  ;;  %v5148_v35 = vadd.f32 %v5147_v31, %v4819_v21  ;;  %v4821_v37 = vpop.f32.mrf.mxu1  ;;  %v4493_v41 = vadd.f32 %v4492_v36, %v807_v24  ;;  %v11382_v31 = vld [vmem:[%s16519_s1 + $0x324] sm:$0xf0] }
  0xc3   :  { %v12372_v42 = vadd.f32 %v5476_v32, %v5148_v35  ;;  %v4822_v43 = vadd.f32 %v4821_v37, %v4493_v41  ;;  %4531 = vmatmul.bf16.gmra.mxu0 %v9252_v33  ;;  %v11378_v32 = vld [vmem:[%s16519_s1 + $0x30c] sm:$0xf]  ;;  %v9316_v37 = vor.u32 %v11381_v26, %v9315_v25 }
  0xc4   :  { %4860 = vmatmul.bf16.gmra.mxu1 %v9256_v34  ;;  %v9325_v33 = vld [vmem:[%s16519_s1 + $0x328] sm:$0xf0]  ;;  %v827_v34 = vpop.permute.xlu2 %826 }
  0xc5   :  { %5189 = vmatmul.bf16.gmra.mxu2 %v9260_v38  ;;  %v9320_v38 = vor.u32 %v11377_v28, %v9317_v29  ;;  %v682_v28 = vld [vmem:[%s16520_s2 + $0xd0] sm:$0xff] }
  0xc6   :  { %5518 = vmatmul.bf16.gmra.mxu3 %v9264_v39  ;;  %916 = vperm.xlu2 %11857, %v682_v28  }
  0xc8   :  { %v5150_v45 = vpop.f32.mrf.mxu2  ;;  %v4494_v48 = vpop.f32.mrf.mxu0 }
  0xc9   :  { %v5479_v46 = vpop.f32.mrf.mxu3  ;;  %v5151_v47 = vadd.f32 %v5150_v45, %v4822_v43  ;;  %v4823_v49 = vpop.f32.mrf.mxu1  ;;  %v4495_v51 = vadd.f32 %v4494_v48, %v812_v44  ;;  %v9324_v43 = vor.u32 %v11382_v31, %v9323_v30  ;;  %v9328_v44 = vor.u32 %v11378_v32, %v9325_v33  ;;  %v683_v48 = vld [vmem:[%s16520_s2 + $0xd8] sm:$0xff]  ;;  %v9379_v32 = vld [vmem:[%s16519_s1 + $0x380] sm:$0xf] }
  0xca   :  { %921 = vperm.xlu0 %11855, %v683_v48   ;;  %v11397_v33 = vld [vmem:[%s16519_s1 + $0x39c] sm:$0xf0] }
  0xcb   :  { %v12377_v53 = vadd.f32 %v5479_v46, %v5151_v47  ;;  %v4824_v54 = vadd.f32 %v4823_v49, %v4495_v51  ;;  %v832_v49 = vpop.permute.xlu0 %831 }
  0xd0   :  { %v5152_v0 = vpop.f32.mrf.mxu2  ;;  %v4497_v5 = vpop.f32.mrf.mxu0 }
  0xd1   :  { %v5481_v1 = vpop.f32.mrf.mxu3  ;;  %v5153_v4 = vadd.f32 %v5152_v0, %v4824_v54  ;;  %v4826_v6 = vpop.f32.mrf.mxu1  ;;  %v4498_v11 = vadd.f32 %v4497_v5, %v817_v63  ;;  %v9349_v63 = vld [vmem:[%s16519_s1 + $0x360] sm:$0xf0]  ;;  %v9355_v0 = vld [vmem:[%s16519_s1 + $0x348] sm:$0xf] }
  0xd3   :  { %v12406_v12 = vadd.f32 %v5481_v1, %v5153_v4  ;;  %4536 = vmatmul.bf16.gmra.mxu0 %v9284_v2  ;;  %v4827_v13 = vadd.f32 %v4826_v6, %v4498_v11  ;;  %v11390_v1 = vld [vmem:[%s16519_s1 + $0x364] sm:$0xf0]  ;;  %v11386_v2 = vld [vmem:[%s16519_s1 + $0x34c] sm:$0xf]  ;;  %v837_v4 = vpop.permute.xlu1 %836 }
  0xd4   :  { %4865 = vmatmul.bf16.gmra.mxu1 %v9288_v3  ;;  %v9357_v3 = vld [vmem:[%s16519_s1 + $0x368] sm:$0xf0]  ;;  %v9356_v14 = vor.u32 %v11390_v1, %v9355_v0 }
  0xd5   :  { %5194 = vmatmul.bf16.gmra.mxu2 %v9292_v7  ;;  %v9348_v7 = vor.u32 %v11389_v61, %v9347_v60  ;;  %v11830_v60 = vld [vmem:[%s16518_s0 + $0x128] sm:$0xff]  ;;  %v11851_v61 = vld [vmem:[%s16518_s0 + $0x1d0] sm:$0xff] }
  0xd6   :  { %5523 = vmatmul.bf16.gmra.mxu3 %v9296_v8  ;;  %v9352_v8 = vor.u32 %v11385_v62, %v9349_v63  ;;  %v687_v62 = vld [vmem:[%s16520_s2 + $0xf8] sm:$0xff]  ;;  %5791 = vmatpush.bf16.msrb.mxu0 %v11830_v60  ;;  %v9453_v60 = vld [vmem:[%s16519_s1 + $0x428] sm:$0xf0] }
  0xd7   :  { %6781 = vmatpush.bf16.msrb.mxu3 %v11851_v61 }
  0xd8   :  { %v5155_v16 = vpop.f32.mrf.mxu2  ;;  %v4499_v19 = vpop.f32.mrf.mxu0 }
  0xd9   :  { %v5484_v17 = vpop.f32.mrf.mxu3  ;;  %v5156_v18 = vadd.f32 %v5155_v16, %v4827_v13  ;;  %v4828_v21 = vpop.f32.mrf.mxu1  ;;  %v4500_v22 = vadd.f32 %v4499_v19, %v822_v15  ;;  %v9360_v15 = vor.u32 %v11386_v2, %v9357_v3  ;;  %v684_v16 = vld [vmem:[%s16520_s2 + $0xe0] sm:$0xff] }
  0xda   :  { %926 = vperm.xlu1 %11856, %v684_v16   ;;  %v9419_v16 = vld [vmem:[%s16519_s1 + $0x3c8] sm:$0xf] }
  0xdb   :  { %v12411_v23 = vadd.f32 %v5484_v17, %v5156_v18  ;;  %v4829_v24 = vadd.f32 %v4828_v21, %v4500_v22  ;;  %v842_v21 = vpop.permute.xlu2 %841  ;;  %v852_v63 = vpop.permute.xlu1 %851 }
  0xe0   :  { %v5157_v35 = vpop.f32.mrf.mxu2  ;;  %v4502_v40 = vpop.f32.mrf.mxu0 }
  0xe1   :  { %v5486_v36 = vpop.f32.mrf.mxu3  ;;  %v5158_v39 = vadd.f32 %v5157_v35, %v4829_v24  ;;  %v4831_v41 = vpop.f32.mrf.mxu1  ;;  %v4503_v45 = vadd.f32 %v4502_v40, %v827_v34  ;;  %v11393_v34 = vld [vmem:[%s16519_s1 + $0x384] sm:$0xf] }
  0xe2   :  { %v9381_v35 = vld [vmem:[%s16519_s1 + $0x3a0] sm:$0xf0]  ;;  %v847_v40 = vpop.permute.xlu0 %846  ;;  %941 = vperm.xlu1 %11856, %v687_v62  }
  0xe3   :  { %v12440_v46 = vadd.f32 %v5486_v36, %v5158_v39  ;;  %4541 = vmatmul.bf16.gmra.mxu0 %v9316_v37  ;;  %v4832_v47 = vadd.f32 %v4831_v41, %v4503_v45  ;;  %v9387_v36 = vld [vmem:[%s16519_s1 + $0x388] sm:$0xf]  ;;  %v9389_v39 = vld [vmem:[%s16519_s1 + $0x3a8] sm:$0xf0]  ;;  %v9384_v45 = vor.u32 %v11393_v34, %v9381_v35  ;;  %v867_v61 = vpop.permute.xlu1 %866 }
  0xe4   :  { %4870 = vmatmul.bf16.gmra.mxu1 %v9320_v38  ;;  %v11398_v37 = vld [vmem:[%s16519_s1 + $0x3a4] sm:$0xf0]  ;;  %v11394_v38 = vld [vmem:[%s16519_s1 + $0x38c] sm:$0xf] }
  0xe5   :  { %5199 = vmatmul.bf16.gmra.mxu2 %v9324_v43 }
  0xe6   :  { %5528 = vmatmul.bf16.gmra.mxu3 %v9328_v44  ;;  %v9380_v44 = vor.u32 %v11397_v33, %v9379_v32 }
  0xe8   :  { %v5160_v50 = vpop.f32.mrf.mxu2  ;;  %v4504_v55 = vpop.f32.mrf.mxu0 }
  0xe9   :  { %v5489_v51 = vpop.f32.mrf.mxu3  ;;  %v5161_v54 = vadd.f32 %v5160_v50, %v4832_v47  ;;  %v4833_v56 = vpop.f32.mrf.mxu1  ;;  %v4505_v57 = vadd.f32 %v4504_v55, %v832_v49  ;;  %v9388_v50 = vor.u32 %v11398_v37, %v9387_v36  ;;  %v689_v37 = vld [vmem:[%s16520_s2 + $0x108] sm:$0xff] }
  0xeb   :  { %v12445_v58 = vadd.f32 %v5489_v51, %v5161_v54  ;;  %v4834_v59 = vadd.f32 %v4833_v56, %v4505_v57  ;;  %v9392_v51 = vor.u32 %v11394_v38, %v9389_v39  ;;  %v686_v54 = vld [vmem:[%s16520_s2 + $0xf0] sm:$0xff]  ;;  %v862_v38 = vpop.permute.xlu0 %861 }
  0xec   :  { %936 = vperm.xlu0 %11855, %v686_v54   ;;  %v9445_v54 = vld [vmem:[%s16519_s1 + $0x420] sm:$0xf0] }
  0xf0   :  { %v5162_v5 = vpop.f32.mrf.mxu2  ;;  %v4507_v11 = vpop.f32.mrf.mxu0 }
  0xf1   :  { %v5491_v6 = vpop.f32.mrf.mxu3  ;;  %v5163_v9 = vadd.f32 %v5162_v5, %v4834_v59  ;;  %v4836_v13 = vpop.f32.mrf.mxu1  ;;  %v4508_v17 = vadd.f32 %v4507_v11, %v837_v4  ;;  %v11846_v59 = vld [vmem:[%s16518_s0 + $0x1a8] sm:$0xff]  ;;  %v11405_v11 = vld [vmem:[%s16519_s1 + $0x3dc] sm:$0xf0] }
  0xf2   :  { %6449 = vmatpush.bf16.msrb.mxu2 %v11846_v59  ;;  %v11410_v59 = vld [vmem:[%s16519_s1 + $0x40c] sm:$0xf] }
  0xf3   :  { %v12474_v18 = vadd.f32 %v5491_v6, %v5163_v9  ;;  %4546 = vmatmul.bf16.gmra.mxu0 %v9348_v7  ;;  %v4837_v19 = vadd.f32 %v4836_v13, %v4508_v17  ;;  %v11838_v7 = vld [vmem:[%s16518_s0 + $0x168] sm:$0xff]  ;;  %v9411_v9 = vld [vmem:[%s16519_s1 + $0x3c0] sm:$0xf] }
  0xf4   :  { %4875 = vmatmul.bf16.gmra.mxu1 %v9352_v8  ;;  %v685_v13 = vld [vmem:[%s16520_s2 + $0xe8] sm:$0xff]  ;;  %951 = vperm.xlu0 %11855, %v689_v37   ;;  %v877_v37 = vpop.permute.xlu0 %876 }
  0xf5   :  { %5204 = vmatmul.bf16.gmra.mxu2 %v9356_v14  ;;  %v11401_v14 = vld [vmem:[%s16519_s1 + $0x3c4] sm:$0xf]  ;;  %6120 = vmatpush.bf16.msrb.mxu1 %v11838_v7  ;;  %v11406_v17 = vld [vmem:[%s16519_s1 + $0x3e4] sm:$0xf0]  ;;  %v9456_v7 = vor.u32 %v11410_v59, %v9453_v60  ;;  %v882_v59 = vpop.permute.xlu1 %881 }
  0xf6   :  { %5533 = vmatmul.bf16.gmra.mxu3 %v9360_v15  ;;  %v9413_v15 = vld [vmem:[%s16519_s1 + $0x3e0] sm:$0xf0]  ;;  %931 = vperm.xlu2 %11857, %v685_v13   ;;  %v9420_v32 = vor.u32 %v11406_v17, %v9419_v16 }
  0xf8   :  { %v5165_v22 = vpop.f32.mrf.mxu2  ;;  %v4509_v26 = vpop.f32.mrf.mxu0 }
  0xf9   :  { %v5494_v24 = vpop.f32.mrf.mxu3  ;;  %v5166_v25 = vadd.f32 %v5165_v22, %v4837_v19  ;;  %v4838_v27 = vpop.f32.mrf.mxu1  ;;  %v4510_v29 = vadd.f32 %v4509_v26, %v842_v21  ;;  %v11402_v19 = vld [vmem:[%s16519_s1 + $0x3cc] sm:$0xf]  ;;  %v9412_v26 = vor.u32 %v11405_v11, %v9411_v9 }
  0xfa   :  { %v9421_v21 = vld [vmem:[%s16519_s1 + $0x3e8] sm:$0xf0]  ;;  %v857_v22 = vpop.permute.xlu2 %856 }
  0xfb   :  { %v12479_v30 = vadd.f32 %v5494_v24, %v5166_v25  ;;  %v4839_v31 = vadd.f32 %v4838_v27, %v4510_v29  ;;  %v9416_v27 = vor.u32 %v11401_v14, %v9413_v15  ;;  %v9424_v33 = vor.u32 %v11402_v19, %v9421_v21 }
 0x100   :  { %v5167_v41 = vpop.f32.mrf.mxu2  ;;  %v4512_v48 = vpop.f32.mrf.mxu0 }
 0x101   :  { %v5496_v43 = vpop.f32.mrf.mxu3  ;;  %v5168_v47 = vadd.f32 %v5167_v41, %v4839_v31  ;;  %v4841_v49 = vpop.f32.mrf.mxu1  ;;  %v4513_v55 = vadd.f32 %v4512_v48, %v847_v40 }
 0x102   :  { %v872_v14 = vpop.permute.xlu2 %871 }
 0x103   :  { %v12508_v56 = vadd.f32 %v5496_v43, %v5168_v47  ;;  %4551 = vmatmul.bf16.gmra.mxu0 %v9380_v44  ;;  %v4842_v57 = vadd.f32 %v4841_v49, %v4513_v55  ;;  %v9443_v49 = vld [vmem:[%s16519_s1 + $0x400] sm:$0xf]  ;;  %v9451_v55 = vld [vmem:[%s16519_s1 + $0x408] sm:$0xf] }
 0x104   :  { %4880 = vmatmul.bf16.gmra.mxu1 %v9384_v45 }
 0x105   :  { %5209 = vmatmul.bf16.gmra.mxu2 %v9388_v50  ;;  %v11413_v50 = vld [vmem:[%s16519_s1 + $0x41c] sm:$0xf0] }
 0x106   :  { %5538 = vmatmul.bf16.gmra.mxu3 %v9392_v51  ;;  %v11409_v51 = vld [vmem:[%s16519_s1 + $0x404] sm:$0xf] }
 0x108   :  { %v5170_v0 = vpop.f32.mrf.mxu2  ;;  %v4514_v3 = vpop.f32.mrf.mxu0 }
 0x109   :  { %v5499_v1 = vpop.f32.mrf.mxu3  ;;  %v5171_v2 = vadd.f32 %v5170_v0, %v4842_v57  ;;  %v4843_v4 = vpop.f32.mrf.mxu1  ;;  %v4515_v5 = vadd.f32 %v4514_v3, %v852_v63  ;;  %v11414_v57 = vld [vmem:[%s16519_s1 + $0x424] sm:$0xf0]  ;;  %v9444_v0 = vor.u32 %v11413_v50, %v9443_v49  ;;  %v692_v50 = vld [vmem:[%s16520_s2 + $0x120] sm:$0xff] }
 0x10a   :  { %966 = vperm.xlu0 %11855, %v692_v50   ;;  %v11437_v50 = vld [vmem:[%s16519_s1 + $0x4dc] sm:$0xf0] }
 0x10b   :  { %v12522_v6 = vadd.f32 %v5499_v1, %v5171_v2  ;;  %v4844_v8 = vadd.f32 %v4843_v4, %v4515_v5  ;;  %v9448_v1 = vor.u32 %v11409_v51, %v9445_v54  ;;  %v9452_v5 = vor.u32 %v11414_v57, %v9451_v55  ;;  %v693_v57 = vld [vmem:[%s16520_s2 + $0x128] sm:$0xff] }
 0x110   :  { %v5172_v24 = vpop.f32.mrf.mxu2  ;;  %v4517_v29 = vpop.f32.mrf.mxu0 }
 0x111   :  { %v5501_v25 = vpop.f32.mrf.mxu3  ;;  %v5173_v28 = vadd.f32 %v5172_v24, %v4844_v8  ;;  %v4846_v31 = vpop.f32.mrf.mxu1  ;;  %v4518_v34 = vadd.f32 %v4517_v29, %v857_v22  ;;  %v690_v8 = vld [vmem:[%s16520_s2 + $0x110] sm:$0xff]  ;;  %v688_v22 = vld [vmem:[%s16520_s2 + $0x100] sm:$0xff] }
 0x112   :  { %956 = vperm.xlu1 %11856, %v690_v8   ;;  %946 = vperm.xlu2 %11857, %v688_v22   ;;  %v11417_v29 = vld [vmem:[%s16519_s1 + $0x444] sm:$0xf] }
 0x113   :  { %v12554_v35 = vadd.f32 %v5501_v25, %v5173_v28  ;;  %4556 = vmatmul.bf16.gmra.mxu0 %v9412_v26  ;;  %v4847_v36 = vadd.f32 %v4846_v31, %v4518_v34  ;;  %v11421_v28 = vld [vmem:[%s16519_s1 + $0x45c] sm:$0xf0]  ;;  %v9477_v31 = vld [vmem:[%s16519_s1 + $0x460] sm:$0xf0]  ;;  %v11418_v34 = vld [vmem:[%s16519_s1 + $0x44c] sm:$0xf] }
 0x114   :  { %4885 = vmatmul.bf16.gmra.mxu1 %v9416_v27  ;;  %v9475_v27 = vld [vmem:[%s16519_s1 + $0x440] sm:$0xf]  ;;  %v11425_v8 = vld [vmem:[%s16519_s1 + $0x484] sm:$0xf] }
 0x115   :  { %5214 = vmatmul.bf16.gmra.mxu2 %v9420_v32  ;;  %v9483_v32 = vld [vmem:[%s16519_s1 + $0x448] sm:$0xf] }
 0x116   :  { %5543 = vmatmul.bf16.gmra.mxu3 %v9424_v33  ;;  %v11422_v33 = vld [vmem:[%s16519_s1 + $0x464] sm:$0xf0] }
 0x118   :  { %v5175_v39 = vpop.f32.mrf.mxu2  ;;  %v4519_v43 = vpop.f32.mrf.mxu0 }
 0x119   :  { %v5504_v40 = vpop.f32.mrf.mxu3  ;;  %v5176_v41 = vadd.f32 %v5175_v39, %v4847_v36  ;;  %v4848_v44 = vpop.f32.mrf.mxu1  ;;  %v4520_v45 = vadd.f32 %v4519_v43, %v862_v38  ;;  %v9485_v36 = vld [vmem:[%s16519_s1 + $0x468] sm:$0xf0] }
 0x11a   :  { %v9488_v49 = vor.u32 %v11418_v34, %v9485_v36  ;;  %971 = vperm.xlu1 %11856, %v693_v57   ;;  %v695_v36 = vld [vmem:[%s16520_s2 + $0x138] sm:$0xff]  ;;  %v9547_v57 = vld [vmem:[%s16519_s1 + $0x4c8] sm:$0xf] }
 0x11b   :  { %v12559_v47 = vadd.f32 %v5504_v40, %v5176_v41  ;;  %v4849_v48 = vadd.f32 %v4848_v44, %v4520_v45  ;;  %v9476_v40 = vor.u32 %v11421_v28, %v9475_v27  ;;  %v9480_v41 = vor.u32 %v11417_v29, %v9477_v31  ;;  %981 = vperm.xlu0 %11855, %v695_v36   ;;  %v11441_v36 = vld [vmem:[%s16519_s1 + $0x504] sm:$0xf] }
 0x120   :  { %v5177_v62 = vpop.f32.mrf.mxu2  ;;  %v4522_v3 = vpop.f32.mrf.mxu0 }
 0x121   :  { %v5506_v63 = vpop.f32.mrf.mxu3  ;;  %v5178_v2 = vadd.f32 %v5177_v62, %v4849_v48  ;;  %v4851_v4 = vpop.f32.mrf.mxu1  ;;  %v4523_v9 = vadd.f32 %v4522_v3, %v867_v61  ;;  %v9484_v48 = vor.u32 %v11422_v33, %v9483_v32 }
 0x123   :  { %v12588_v11 = vadd.f32 %v5506_v63, %v5178_v2  ;;  %4561 = vmatmul.bf16.gmra.mxu0 %v9444_v0  ;;  %v4852_v13 = vadd.f32 %v4851_v4, %v4523_v9  ;;  %v9507_v4 = vld [vmem:[%s16519_s1 + $0x480] sm:$0xf]  ;;  %v9509_v9 = vld [vmem:[%s16519_s1 + $0x4a0] sm:$0xf0] }
 0x124   :  { %4890 = vmatmul.bf16.gmra.mxu1 %v9448_v1 }
 0x125   :  { %5219 = vmatmul.bf16.gmra.mxu2 %v9452_v5  ;;  %v11429_v5 = vld [vmem:[%s16519_s1 + $0x49c] sm:$0xf0] }
 0x126   :  { %5548 = vmatmul.bf16.gmra.mxu3 %v9456_v7  ;;  %v691_v7 = vld [vmem:[%s16520_s2 + $0x118] sm:$0xff]  ;;  %v9508_v22 = vor.u32 %v11429_v5, %v9507_v4 }
 0x127   :  { %961 = vperm.xlu2 %11857, %v691_v7  }
 0x128   :  { %v5180_v15 = vpop.f32.mrf.mxu2  ;;  %v4524_v19 = vpop.f32.mrf.mxu0 }
 0x129   :  { %v5509_v16 = vpop.f32.mrf.mxu3  ;;  %v5181_v17 = vadd.f32 %v5180_v15, %v4852_v13  ;;  %v4853_v21 = vpop.f32.mrf.mxu1  ;;  %v4525_v24 = vadd.f32 %v4524_v19, %v872_v14  ;;  %v9515_v13 = vld [vmem:[%s16519_s1 + $0x488] sm:$0xf]  ;;  %v11426_v15 = vld [vmem:[%s16519_s1 + $0x48c] sm:$0xf] }
 0x12a   :  { %v11430_v14 = vld [vmem:[%s16519_s1 + $0x4a4] sm:$0xf0] }
 0x12b   :  { %v12593_v25 = vadd.f32 %v5509_v16, %v5181_v17  ;;  %v4854_v26 = vadd.f32 %v4853_v21, %v4525_v24  ;;  %v9517_v16 = vld [vmem:[%s16519_s1 + $0x4a8] sm:$0xf0]  ;;  %v887_v17 = vpop.permute.xlu2 %886  ;;  %v9512_v24 = vor.u32 %v11425_v8, %v9509_v9  ;;  %v9516_v29 = vor.u32 %v11430_v14, %v9515_v13  ;;  %v696_v13 = vld [vmem:[%s16520_s2 + $0x140] sm:$0xff] }
 0x12c   :  { %v9520_v31 = vor.u32 %v11426_v15, %v9517_v16  ;;  %986 = vperm.xlu1 %11856, %v696_v13  }
 0x130   :  { %v5182_v38 = vpop.f32.mrf.mxu2  ;;  %v4527_v44 = vpop.f32.mrf.mxu0 }
 0x131   :  { %v5511_v39 = vpop.f32.mrf.mxu3  ;;  %v5183_v43 = vadd.f32 %v5182_v38, %v4854_v26  ;;  %v4856_v45 = vpop.f32.mrf.mxu1  ;;  %v4528_v51 = vadd.f32 %v4527_v44, %v877_v37 }
 0x132   :  { %v892_v37 = vpop.permute.xlu0 %891 }
 0x133   :  { %v12622_v54 = vadd.f32 %v5511_v39, %v5183_v43  ;;  %4566 = vmatmul.bf16.gmra.mxu0 %v9476_v40  ;;  %v4857_v55 = vadd.f32 %v4856_v45, %v4528_v51  ;;  %v11433_v51 = vld [vmem:[%s16519_s1 + $0x4c4] sm:$0xf] }
 0x134   :  { %4895 = vmatmul.bf16.gmra.mxu1 %v9480_v41 }
 0x135   :  { %5224 = vmatmul.bf16.gmra.mxu2 %v9484_v48 }
 0x136   :  { %5553 = vmatmul.bf16.gmra.mxu3 %v9488_v49  ;;  %v9539_v49 = vld [vmem:[%s16519_s1 + $0x4c0] sm:$0xf] }
 0x138   :  { %v5185_v60 = vpop.f32.mrf.mxu2  ;;  %v4529_v63 = vpop.f32.mrf.mxu0 }
 0x139   :  { %v5514_v61 = vpop.f32.mrf.mxu3  ;;  %v5186_v62 = vadd.f32 %v5185_v60, %v4857_v55  ;;  %v4858_v0 = vpop.f32.mrf.mxu1  ;;  %v4530_v1 = vadd.f32 %v4529_v63, %v882_v59  ;;  %v9541_v55 = vld [vmem:[%s16519_s1 + $0x4e0] sm:$0xf0]  ;;  %v11438_v59 = vld [vmem:[%s16519_s1 + $0x4e4] sm:$0xf0]  ;;  %v11434_v60 = vld [vmem:[%s16519_s1 + $0x4cc] sm:$0xf] }
 0x13a   :  { %v9548_v8 = vor.u32 %v11438_v59, %v9547_v57 }
 0x13b   :  { %v12627_v2 = vadd.f32 %v5514_v61, %v5186_v62  ;;  %v4859_v3 = vadd.f32 %v4858_v0, %v4530_v1  ;;  %v9549_v61 = vld [vmem:[%s16519_s1 + $0x4e8] sm:$0xf0]  ;;  %v897_v62 = vpop.permute.xlu1 %896  ;;  %v9540_v1 = vor.u32 %v11437_v50, %v9539_v49 }
 0x13c   :  { %v9552_v9 = vor.u32 %v11434_v60, %v9549_v61  ;;  %v698_v61 = vld [vmem:[%s16520_s2 + $0x150] sm:$0xff] }
 0x13d   :  { %996 = vperm.xlu0 %11855, %v698_v61  }
 0x140   :  { %v5187_v19 = vpop.f32.mrf.mxu2  ;;  %v4532_v27 = vpop.f32.mrf.mxu0 }
 0x141   :  { %v5516_v21 = vpop.f32.mrf.mxu3  ;;  %v5188_v26 = vadd.f32 %v5187_v19, %v4859_v3  ;;  %v4861_v28 = vpop.f32.mrf.mxu1  ;;  %v4533_v32 = vadd.f32 %v4532_v27, %v887_v17  ;;  %v9544_v3 = vor.u32 %v11433_v51, %v9541_v55  ;;  %v694_v27 = vld [vmem:[%s16520_s2 + $0x130] sm:$0xff] }
 0x142   :  { %v902_v17 = vpop.permute.xlu2 %901  ;;  %976 = vperm.xlu2 %11857, %v694_v27   ;;  %v11454_v27 = vld [vmem:[%s16519_s1 + $0x564] sm:$0xf0] }
 0x143   :  { %v12656_v33 = vadd.f32 %v5516_v21, %v5188_v26  ;;  %4571 = vmatmul.bf16.gmra.mxu0 %v9508_v22  ;;  %v4862_v34 = vadd.f32 %v4861_v28, %v4533_v32  ;;  %v9571_v32 = vld [vmem:[%s16519_s1 + $0x500] sm:$0xf] }
 0x144   :  { %4900 = vmatmul.bf16.gmra.mxu1 %v9512_v24 }
 0x145   :  { %5229 = vmatmul.bf16.gmra.mxu2 %v9516_v29 }
 0x146   :  { %5558 = vmatmul.bf16.gmra.mxu3 %v9520_v31 }
 0x148   :  { %v5190_v38 = vpop.f32.mrf.mxu2  ;;  %v4534_v41 = vpop.f32.mrf.mxu0 }
 0x149   :  { %v5519_v39 = vpop.f32.mrf.mxu3  ;;  %v5191_v40 = vadd.f32 %v5190_v38, %v4862_v34  ;;  %v4863_v43 = vpop.f32.mrf.mxu1  ;;  %v4535_v44 = vadd.f32 %v4534_v41, %v892_v37  ;;  %v11445_v34 = vld [vmem:[%s16519_s1 + $0x51c] sm:$0xf0]  ;;  %v9573_v37 = vld [vmem:[%s16519_s1 + $0x520] sm:$0xf0]  ;;  %v9579_v38 = vld [vmem:[%s16519_s1 + $0x508] sm:$0xf] }
 0x14a   :  { %v9581_v41 = vld [vmem:[%s16519_s1 + $0x528] sm:$0xf0]  ;;  %v9572_v49 = vor.u32 %v11445_v34, %v9571_v32  ;;  %v9576_v50 = vor.u32 %v11441_v36, %v9573_v37  ;;  %v917_v32 = vpop.permute.xlu2 %916 }
 0x14b   :  { %v12661_v45 = vadd.f32 %v5519_v39, %v5191_v40  ;;  %v4864_v48 = vadd.f32 %v4863_v43, %v4535_v44  ;;  %v11446_v39 = vld [vmem:[%s16519_s1 + $0x524] sm:$0xf0]  ;;  %v11442_v40 = vld [vmem:[%s16519_s1 + $0x50c] sm:$0xf]  ;;  %v907_v43 = vpop.permute.xlu0 %906 }
 0x14c   :  { %v9580_v59 = vor.u32 %v11446_v39, %v9579_v38  ;;  %v9584_v60 = vor.u32 %v11442_v40, %v9581_v41 }
 0x150   :  { %v5192_v63 = vpop.f32.mrf.mxu2  ;;  %v4537_v5 = vpop.f32.mrf.mxu0 }
 0x151   :  { %v5521_v0 = vpop.f32.mrf.mxu3  ;;  %v5193_v4 = vadd.f32 %v5192_v63, %v4864_v48  ;;  %v4866_v7 = vpop.f32.mrf.mxu1  ;;  %v4538_v14 = vadd.f32 %v4537_v5, %v897_v62 }
 0x153   :  { %v12690_v15 = vadd.f32 %v5521_v0, %v5193_v4  ;;  %4576 = vmatmul.bf16.gmra.mxu0 %v9540_v1  ;;  %v4867_v16 = vadd.f32 %v4866_v7, %v4538_v14  ;;  %v699_v1 = vld [vmem:[%s16520_s2 + $0x158] sm:$0xff] }
 0x154   :  { %4905 = vmatmul.bf16.gmra.mxu1 %v9544_v3  ;;  %1001 = vperm.xlu1 %11856, %v699_v1   ;;  %v912_v3 = vpop.permute.xlu1 %911 }
 0x155   :  { %5234 = vmatmul.bf16.gmra.mxu2 %v9548_v8 }
 0x156   :  { %5563 = vmatmul.bf16.gmra.mxu3 %v9552_v9 }
 0x158   :  { %v5195_v19 = vpop.f32.mrf.mxu2  ;;  %v4539_v24 = vpop.f32.mrf.mxu0 }
 0x159   :  { %v5524_v21 = vpop.f32.mrf.mxu3  ;;  %v5196_v22 = vadd.f32 %v5195_v19, %v4867_v16  ;;  %v4868_v26 = vpop.f32.mrf.mxu1  ;;  %v4540_v28 = vadd.f32 %v4539_v24, %v902_v17  ;;  %v9603_v17 = vld [vmem:[%s16519_s1 + $0x540] sm:$0xf]  ;;  %v9605_v24 = vld [vmem:[%s16519_s1 + $0x560] sm:$0xf0] }
 0x15a   :  { %v11453_v19 = vld [vmem:[%s16519_s1 + $0x55c] sm:$0xf0] }
 0x15b   :  { %v12695_v29 = vadd.f32 %v5524_v21, %v5196_v22  ;;  %v4869_v31 = vadd.f32 %v4868_v26, %v4540_v28  ;;  %v697_v21 = vld [vmem:[%s16520_s2 + $0x148] sm:$0xff]  ;;  %v11449_v22 = vld [vmem:[%s16519_s1 + $0x544] sm:$0xf]  ;;  %v9604_v37 = vor.u32 %v11453_v19, %v9603_v17 }
 0x15c   :  { %v9611_v26 = vld [vmem:[%s16519_s1 + $0x548] sm:$0xf]  ;;  %991 = vperm.xlu2 %11857, %v697_v21   ;;  %v11450_v28 = vld [vmem:[%s16519_s1 + $0x54c] sm:$0xf]  ;;  %v9608_v38 = vor.u32 %v11449_v22, %v9605_v24  ;;  %v927_v19 = vpop.permute.xlu1 %926 }
 0x15d   :  { %v9645_v17 = vld [vmem:[%s16519_s1 + $0x5a8] sm:$0xf0] }
 0x160   :  { %v5197_v44 = vpop.f32.mrf.mxu2  ;;  %v4542_v55 = vpop.f32.mrf.mxu0 }
 0x161   :  { %v5526_v48 = vpop.f32.mrf.mxu3  ;;  %v5198_v51 = vadd.f32 %v5197_v44, %v4869_v31  ;;  %v4871_v57 = vpop.f32.mrf.mxu1  ;;  %v4543_v62 = vadd.f32 %v4542_v55, %v907_v43  ;;  %v9613_v31 = vld [vmem:[%s16519_s1 + $0x568] sm:$0xf0]  ;;  %v9612_v43 = vor.u32 %v11454_v27, %v9611_v26 }
 0x162   :  { %v9616_v44 = vor.u32 %v11450_v28, %v9613_v31  ;;  %v922_v55 = vpop.permute.xlu0 %921 }
 0x163   :  { %v12724_v63 = vadd.f32 %v5526_v48, %v5198_v51  ;;  %4581 = vmatmul.bf16.gmra.mxu0 %v9572_v49  ;;  %v4872_v0 = vadd.f32 %v4871_v57, %v4543_v62  ;;  %v701_v51 = vld [vmem:[%s16520_s2 + $0x168] sm:$0xff] }
 0x164   :  { %4910 = vmatmul.bf16.gmra.mxu1 %v9576_v50  ;;  %1011 = vperm.xlu0 %11855, %v701_v51  }
 0x165   :  { %5239 = vmatmul.bf16.gmra.mxu2 %v9580_v59 }
 0x166   :  { %5568 = vmatmul.bf16.gmra.mxu3 %v9584_v60 }
 0x168   :  { %v5200_v4 = vpop.f32.mrf.mxu2  ;;  %v4544_v8 = vpop.f32.mrf.mxu0 }
 0x169   :  { %v5529_v5 = vpop.f32.mrf.mxu3  ;;  %v5201_v7 = vadd.f32 %v5200_v4, %v4872_v0  ;;  %v4873_v9 = vpop.f32.mrf.mxu1  ;;  %v4545_v13 = vadd.f32 %v4544_v8, %v912_v3  ;;  %v9635_v4 = vld [vmem:[%s16519_s1 + $0x580] sm:$0xf]  ;;  %v9637_v8 = vld [vmem:[%s16519_s1 + $0x5a0] sm:$0xf0] }
 0x16b   :  { %v12729_v14 = vadd.f32 %v5529_v5, %v5201_v7  ;;  %v4874_v16 = vadd.f32 %v4873_v9, %v4545_v13  ;;  %v11461_v5 = vld [vmem:[%s16519_s1 + $0x59c] sm:$0xf0]  ;;  %v11457_v7 = vld [vmem:[%s16519_s1 + $0x584] sm:$0xf]  ;;  %v9643_v9 = vld [vmem:[%s16519_s1 + $0x588] sm:$0xf] }
 0x16c   :  { %v11462_v13 = vld [vmem:[%s16519_s1 + $0x5a4] sm:$0xf0]  ;;  %v9636_v24 = vor.u32 %v11461_v5, %v9635_v4  ;;  %v9640_v26 = vor.u32 %v11457_v7, %v9637_v8  ;;  %v11465_v4 = vld [vmem:[%s16519_s1 + $0x5c4] sm:$0xf] }
 0x16d   :  { %v9669_v5 = vld [vmem:[%s16519_s1 + $0x5e0] sm:$0xf0]  ;;  %v9675_v7 = vld [vmem:[%s16519_s1 + $0x5c8] sm:$0xf] }
 0x16e   :  { %v11470_v8 = vld [vmem:[%s16519_s1 + $0x5e4] sm:$0xf0] }
 0x170   :  { %v5202_v34 = vpop.f32.mrf.mxu2  ;;  %v4547_v40 = vpop.f32.mrf.mxu0 }
 0x171   :  { %v5531_v36 = vpop.f32.mrf.mxu3  ;;  %v5203_v39 = vadd.f32 %v5202_v34, %v4874_v16  ;;  %v4876_v41 = vpop.f32.mrf.mxu1  ;;  %v4548_v48 = vadd.f32 %v4547_v40, %v917_v32  ;;  %v11458_v16 = vld [vmem:[%s16519_s1 + $0x58c] sm:$0xf]  ;;  %v9644_v32 = vor.u32 %v11462_v13, %v9643_v9  ;;  %v11845_v40 = vld [vmem:[%s16518_s0 + $0x1a0] sm:$0xff] }
 0x172   :  { %v9648_v34 = vor.u32 %v11458_v16, %v9645_v17  ;;  %6450 = vmatpush.bf16.msrb.mxu2 %v11845_v40  ;;  %v11466_v9 = vld [vmem:[%s16519_s1 + $0x5cc] sm:$0xf]  ;;  %v937_v16 = vpop.permute.xlu0 %936  ;;  %v942_v40 = vpop.permute.xlu1 %941 }
 0x173   :  { %v12758_v49 = vadd.f32 %v5531_v36, %v5203_v39  ;;  %4586 = vmatmul.bf16.gmra.mxu0 %v9604_v37  ;;  %v4877_v50 = vadd.f32 %v4876_v41, %v4548_v48  ;;  %v702_v36 = vld [vmem:[%s16520_s2 + $0x170] sm:$0xff]  ;;  %v11829_v41 = vld [vmem:[%s16518_s0 + $0x120] sm:$0xff]  ;;  %v9677_v13 = vld [vmem:[%s16519_s1 + $0x5e8] sm:$0xf0] }
 0x174   :  { %4915 = vmatmul.bf16.gmra.mxu1 %v9608_v38  ;;  %1016 = vperm.xlu1 %11856, %v702_v36  }
 0x175   :  { %5244 = vmatmul.bf16.gmra.mxu2 %v9612_v43  ;;  %v932_v43 = vpop.permute.xlu2 %931  ;;  %5792 = vmatpush.bf16.msrb.mxu0 %v11829_v41 }
 0x176   :  { %5573 = vmatmul.bf16.gmra.mxu3 %v9616_v44 }
 0x178   :  { %v5205_v57 = vpop.f32.mrf.mxu2  ;;  %v4549_v61 = vpop.f32.mrf.mxu0 }
 0x179   :  { %v5534_v59 = vpop.f32.mrf.mxu3  ;;  %v5206_v60 = vadd.f32 %v5205_v57, %v4877_v50  ;;  %v4878_v62 = vpop.f32.mrf.mxu1  ;;  %v4550_v0 = vadd.f32 %v4549_v61, %v922_v55  ;;  %v700_v57 = vld [vmem:[%s16520_s2 + $0x160] sm:$0xff] }
 0x17a   :  { %1006 = vperm.xlu2 %11857, %v700_v57   ;;  %v11837_v61 = vld [vmem:[%s16518_s0 + $0x160] sm:$0xff] }
 0x17b   :  { %v12763_v1 = vadd.f32 %v5534_v59, %v5206_v60  ;;  %v4879_v3 = vadd.f32 %v4878_v62, %v4550_v0  ;;  %v9667_v0 = vld [vmem:[%s16519_s1 + $0x5c0] sm:$0xf]  ;;  %6121 = vmatpush.bf16.msrb.mxu1 %v11837_v61 }
 0x17c   :  { %v11477_v61 = vld [vmem:[%s16519_s1 + $0x61c] sm:$0xf0] }
 0x180   :  { %v5207_v21 = vpop.f32.mrf.mxu2  ;;  %v4552_v28 = vpop.f32.mrf.mxu0 }
 0x181   :  { %v5536_v22 = vpop.f32.mrf.mxu3  ;;  %v5208_v27 = vadd.f32 %v5207_v21, %v4879_v3  ;;  %v4881_v31 = vpop.f32.mrf.mxu1  ;;  %v4553_v37 = vadd.f32 %v4552_v28, %v927_v19  ;;  %v11469_v3 = vld [vmem:[%s16519_s1 + $0x5dc] sm:$0xf0]  ;;  %v9676_v28 = vor.u32 %v11470_v8, %v9675_v7  ;;  %v11474_v7 = vld [vmem:[%s16519_s1 + $0x60c] sm:$0xf] }
 0x182   :  { %v9668_v21 = vor.u32 %v11469_v3, %v9667_v0  ;;  %v11473_v0 = vld [vmem:[%s16519_s1 + $0x604] sm:$0xf]  ;;  %v9709_v8 = vld [vmem:[%s16519_s1 + $0x628] sm:$0xf0] }
 0x183   :  { %v12792_v38 = vadd.f32 %v5536_v22, %v5208_v27  ;;  %4591 = vmatmul.bf16.gmra.mxu0 %v9636_v24  ;;  %v4882_v39 = vadd.f32 %v4881_v31, %v4553_v37  ;;  %v9672_v22 = vor.u32 %v11465_v4, %v9669_v5  ;;  %v9680_v31 = vor.u32 %v11466_v9, %v9677_v13  ;;  %v9701_v3 = vld [vmem:[%s16519_s1 + $0x620] sm:$0xf0]  ;;  %v9707_v4 = vld [vmem:[%s16519_s1 + $0x608] sm:$0xf]  ;;  %v947_v9 = vpop.permute.xlu2 %946 }
 0x184   :  { %4920 = vmatmul.bf16.gmra.mxu1 %v9640_v26  ;;  %v11478_v5 = vld [vmem:[%s16519_s1 + $0x624] sm:$0xf0] }
 0x185   :  { %5249 = vmatmul.bf16.gmra.mxu2 %v9644_v32  ;;  %v704_v32 = vld [vmem:[%s16520_s2 + $0x180] sm:$0xff] }
 0x186   :  { %5578 = vmatmul.bf16.gmra.mxu3 %v9648_v34  ;;  %1026 = vperm.xlu0 %11855, %v704_v32  }
 0x188   :  { %v5210_v44 = vpop.f32.mrf.mxu2  ;;  %v4554_v51 = vpop.f32.mrf.mxu0 }
 0x189   :  { %v5539_v48 = vpop.f32.mrf.mxu3  ;;  %v5211_v50 = vadd.f32 %v5210_v44, %v4882_v39  ;;  %v4883_v55 = vpop.f32.mrf.mxu1  ;;  %v4555_v59 = vadd.f32 %v4554_v51, %v932_v43  ;;  %v705_v39 = vld [vmem:[%s16520_s2 + $0x188] sm:$0xff] }
 0x18a   :  { %1031 = vperm.xlu1 %11856, %v705_v39  }
 0x18b   :  { %v12803_v60 = vadd.f32 %v5539_v48, %v5211_v50  ;;  %v4884_v62 = vadd.f32 %v4883_v55, %v4555_v59  ;;  %v9699_v59 = vld [vmem:[%s16519_s1 + $0x600] sm:$0xf] }
 0x190   :  { %v5212_v17 = vpop.f32.mrf.mxu2  ;;  %v4557_v26 = vpop.f32.mrf.mxu0 }
 0x191   :  { %v5541_v19 = vpop.f32.mrf.mxu3  ;;  %v5213_v24 = vadd.f32 %v5212_v17, %v4884_v62  ;;  %v4886_v27 = vpop.f32.mrf.mxu1  ;;  %v4558_v34 = vadd.f32 %v4557_v26, %v937_v16  ;;  %v703_v62 = vld [vmem:[%s16520_s2 + $0x178] sm:$0xff]  ;;  %v9700_v17 = vor.u32 %v11477_v61, %v9699_v59  ;;  %v9708_v26 = vor.u32 %v11478_v5, %v9707_v4  ;;  %v11485_v59 = vld [vmem:[%s16519_s1 + $0x65c] sm:$0xf0]  ;;  %v11481_v61 = vld [vmem:[%s16519_s1 + $0x644] sm:$0xf] }
 0x192   :  { %1021 = vperm.xlu2 %11857, %v703_v62   ;;  %v9733_v62 = vld [vmem:[%s16519_s1 + $0x660] sm:$0xf0]  ;;  %v11482_v4 = vld [vmem:[%s16519_s1 + $0x64c] sm:$0xf] }
 0x193   :  { %v12835_v36 = vadd.f32 %v5541_v19, %v5213_v24  ;;  %4596 = vmatmul.bf16.gmra.mxu0 %v9668_v21  ;;  %v4887_v37 = vadd.f32 %v4886_v27, %v4558_v34  ;;  %v9704_v19 = vor.u32 %v11473_v0, %v9701_v3  ;;  %v9712_v27 = vor.u32 %v11474_v7, %v9709_v8  ;;  %v707_v34 = vld [vmem:[%s16520_s2 + $0x198] sm:$0xff]  ;;  %v9739_v0 = vld [vmem:[%s16519_s1 + $0x648] sm:$0xf]  ;;  %v9741_v5 = vld [vmem:[%s16519_s1 + $0x668] sm:$0xf0]  ;;  %v957_v7 = vpop.permute.xlu1 %956 }
 0x194   :  { %4925 = vmatmul.bf16.gmra.mxu1 %v9672_v22  ;;  %1041 = vperm.xlu0 %11855, %v707_v34   ;;  %v11486_v3 = vld [vmem:[%s16519_s1 + $0x664] sm:$0xf0]  ;;  %v962_v34 = vpop.permute.xlu2 %961 }
 0x195   :  { %5254 = vmatmul.bf16.gmra.mxu2 %v9676_v28 }
 0x196   :  { %5583 = vmatmul.bf16.gmra.mxu3 %v9680_v31 }
 0x198   :  { %v5215_v41 = vpop.f32.mrf.mxu2  ;;  %v4559_v48 = vpop.f32.mrf.mxu0 }
 0x199   :  { %v5544_v43 = vpop.f32.mrf.mxu3  ;;  %v5216_v44 = vadd.f32 %v5215_v41, %v4887_v37  ;;  %v4888_v50 = vpop.f32.mrf.mxu1  ;;  %v4560_v51 = vadd.f32 %v4559_v48, %v942_v40 }
 0x19a   :  { %v952_v37 = vpop.permute.xlu0 %951 }
 0x19b   :  { %v12840_v55 = vadd.f32 %v5544_v43, %v5216_v44  ;;  %v4889_v57 = vadd.f32 %v4888_v50, %v4560_v51 }
 0x1a0   :  { %v5217_v13 = vpop.f32.mrf.mxu2  ;;  %v4562_v22 = vpop.f32.mrf.mxu0 }
 0x1a1   :  { %v5546_v16 = vpop.f32.mrf.mxu3  ;;  %v5218_v21 = vadd.f32 %v5217_v13, %v4889_v57  ;;  %v4891_v24 = vpop.f32.mrf.mxu1  ;;  %v4563_v28 = vadd.f32 %v4562_v22, %v947_v9  ;;  %v9731_v57 = vld [vmem:[%s16519_s1 + $0x640] sm:$0xf]  ;;  %v9740_v22 = vor.u32 %v11486_v3, %v9739_v0  ;;  %v9765_v0 = vld [vmem:[%s16519_s1 + $0x6a0] sm:$0xf0]  ;;  %v9771_v3 = vld [vmem:[%s16519_s1 + $0x688] sm:$0xf] }
 0x1a2   :  { %v9732_v13 = vor.u32 %v11485_v59, %v9731_v57  ;;  %v9763_v59 = vld [vmem:[%s16519_s1 + $0x680] sm:$0xf] }
 0x1a3   :  { %v12869_v31 = vadd.f32 %v5546_v16, %v5218_v21  ;;  %4601 = vmatmul.bf16.gmra.mxu0 %v9700_v17  ;;  %v4892_v32 = vadd.f32 %v4891_v24, %v4563_v28  ;;  %v9736_v16 = vor.u32 %v11481_v61, %v9733_v62  ;;  %v9744_v24 = vor.u32 %v11482_v4, %v9741_v5  ;;  %v11493_v61 = vld [vmem:[%s16519_s1 + $0x69c] sm:$0xf0]  ;;  %v11489_v62 = vld [vmem:[%s16519_s1 + $0x684] sm:$0xf]  ;;  %v11494_v4 = vld [vmem:[%s16519_s1 + $0x6a4] sm:$0xf0] }
 0x1a4   :  { %4930 = vmatmul.bf16.gmra.mxu1 %v9704_v19  ;;  %v11490_v5 = vld [vmem:[%s16519_s1 + $0x68c] sm:$0xf] }
 0x1a5   :  { %5259 = vmatmul.bf16.gmra.mxu2 %v9708_v26  ;;  %v708_v26 = vld [vmem:[%s16520_s2 + $0x1a0] sm:$0xff] }
 0x1a6   :  { %5588 = vmatmul.bf16.gmra.mxu3 %v9712_v27  ;;  %1046 = vperm.xlu1 %11856, %v708_v26  }
 0x1a8   :  { %v5220_v39 = vpop.f32.mrf.mxu2  ;;  %v4564_v43 = vpop.f32.mrf.mxu0 }
 0x1a9   :  { %v5549_v40 = vpop.f32.mrf.mxu3  ;;  %v5221_v41 = vadd.f32 %v5220_v39, %v4892_v32  ;;  %v4893_v44 = vpop.f32.mrf.mxu1  ;;  %v4565_v48 = vadd.f32 %v4564_v43, %v952_v37 }
 0x1ab   :  { %v12874_v50 = vadd.f32 %v5549_v40, %v5221_v41  ;;  %v4894_v51 = vadd.f32 %v4893_v44, %v4565_v48  ;;  %v706_v44 = vld [vmem:[%s16520_s2 + $0x190] sm:$0xff] }
 0x1ac   :  { %1036 = vperm.xlu2 %11857, %v706_v44  }
 0x1b0   :  { %v5222_v8 = vpop.f32.mrf.mxu2  ;;  %v4567_v19 = vpop.f32.mrf.mxu0 }
 0x1b1   :  { %v5551_v9 = vpop.f32.mrf.mxu3  ;;  %v5223_v17 = vadd.f32 %v5222_v8, %v4894_v51  ;;  %v4896_v21 = vpop.f32.mrf.mxu1  ;;  %v4568_v27 = vadd.f32 %v4567_v19, %v957_v7  ;;  %v9773_v7 = vld [vmem:[%s16519_s1 + $0x6a8] sm:$0xf0] }
 0x1b2   :  { %v967_v8 = vpop.permute.xlu0 %966  ;;  %v9776_v26 = vor.u32 %v11490_v5, %v9773_v7  ;;  %v11497_v5 = vld [vmem:[%s16519_s1 + $0x6c4] sm:$0xf] }
 0x1b3   :  { %v12903_v28 = vadd.f32 %v5551_v9, %v5223_v17  ;;  %4606 = vmatmul.bf16.gmra.mxu0 %v9732_v13  ;;  %v4897_v32 = vadd.f32 %v4896_v21, %v4568_v27  ;;  %v9768_v17 = vor.u32 %v11489_v62, %v9765_v0  ;;  %v710_v27 = vld [vmem:[%s16520_s2 + $0x1b0] sm:$0xff]  ;;  %v9795_v0 = vld [vmem:[%s16519_s1 + $0x6c0] sm:$0xf]  ;;  %v9797_v7 = vld [vmem:[%s16519_s1 + $0x6e0] sm:$0xf0] }
 0x1b4   :  { %4935 = vmatmul.bf16.gmra.mxu1 %v9736_v16  ;;  %v9764_v16 = vor.u32 %v11493_v61, %v9763_v59  ;;  %1056 = vperm.xlu0 %11855, %v710_v27  }
 0x1b5   :  { %5264 = vmatmul.bf16.gmra.mxu2 %v9740_v22 }
 0x1b6   :  { %5593 = vmatmul.bf16.gmra.mxu3 %v9744_v24  ;;  %v9772_v24 = vor.u32 %v11494_v4, %v9771_v3  ;;  %v11501_v3 = vld [vmem:[%s16519_s1 + $0x6dc] sm:$0xf0]  ;;  %v709_v4 = vld [vmem:[%s16520_s2 + $0x1a8] sm:$0xff] }
 0x1b7   :  { %1051 = vperm.xlu2 %11857, %v709_v4  }
 0x1b8   :  { %v5225_v37 = vpop.f32.mrf.mxu2  ;;  %v4569_v41 = vpop.f32.mrf.mxu0 }
 0x1b9   :  { %v5554_v39 = vpop.f32.mrf.mxu3  ;;  %v5226_v40 = vadd.f32 %v5225_v37, %v4897_v32  ;;  %v4898_v43 = vpop.f32.mrf.mxu1  ;;  %v4570_v48 = vadd.f32 %v4569_v41, %v962_v34 }
 0x1bb   :  { %v12908_v51 = vadd.f32 %v5554_v39, %v5226_v40  ;;  %v4899_v57 = vadd.f32 %v4898_v43, %v4570_v48  ;;  %v711_v39 = vld [vmem:[%s16520_s2 + $0x1b8] sm:$0xff]  ;;  %v972_v40 = vpop.permute.xlu1 %971 }
 0x1bc   :  { %1061 = vperm.xlu1 %11856, %v711_v39  }
 0x1c0   :  { %v5227_v9 = vpop.f32.mrf.mxu2  ;;  %v4572_v21 = vpop.f32.mrf.mxu0 }
 0x1c1   :  { %v5556_v13 = vpop.f32.mrf.mxu3  ;;  %v5228_v19 = vadd.f32 %v5227_v9, %v4899_v57  ;;  %v4901_v22 = vpop.f32.mrf.mxu1  ;;  %v4573_v32 = vadd.f32 %v4572_v21, %v967_v8  ;;  %v9803_v8 = vld [vmem:[%s16519_s1 + $0x6c8] sm:$0xf] }
 0x1c2   :  { %v11502_v9 = vld [vmem:[%s16519_s1 + $0x6e4] sm:$0xf0] }
 0x1c3   :  { %v12937_v34 = vadd.f32 %v5556_v13, %v5228_v19  ;;  %4611 = vmatmul.bf16.gmra.mxu0 %v9764_v16  ;;  %v4902_v37 = vadd.f32 %v4901_v22, %v4573_v32  ;;  %v11498_v13 = vld [vmem:[%s16519_s1 + $0x6cc] sm:$0xf]  ;;  %v9796_v22 = vor.u32 %v11501_v3, %v9795_v0 }
 0x1c4   :  { %4940 = vmatmul.bf16.gmra.mxu1 %v9768_v17  ;;  %v9805_v16 = vld [vmem:[%s16519_s1 + $0x6e8] sm:$0xf0]  ;;  %v977_v17 = vpop.permute.xlu2 %976 }
 0x1c5   :  { %5269 = vmatmul.bf16.gmra.mxu2 %v9772_v24  ;;  %v9800_v24 = vor.u32 %v11497_v5, %v9797_v7  ;;  %v9808_v39 = vor.u32 %v11498_v13, %v9805_v16  ;;  %v11505_v13 = vld [vmem:[%s16519_s1 + $0x704] sm:$0xf] }
 0x1c6   :  { %5598 = vmatmul.bf16.gmra.mxu3 %v9776_v26  ;;  %v9829_v16 = vld [vmem:[%s16519_s1 + $0x720] sm:$0xf0] }
 0x1c8   :  { %v5230_v41 = vpop.f32.mrf.mxu2  ;;  %v4574_v48 = vpop.f32.mrf.mxu0 }
 0x1c9   :  { %v5559_v43 = vpop.f32.mrf.mxu3  ;;  %v5231_v44 = vadd.f32 %v5230_v41, %v4902_v37  ;;  %v4903_v57 = vpop.f32.mrf.mxu1  ;;  %v4575_v59 = vadd.f32 %v4574_v48, %v972_v40  ;;  %v9804_v37 = vor.u32 %v11502_v9, %v9803_v8  ;;  %v9827_v8 = vld [vmem:[%s16519_s1 + $0x700] sm:$0xf] }
 0x1ca   :  { %v982_v48 = vpop.permute.xlu0 %981  ;;  %v11509_v9 = vld [vmem:[%s16519_s1 + $0x71c] sm:$0xf0] }
 0x1cb   :  { %v12942_v61 = vadd.f32 %v5559_v43, %v5231_v44  ;;  %v4904_v62 = vadd.f32 %v4903_v57, %v4575_v59  ;;  %v713_v44 = vld [vmem:[%s16520_s2 + $0x1c8] sm:$0xff] }
 0x1cc   :  { %1071 = vperm.xlu0 %11855, %v713_v44  }
 0x1d0   :  { %v5232_v19 = vpop.f32.mrf.mxu2  ;;  %v4577_v27 = vpop.f32.mrf.mxu0 }
 0x1d1   :  { %v5561_v21 = vpop.f32.mrf.mxu3  ;;  %v5233_v26 = vadd.f32 %v5232_v19, %v4904_v62  ;;  %v4906_v32 = vpop.f32.mrf.mxu1  ;;  %v4578_v40 = vadd.f32 %v4577_v27, %v977_v17  ;;  %v9835_v17 = vld [vmem:[%s16519_s1 + $0x708] sm:$0xf] }
 0x1d2   :  { %v11510_v19 = vld [vmem:[%s16519_s1 + $0x724] sm:$0xf0] }
 0x1d3   :  { %v12971_v41 = vadd.f32 %v5561_v21, %v5233_v26  ;;  %4616 = vmatmul.bf16.gmra.mxu0 %v9796_v22  ;;  %v4907_v43 = vadd.f32 %v4906_v32, %v4578_v40  ;;  %v11506_v21 = vld [vmem:[%s16519_s1 + $0x70c] sm:$0xf]  ;;  %v9828_v32 = vor.u32 %v11509_v9, %v9827_v8  ;;  %v9836_v44 = vor.u32 %v11510_v19, %v9835_v17 }
 0x1d4   :  { %4945 = vmatmul.bf16.gmra.mxu1 %v9800_v24  ;;  %v9837_v22 = vld [vmem:[%s16519_s1 + $0x728] sm:$0xf0]  ;;  %v987_v24 = vpop.permute.xlu1 %986 }
 0x1d5   :  { %16524 = vst [vmem:[#allocation6_spill] sm:$0xff] %v12971_v41  ;;  %5274 = vmatmul.bf16.gmra.mxu2 %v9804_v37  ;;  %v9832_v37 = vor.u32 %v11505_v13, %v9829_v16  ;;  %v712_v16 = vld [vmem:[%s16520_s2 + $0x1c0] sm:$0xff] }
 0x1d6   :  { %5603 = vmatmul.bf16.gmra.mxu3 %v9808_v39  ;;  %1066 = vperm.xlu2 %11857, %v712_v16  }
 0x1d8   :  { %v5235_v57 = vpop.f32.mrf.mxu2  ;;  %v4579_v0 = vpop.f32.mrf.mxu0 }
 0x1d9   :  { %v5564_v59 = vpop.f32.mrf.mxu3  ;;  %v5236_v62 = vadd.f32 %v5235_v57, %v4907_v43  ;;  %v4908_v3 = vpop.f32.mrf.mxu1  ;;  %v4580_v4 = vadd.f32 %v4579_v0, %v982_v48  ;;  %v9840_v48 = vor.u32 %v11506_v21, %v9837_v22  ;;  %v714_v57 = vld [vmem:[%s16520_s2 + $0x1d0] sm:$0xff]  ;;  %v9859_v22 = vld [vmem:[%s16519_s1 + $0x740] sm:$0xf] }
 0x1da   :  { %1076 = vperm.xlu1 %11856, %v714_v57  }
 0x1db   :  { %v12976_v5 = vadd.f32 %v5564_v59, %v5236_v62  ;;  %v4909_v7 = vadd.f32 %v4908_v3, %v4580_v4  ;;  %v992_v3 = vpop.permute.xlu2 %991 }
 0x1dd   :  { %16525 = vst [vmem:[#allocation7_spill] sm:$0xff] %v12976_v5 }
 0x1e0   :  { %v5237_v26 = vpop.f32.mrf.mxu2  ;;  %v4582_v40 = vpop.f32.mrf.mxu0 }
 0x1e1   :  { %v5566_v27 = vpop.f32.mrf.mxu3  ;;  %v5238_v39 = vadd.f32 %v5237_v26, %v4909_v7  ;;  %v4911_v43 = vpop.f32.mrf.mxu1  ;;  %v4583_v59 = vadd.f32 %v4582_v40, %v987_v24  ;;  %v11517_v24 = vld [vmem:[%s16519_s1 + $0x75c] sm:$0xf0]  ;;  %v11513_v26 = vld [vmem:[%s16519_s1 + $0x744] sm:$0xf]  ;;  %v9869_v40 = vld [vmem:[%s16519_s1 + $0x768] sm:$0xf0] }
 0x1e2   :  { %v9860_v57 = vor.u32 %v11517_v24, %v9859_v22  ;;  %v1002_v22 = vpop.permute.xlu1 %1001 }
 0x1e3   :  { %v13005_v62 = vadd.f32 %v5566_v27, %v5238_v39  ;;  %4621 = vmatmul.bf16.gmra.mxu0 %v9828_v32  ;;  %v4912_v0 = vadd.f32 %v4911_v43, %v4583_v59  ;;  %v9861_v27 = vld [vmem:[%s16519_s1 + $0x760] sm:$0xf0]  ;;  %v9867_v32 = vld [vmem:[%s16519_s1 + $0x748] sm:$0xf]  ;;  %v11514_v39 = vld [vmem:[%s16519_s1 + $0x74c] sm:$0xf]  ;;  %v997_v43 = vpop.permute.xlu0 %996 }
 0x1e4   :  { %4950 = vmatmul.bf16.gmra.mxu1 %v9832_v37  ;;  %v11518_v37 = vld [vmem:[%s16519_s1 + $0x764] sm:$0xf0]  ;;  %v9864_v59 = vor.u32 %v11513_v26, %v9861_v27 }
 0x1e5   :  { %16526 = vst [vmem:[#allocation8_spill] sm:$0xff] %v13005_v62  ;;  %5279 = vmatmul.bf16.gmra.mxu2 %v9836_v44 }
 0x1e6   :  { %5608 = vmatmul.bf16.gmra.mxu3 %v9840_v48 }
 0x1e8   :  { %v5240_v4 = vpop.f32.mrf.mxu2  ;;  %v4584_v9 = vpop.f32.mrf.mxu0 }
 0x1e9   :  { %v5569_v7 = vpop.f32.mrf.mxu3  ;;  %v5241_v8 = vadd.f32 %v5240_v4, %v4912_v0  ;;  %v4913_v13 = vpop.f32.mrf.mxu1  ;;  %v4585_v17 = vadd.f32 %v4584_v9, %v992_v3  ;;  %v716_v9 = vld [vmem:[%s16520_s2 + $0x1e0] sm:$0xff] }
 0x1ea   :  { %1086 = vperm.xlu0 %11855, %v716_v9   ;;  %v1007_v9 = vpop.permute.xlu2 %1006 }
 0x1eb   :  { %v13010_v19 = vadd.f32 %v5569_v7, %v5241_v8  ;;  %v4914_v21 = vadd.f32 %v4913_v13, %v4585_v17  ;;  %v9868_v7 = vor.u32 %v11518_v37, %v9867_v32  ;;  %v9872_v8 = vor.u32 %v11514_v39, %v9869_v40 }
 0x1ed   :  { %16527 = vst [vmem:[#allocation9_spill] sm:$0xff] %v13010_v19 }
 0x1f0   :  { %v5242_v44 = vpop.f32.mrf.mxu2  ;;  %v4587_v3 = vpop.f32.mrf.mxu0 }
 0x1f1   :  { %v5571_v48 = vpop.f32.mrf.mxu3  ;;  %v5243_v0 = vadd.f32 %v5242_v44, %v4914_v21  ;;  %v4916_v4 = vpop.f32.mrf.mxu1  ;;  %v4588_v13 = vadd.f32 %v4587_v3, %v997_v43  ;;  %v717_v21 = vld [vmem:[%s16520_s2 + $0x1e8] sm:$0xff]  ;;  %v9891_v44 = vld [vmem:[%s16519_s1 + $0x780] sm:$0xf] }
 0x1f2   :  { %1091 = vperm.xlu1 %11856, %v717_v21   ;;  %v9899_v3 = vld [vmem:[%s16519_s1 + $0x788] sm:$0xf] }
 0x1f3   :  { %v13039_v16 = vadd.f32 %v5571_v48, %v5243_v0  ;;  %4626 = vmatmul.bf16.gmra.mxu0 %v9860_v57  ;;  %v4917_v17 = vadd.f32 %v4916_v4, %v4588_v13  ;;  %v11525_v48 = vld [vmem:[%s16519_s1 + $0x79c] sm:$0xf0]  ;;  %v715_v57 = vld [vmem:[%s16520_s2 + $0x1d8] sm:$0xff]  ;;  %v9893_v0 = vld [vmem:[%s16519_s1 + $0x7a0] sm:$0xf0] }
 0x1f4   :  { %4955 = vmatmul.bf16.gmra.mxu1 %v9864_v59  ;;  %v11521_v59 = vld [vmem:[%s16519_s1 + $0x784] sm:$0xf]  ;;  %1081 = vperm.xlu2 %11857, %v715_v57   ;;  %v11526_v4 = vld [vmem:[%s16519_s1 + $0x7a4] sm:$0xf0]  ;;  %v9892_v21 = vor.u32 %v11525_v48, %v9891_v44  ;;  %v719_v48 = vld [vmem:[%s16520_s2 + $0x1f8] sm:$0xff] }
 0x1f5   :  { %16528 = vst [vmem:[#allocation10_spill] sm:$0xff] %v13039_v16  ;;  %5284 = vmatmul.bf16.gmra.mxu2 %v9868_v7  ;;  %v11522_v7 = vld [vmem:[%s16519_s1 + $0x78c] sm:$0xf]  ;;  %v11844_v16 = vld [vmem:[%s16518_s0 + $0x198] sm:$0xff]  ;;  %1101 = vperm.xlu0 %11855, %v719_v48  }
 0x1f6   :  { %5613 = vmatmul.bf16.gmra.mxu3 %v9872_v8  ;;  %v9901_v8 = vld [vmem:[%s16519_s1 + $0x7a8] sm:$0xf0]  ;;  %6451 = vmatpush.bf16.msrb.mxu2 %v11844_v16  ;;  %v9923_v16 = vld [vmem:[%s16519_s1 + $0x7c0] sm:$0xf] }
 0x1f7   :  { %v11850_v44 = vld [vmem:[%s16518_s0 + $0x1c8] sm:$0xff] }
 0x1f8   :  { %v5245_v24 = vpop.f32.mrf.mxu2  ;;  %v4589_v32 = vpop.f32.mrf.mxu0  ;;  %6782 = vmatpush.bf16.msrb.mxu3 %v11850_v44 }
 0x1f9   :  { %v5574_v26 = vpop.f32.mrf.mxu3  ;;  %v5246_v27 = vadd.f32 %v5245_v24, %v4917_v17  ;;  %v4918_v37 = vpop.f32.mrf.mxu1  ;;  %v4590_v39 = vadd.f32 %v4589_v32, %v1002_v22  ;;  %v9896_v22 = vor.u32 %v11521_v59, %v9893_v0  ;;  %v9900_v32 = vor.u32 %v11526_v4, %v9899_v3 }
 0x1fa   :  { %v1012_v59 = vpop.permute.xlu0 %1011 }
 0x1fb   :  { %v13044_v40 = vadd.f32 %v5574_v26, %v5246_v27  ;;  %v4919_v43 = vadd.f32 %v4918_v37, %v4590_v39  ;;  %v9904_v37 = vor.u32 %v11522_v7, %v9901_v8 }
 0x1fd   :  { %16529 = vst [vmem:[#allocation11_spill] sm:$0xff] %v13044_v40 }
 0x200   :  { %v5247_v13 = vpop.f32.mrf.mxu2  ;;  %v4592_v26 = vpop.f32.mrf.mxu0 }
 0x201   :  { %v5576_v17 = vpop.f32.mrf.mxu3  ;;  %v5248_v24 = vadd.f32 %v5247_v13, %v4919_v43  ;;  %v4921_v27 = vpop.f32.mrf.mxu1  ;;  %v4593_v39 = vadd.f32 %v4592_v26, %v1007_v9  ;;  %v11828_v43 = vld [vmem:[%s16518_s0 + $0x118] sm:$0xff]  ;;  %v9931_v26 = vld [vmem:[%s16519_s1 + $0x7c8] sm:$0xf] }
 0x202   :  { %5793 = vmatpush.bf16.msrb.mxu0 %v11828_v43 }
 0x203   :  { %v13073_v57 = vadd.f32 %v5576_v17, %v5248_v24  ;;  %4631 = vmatmul.bf16.gmra.mxu0 %v9892_v21  ;;  %v4922_v40 = vadd.f32 %v4921_v27, %v4593_v39  ;;  %v11836_v17 = vld [vmem:[%s16518_s0 + $0x158] sm:$0xff]  ;;  %v9925_v24 = vld [vmem:[%s16519_s1 + $0x7e0] sm:$0xf0]  ;;  %v11534_v27 = vld [vmem:[%s16519_s1 + $0x7e4] sm:$0xf0]  ;;  %v1017_v39 = vpop.permute.xlu1 %1016 }
 0x204   :  { %4960 = vmatmul.bf16.gmra.mxu1 %v9896_v22  ;;  %v11533_v22 = vld [vmem:[%s16519_s1 + $0x7dc] sm:$0xf0] }
 0x205   :  { %16530 = vst [vmem:[#allocation12_spill] sm:$0xff] %v13073_v57  ;;  %5289 = vmatmul.bf16.gmra.mxu2 %v9900_v32  ;;  %6122 = vmatpush.bf16.msrb.mxu1 %v11836_v17  ;;  %v11530_v32 = vld [vmem:[%s16519_s1 + $0x7cc] sm:$0xf]  ;;  %v9924_v48 = vor.u32 %v11533_v22, %v9923_v16  ;;  %v1022_v16 = vpop.permute.xlu2 %1021 }
 0x206   :  { %5618 = vmatmul.bf16.gmra.mxu3 %v9904_v37  ;;  %v9933_v37 = vld [vmem:[%s16519_s1 + $0x7e8] sm:$0xf0] }
 0x208   :  { %v5250_v0 = vpop.f32.mrf.mxu2  ;;  %v4594_v7 = vpop.f32.mrf.mxu0 }
 0x209   :  { %v5579_v3 = vpop.f32.mrf.mxu3  ;;  %v5251_v4 = vadd.f32 %v5250_v0, %v4922_v40  ;;  %v4923_v8 = vpop.f32.mrf.mxu1  ;;  %v4595_v9 = vadd.f32 %v4594_v7, %v1012_v59  ;;  %v11529_v40 = vld [vmem:[%s16519_s1 + $0x7c4] sm:$0xf]  ;;  %v9932_v7 = vor.u32 %v11534_v27, %v9931_v26  ;;  %v718_v27 = vld [vmem:[%s16520_s2 + $0x1f0] sm:$0xff] }
 0x20a   :  { %v9928_v59 = vor.u32 %v11529_v40, %v9925_v24  ;;  %1096 = vperm.xlu2 %11857, %v718_v27   ;;  %v722_v27 = vld [vmem:[%s16520_s2 + $0x210] sm:$0xff] }
 0x20b   :  { %v13087_v13 = vadd.f32 %v5579_v3, %v5251_v4  ;;  %v4924_v21 = vadd.f32 %v4923_v8, %v4595_v9  ;;  %v9936_v8 = vor.u32 %v11530_v32, %v9933_v37  ;;  %v720_v9 = vld [vmem:[%s16520_s2 + $0x200] sm:$0xff]  ;;  %1116 = vperm.xlu0 %11855, %v722_v27  }
 0x20c   :  { %1106 = vperm.xlu1 %11856, %v720_v9  }
 0x20d   :  { %16531 = vst [vmem:[#allocation13_spill] sm:$0xff] %v13087_v13 }
 0x210   :  { %v5252_v43 = vpop.f32.mrf.mxu2  ;;  %v4597_v3 = vpop.f32.mrf.mxu0 }
 0x211   :  { %v5581_v44 = vpop.f32.mrf.mxu3  ;;  %v5253_v0 = vadd.f32 %v5252_v43, %v4924_v21  ;;  %v4926_v4 = vpop.f32.mrf.mxu1  ;;  %v4598_v17 = vadd.f32 %v4597_v3, %v1017_v39  ;;  %v9955_v43 = vld [vmem:[%s16519_s1 + $0x800] sm:$0xf]  ;;  %v11538_v3 = vld [vmem:[%s16519_s1 + $0x80c] sm:$0xf] }
 0x213   :  { %v13119_v13 = vadd.f32 %v5581_v44, %v5253_v0  ;;  %4636 = vmatmul.bf16.gmra.mxu0 %v9924_v48  ;;  %v4927_v57 = vadd.f32 %v4926_v4, %v4598_v17  ;;  %v11541_v44 = vld [vmem:[%s16519_s1 + $0x81c] sm:$0xf0]  ;;  %v9957_v48 = vld [vmem:[%s16519_s1 + $0x820] sm:$0xf0]  ;;  %v11542_v0 = vld [vmem:[%s16519_s1 + $0x824] sm:$0xf0] }
 0x214   :  { %4965 = vmatmul.bf16.gmra.mxu1 %v9928_v59  ;;  %v9963_v59 = vld [vmem:[%s16519_s1 + $0x808] sm:$0xf]  ;;  %v9965_v4 = vld [vmem:[%s16519_s1 + $0x828] sm:$0xf0]  ;;  %v9956_v17 = vor.u32 %v11541_v44, %v9955_v43  ;;  %v1032_v43 = vpop.permute.xlu1 %1031 }
 0x215   :  { %16532 = vst [vmem:[#allocation14_spill] sm:$0xff] %v13119_v13  ;;  %5294 = vmatmul.bf16.gmra.mxu2 %v9932_v7  ;;  %v1027_v7 = vpop.permute.xlu0 %1026 }
 0x216   :  { %5623 = vmatmul.bf16.gmra.mxu3 %v9936_v8 }
 0x218   :  { %v5255_v22 = vpop.f32.mrf.mxu2  ;;  %v4599_v24 = vpop.f32.mrf.mxu0 }
 0x219   :  { %v5584_v21 = vpop.f32.mrf.mxu3  ;;  %v5256_v40 = vadd.f32 %v5255_v22, %v4927_v57  ;;  %v4928_v26 = vpop.f32.mrf.mxu1  ;;  %v4600_v32 = vadd.f32 %v4599_v24, %v1022_v16  ;;  %v11537_v57 = vld [vmem:[%s16519_s1 + $0x804] sm:$0xf]  ;;  %v9964_v24 = vor.u32 %v11542_v0, %v9963_v59 }
 0x21a   :  { %v9960_v16 = vor.u32 %v11537_v57, %v9957_v48 }
 0x21b   :  { %v13124_v37 = vadd.f32 %v5584_v21, %v5256_v40  ;;  %v4929_v39 = vadd.f32 %v4928_v26, %v4600_v32  ;;  %v9968_v26 = vor.u32 %v11538_v3, %v9965_v4 }
 0x21d   :  { %16533 = vst [vmem:[#allocation15_spill] sm:$0xff] %v13124_v37 }
 0x220   :  { %v5257_v8 = vpop.f32.mrf.mxu2  ;;  %v4602_v21 = vpop.f32.mrf.mxu0 }
 0x221   :  { %v5586_v9 = vpop.f32.mrf.mxu3  ;;  %v5258_v22 = vadd.f32 %v5257_v8, %v4929_v39  ;;  %v4931_v40 = vpop.f32.mrf.mxu1  ;;  %v4603_v32 = vadd.f32 %v4602_v21, %v1027_v7  ;;  %v723_v39 = vld [vmem:[%s16520_s2 + $0x218] sm:$0xff]  ;;  %v9987_v8 = vld [vmem:[%s16519_s1 + $0x840] sm:$0xf]  ;;  %v11550_v21 = vld [vmem:[%s16519_s1 + $0x864] sm:$0xf0] }
 0x222   :  { %1121 = vperm.xlu1 %11856, %v723_v39  }
 0x223   :  { %v13153_v37 = vadd.f32 %v5586_v9, %v5258_v22  ;;  %4641 = vmatmul.bf16.gmra.mxu0 %v9956_v17  ;;  %v4932_v13 = vadd.f32 %v4931_v40, %v4603_v32  ;;  %v11549_v9 = vld [vmem:[%s16519_s1 + $0x85c] sm:$0xf0]  ;;  %v721_v17 = vld [vmem:[%s16520_s2 + $0x208] sm:$0xff] }
 0x224   :  { %4970 = vmatmul.bf16.gmra.mxu1 %v9960_v16  ;;  %v9989_v16 = vld [vmem:[%s16519_s1 + $0x860] sm:$0xf0]  ;;  %v9995_v22 = vld [vmem:[%s16519_s1 + $0x848] sm:$0xf]  ;;  %1111 = vperm.xlu2 %11857, %v721_v17   ;;  %v11546_v40 = vld [vmem:[%s16519_s1 + $0x84c] sm:$0xf]  ;;  %v9988_v39 = vor.u32 %v11549_v9, %v9987_v8  ;;  %v1042_v8 = vpop.permute.xlu0 %1041 }
 0x225   :  { %16534 = vst [vmem:[#allocation16_spill] sm:$0xff] %v13153_v37  ;;  %5299 = vmatmul.bf16.gmra.mxu2 %v9964_v24  ;;  %v9997_v24 = vld [vmem:[%s16519_s1 + $0x868] sm:$0xf0] }
 0x226   :  { %5628 = vmatmul.bf16.gmra.mxu3 %v9968_v26  ;;  %v1037_v26 = vpop.permute.xlu2 %1036  ;;  %v725_v37 = vld [vmem:[%s16520_s2 + $0x228] sm:$0xff] }
 0x227   :  { %1131 = vperm.xlu0 %11855, %v725_v37   ;;  %v11553_v37 = vld [vmem:[%s16519_s1 + $0x884] sm:$0xf] }
 0x228   :  { %v5260_v44 = vpop.f32.mrf.mxu2  ;;  %v4604_v59 = vpop.f32.mrf.mxu0 }
 0x229   :  { %v5589_v57 = vpop.f32.mrf.mxu3  ;;  %v5261_v48 = vadd.f32 %v5260_v44, %v4932_v13  ;;  %v4933_v0 = vpop.f32.mrf.mxu1  ;;  %v4605_v3 = vadd.f32 %v4604_v59, %v1032_v43  ;;  %v11545_v13 = vld [vmem:[%s16519_s1 + $0x844] sm:$0xf]  ;;  %v9996_v59 = vor.u32 %v11550_v21, %v9995_v22 }
 0x22a   :  { %v9992_v43 = vor.u32 %v11545_v13, %v9989_v16 }
 0x22b   :  { %v13158_v4 = vadd.f32 %v5589_v57, %v5261_v48  ;;  %v4934_v7 = vadd.f32 %v4933_v0, %v4605_v3  ;;  %v10000_v0 = vor.u32 %v11546_v40, %v9997_v24 }
 0x22d   :  { %16535 = vst [vmem:[#allocation17_spill] sm:$0xff] %v13158_v4 }
 0x230   :  { %v5262_v27 = vpop.f32.mrf.mxu2  ;;  %v4607_v57 = vpop.f32.mrf.mxu0 }
 0x231   :  { %v5591_v32 = vpop.f32.mrf.mxu3  ;;  %v5263_v44 = vadd.f32 %v5262_v27, %v4934_v7  ;;  %v4936_v48 = vpop.f32.mrf.mxu1  ;;  %v4608_v3 = vadd.f32 %v4607_v57, %v1037_v26  ;;  %v10019_v26 = vld [vmem:[%s16519_s1 + $0x880] sm:$0xf] }
 0x232   :  { %v11557_v27 = vld [vmem:[%s16519_s1 + $0x89c] sm:$0xf0]  ;;  %v1047_v57 = vpop.permute.xlu1 %1046 }
 0x233   :  { %v13187_v17 = vadd.f32 %v5591_v32, %v5263_v44  ;;  %4646 = vmatmul.bf16.gmra.mxu0 %v9988_v39  ;;  %v4937_v4 = vadd.f32 %v4936_v48, %v4608_v3  ;;  %v10027_v32 = vld [vmem:[%s16519_s1 + $0x888] sm:$0xf]  ;;  %v10029_v44 = vld [vmem:[%s16519_s1 + $0x8a8] sm:$0xf0] }
 0x234   :  { %4975 = vmatmul.bf16.gmra.mxu1 %v9992_v43  ;;  %v11558_v39 = vld [vmem:[%s16519_s1 + $0x8a4] sm:$0xf0]  ;;  %v11554_v43 = vld [vmem:[%s16519_s1 + $0x88c] sm:$0xf] }
 0x235   :  { %16536 = vst [vmem:[#allocation18_spill] sm:$0xff] %v13187_v17  ;;  %5304 = vmatmul.bf16.gmra.mxu2 %v9996_v59 }
 0x236   :  { %5633 = vmatmul.bf16.gmra.mxu3 %v10000_v0  ;;  %v10020_v0 = vor.u32 %v11557_v27, %v10019_v26  ;;  %v1052_v26 = vpop.permute.xlu2 %1051 }
 0x238   :  { %v5265_v9 = vpop.f32.mrf.mxu2  ;;  %v4609_v16 = vpop.f32.mrf.mxu0 }
 0x239   :  { %v5594_v7 = vpop.f32.mrf.mxu3  ;;  %v5266_v13 = vadd.f32 %v5265_v9, %v4937_v4  ;;  %v4938_v22 = vpop.f32.mrf.mxu1  ;;  %v4610_v21 = vadd.f32 %v4609_v16, %v1042_v8  ;;  %v10021_v4 = vld [vmem:[%s16519_s1 + $0x8a0] sm:$0xf0]  ;;  %v10032_v16 = vor.u32 %v11554_v43, %v10029_v44 }
 0x23a   :  { %v10024_v3 = vor.u32 %v11553_v37, %v10021_v4 }
 0x23b   :  { %v13192_v40 = vadd.f32 %v5594_v7, %v5266_v13  ;;  %v4939_v24 = vadd.f32 %v4938_v22, %v4610_v21  ;;  %v10028_v13 = vor.u32 %v11558_v39, %v10027_v32  ;;  %v726_v22 = vld [vmem:[%s16520_s2 + $0x230] sm:$0xff]  ;;  %v724_v39 = vld [vmem:[%s16520_s2 + $0x220] sm:$0xff] }
 0x23c   :  { %1136 = vperm.xlu1 %11856, %v726_v22   ;;  %1126 = vperm.xlu2 %11857, %v724_v39   ;;  %v728_v39 = vld [vmem:[%s16520_s2 + $0x240] sm:$0xff] }
 0x23d   :  { %16537 = vst [vmem:[#allocation19_spill] sm:$0xff] %v13192_v40  ;;  %1146 = vperm.xlu0 %11855, %v728_v39  }
 0x240   :  { %v5267_v48 = vpop.f32.mrf.mxu2  ;;  %v4612_v9 = vpop.f32.mrf.mxu0 }
 0x241   :  { %v5596_v59 = vpop.f32.mrf.mxu3  ;;  %v5268_v8 = vadd.f32 %v5267_v48, %v4939_v24  ;;  %v4941_v7 = vpop.f32.mrf.mxu1  ;;  %v4613_v21 = vadd.f32 %v4612_v9, %v1047_v57  ;;  %v10051_v48 = vld [vmem:[%s16519_s1 + $0x8c0] sm:$0xf]  ;;  %v11562_v9 = vld [vmem:[%s16519_s1 + $0x8cc] sm:$0xf] }
 0x243   :  { %v13221_v40 = vadd.f32 %v5596_v59, %v5268_v8  ;;  %4651 = vmatmul.bf16.gmra.mxu0 %v10020_v0  ;;  %v4942_v17 = vadd.f32 %v4941_v7, %v4613_v21  ;;  %v11565_v59 = vld [vmem:[%s16519_s1 + $0x8dc] sm:$0xf0]  ;;  %v10053_v0 = vld [vmem:[%s16519_s1 + $0x8e0] sm:$0xf0]  ;;  %v11566_v8 = vld [vmem:[%s16519_s1 + $0x8e4] sm:$0xf0] }
 0x244   :  { %4980 = vmatmul.bf16.gmra.mxu1 %v10024_v3  ;;  %v10059_v3 = vld [vmem:[%s16519_s1 + $0x8c8] sm:$0xf]  ;;  %v10061_v7 = vld [vmem:[%s16519_s1 + $0x8e8] sm:$0xf0]  ;;  %v10052_v21 = vor.u32 %v11565_v59, %v10051_v48  ;;  %v1062_v48 = vpop.permute.xlu1 %1061 }
 0x245   :  { %16538 = vst [vmem:[#allocation20_spill] sm:$0xff] %v13221_v40  ;;  %5309 = vmatmul.bf16.gmra.mxu2 %v10028_v13  ;;  %v1057_v13 = vpop.permute.xlu0 %1056 }
 0x246   :  { %5638 = vmatmul.bf16.gmra.mxu3 %v10032_v16 }
 0x248   :  { %v5270_v27 = vpop.f32.mrf.mxu2  ;;  %v4614_v4 = vpop.f32.mrf.mxu0 }
 0x249   :  { %v5599_v24 = vpop.f32.mrf.mxu3  ;;  %v5271_v37 = vadd.f32 %v5270_v27, %v4942_v17  ;;  %v4943_v32 = vpop.f32.mrf.mxu1  ;;  %v4615_v43 = vadd.f32 %v4614_v4, %v1052_v26  ;;  %v11561_v17 = vld [vmem:[%s16519_s1 + $0x8c4] sm:$0xf]  ;;  %v10060_v4 = vor.u32 %v11566_v8, %v10059_v3 }
 0x24a   :  { %v10056_v26 = vor.u32 %v11561_v17, %v10053_v0 }
 0x24b   :  { %v13226_v44 = vadd.f32 %v5599_v24, %v5271_v37  ;;  %v4944_v57 = vadd.f32 %v4943_v32, %v4615_v43  ;;  %v10064_v32 = vor.u32 %v11562_v9, %v10061_v7 }
 0x24d   :  { %16539 = vst [vmem:[#allocation21_spill] sm:$0xff] %v13226_v44 }
 0x250   :  { %v5272_v16 = vpop.f32.mrf.mxu2  ;;  %v4617_v24 = vpop.f32.mrf.mxu0 }
 0x251   :  { %v5601_v22 = vpop.f32.mrf.mxu3  ;;  %v5273_v27 = vadd.f32 %v5272_v16, %v4944_v57  ;;  %v4946_v37 = vpop.f32.mrf.mxu1  ;;  %v4618_v43 = vadd.f32 %v4617_v24, %v1057_v13  ;;  %v729_v57 = vld [vmem:[%s16520_s2 + $0x248] sm:$0xff]  ;;  %v10083_v16 = vld [vmem:[%s16519_s1 + $0x900] sm:$0xf] }
 0x252   :  { %1151 = vperm.xlu1 %11856, %v729_v57   ;;  %v11574_v24 = vld [vmem:[%s16519_s1 + $0x924] sm:$0xf0] }
 0x253   :  { %v13255_v44 = vadd.f32 %v5601_v22, %v5273_v27  ;;  %4656 = vmatmul.bf16.gmra.mxu0 %v10052_v21  ;;  %v4947_v40 = vadd.f32 %v4946_v37, %v4618_v43  ;;  %v11573_v22 = vld [vmem:[%s16519_s1 + $0x91c] sm:$0xf0]  ;;  %v727_v21 = vld [vmem:[%s16520_s2 + $0x238] sm:$0xff]  ;;  %v10091_v27 = vld [vmem:[%s16519_s1 + $0x908] sm:$0xf] }
 0x254   :  { %4985 = vmatmul.bf16.gmra.mxu1 %v10056_v26  ;;  %v10085_v26 = vld [vmem:[%s16519_s1 + $0x920] sm:$0xf0]  ;;  %1141 = vperm.xlu2 %11857, %v727_v21   ;;  %v11570_v37 = vld [vmem:[%s16519_s1 + $0x90c] sm:$0xf]  ;;  %v10084_v57 = vor.u32 %v11573_v22, %v10083_v16  ;;  %v1072_v16 = vpop.permute.xlu0 %1071 }
 0x255   :  { %16540 = vst [vmem:[#allocation22_spill] sm:$0xff] %v13255_v44  ;;  %5314 = vmatmul.bf16.gmra.mxu2 %v10060_v4  ;;  %v10093_v4 = vld [vmem:[%s16519_s1 + $0x928] sm:$0xf0]  ;;  %v731_v44 = vld [vmem:[%s16520_s2 + $0x258] sm:$0xff] }
 0x256   :  { %5643 = vmatmul.bf16.gmra.mxu3 %v10064_v32  ;;  %v1067_v32 = vpop.permute.xlu2 %1066  ;;  %1161 = vperm.xlu0 %11855, %v731_v44   ;;  %v11577_v44 = vld [vmem:[%s16519_s1 + $0x944] sm:$0xf] }
 0x258   :  { %v5275_v59 = vpop.f32.mrf.mxu2  ;;  %v4619_v3 = vpop.f32.mrf.mxu0 }
 0x259   :  { %v5604_v17 = vpop.f32.mrf.mxu3  ;;  %v5276_v0 = vadd.f32 %v5275_v59, %v4947_v40  ;;  %v4948_v8 = vpop.f32.mrf.mxu1  ;;  %v4620_v9 = vadd.f32 %v4619_v3, %v1062_v48  ;;  %v11569_v40 = vld [vmem:[%s16519_s1 + $0x904] sm:$0xf]  ;;  %v10092_v3 = vor.u32 %v11574_v24, %v10091_v27 }
 0x25a   :  { %v10088_v48 = vor.u32 %v11569_v40, %v10085_v26 }
 0x25b   :  { %v13260_v7 = vadd.f32 %v5604_v17, %v5276_v0  ;;  %v4949_v13 = vadd.f32 %v4948_v8, %v4620_v9  ;;  %v10096_v8 = vor.u32 %v11570_v37, %v10093_v4 }
 0x25d   :  { %16541 = vst [vmem:[#allocation23_spill] sm:$0xff] %v13260_v7 }
 0x260   :  { %v5277_v39 = vpop.f32.mrf.mxu2  ;;  %v4622_v17 = vpop.f32.mrf.mxu0 }
 0x261   :  { %v5606_v43 = vpop.f32.mrf.mxu3  ;;  %v5278_v59 = vadd.f32 %v5277_v39, %v4949_v13  ;;  %v4951_v0 = vpop.f32.mrf.mxu1  ;;  %v4623_v9 = vadd.f32 %v4622_v17, %v1067_v32  ;;  %v10115_v32 = vld [vmem:[%s16519_s1 + $0x940] sm:$0xf] }
 0x262   :  { %v11581_v39 = vld [vmem:[%s16519_s1 + $0x95c] sm:$0xf0]  ;;  %v1077_v17 = vpop.permute.xlu1 %1076 }
 0x263   :  { %v13289_v21 = vadd.f32 %v5606_v43, %v5278_v59  ;;  %4661 = vmatmul.bf16.gmra.mxu0 %v10084_v57  ;;  %v4952_v7 = vadd.f32 %v4951_v0, %v4623_v9  ;;  %v10123_v43 = vld [vmem:[%s16519_s1 + $0x948] sm:$0xf]  ;;  %v10125_v59 = vld [vmem:[%s16519_s1 + $0x968] sm:$0xf0] }
 0x264   :  { %4990 = vmatmul.bf16.gmra.mxu1 %v10088_v48  ;;  %v11582_v57 = vld [vmem:[%s16519_s1 + $0x964] sm:$0xf0]  ;;  %v11578_v48 = vld [vmem:[%s16519_s1 + $0x94c] sm:$0xf] }
 0x265   :  { %16542 = vst [vmem:[#allocation24_spill] sm:$0xff] %v13289_v21  ;;  %5319 = vmatmul.bf16.gmra.mxu2 %v10092_v3 }
 0x266   :  { %5648 = vmatmul.bf16.gmra.mxu3 %v10096_v8  ;;  %v10116_v8 = vor.u32 %v11581_v39, %v10115_v32  ;;  %v1082_v32 = vpop.permute.xlu2 %1081 }
 0x268   :  { %v5280_v22 = vpop.f32.mrf.mxu2  ;;  %v4624_v26 = vpop.f32.mrf.mxu0 }
 0x269   :  { %v5609_v13 = vpop.f32.mrf.mxu3  ;;  %v5281_v40 = vadd.f32 %v5280_v22, %v4952_v7  ;;  %v4953_v27 = vpop.f32.mrf.mxu1  ;;  %v4625_v24 = vadd.f32 %v4624_v26, %v1072_v16  ;;  %v10117_v7 = vld [vmem:[%s16519_s1 + $0x960] sm:$0xf0]  ;;  %v10128_v26 = vor.u32 %v11578_v48, %v10125_v59 }
 0x26a   :  { %v10120_v9 = vor.u32 %v11577_v44, %v10117_v7 }
 0x26b   :  { %v13294_v37 = vadd.f32 %v5609_v13, %v5281_v40  ;;  %v4954_v4 = vadd.f32 %v4953_v27, %v4625_v24  ;;  %v10124_v40 = vor.u32 %v11582_v57, %v10123_v43  ;;  %v732_v27 = vld [vmem:[%s16520_s2 + $0x260] sm:$0xff]  ;;  %v730_v57 = vld [vmem:[%s16520_s2 + $0x250] sm:$0xff] }
 0x26c   :  { %1166 = vperm.xlu1 %11856, %v732_v27   ;;  %1156 = vperm.xlu2 %11857, %v730_v57   ;;  %v734_v57 = vld [vmem:[%s16520_s2 + $0x270] sm:$0xff] }
 0x26d   :  { %16543 = vst [vmem:[#allocation25_spill] sm:$0xff] %v13294_v37  ;;  %1176 = vperm.xlu0 %11855, %v734_v57   ;;  %v11594_v57 = vld [vmem:[%s16519_s1 + $0x9cc] sm:$0xf] }
 0x270   :  { %v5282_v0 = vpop.f32.mrf.mxu2  ;;  %v4627_v22 = vpop.f32.mrf.mxu0 }
 0x271   :  { %v5611_v3 = vpop.f32.mrf.mxu3  ;;  %v5283_v16 = vadd.f32 %v5282_v0, %v4954_v4  ;;  %v4956_v13 = vpop.f32.mrf.mxu1  ;;  %v4628_v24 = vadd.f32 %v4627_v22, %v1077_v17  ;;  %v10147_v0 = vld [vmem:[%s16519_s1 + $0x980] sm:$0xf]  ;;  %v11586_v22 = vld [vmem:[%s16519_s1 + $0x98c] sm:$0xf] }
 0x273   :  { %v13323_v37 = vadd.f32 %v5611_v3, %v5283_v16  ;;  %4666 = vmatmul.bf16.gmra.mxu0 %v10116_v8  ;;  %v4957_v21 = vadd.f32 %v4956_v13, %v4628_v24  ;;  %v11589_v3 = vld [vmem:[%s16519_s1 + $0x99c] sm:$0xf0]  ;;  %v10149_v8 = vld [vmem:[%s16519_s1 + $0x9a0] sm:$0xf0]  ;;  %v11590_v16 = vld [vmem:[%s16519_s1 + $0x9a4] sm:$0xf0] }
 0x274   :  { %4995 = vmatmul.bf16.gmra.mxu1 %v10120_v9  ;;  %v10155_v9 = vld [vmem:[%s16519_s1 + $0x988] sm:$0xf]  ;;  %v10157_v13 = vld [vmem:[%s16519_s1 + $0x9a8] sm:$0xf0]  ;;  %v10148_v24 = vor.u32 %v11589_v3, %v10147_v0  ;;  %v11827_v0 = vld [vmem:[%s16518_s0 + $0x110] sm:$0xff] }
 0x275   :  { %16544 = vst [vmem:[#allocation26_spill] sm:$0xff] %v13323_v37  ;;  %5324 = vmatmul.bf16.gmra.mxu2 %v10124_v40  ;;  %v1087_v40 = vpop.permute.xlu0 %1086  ;;  %v735_v3 = vld [vmem:[%s16520_s2 + $0x278] sm:$0xff]  ;;  %5794 = vmatpush.bf16.msrb.mxu0 %v11827_v0 }
 0x276   :  { %5653 = vmatmul.bf16.gmra.mxu3 %v10128_v26  ;;  %1181 = vperm.xlu1 %11856, %v735_v3  }
 0x278   :  { %v5285_v39 = vpop.f32.mrf.mxu2  ;;  %v4629_v7 = vpop.f32.mrf.mxu0 }
 0x279   :  { %v5614_v4 = vpop.f32.mrf.mxu3  ;;  %v5286_v44 = vadd.f32 %v5285_v39, %v4957_v21  ;;  %v4958_v43 = vpop.f32.mrf.mxu1  ;;  %v4630_v48 = vadd.f32 %v4629_v7, %v1082_v32  ;;  %v11585_v21 = vld [vmem:[%s16519_s1 + $0x984] sm:$0xf]  ;;  %v10156_v7 = vor.u32 %v11590_v16, %v10155_v9 }
 0x27a   :  { %v10152_v32 = vor.u32 %v11585_v21, %v10149_v8  ;;  %v1092_v21 = vpop.permute.xlu1 %1091 }
 0x27b   :  { %v13328_v59 = vadd.f32 %v5614_v4, %v5286_v44  ;;  %v4959_v17 = vadd.f32 %v4958_v43, %v4630_v48  ;;  %v10160_v43 = vor.u32 %v11586_v22, %v10157_v13 }
 0x27d   :  { %16545 = vst [vmem:[#allocation27_spill] sm:$0xff] %v13328_v59 }
 0x280   :  { %v5287_v26 = vpop.f32.mrf.mxu2  ;;  %v4632_v4 = vpop.f32.mrf.mxu0 }
 0x281   :  { %v5616_v27 = vpop.f32.mrf.mxu3  ;;  %v5288_v39 = vadd.f32 %v5287_v26, %v4959_v17  ;;  %v4961_v44 = vpop.f32.mrf.mxu1  ;;  %v4633_v48 = vadd.f32 %v4632_v4, %v1087_v40  ;;  %v11843_v17 = vld [vmem:[%s16518_s0 + $0x190] sm:$0xff]  ;;  %v11593_v4 = vld [vmem:[%s16519_s1 + $0x9c4] sm:$0xf] }
 0x282   :  { %6452 = vmatpush.bf16.msrb.mxu2 %v11843_v17  ;;  %v1097_v17 = vpop.permute.xlu2 %1096 }
 0x283   :  { %v13357_v59 = vadd.f32 %v5616_v27, %v5288_v39  ;;  %4671 = vmatmul.bf16.gmra.mxu0 %v10148_v24  ;;  %v4962_v37 = vadd.f32 %v4961_v44, %v4633_v48  ;;  %v11835_v27 = vld [vmem:[%s16518_s0 + $0x150] sm:$0xff]  ;;  %v11597_v39 = vld [vmem:[%s16519_s1 + $0x9dc] sm:$0xf0]  ;;  %v10181_v44 = vld [vmem:[%s16519_s1 + $0x9e0] sm:$0xf0] }
 0x284   :  { %5000 = vmatmul.bf16.gmra.mxu1 %v10152_v32  ;;  %v10179_v32 = vld [vmem:[%s16519_s1 + $0x9c0] sm:$0xf]  ;;  %v10189_v48 = vld [vmem:[%s16519_s1 + $0x9e8] sm:$0xf0] }
 0x285   :  { %16546 = vst [vmem:[#allocation28_spill] sm:$0xff] %v13357_v59  ;;  %5329 = vmatmul.bf16.gmra.mxu2 %v10156_v7  ;;  %v10187_v7 = vld [vmem:[%s16519_s1 + $0x9c8] sm:$0xf]  ;;  %6123 = vmatpush.bf16.msrb.mxu1 %v11835_v27 }
 0x286   :  { %5658 = vmatmul.bf16.gmra.mxu3 %v10160_v43  ;;  %v11598_v43 = vld [vmem:[%s16519_s1 + $0x9e4] sm:$0xf0] }
 0x287   :  { %v737_v59 = vld [vmem:[%s16520_s2 + $0x288] sm:$0xff] }
 0x288   :  { %v5290_v8 = vpop.f32.mrf.mxu2  ;;  %v4634_v22 = vpop.f32.mrf.mxu0  ;;  %1191 = vperm.xlu0 %11855, %v737_v59   ;;  %v11601_v59 = vld [vmem:[%s16519_s1 + $0xa04] sm:$0xf] }
 0x289   :  { %v5619_v9 = vpop.f32.mrf.mxu3  ;;  %v5291_v16 = vadd.f32 %v5290_v8, %v4962_v37  ;;  %v4963_v13 = vpop.f32.mrf.mxu1  ;;  %v4635_v40 = vadd.f32 %v4634_v22, %v1092_v21  ;;  %v733_v37 = vld [vmem:[%s16520_s2 + $0x268] sm:$0xff]  ;;  %v10180_v21 = vor.u32 %v11597_v39, %v10179_v32  ;;  %v10184_v8 = vor.u32 %v11593_v4, %v10181_v44 }
 0x28a   :  { %1171 = vperm.xlu2 %11857, %v733_v37   ;;  %v1102_v32 = vpop.permute.xlu0 %1101 }
 0x28b   :  { %v13368_v26 = vadd.f32 %v5619_v9, %v5291_v16  ;;  %v4964_v24 = vadd.f32 %v4963_v13, %v4635_v40  ;;  %v10188_v13 = vor.u32 %v11598_v43, %v10187_v7  ;;  %v10192_v40 = vor.u32 %v11594_v57, %v10189_v48 }
 0x28d   :  { %16547 = vst [vmem:[#allocation29_spill] sm:$0xff] %v13368_v26 }
 0x290   :  { %v5292_v0 = vpop.f32.mrf.mxu2  ;;  %v4637_v16 = vpop.f32.mrf.mxu0 }
 0x291   :  { %v5621_v3 = vpop.f32.mrf.mxu3  ;;  %v5293_v9 = vadd.f32 %v5292_v0, %v4964_v24  ;;  %v4966_v22 = vpop.f32.mrf.mxu1  ;;  %v4638_v27 = vadd.f32 %v4637_v16, %v1097_v17  ;;  %v10211_v17 = vld [vmem:[%s16519_s1 + $0xa00] sm:$0xf] }
 0x292   :  { %v11605_v0 = vld [vmem:[%s16519_s1 + $0xa1c] sm:$0xf0]  ;;  %v1107_v16 = vpop.permute.xlu1 %1106 }
 0x293   :  { %v13400_v37 = vadd.f32 %v5621_v3, %v5293_v9  ;;  %4676 = vmatmul.bf16.gmra.mxu0 %v10180_v21  ;;  %v4967_v26 = vadd.f32 %v4966_v22, %v4638_v27  ;;  %v10219_v3 = vld [vmem:[%s16519_s1 + $0xa08] sm:$0xf]  ;;  %v10221_v9 = vld [vmem:[%s16519_s1 + $0xa28] sm:$0xf0] }
 0x294   :  { %5005 = vmatmul.bf16.gmra.mxu1 %v10184_v8  ;;  %v11606_v21 = vld [vmem:[%s16519_s1 + $0xa24] sm:$0xf0]  ;;  %v11602_v8 = vld [vmem:[%s16519_s1 + $0xa0c] sm:$0xf] }
 0x295   :  { %16548 = vst [vmem:[#allocation30_spill] sm:$0xff] %v13400_v37  ;;  %5334 = vmatmul.bf16.gmra.mxu2 %v10188_v13 }
 0x296   :  { %5663 = vmatmul.bf16.gmra.mxu3 %v10192_v40  ;;  %v10212_v40 = vor.u32 %v11605_v0, %v10211_v17  ;;  %v1112_v17 = vpop.permute.xlu2 %1111 }
 0x298   :  { %v5295_v39 = vpop.f32.mrf.mxu2  ;;  %v4639_v44 = vpop.f32.mrf.mxu0 }
 0x299   :  { %v5624_v24 = vpop.f32.mrf.mxu3  ;;  %v5296_v4 = vadd.f32 %v5295_v39, %v4967_v26  ;;  %v4968_v7 = vpop.f32.mrf.mxu1  ;;  %v4640_v43 = vadd.f32 %v4639_v44, %v1102_v32  ;;  %v10213_v26 = vld [vmem:[%s16519_s1 + $0xa20] sm:$0xf0]  ;;  %v10224_v44 = vor.u32 %v11602_v8, %v10221_v9 }
 0x29a   :  { %v10216_v27 = vor.u32 %v11601_v59, %v10213_v26 }
 0x29b   :  { %v13405_v57 = vadd.f32 %v5624_v24, %v5296_v4  ;;  %v4969_v48 = vadd.f32 %v4968_v7, %v4640_v43  ;;  %v10220_v4 = vor.u32 %v11606_v21, %v10219_v3  ;;  %v738_v7 = vld [vmem:[%s16520_s2 + $0x290] sm:$0xff]  ;;  %v736_v21 = vld [vmem:[%s16520_s2 + $0x280] sm:$0xff] }
 0x29c   :  { %1196 = vperm.xlu1 %11856, %v738_v7   ;;  %1186 = vperm.xlu2 %11857, %v736_v21   ;;  %v740_v21 = vld [vmem:[%s16520_s2 + $0x2a0] sm:$0xff] }
 0x29d   :  { %16549 = vst [vmem:[#allocation31_spill] sm:$0xff] %v13405_v57  ;;  %1206 = vperm.xlu0 %11855, %v740_v21  }
 0x2a0   :  { %v5297_v22 = vpop.f32.mrf.mxu2  ;;  %v4642_v39 = vpop.f32.mrf.mxu0 }
 0x2a1   :  { %v5626_v13 = vpop.f32.mrf.mxu3  ;;  %v5298_v32 = vadd.f32 %v5297_v22, %v4969_v48  ;;  %v4971_v24 = vpop.f32.mrf.mxu1  ;;  %v4643_v43 = vadd.f32 %v4642_v39, %v1107_v16  ;;  %v10243_v22 = vld [vmem:[%s16519_s1 + $0xa40] sm:$0xf]  ;;  %v11610_v39 = vld [vmem:[%s16519_s1 + $0xa4c] sm:$0xf] }
 0x2a3   :  { %v13434_v57 = vadd.f32 %v5626_v13, %v5298_v32  ;;  %4681 = vmatmul.bf16.gmra.mxu0 %v10212_v40  ;;  %v4972_v37 = vadd.f32 %v4971_v24, %v4643_v43  ;;  %v11613_v13 = vld [vmem:[%s16519_s1 + $0xa5c] sm:$0xf0]  ;;  %v10245_v40 = vld [vmem:[%s16519_s1 + $0xa60] sm:$0xf0]  ;;  %v11614_v32 = vld [vmem:[%s16519_s1 + $0xa64] sm:$0xf0] }
 0x2a4   :  { %5010 = vmatmul.bf16.gmra.mxu1 %v10216_v27  ;;  %v10251_v27 = vld [vmem:[%s16519_s1 + $0xa48] sm:$0xf]  ;;  %v10253_v24 = vld [vmem:[%s16519_s1 + $0xa68] sm:$0xf0]  ;;  %v10244_v43 = vor.u32 %v11613_v13, %v10243_v22  ;;  %v1122_v22 = vpop.permute.xlu1 %1121 }
 0x2a5   :  { %16550 = vst [vmem:[#allocation32_spill] sm:$0xff] %v13434_v57  ;;  %5339 = vmatmul.bf16.gmra.mxu2 %v10220_v4  ;;  %v1117_v4 = vpop.permute.xlu0 %1116 }
 0x2a6   :  { %5668 = vmatmul.bf16.gmra.mxu3 %v10224_v44 }
 0x2a8   :  { %v5300_v0 = vpop.f32.mrf.mxu2  ;;  %v4644_v26 = vpop.f32.mrf.mxu0 }
 0x2a9   :  { %v5629_v48 = vpop.f32.mrf.mxu3  ;;  %v5301_v59 = vadd.f32 %v5300_v0, %v4972_v37  ;;  %v4973_v3 = vpop.f32.mrf.mxu1  ;;  %v4645_v8 = vadd.f32 %v4644_v26, %v1112_v17  ;;  %v11609_v37 = vld [vmem:[%s16519_s1 + $0xa44] sm:$0xf]  ;;  %v10252_v26 = vor.u32 %v11614_v32, %v10251_v27 }
 0x2aa   :  { %v10248_v17 = vor.u32 %v11609_v37, %v10245_v40 }
 0x2ab   :  { %v13439_v9 = vadd.f32 %v5629_v48, %v5301_v59  ;;  %v4974_v16 = vadd.f32 %v4973_v3, %v4645_v8  ;;  %v10256_v3 = vor.u32 %v11610_v39, %v10253_v24 }
 0x2ad   :  { %16551 = vst [vmem:[#allocation33_spill] sm:$0xff] %v13439_v9 }
 0x2b0   :  { %v5302_v44 = vpop.f32.mrf.mxu2  ;;  %v4647_v48 = vpop.f32.mrf.mxu0 }
 0x2b1   :  { %v5631_v7 = vpop.f32.mrf.mxu3  ;;  %v5303_v0 = vadd.f32 %v5302_v44, %v4974_v16  ;;  %v4976_v59 = vpop.f32.mrf.mxu1  ;;  %v4648_v8 = vadd.f32 %v4647_v48, %v1117_v4  ;;  %v741_v16 = vld [vmem:[%s16520_s2 + $0x2a8] sm:$0xff]  ;;  %v10275_v44 = vld [vmem:[%s16519_s1 + $0xa80] sm:$0xf] }
 0x2b2   :  { %1211 = vperm.xlu1 %11856, %v741_v16   ;;  %v11622_v48 = vld [vmem:[%s16519_s1 + $0xaa4] sm:$0xf0] }
 0x2b3   :  { %v13468_v9 = vadd.f32 %v5631_v7, %v5303_v0  ;;  %4686 = vmatmul.bf16.gmra.mxu0 %v10244_v43  ;;  %v4977_v57 = vadd.f32 %v4976_v59, %v4648_v8  ;;  %v11621_v7 = vld [vmem:[%s16519_s1 + $0xa9c] sm:$0xf0]  ;;  %v739_v43 = vld [vmem:[%s16520_s2 + $0x298] sm:$0xff]  ;;  %v10283_v0 = vld [vmem:[%s16519_s1 + $0xa88] sm:$0xf] }
 0x2b4   :  { %5015 = vmatmul.bf16.gmra.mxu1 %v10248_v17  ;;  %v10277_v17 = vld [vmem:[%s16519_s1 + $0xaa0] sm:$0xf0]  ;;  %1201 = vperm.xlu2 %11857, %v739_v43   ;;  %v11618_v59 = vld [vmem:[%s16519_s1 + $0xa8c] sm:$0xf]  ;;  %v10276_v16 = vor.u32 %v11621_v7, %v10275_v44  ;;  %v1132_v44 = vpop.permute.xlu0 %1131 }
 0x2b5   :  { %16552 = vst [vmem:[#allocation34_spill] sm:$0xff] %v13468_v9  ;;  %5344 = vmatmul.bf16.gmra.mxu2 %v10252_v26  ;;  %v10285_v26 = vld [vmem:[%s16519_s1 + $0xaa8] sm:$0xf0]  ;;  %v743_v9 = vld [vmem:[%s16520_s2 + $0x2b8] sm:$0xff] }
 0x2b6   :  { %5673 = vmatmul.bf16.gmra.mxu3 %v10256_v3  ;;  %v1127_v3 = vpop.permute.xlu2 %1126  ;;  %1221 = vperm.xlu0 %11855, %v743_v9   ;;  %v11625_v9 = vld [vmem:[%s16519_s1 + $0xac4] sm:$0xf] }
 0x2b8   :  { %v5305_v13 = vpop.f32.mrf.mxu2  ;;  %v4649_v27 = vpop.f32.mrf.mxu0 }
 0x2b9   :  { %v5634_v37 = vpop.f32.mrf.mxu3  ;;  %v5306_v40 = vadd.f32 %v5305_v13, %v4977_v57  ;;  %v4978_v32 = vpop.f32.mrf.mxu1  ;;  %v4650_v39 = vadd.f32 %v4649_v27, %v1122_v22  ;;  %v11617_v57 = vld [vmem:[%s16519_s1 + $0xa84] sm:$0xf]  ;;  %v10284_v27 = vor.u32 %v11622_v48, %v10283_v0 }
 0x2ba   :  { %v10280_v22 = vor.u32 %v11617_v57, %v10277_v17 }
 0x2bb   :  { %v13473_v24 = vadd.f32 %v5634_v37, %v5306_v40  ;;  %v4979_v4 = vadd.f32 %v4978_v32, %v4650_v39  ;;  %v10288_v32 = vor.u32 %v11618_v59, %v10285_v26 }
 0x2bd   :  { %16553 = vst [vmem:[#allocation35_spill] sm:$0xff] %v13473_v24 }
 0x2c0   :  { %v5307_v21 = vpop.f32.mrf.mxu2  ;;  %v4652_v37 = vpop.f32.mrf.mxu0 }
 0x2c1   :  { %v5636_v8 = vpop.f32.mrf.mxu3  ;;  %v5308_v13 = vadd.f32 %v5307_v21, %v4979_v4  ;;  %v4981_v40 = vpop.f32.mrf.mxu1  ;;  %v4653_v39 = vadd.f32 %v4652_v37, %v1127_v3  ;;  %v10307_v3 = vld [vmem:[%s16519_s1 + $0xac0] sm:$0xf] }
 0x2c2   :  { %v11629_v21 = vld [vmem:[%s16519_s1 + $0xadc] sm:$0xf0]  ;;  %v1137_v37 = vpop.permute.xlu1 %1136 }
 0x2c3   :  { %v13502_v43 = vadd.f32 %v5636_v8, %v5308_v13  ;;  %4691 = vmatmul.bf16.gmra.mxu0 %v10276_v16  ;;  %v4982_v24 = vadd.f32 %v4981_v40, %v4653_v39  ;;  %v10315_v8 = vld [vmem:[%s16519_s1 + $0xac8] sm:$0xf]  ;;  %v10317_v13 = vld [vmem:[%s16519_s1 + $0xae8] sm:$0xf0] }
 0x2c4   :  { %5020 = vmatmul.bf16.gmra.mxu1 %v10280_v22  ;;  %v11630_v16 = vld [vmem:[%s16519_s1 + $0xae4] sm:$0xf0]  ;;  %v11626_v22 = vld [vmem:[%s16519_s1 + $0xacc] sm:$0xf] }
 0x2c5   :  { %16554 = vst [vmem:[#allocation36_spill] sm:$0xff] %v13502_v43  ;;  %5349 = vmatmul.bf16.gmra.mxu2 %v10284_v27 }
 0x2c6   :  { %5678 = vmatmul.bf16.gmra.mxu3 %v10288_v32  ;;  %v10308_v32 = vor.u32 %v11629_v21, %v10307_v3  ;;  %v1142_v3 = vpop.permute.xlu2 %1141 }
 0x2c8   :  { %v5310_v7 = vpop.f32.mrf.mxu2  ;;  %v4654_v17 = vpop.f32.mrf.mxu0 }
 0x2c9   :  { %v5639_v4 = vpop.f32.mrf.mxu3  ;;  %v5311_v57 = vadd.f32 %v5310_v7, %v4982_v24  ;;  %v4983_v0 = vpop.f32.mrf.mxu1  ;;  %v4655_v48 = vadd.f32 %v4654_v17, %v1132_v44  ;;  %v10309_v24 = vld [vmem:[%s16519_s1 + $0xae0] sm:$0xf0]  ;;  %v10320_v17 = vor.u32 %v11626_v22, %v10317_v13 }
 0x2ca   :  { %v10312_v39 = vor.u32 %v11625_v9, %v10309_v24 }
 0x2cb   :  { %v13507_v59 = vadd.f32 %v5639_v4, %v5311_v57  ;;  %v4984_v26 = vadd.f32 %v4983_v0, %v4655_v48  ;;  %v10316_v57 = vor.u32 %v11630_v16, %v10315_v8  ;;  %v744_v0 = vld [vmem:[%s16520_s2 + $0x2c0] sm:$0xff]  ;;  %v742_v16 = vld [vmem:[%s16520_s2 + $0x2b0] sm:$0xff] }
 0x2cc   :  { %1226 = vperm.xlu1 %11856, %v744_v0   ;;  %1216 = vperm.xlu2 %11857, %v742_v16   ;;  %v746_v16 = vld [vmem:[%s16520_s2 + $0x2d0] sm:$0xff] }
 0x2cd   :  { %16555 = vst [vmem:[#allocation37_spill] sm:$0xff] %v13507_v59  ;;  %1236 = vperm.xlu0 %11855, %v746_v16  }
 0x2d0   :  { %v5312_v40 = vpop.f32.mrf.mxu2  ;;  %v4657_v7 = vpop.f32.mrf.mxu0 }
 0x2d1   :  { %v5641_v27 = vpop.f32.mrf.mxu3  ;;  %v5313_v44 = vadd.f32 %v5312_v40, %v4984_v26  ;;  %v4986_v4 = vpop.f32.mrf.mxu1  ;;  %v4658_v48 = vadd.f32 %v4657_v7, %v1137_v37  ;;  %v10339_v40 = vld [vmem:[%s16519_s1 + $0xb00] sm:$0xf]  ;;  %v11634_v7 = vld [vmem:[%s16519_s1 + $0xb0c] sm:$0xf] }
 0x2d3   :  { %v13536_v59 = vadd.f32 %v5641_v27, %v5313_v44  ;;  %4696 = vmatmul.bf16.gmra.mxu0 %v10308_v32  ;;  %v4987_v43 = vadd.f32 %v4986_v4, %v4658_v48  ;;  %v11637_v27 = vld [vmem:[%s16519_s1 + $0xb1c] sm:$0xf0]  ;;  %v10341_v32 = vld [vmem:[%s16519_s1 + $0xb20] sm:$0xf0]  ;;  %v11638_v44 = vld [vmem:[%s16519_s1 + $0xb24] sm:$0xf0] }
 0x2d4   :  { %5025 = vmatmul.bf16.gmra.mxu1 %v10312_v39  ;;  %v10347_v39 = vld [vmem:[%s16519_s1 + $0xb08] sm:$0xf]  ;;  %v10349_v4 = vld [vmem:[%s16519_s1 + $0xb28] sm:$0xf0]  ;;  %v10340_v48 = vor.u32 %v11637_v27, %v10339_v40  ;;  %v1152_v40 = vpop.permute.xlu1 %1151 }
 0x2d5   :  { %16556 = vst [vmem:[#allocation38_spill] sm:$0xff] %v13536_v59  ;;  %5354 = vmatmul.bf16.gmra.mxu2 %v10316_v57  ;;  %v1147_v57 = vpop.permute.xlu0 %1146 }
 0x2d6   :  { %5683 = vmatmul.bf16.gmra.mxu3 %v10320_v17 }
 0x2d8   :  { %v5315_v21 = vpop.f32.mrf.mxu2  ;;  %v4659_v24 = vpop.f32.mrf.mxu0 }
 0x2d9   :  { %v5644_v26 = vpop.f32.mrf.mxu3  ;;  %v5316_v9 = vadd.f32 %v5315_v21, %v4987_v43  ;;  %v4988_v8 = vpop.f32.mrf.mxu1  ;;  %v4660_v22 = vadd.f32 %v4659_v24, %v1142_v3  ;;  %v11633_v43 = vld [vmem:[%s16519_s1 + $0xb04] sm:$0xf]  ;;  %v10348_v24 = vor.u32 %v11638_v44, %v10347_v39 }
 0x2da   :  { %v10344_v3 = vor.u32 %v11633_v43, %v10341_v32 }
 0x2db   :  { %v13541_v13 = vadd.f32 %v5644_v26, %v5316_v9  ;;  %v4989_v37 = vadd.f32 %v4988_v8, %v4660_v22  ;;  %v10352_v8 = vor.u32 %v11634_v7, %v10349_v4 }
 0x2dd   :  { %16557 = vst [vmem:[#allocation39_spill] sm:$0xff] %v13541_v13 }
 0x2e0   :  { %v5317_v17 = vpop.f32.mrf.mxu2  ;;  %v4662_v26 = vpop.f32.mrf.mxu0 }
 0x2e1   :  { %v5646_v0 = vpop.f32.mrf.mxu3  ;;  %v5318_v21 = vadd.f32 %v5317_v17, %v4989_v37  ;;  %v4991_v9 = vpop.f32.mrf.mxu1  ;;  %v4663_v22 = vadd.f32 %v4662_v26, %v1147_v57  ;;  %v747_v37 = vld [vmem:[%s16520_s2 + $0x2d8] sm:$0xff]  ;;  %v10371_v17 = vld [vmem:[%s16519_s1 + $0xb40] sm:$0xf]  ;;  %v11646_v26 = vld [vmem:[%s16519_s1 + $0xb64] sm:$0xf0] }
 0x2e2   :  { %1241 = vperm.xlu1 %11856, %v747_v37  }
 0x2e3   :  { %v13570_v13 = vadd.f32 %v5646_v0, %v5318_v21  ;;  %4701 = vmatmul.bf16.gmra.mxu0 %v10340_v48  ;;  %v4992_v59 = vadd.f32 %v4991_v9, %v4663_v22  ;;  %v11645_v0 = vld [vmem:[%s16519_s1 + $0xb5c] sm:$0xf0]  ;;  %v745_v48 = vld [vmem:[%s16520_s2 + $0x2c8] sm:$0xff] }
 0x2e4   :  { %5030 = vmatmul.bf16.gmra.mxu1 %v10344_v3  ;;  %v10373_v3 = vld [vmem:[%s16519_s1 + $0xb60] sm:$0xf0]  ;;  %v10379_v21 = vld [vmem:[%s16519_s1 + $0xb48] sm:$0xf]  ;;  %1231 = vperm.xlu2 %11857, %v745_v48   ;;  %v11642_v9 = vld [vmem:[%s16519_s1 + $0xb4c] sm:$0xf]  ;;  %v10372_v37 = vor.u32 %v11645_v0, %v10371_v17  ;;  %v1162_v17 = vpop.permute.xlu0 %1161 }
 0x2e5   :  { %16558 = vst [vmem:[#allocation40_spill] sm:$0xff] %v13570_v13  ;;  %5359 = vmatmul.bf16.gmra.mxu2 %v10348_v24  ;;  %v10381_v24 = vld [vmem:[%s16519_s1 + $0xb68] sm:$0xf0] }
 0x2e6   :  { %5688 = vmatmul.bf16.gmra.mxu3 %v10352_v8  ;;  %v1157_v8 = vpop.permute.xlu2 %1156  ;;  %v749_v13 = vld [vmem:[%s16520_s2 + $0x2e8] sm:$0xff] }
 0x2e7   :  { %1251 = vperm.xlu0 %11855, %v749_v13   ;;  %v11649_v13 = vld [vmem:[%s16519_s1 + $0xb84] sm:$0xf] }
 0x2e8   :  { %v5320_v27 = vpop.f32.mrf.mxu2  ;;  %v4664_v39 = vpop.f32.mrf.mxu0 }
 0x2e9   :  { %v5649_v43 = vpop.f32.mrf.mxu3  ;;  %v5321_v32 = vadd.f32 %v5320_v27, %v4992_v59  ;;  %v4993_v44 = vpop.f32.mrf.mxu1  ;;  %v4665_v7 = vadd.f32 %v4664_v39, %v1152_v40  ;;  %v11641_v59 = vld [vmem:[%s16519_s1 + $0xb44] sm:$0xf]  ;;  %v10380_v39 = vor.u32 %v11646_v26, %v10379_v21 }
 0x2ea   :  { %v10376_v40 = vor.u32 %v11641_v59, %v10373_v3 }
 0x2eb   :  { %v13575_v4 = vadd.f32 %v5649_v43, %v5321_v32  ;;  %v4994_v57 = vadd.f32 %v4993_v44, %v4665_v7  ;;  %v10384_v44 = vor.u32 %v11642_v9, %v10381_v24 }
 0x2ed   :  { %16559 = vst [vmem:[#allocation41_spill] sm:$0xff] %v13575_v4 }
 0x2f0   :  { %v5322_v16 = vpop.f32.mrf.mxu2  ;;  %v4667_v43 = vpop.f32.mrf.mxu0 }
 0x2f1   :  { %v5651_v22 = vpop.f32.mrf.mxu3  ;;  %v5323_v27 = vadd.f32 %v5322_v16, %v4994_v57  ;;  %v4996_v32 = vpop.f32.mrf.mxu1  ;;  %v4668_v7 = vadd.f32 %v4667_v43, %v1157_v8  ;;  %v10403_v8 = vld [vmem:[%s16519_s1 + $0xb80] sm:$0xf] }
 0x2f2   :  { %v11653_v16 = vld [vmem:[%s16519_s1 + $0xb9c] sm:$0xf0]  ;;  %v1167_v43 = vpop.permute.xlu1 %1166 }
 0x2f3   :  { %v13604_v48 = vadd.f32 %v5651_v22, %v5323_v27  ;;  %4706 = vmatmul.bf16.gmra.mxu0 %v10372_v37  ;;  %v4997_v4 = vadd.f32 %v4996_v32, %v4668_v7  ;;  %v10411_v22 = vld [vmem:[%s16519_s1 + $0xb88] sm:$0xf]  ;;  %v10413_v27 = vld [vmem:[%s16519_s1 + $0xba8] sm:$0xf0] }
 0x2f4   :  { %5035 = vmatmul.bf16.gmra.mxu1 %v10376_v40  ;;  %v11654_v37 = vld [vmem:[%s16519_s1 + $0xba4] sm:$0xf0]  ;;  %v11650_v40 = vld [vmem:[%s16519_s1 + $0xb8c] sm:$0xf] }
 0x2f5   :  { %16560 = vst [vmem:[#allocation42_spill] sm:$0xff] %v13604_v48  ;;  %5364 = vmatmul.bf16.gmra.mxu2 %v10380_v39 }
 0x2f6   :  { %5693 = vmatmul.bf16.gmra.mxu3 %v10384_v44  ;;  %v10404_v44 = vor.u32 %v11653_v16, %v10403_v8  ;;  %v11826_v8 = vld [vmem:[%s16518_s0 + $0x108] sm:$0xff]  ;;  %v11849_v16 = vld [vmem:[%s16518_s0 + $0x1c0] sm:$0xff] }
 0x2f7   :  { %5795 = vmatpush.bf16.msrb.mxu0 %v11826_v8  ;;  %6783 = vmatpush.bf16.msrb.mxu3 %v11849_v16 }
 0x2f8   :  { %v5325_v0 = vpop.f32.mrf.mxu2  ;;  %v4669_v3 = vpop.f32.mrf.mxu0 }
 0x2f9   :  { %v5654_v57 = vpop.f32.mrf.mxu3  ;;  %v5326_v59 = vadd.f32 %v5325_v0, %v4997_v4  ;;  %v4998_v21 = vpop.f32.mrf.mxu1  ;;  %v4670_v26 = vadd.f32 %v4669_v3, %v1162_v17  ;;  %v10405_v4 = vld [vmem:[%s16519_s1 + $0xba0] sm:$0xf0]  ;;  %v10416_v3 = vor.u32 %v11650_v40, %v10413_v27 }
 0x2fa   :  { %v10408_v7 = vor.u32 %v11649_v13, %v10405_v4  ;;  %v1172_v13 = vpop.permute.xlu2 %1171 }
 0x2fb   :  { %v13609_v9 = vadd.f32 %v5654_v57, %v5326_v59  ;;  %v4999_v24 = vadd.f32 %v4998_v21, %v4670_v26  ;;  %v10412_v59 = vor.u32 %v11654_v37, %v10411_v22  ;;  %v750_v21 = vld [vmem:[%s16520_s2 + $0x2f0] sm:$0xff] }
 0x2fc   :  { %1256 = vperm.xlu1 %11856, %v750_v21   ;;  %v11658_v21 = vld [vmem:[%s16519_s1 + $0xbcc] sm:$0xf] }
 0x2fd   :  { %16561 = vst [vmem:[#allocation43_spill] sm:$0xff] %v13609_v9 }
 0x300   :  { %v5327_v32 = vpop.f32.mrf.mxu2  ;;  %v4672_v0 = vpop.f32.mrf.mxu0 }
 0x301   :  { %v5656_v39 = vpop.f32.mrf.mxu3  ;;  %v5328_v17 = vadd.f32 %v5327_v32, %v4999_v24  ;;  %v5001_v57 = vpop.f32.mrf.mxu1  ;;  %v4673_v26 = vadd.f32 %v4672_v0, %v1167_v43  ;;  %v11842_v24 = vld [vmem:[%s16518_s0 + $0x188] sm:$0xff]  ;;  %v748_v43 = vld [vmem:[%s16520_s2 + $0x2e0] sm:$0xff] }
 0x302   :  { %6453 = vmatpush.bf16.msrb.mxu2 %v11842_v24  ;;  %1246 = vperm.xlu2 %11857, %v748_v43   ;;  %v11657_v0 = vld [vmem:[%s16519_s1 + $0xbc4] sm:$0xf]  ;;  %v1177_v24 = vpop.permute.xlu0 %1176 }
 0x303   :  { %v13638_v9 = vadd.f32 %v5656_v39, %v5328_v17  ;;  %4711 = vmatmul.bf16.gmra.mxu0 %v10404_v44  ;;  %v5002_v48 = vadd.f32 %v5001_v57, %v4673_v26  ;;  %v11834_v44 = vld [vmem:[%s16518_s0 + $0x148] sm:$0xff]  ;;  %v10435_v17 = vld [vmem:[%s16519_s1 + $0xbc0] sm:$0xf]  ;;  %v10437_v57 = vld [vmem:[%s16519_s1 + $0xbe0] sm:$0xf0] }
 0x304   :  { %5040 = vmatmul.bf16.gmra.mxu1 %v10408_v7  ;;  %v10445_v26 = vld [vmem:[%s16519_s1 + $0xbe8] sm:$0xf0] }
 0x305   :  { %16562 = vst [vmem:[#allocation44_spill] sm:$0xff] %v13638_v9  ;;  %5369 = vmatmul.bf16.gmra.mxu2 %v10412_v59  ;;  %v10443_v59 = vld [vmem:[%s16519_s1 + $0xbc8] sm:$0xf]  ;;  %6124 = vmatpush.bf16.msrb.mxu1 %v11834_v44  ;;  %v10448_v43 = vor.u32 %v11658_v21, %v10445_v26 }
 0x306   :  { %5698 = vmatmul.bf16.gmra.mxu3 %v10416_v3  ;;  %v11662_v3 = vld [vmem:[%s16519_s1 + $0xbe4] sm:$0xf0] }
 0x308   :  { %v5330_v4 = vpop.f32.mrf.mxu2  ;;  %v4674_v40 = vpop.f32.mrf.mxu0 }
 0x309   :  { %v5659_v22 = vpop.f32.mrf.mxu3  ;;  %v5331_v37 = vadd.f32 %v5330_v4, %v5002_v48  ;;  %v5003_v27 = vpop.f32.mrf.mxu1  ;;  %v4675_v32 = vadd.f32 %v4674_v40, %v1172_v13  ;;  %v11661_v48 = vld [vmem:[%s16519_s1 + $0xbdc] sm:$0xf0]  ;;  %v10440_v4 = vor.u32 %v11657_v0, %v10437_v57 }
 0x30a   :  { %v10436_v13 = vor.u32 %v11661_v48, %v10435_v17  ;;  %v1182_v17 = vpop.permute.xlu1 %1181 }
 0x30b   :  { %v13652_v39 = vadd.f32 %v5659_v22, %v5331_v37  ;;  %v5004_v7 = vadd.f32 %v5003_v27, %v4675_v32  ;;  %v10444_v27 = vor.u32 %v11662_v3, %v10443_v59  ;;  %v752_v32 = vld [vmem:[%s16520_s2 + $0x300] sm:$0xff] }
 0x30c   :  { %1266 = vperm.xlu0 %11855, %v752_v32  }
 0x30d   :  { %16563 = vst [vmem:[#allocation45_spill] sm:$0xff] %v13652_v39 }
 0x310   :  { %v5332_v8 = vpop.f32.mrf.mxu2  ;;  %v4677_v37 = vpop.f32.mrf.mxu0 }
 0x311   :  { %v5661_v16 = vpop.f32.mrf.mxu3  ;;  %v5333_v22 = vadd.f32 %v5332_v8, %v5004_v7  ;;  %v5006_v40 = vpop.f32.mrf.mxu1  ;;  %v4678_v44 = vadd.f32 %v4677_v37, %v1177_v24  ;;  %v753_v7 = vld [vmem:[%s16520_s2 + $0x308] sm:$0xff]  ;;  %v10467_v8 = vld [vmem:[%s16519_s1 + $0xc00] sm:$0xf] }
 0x312   :  { %1271 = vperm.xlu1 %11856, %v753_v7   ;;  %v11670_v37 = vld [vmem:[%s16519_s1 + $0xc24] sm:$0xf0] }
 0x313   :  { %v13684_v39 = vadd.f32 %v5661_v16, %v5333_v22  ;;  %4716 = vmatmul.bf16.gmra.mxu0 %v10436_v13  ;;  %v5007_v9 = vadd.f32 %v5006_v40, %v4678_v44  ;;  %v11669_v16 = vld [vmem:[%s16519_s1 + $0xc1c] sm:$0xf0]  ;;  %v751_v13 = vld [vmem:[%s16520_s2 + $0x2f8] sm:$0xff]  ;;  %v10475_v22 = vld [vmem:[%s16519_s1 + $0xc08] sm:$0xf] }
 0x314   :  { %5045 = vmatmul.bf16.gmra.mxu1 %v10440_v4  ;;  %v10469_v4 = vld [vmem:[%s16519_s1 + $0xc20] sm:$0xf0]  ;;  %1261 = vperm.xlu2 %11857, %v751_v13   ;;  %v11666_v40 = vld [vmem:[%s16519_s1 + $0xc0c] sm:$0xf]  ;;  %v10468_v7 = vor.u32 %v11669_v16, %v10467_v8  ;;  %v1192_v8 = vpop.permute.xlu0 %1191 }
 0x315   :  { %16564 = vst [vmem:[#allocation46_spill] sm:$0xff] %v13684_v39  ;;  %5374 = vmatmul.bf16.gmra.mxu2 %v10444_v27  ;;  %v10477_v27 = vld [vmem:[%s16519_s1 + $0xc28] sm:$0xf0]  ;;  %v755_v39 = vld [vmem:[%s16520_s2 + $0x318] sm:$0xff] }
 0x316   :  { %5703 = vmatmul.bf16.gmra.mxu3 %v10448_v43  ;;  %v1187_v43 = vpop.permute.xlu2 %1186  ;;  %1281 = vperm.xlu0 %11855, %v755_v39   ;;  %v11673_v39 = vld [vmem:[%s16519_s1 + $0xc44] sm:$0xf] }
 0x318   :  { %v5335_v48 = vpop.f32.mrf.mxu2  ;;  %v4679_v59 = vpop.f32.mrf.mxu0 }
 0x319   :  { %v5664_v0 = vpop.f32.mrf.mxu3  ;;  %v5336_v57 = vadd.f32 %v5335_v48, %v5007_v9  ;;  %v5008_v3 = vpop.f32.mrf.mxu1  ;;  %v4680_v21 = vadd.f32 %v4679_v59, %v1182_v17  ;;  %v11665_v9 = vld [vmem:[%s16519_s1 + $0xc04] sm:$0xf]  ;;  %v10476_v59 = vor.u32 %v11670_v37, %v10475_v22 }
 0x31a   :  { %v10472_v17 = vor.u32 %v11665_v9, %v10469_v4 }
 0x31b   :  { %v13689_v26 = vadd.f32 %v5664_v0, %v5336_v57  ;;  %v5009_v24 = vadd.f32 %v5008_v3, %v4680_v21  ;;  %v10480_v3 = vor.u32 %v11666_v40, %v10477_v27 }
 0x31d   :  { %16565 = vst [vmem:[#allocation47_spill] sm:$0xff] %v13689_v26 }
 0x320   :  { %v5337_v32 = vpop.f32.mrf.mxu2  ;;  %v4682_v0 = vpop.f32.mrf.mxu0 }
 0x321   :  { %v5666_v44 = vpop.f32.mrf.mxu3  ;;  %v5338_v48 = vadd.f32 %v5337_v32, %v5009_v24  ;;  %v5011_v57 = vpop.f32.mrf.mxu1  ;;  %v4683_v21 = vadd.f32 %v4682_v0, %v1187_v43  ;;  %v10499_v43 = vld [vmem:[%s16519_s1 + $0xc40] sm:$0xf] }
 0x322   :  { %v11677_v32 = vld [vmem:[%s16519_s1 + $0xc5c] sm:$0xf0]  ;;  %v1197_v0 = vpop.permute.xlu1 %1196 }
 0x323   :  { %v13718_v13 = vadd.f32 %v5666_v44, %v5338_v48  ;;  %4721 = vmatmul.bf16.gmra.mxu0 %v10468_v7  ;;  %v5012_v26 = vadd.f32 %v5011_v57, %v4683_v21  ;;  %v10507_v44 = vld [vmem:[%s16519_s1 + $0xc48] sm:$0xf]  ;;  %v10509_v48 = vld [vmem:[%s16519_s1 + $0xc68] sm:$0xf0] }
 0x324   :  { %5050 = vmatmul.bf16.gmra.mxu1 %v10472_v17  ;;  %v11678_v7 = vld [vmem:[%s16519_s1 + $0xc64] sm:$0xf0]  ;;  %v11674_v17 = vld [vmem:[%s16519_s1 + $0xc4c] sm:$0xf] }
 0x325   :  { %16566 = vst [vmem:[#allocation48_spill] sm:$0xff] %v13718_v13  ;;  %5379 = vmatmul.bf16.gmra.mxu2 %v10476_v59 }
 0x326   :  { %5708 = vmatmul.bf16.gmra.mxu3 %v10480_v3  ;;  %v10500_v3 = vor.u32 %v11677_v32, %v10499_v43  ;;  %v1202_v43 = vpop.permute.xlu2 %1201 }
 0x328   :  { %v5340_v16 = vpop.f32.mrf.mxu2  ;;  %v4684_v4 = vpop.f32.mrf.mxu0 }
 0x329   :  { %v5669_v24 = vpop.f32.mrf.mxu3  ;;  %v5341_v9 = vadd.f32 %v5340_v16, %v5012_v26  ;;  %v5013_v22 = vpop.f32.mrf.mxu1  ;;  %v4685_v37 = vadd.f32 %v4684_v4, %v1192_v8  ;;  %v10501_v26 = vld [vmem:[%s16519_s1 + $0xc60] sm:$0xf0]  ;;  %v10512_v4 = vor.u32 %v11674_v17, %v10509_v48 }
 0x32a   :  { %v10504_v21 = vor.u32 %v11673_v39, %v10501_v26 }
 0x32b   :  { %v13723_v40 = vadd.f32 %v5669_v24, %v5341_v9  ;;  %v5014_v27 = vadd.f32 %v5013_v22, %v4685_v37  ;;  %v10508_v9 = vor.u32 %v11678_v7, %v10507_v44  ;;  %v756_v22 = vld [vmem:[%s16520_s2 + $0x320] sm:$0xff]  ;;  %v754_v7 = vld [vmem:[%s16520_s2 + $0x310] sm:$0xff] }
 0x32c   :  { %1286 = vperm.xlu1 %11856, %v756_v22   ;;  %1276 = vperm.xlu2 %11857, %v754_v7   ;;  %v758_v7 = vld [vmem:[%s16520_s2 + $0x330] sm:$0xff] }
 0x32d   :  { %16567 = vst [vmem:[#allocation49_spill] sm:$0xff] %v13723_v40  ;;  %1296 = vperm.xlu0 %11855, %v758_v7  }
 0x330   :  { %v5342_v57 = vpop.f32.mrf.mxu2  ;;  %v4687_v16 = vpop.f32.mrf.mxu0 }
 0x331   :  { %v5671_v59 = vpop.f32.mrf.mxu3  ;;  %v5343_v8 = vadd.f32 %v5342_v57, %v5014_v27  ;;  %v5016_v24 = vpop.f32.mrf.mxu1  ;;  %v4688_v37 = vadd.f32 %v4687_v16, %v1197_v0  ;;  %v10531_v57 = vld [vmem:[%s16519_s1 + $0xc80] sm:$0xf]  ;;  %v11682_v16 = vld [vmem:[%s16519_s1 + $0xc8c] sm:$0xf] }
 0x333   :  { %v13752_v40 = vadd.f32 %v5671_v59, %v5343_v8  ;;  %4726 = vmatmul.bf16.gmra.mxu0 %v10500_v3  ;;  %v5017_v13 = vadd.f32 %v5016_v24, %v4688_v37  ;;  %v11685_v59 = vld [vmem:[%s16519_s1 + $0xc9c] sm:$0xf0]  ;;  %v10533_v3 = vld [vmem:[%s16519_s1 + $0xca0] sm:$0xf0]  ;;  %v11686_v8 = vld [vmem:[%s16519_s1 + $0xca4] sm:$0xf0] }
 0x334   :  { %5055 = vmatmul.bf16.gmra.mxu1 %v10504_v21  ;;  %v10539_v21 = vld [vmem:[%s16519_s1 + $0xc88] sm:$0xf]  ;;  %v10541_v24 = vld [vmem:[%s16519_s1 + $0xca8] sm:$0xf0]  ;;  %v10532_v37 = vor.u32 %v11685_v59, %v10531_v57  ;;  %v1212_v57 = vpop.permute.xlu1 %1211 }
 0x335   :  { %16568 = vst [vmem:[#allocation50_spill] sm:$0xff] %v13752_v40  ;;  %5384 = vmatmul.bf16.gmra.mxu2 %v10508_v9  ;;  %v1207_v9 = vpop.permute.xlu0 %1206 }
 0x336   :  { %5713 = vmatmul.bf16.gmra.mxu3 %v10512_v4 }
 0x338   :  { %v5345_v32 = vpop.f32.mrf.mxu2  ;;  %v4689_v26 = vpop.f32.mrf.mxu0 }
 0x339   :  { %v5674_v27 = vpop.f32.mrf.mxu3  ;;  %v5346_v39 = vadd.f32 %v5345_v32, %v5017_v13  ;;  %v5018_v44 = vpop.f32.mrf.mxu1  ;;  %v4690_v17 = vadd.f32 %v4689_v26, %v1202_v43  ;;  %v11681_v13 = vld [vmem:[%s16519_s1 + $0xc84] sm:$0xf]  ;;  %v10540_v26 = vor.u32 %v11686_v8, %v10539_v21 }
 0x33a   :  { %v10536_v43 = vor.u32 %v11681_v13, %v10533_v3 }
 0x33b   :  { %v13757_v48 = vadd.f32 %v5674_v27, %v5346_v39  ;;  %v5019_v0 = vadd.f32 %v5018_v44, %v4690_v17  ;;  %v10544_v44 = vor.u32 %v11682_v16, %v10541_v24 }
 0x33d   :  { %16569 = vst [vmem:[#allocation51_spill] sm:$0xff] %v13757_v48 }
 0x340   :  { %v5347_v4 = vpop.f32.mrf.mxu2  ;;  %v4692_v27 = vpop.f32.mrf.mxu0 }
 0x341   :  { %v5676_v22 = vpop.f32.mrf.mxu3  ;;  %v5348_v32 = vadd.f32 %v5347_v4, %v5019_v0  ;;  %v5021_v39 = vpop.f32.mrf.mxu1  ;;  %v4693_v17 = vadd.f32 %v4692_v27, %v1207_v9  ;;  %v759_v0 = vld [vmem:[%s16520_s2 + $0x338] sm:$0xff]  ;;  %v10563_v4 = vld [vmem:[%s16519_s1 + $0xcc0] sm:$0xf]  ;;  %v11694_v27 = vld [vmem:[%s16519_s1 + $0xce4] sm:$0xf0] }
 0x342   :  { %1301 = vperm.xlu1 %11856, %v759_v0  }
 0x343   :  { %v13786_v48 = vadd.f32 %v5676_v22, %v5348_v32  ;;  %4731 = vmatmul.bf16.gmra.mxu0 %v10532_v37  ;;  %v5022_v40 = vadd.f32 %v5021_v39, %v4693_v17  ;;  %v11693_v22 = vld [vmem:[%s16519_s1 + $0xcdc] sm:$0xf0]  ;;  %v757_v37 = vld [vmem:[%s16520_s2 + $0x328] sm:$0xff] }
 0x344   :  { %5060 = vmatmul.bf16.gmra.mxu1 %v10536_v43  ;;  %v10565_v43 = vld [vmem:[%s16519_s1 + $0xce0] sm:$0xf0]  ;;  %v10571_v32 = vld [vmem:[%s16519_s1 + $0xcc8] sm:$0xf]  ;;  %1291 = vperm.xlu2 %11857, %v757_v37   ;;  %v11690_v39 = vld [vmem:[%s16519_s1 + $0xccc] sm:$0xf]  ;;  %v10564_v0 = vor.u32 %v11693_v22, %v10563_v4  ;;  %v1222_v4 = vpop.permute.xlu0 %1221 }
 0x345   :  { %16570 = vst [vmem:[#allocation52_spill] sm:$0xff] %v13786_v48  ;;  %5389 = vmatmul.bf16.gmra.mxu2 %v10540_v26  ;;  %v10573_v26 = vld [vmem:[%s16519_s1 + $0xce8] sm:$0xf0] }
 0x346   :  { %5718 = vmatmul.bf16.gmra.mxu3 %v10544_v44  ;;  %v1217_v44 = vpop.permute.xlu2 %1216  ;;  %v761_v48 = vld [vmem:[%s16520_s2 + $0x348] sm:$0xff] }
 0x347   :  { %1311 = vperm.xlu0 %11855, %v761_v48   ;;  %v11697_v48 = vld [vmem:[%s16519_s1 + $0xd04] sm:$0xf] }
 0x348   :  { %v5350_v59 = vpop.f32.mrf.mxu2  ;;  %v4694_v21 = vpop.f32.mrf.mxu0 }
 0x349   :  { %v5679_v13 = vpop.f32.mrf.mxu3  ;;  %v5351_v3 = vadd.f32 %v5350_v59, %v5022_v40  ;;  %v5023_v8 = vpop.f32.mrf.mxu1  ;;  %v4695_v16 = vadd.f32 %v4694_v21, %v1212_v57  ;;  %v11689_v40 = vld [vmem:[%s16519_s1 + $0xcc4] sm:$0xf]  ;;  %v10572_v21 = vor.u32 %v11694_v27, %v10571_v32 }
 0x34a   :  { %v10568_v57 = vor.u32 %v11689_v40, %v10565_v43 }
 0x34b   :  { %v13791_v24 = vadd.f32 %v5679_v13, %v5351_v3  ;;  %v5024_v9 = vadd.f32 %v5023_v8, %v4695_v16  ;;  %v10576_v8 = vor.u32 %v11690_v39, %v10573_v26 }
 0x34d   :  { %16571 = vst [vmem:[#allocation53_spill] sm:$0xff] %v13791_v24 }
 0x350   :  { %v5352_v7 = vpop.f32.mrf.mxu2  ;;  %v4697_v13 = vpop.f32.mrf.mxu0 }
 0x351   :  { %v5681_v17 = vpop.f32.mrf.mxu3  ;;  %v5353_v59 = vadd.f32 %v5352_v7, %v5024_v9  ;;  %v5026_v3 = vpop.f32.mrf.mxu1  ;;  %v4698_v16 = vadd.f32 %v4697_v13, %v1217_v44  ;;  %v10595_v44 = vld [vmem:[%s16519_s1 + $0xd00] sm:$0xf] }
 0x352   :  { %v11701_v7 = vld [vmem:[%s16519_s1 + $0xd1c] sm:$0xf0]  ;;  %v1227_v13 = vpop.permute.xlu1 %1226 }
 0x353   :  { %v13820_v37 = vadd.f32 %v5681_v17, %v5353_v59  ;;  %4736 = vmatmul.bf16.gmra.mxu0 %v10564_v0  ;;  %v5027_v24 = vadd.f32 %v5026_v3, %v4698_v16  ;;  %v10603_v17 = vld [vmem:[%s16519_s1 + $0xd08] sm:$0xf]  ;;  %v10605_v59 = vld [vmem:[%s16519_s1 + $0xd28] sm:$0xf0] }
 0x354   :  { %5065 = vmatmul.bf16.gmra.mxu1 %v10568_v57  ;;  %v11702_v0 = vld [vmem:[%s16519_s1 + $0xd24] sm:$0xf0]  ;;  %v11698_v57 = vld [vmem:[%s16519_s1 + $0xd0c] sm:$0xf] }
 0x355   :  { %16572 = vst [vmem:[#allocation54_spill] sm:$0xff] %v13820_v37  ;;  %5394 = vmatmul.bf16.gmra.mxu2 %v10572_v21 }
 0x356   :  { %5723 = vmatmul.bf16.gmra.mxu3 %v10576_v8  ;;  %v10596_v8 = vor.u32 %v11701_v7, %v10595_v44  ;;  %v1232_v44 = vpop.permute.xlu2 %1231 }
 0x358   :  { %v5355_v22 = vpop.f32.mrf.mxu2  ;;  %v4699_v43 = vpop.f32.mrf.mxu0 }
 0x359   :  { %v5684_v9 = vpop.f32.mrf.mxu3  ;;  %v5356_v40 = vadd.f32 %v5355_v22, %v5027_v24  ;;  %v5028_v32 = vpop.f32.mrf.mxu1  ;;  %v4700_v27 = vadd.f32 %v4699_v43, %v1222_v4  ;;  %v10597_v24 = vld [vmem:[%s16519_s1 + $0xd20] sm:$0xf0]  ;;  %v10608_v43 = vor.u32 %v11698_v57, %v10605_v59 }
 0x35a   :  { %v10600_v16 = vor.u32 %v11697_v48, %v10597_v24 }
 0x35b   :  { %v13825_v39 = vadd.f32 %v5684_v9, %v5356_v40  ;;  %v5029_v26 = vadd.f32 %v5028_v32, %v4700_v27  ;;  %v10604_v40 = vor.u32 %v11702_v0, %v10603_v17  ;;  %v762_v32 = vld [vmem:[%s16520_s2 + $0x350] sm:$0xff]  ;;  %v760_v0 = vld [vmem:[%s16520_s2 + $0x340] sm:$0xff] }
 0x35c   :  { %1316 = vperm.xlu1 %11856, %v762_v32   ;;  %1306 = vperm.xlu2 %11857, %v760_v0   ;;  %v764_v0 = vld [vmem:[%s16520_s2 + $0x360] sm:$0xff] }
 0x35d   :  { %16573 = vst [vmem:[#allocation55_spill] sm:$0xff] %v13825_v39  ;;  %1326 = vperm.xlu0 %11855, %v764_v0  }
 0x360   :  { %v5357_v3 = vpop.f32.mrf.mxu2  ;;  %v4702_v22 = vpop.f32.mrf.mxu0 }
 0x361   :  { %v5686_v21 = vpop.f32.mrf.mxu3  ;;  %v5358_v4 = vadd.f32 %v5357_v3, %v5029_v26  ;;  %v5031_v9 = vpop.f32.mrf.mxu1  ;;  %v4703_v27 = vadd.f32 %v4702_v22, %v1227_v13  ;;  %v10627_v3 = vld [vmem:[%s16519_s1 + $0xd40] sm:$0xf]  ;;  %v11706_v22 = vld [vmem:[%s16519_s1 + $0xd4c] sm:$0xf] }
 0x363   :  { %v13854_v39 = vadd.f32 %v5686_v21, %v5358_v4  ;;  %4741 = vmatmul.bf16.gmra.mxu0 %v10596_v8  ;;  %v5032_v37 = vadd.f32 %v5031_v9, %v4703_v27  ;;  %v11709_v21 = vld [vmem:[%s16519_s1 + $0xd5c] sm:$0xf0]  ;;  %v10629_v8 = vld [vmem:[%s16519_s1 + $0xd60] sm:$0xf0]  ;;  %v11710_v4 = vld [vmem:[%s16519_s1 + $0xd64] sm:$0xf0] }
 0x364   :  { %5070 = vmatmul.bf16.gmra.mxu1 %v10600_v16  ;;  %v10635_v16 = vld [vmem:[%s16519_s1 + $0xd48] sm:$0xf]  ;;  %v10637_v9 = vld [vmem:[%s16519_s1 + $0xd68] sm:$0xf0]  ;;  %v10628_v27 = vor.u32 %v11709_v21, %v10627_v3  ;;  %v1242_v3 = vpop.permute.xlu1 %1241 }
 0x365   :  { %16574 = vst [vmem:[#allocation56_spill] sm:$0xff] %v13854_v39  ;;  %5399 = vmatmul.bf16.gmra.mxu2 %v10604_v40  ;;  %v1237_v40 = vpop.permute.xlu0 %1236 }
 0x366   :  { %5728 = vmatmul.bf16.gmra.mxu3 %v10608_v43 }
 0x368   :  { %v5360_v7 = vpop.f32.mrf.mxu2  ;;  %v4704_v24 = vpop.f32.mrf.mxu0 }
 0x369   :  { %v5689_v26 = vpop.f32.mrf.mxu3  ;;  %v5361_v48 = vadd.f32 %v5360_v7, %v5032_v37  ;;  %v5033_v17 = vpop.f32.mrf.mxu1  ;;  %v4705_v57 = vadd.f32 %v4704_v24, %v1232_v44  ;;  %v11705_v37 = vld [vmem:[%s16519_s1 + $0xd44] sm:$0xf]  ;;  %v10636_v24 = vor.u32 %v11710_v4, %v10635_v16 }
 0x36a   :  { %v10632_v44 = vor.u32 %v11705_v37, %v10629_v8 }
 0x36b   :  { %v13859_v59 = vadd.f32 %v5689_v26, %v5361_v48  ;;  %v5034_v13 = vadd.f32 %v5033_v17, %v4705_v57  ;;  %v10640_v17 = vor.u32 %v11706_v22, %v10637_v9 }
 0x36d   :  { %16575 = vst [vmem:[#allocation57_spill] sm:$0xff] %v13859_v59 }
 0x370   :  { %v5362_v43 = vpop.f32.mrf.mxu2  ;;  %v4707_v26 = vpop.f32.mrf.mxu0 }
 0x371   :  { %v5691_v32 = vpop.f32.mrf.mxu3  ;;  %v5363_v7 = vadd.f32 %v5362_v43, %v5034_v13  ;;  %v5036_v48 = vpop.f32.mrf.mxu1  ;;  %v4708_v57 = vadd.f32 %v4707_v26, %v1237_v40  ;;  %v765_v13 = vld [vmem:[%s16520_s2 + $0x368] sm:$0xff]  ;;  %v10659_v43 = vld [vmem:[%s16519_s1 + $0xd80] sm:$0xf] }
 0x372   :  { %1331 = vperm.xlu1 %11856, %v765_v13   ;;  %v11718_v26 = vld [vmem:[%s16519_s1 + $0xda4] sm:$0xf0] }
 0x373   :  { %v13888_v59 = vadd.f32 %v5691_v32, %v5363_v7  ;;  %4746 = vmatmul.bf16.gmra.mxu0 %v10628_v27  ;;  %v5037_v39 = vadd.f32 %v5036_v48, %v4708_v57  ;;  %v11717_v32 = vld [vmem:[%s16519_s1 + $0xd9c] sm:$0xf0]  ;;  %v763_v27 = vld [vmem:[%s16520_s2 + $0x358] sm:$0xff]  ;;  %v10667_v7 = vld [vmem:[%s16519_s1 + $0xd88] sm:$0xf] }
 0x374   :  { %5075 = vmatmul.bf16.gmra.mxu1 %v10632_v44  ;;  %v10661_v44 = vld [vmem:[%s16519_s1 + $0xda0] sm:$0xf0]  ;;  %1321 = vperm.xlu2 %11857, %v763_v27   ;;  %v11714_v48 = vld [vmem:[%s16519_s1 + $0xd8c] sm:$0xf]  ;;  %v10660_v13 = vor.u32 %v11717_v32, %v10659_v43  ;;  %v767_v43 = vld [vmem:[%s16520_s2 + $0x378] sm:$0xff]  ;;  %v1252_v32 = vpop.permute.xlu0 %1251 }
 0x375   :  { %16576 = vst [vmem:[#allocation58_spill] sm:$0xff] %v13888_v59  ;;  %5404 = vmatmul.bf16.gmra.mxu2 %v10636_v24  ;;  %v10669_v24 = vld [vmem:[%s16519_s1 + $0xda8] sm:$0xf0]  ;;  %v11841_v59 = vld [vmem:[%s16518_s0 + $0x180] sm:$0xff]  ;;  %1341 = vperm.xlu0 %11855, %v767_v43  }
 0x376   :  { %5733 = vmatmul.bf16.gmra.mxu3 %v10640_v17  ;;  %v1247_v17 = vpop.permute.xlu2 %1246  ;;  %6454 = vmatpush.bf16.msrb.mxu2 %v11841_v59  ;;  %v11725_v59 = vld [vmem:[%s16519_s1 + $0xddc] sm:$0xf0] }
 0x378   :  { %v5365_v21 = vpop.f32.mrf.mxu2  ;;  %v4709_v16 = vpop.f32.mrf.mxu0 }
 0x379   :  { %v5694_v37 = vpop.f32.mrf.mxu3  ;;  %v5366_v8 = vadd.f32 %v5365_v21, %v5037_v39  ;;  %v5038_v4 = vpop.f32.mrf.mxu1  ;;  %v4710_v22 = vadd.f32 %v4709_v16, %v1242_v3  ;;  %v11713_v39 = vld [vmem:[%s16519_s1 + $0xd84] sm:$0xf]  ;;  %v10668_v16 = vor.u32 %v11718_v26, %v10667_v7 }
 0x37a   :  { %v10664_v3 = vor.u32 %v11713_v39, %v10661_v44 }
 0x37b   :  { %v13893_v9 = vadd.f32 %v5694_v37, %v5366_v8  ;;  %v5039_v40 = vadd.f32 %v5038_v4, %v4710_v22  ;;  %v10672_v4 = vor.u32 %v11714_v48, %v10669_v24 }
 0x37d   :  { %16577 = vst [vmem:[#allocation59_spill] sm:$0xff] %v13893_v9 }
 0x380   :  { %v5367_v0 = vpop.f32.mrf.mxu2  ;;  %v4712_v37 = vpop.f32.mrf.mxu0 }
 0x381   :  { %v5696_v57 = vpop.f32.mrf.mxu3  ;;  %v5368_v21 = vadd.f32 %v5367_v0, %v5039_v40  ;;  %v5041_v8 = vpop.f32.mrf.mxu1  ;;  %v4713_v22 = vadd.f32 %v4712_v37, %v1247_v17  ;;  %v11825_v40 = vld [vmem:[%s16518_s0 + $0x100] sm:$0xff]  ;;  %v11726_v37 = vld [vmem:[%s16519_s1 + $0xde4] sm:$0xf0] }
 0x382   :  { %5796 = vmatpush.bf16.msrb.mxu0 %v11825_v40  ;;  %v11833_v0 = vld [vmem:[%s16518_s0 + $0x140] sm:$0xff] }
 0x383   :  { %v13922_v27 = vadd.f32 %v5696_v57, %v5368_v21  ;;  %4751 = vmatmul.bf16.gmra.mxu0 %v10660_v13  ;;  %v5042_v9 = vadd.f32 %v5041_v8, %v4713_v22  ;;  %v10691_v13 = vld [vmem:[%s16519_s1 + $0xdc0] sm:$0xf]  ;;  %v10699_v21 = vld [vmem:[%s16519_s1 + $0xdc8] sm:$0xf]  ;;  %6125 = vmatpush.bf16.msrb.mxu1 %v11833_v0  ;;  %v11722_v8 = vld [vmem:[%s16519_s1 + $0xdcc] sm:$0xf] }
 0x384   :  { %5080 = vmatmul.bf16.gmra.mxu1 %v10664_v3  ;;  %v10693_v3 = vld [vmem:[%s16519_s1 + $0xde0] sm:$0xf0]  ;;  %v10692_v43 = vor.u32 %v11725_v59, %v10691_v13  ;;  %v1262_v13 = vpop.permute.xlu2 %1261 }
 0x385   :  { %16578 = vst [vmem:[#allocation60_spill] sm:$0xff] %v13922_v27  ;;  %5409 = vmatmul.bf16.gmra.mxu2 %v10668_v16  ;;  %v10701_v16 = vld [vmem:[%s16519_s1 + $0xde8] sm:$0xf0] }
 0x386   :  { %5738 = vmatmul.bf16.gmra.mxu3 %v10672_v4  ;;  %v1257_v4 = vpop.permute.xlu1 %1256 }
 0x388   :  { %v5370_v39 = vpop.f32.mrf.mxu2  ;;  %v4714_v26 = vpop.f32.mrf.mxu0 }
 0x389   :  { %v5699_v44 = vpop.f32.mrf.mxu3  ;;  %v5371_v7 = vadd.f32 %v5370_v39, %v5042_v9  ;;  %v5043_v48 = vpop.f32.mrf.mxu1  ;;  %v4715_v24 = vadd.f32 %v4714_v26, %v1252_v32  ;;  %v11721_v9 = vld [vmem:[%s16519_s1 + $0xdc4] sm:$0xf]  ;;  %v10700_v26 = vor.u32 %v11726_v37, %v10699_v21  ;;  %v766_v37 = vld [vmem:[%s16520_s2 + $0x370] sm:$0xff] }
 0x38a   :  { %v10696_v32 = vor.u32 %v11721_v9, %v10693_v3  ;;  %1336 = vperm.xlu2 %11857, %v766_v37   ;;  %v770_v37 = vld [vmem:[%s16520_s2 + $0x390] sm:$0xff] }
 0x38b   :  { %v13933_v17 = vadd.f32 %v5699_v44, %v5371_v7  ;;  %v5044_v57 = vadd.f32 %v5043_v48, %v4715_v24  ;;  %v10704_v48 = vor.u32 %v11722_v8, %v10701_v16  ;;  %v768_v24 = vld [vmem:[%s16520_s2 + $0x380] sm:$0xff]  ;;  %1356 = vperm.xlu0 %11855, %v770_v37  }
 0x38c   :  { %1346 = vperm.xlu1 %11856, %v768_v24  }
 0x38d   :  { %16579 = vst [vmem:[#allocation61_spill] sm:$0xff] %v13933_v17 }
 0x390   :  { %v5372_v22 = vpop.f32.mrf.mxu2  ;;  %v4717_v44 = vpop.f32.mrf.mxu0 }
 0x391   :  { %v5701_v40 = vpop.f32.mrf.mxu3  ;;  %v5373_v39 = vadd.f32 %v5372_v22, %v5044_v57  ;;  %v5046_v7 = vpop.f32.mrf.mxu1  ;;  %v4718_v0 = vadd.f32 %v4717_v44, %v1257_v4  ;;  %v10723_v22 = vld [vmem:[%s16519_s1 + $0xe00] sm:$0xf]  ;;  %v11730_v44 = vld [vmem:[%s16519_s1 + $0xe0c] sm:$0xf] }
 0x393   :  { %v13965_v17 = vadd.f32 %v5701_v40, %v5373_v39  ;;  %4756 = vmatmul.bf16.gmra.mxu0 %v10692_v43  ;;  %v5047_v27 = vadd.f32 %v5046_v7, %v4718_v0  ;;  %v11733_v40 = vld [vmem:[%s16519_s1 + $0xe1c] sm:$0xf0]  ;;  %v10725_v43 = vld [vmem:[%s16519_s1 + $0xe20] sm:$0xf0]  ;;  %v11734_v39 = vld [vmem:[%s16519_s1 + $0xe24] sm:$0xf0] }
 0x394   :  { %5085 = vmatmul.bf16.gmra.mxu1 %v10696_v32  ;;  %v10731_v32 = vld [vmem:[%s16519_s1 + $0xe08] sm:$0xf]  ;;  %v10733_v7 = vld [vmem:[%s16519_s1 + $0xe28] sm:$0xf0]  ;;  %v10724_v0 = vor.u32 %v11733_v40, %v10723_v22  ;;  %v1272_v22 = vpop.permute.xlu1 %1271 }
 0x395   :  { %16580 = vst [vmem:[#allocation62_spill] sm:$0xff] %v13965_v17  ;;  %5414 = vmatmul.bf16.gmra.mxu2 %v10700_v26  ;;  %v1267_v26 = vpop.permute.xlu0 %1266 }
 0x396   :  { %5743 = vmatmul.bf16.gmra.mxu3 %v10704_v48 }
 0x398   :  { %v5375_v59 = vpop.f32.mrf.mxu2  ;;  %v4719_v3 = vpop.f32.mrf.mxu0 }
 0x399   :  { %v5704_v57 = vpop.f32.mrf.mxu3  ;;  %v5376_v9 = vadd.f32 %v5375_v59, %v5047_v27  ;;  %v5048_v21 = vpop.f32.mrf.mxu1  ;;  %v4720_v8 = vadd.f32 %v4719_v3, %v1262_v13  ;;  %v11729_v27 = vld [vmem:[%s16519_s1 + $0xe04] sm:$0xf]  ;;  %v10732_v3 = vor.u32 %v11734_v39, %v10731_v32 }
 0x39a   :  { %v10728_v13 = vor.u32 %v11729_v27, %v10725_v43 }
 0x39b   :  { %v13970_v16 = vadd.f32 %v5704_v57, %v5376_v9  ;;  %v5049_v4 = vadd.f32 %v5048_v21, %v4720_v8  ;;  %v10736_v21 = vor.u32 %v11730_v44, %v10733_v7 }
 0x39d   :  { %16581 = vst [vmem:[#allocation63_spill] sm:$0xff] %v13970_v16 }
 0x3a0   :  { %v5377_v48 = vpop.f32.mrf.mxu2  ;;  %v4722_v57 = vpop.f32.mrf.mxu0 }
 0x3a1   :  { %v5706_v24 = vpop.f32.mrf.mxu3  ;;  %v5378_v59 = vadd.f32 %v5377_v48, %v5049_v4  ;;  %v5051_v9 = vpop.f32.mrf.mxu1  ;;  %v4723_v8 = vadd.f32 %v4722_v57, %v1267_v26  ;;  %v771_v4 = vld [vmem:[%s16520_s2 + $0x398] sm:$0xff]  ;;  %v10755_v48 = vld [vmem:[%s16519_s1 + $0xe40] sm:$0xf]  ;;  %v11742_v57 = vld [vmem:[%s16519_s1 + $0xe64] sm:$0xf0] }
 0x3a2   :  { %1361 = vperm.xlu1 %11856, %v771_v4  }
 0x3a3   :  { %v13999_v16 = vadd.f32 %v5706_v24, %v5378_v59  ;;  %4761 = vmatmul.bf16.gmra.mxu0 %v10724_v0  ;;  %v5052_v17 = vadd.f32 %v5051_v9, %v4723_v8  ;;  %v11741_v24 = vld [vmem:[%s16519_s1 + $0xe5c] sm:$0xf0]  ;;  %v769_v0 = vld [vmem:[%s16520_s2 + $0x388] sm:$0xff] }
 0x3a4   :  { %5090 = vmatmul.bf16.gmra.mxu1 %v10728_v13  ;;  %v10757_v13 = vld [vmem:[%s16519_s1 + $0xe60] sm:$0xf0]  ;;  %v10763_v59 = vld [vmem:[%s16519_s1 + $0xe48] sm:$0xf]  ;;  %1351 = vperm.xlu2 %11857, %v769_v0   ;;  %v11738_v9 = vld [vmem:[%s16519_s1 + $0xe4c] sm:$0xf]  ;;  %v10756_v4 = vor.u32 %v11741_v24, %v10755_v48  ;;  %v1282_v48 = vpop.permute.xlu0 %1281 }
 0x3a5   :  { %16582 = vst [vmem:[#allocation64_spill] sm:$0xff] %v13999_v16  ;;  %5419 = vmatmul.bf16.gmra.mxu2 %v10732_v3  ;;  %v10765_v3 = vld [vmem:[%s16519_s1 + $0xe68] sm:$0xf0] }
 0x3a6   :  { %5748 = vmatmul.bf16.gmra.mxu3 %v10736_v21  ;;  %v1277_v21 = vpop.permute.xlu2 %1276  ;;  %v773_v16 = vld [vmem:[%s16520_s2 + $0x3a8] sm:$0xff] }
 0x3a7   :  { %1371 = vperm.xlu0 %11855, %v773_v16   ;;  %v11745_v16 = vld [vmem:[%s16519_s1 + $0xe84] sm:$0xf] }
 0x3a8   :  { %v5380_v40 = vpop.f32.mrf.mxu2  ;;  %v4724_v32 = vpop.f32.mrf.mxu0 }
 0x3a9   :  { %v5709_v27 = vpop.f32.mrf.mxu3  ;;  %v5381_v43 = vadd.f32 %v5380_v40, %v5052_v17  ;;  %v5053_v39 = vpop.f32.mrf.mxu1  ;;  %v4725_v44 = vadd.f32 %v4724_v32, %v1272_v22  ;;  %v11737_v17 = vld [vmem:[%s16519_s1 + $0xe44] sm:$0xf]  ;;  %v10764_v32 = vor.u32 %v11742_v57, %v10763_v59 }
 0x3aa   :  { %v10760_v22 = vor.u32 %v11737_v17, %v10757_v13 }
 0x3ab   :  { %v14004_v7 = vadd.f32 %v5709_v27, %v5381_v43  ;;  %v5054_v26 = vadd.f32 %v5053_v39, %v4725_v44  ;;  %v10768_v39 = vor.u32 %v11738_v9, %v10765_v3 }
 0x3ad   :  { %16583 = vst [vmem:[#allocation65_spill] sm:$0xff] %v14004_v7 }
 0x3b0   :  { %v5382_v37 = vpop.f32.mrf.mxu2  ;;  %v4727_v27 = vpop.f32.mrf.mxu0 }
 0x3b1   :  { %v5711_v8 = vpop.f32.mrf.mxu3  ;;  %v5383_v40 = vadd.f32 %v5382_v37, %v5054_v26  ;;  %v5056_v43 = vpop.f32.mrf.mxu1  ;;  %v4728_v44 = vadd.f32 %v4727_v27, %v1277_v21  ;;  %v10787_v21 = vld [vmem:[%s16519_s1 + $0xe80] sm:$0xf] }
 0x3b2   :  { %v11749_v37 = vld [vmem:[%s16519_s1 + $0xe9c] sm:$0xf0]  ;;  %v1287_v27 = vpop.permute.xlu1 %1286 }
 0x3b3   :  { %v14033_v0 = vadd.f32 %v5711_v8, %v5383_v40  ;;  %4766 = vmatmul.bf16.gmra.mxu0 %v10756_v4  ;;  %v5057_v7 = vadd.f32 %v5056_v43, %v4728_v44  ;;  %v10795_v8 = vld [vmem:[%s16519_s1 + $0xe88] sm:$0xf]  ;;  %v10797_v40 = vld [vmem:[%s16519_s1 + $0xea8] sm:$0xf0] }
 0x3b4   :  { %5095 = vmatmul.bf16.gmra.mxu1 %v10760_v22  ;;  %v11750_v4 = vld [vmem:[%s16519_s1 + $0xea4] sm:$0xf0]  ;;  %v11746_v22 = vld [vmem:[%s16519_s1 + $0xe8c] sm:$0xf] }
 0x3b5   :  { %16584 = vst [vmem:[#allocation66_spill] sm:$0xff] %v14033_v0  ;;  %5424 = vmatmul.bf16.gmra.mxu2 %v10764_v32 }
 0x3b6   :  { %5753 = vmatmul.bf16.gmra.mxu3 %v10768_v39  ;;  %v10788_v39 = vor.u32 %v11749_v37, %v10787_v21  ;;  %v1292_v21 = vpop.permute.xlu2 %1291 }
 0x3b8   :  { %v5385_v24 = vpop.f32.mrf.mxu2  ;;  %v4729_v13 = vpop.f32.mrf.mxu0 }
 0x3b9   :  { %v5714_v26 = vpop.f32.mrf.mxu3  ;;  %v5386_v17 = vadd.f32 %v5385_v24, %v5057_v7  ;;  %v5058_v59 = vpop.f32.mrf.mxu1  ;;  %v4730_v57 = vadd.f32 %v4729_v13, %v1282_v48  ;;  %v10789_v7 = vld [vmem:[%s16519_s1 + $0xea0] sm:$0xf0]  ;;  %v10800_v13 = vor.u32 %v11746_v22, %v10797_v40 }
 0x3ba   :  { %v10792_v44 = vor.u32 %v11745_v16, %v10789_v7 }
 0x3bb   :  { %v14038_v9 = vadd.f32 %v5714_v26, %v5386_v17  ;;  %v5059_v3 = vadd.f32 %v5058_v59, %v4730_v57  ;;  %v10796_v17 = vor.u32 %v11750_v4, %v10795_v8  ;;  %v774_v59 = vld [vmem:[%s16520_s2 + $0x3b0] sm:$0xff]  ;;  %v772_v4 = vld [vmem:[%s16520_s2 + $0x3a0] sm:$0xff] }
 0x3bc   :  { %1376 = vperm.xlu1 %11856, %v774_v59   ;;  %1366 = vperm.xlu2 %11857, %v772_v4   ;;  %v776_v4 = vld [vmem:[%s16520_s2 + $0x3c0] sm:$0xff] }
 0x3bd   :  { %16585 = vst [vmem:[#allocation67_spill] sm:$0xff] %v14038_v9  ;;  %1386 = vperm.xlu0 %11855, %v776_v4  }
 0x3c0   :  { %v5387_v43 = vpop.f32.mrf.mxu2  ;;  %v4732_v24 = vpop.f32.mrf.mxu0 }
 0x3c1   :  { %v5716_v32 = vpop.f32.mrf.mxu3  ;;  %v5388_v48 = vadd.f32 %v5387_v43, %v5059_v3  ;;  %v5061_v26 = vpop.f32.mrf.mxu1  ;;  %v4733_v57 = vadd.f32 %v4732_v24, %v1287_v27  ;;  %v10819_v43 = vld [vmem:[%s16519_s1 + $0xec0] sm:$0xf]  ;;  %v11754_v24 = vld [vmem:[%s16519_s1 + $0xecc] sm:$0xf] }
 0x3c3   :  { %v14067_v9 = vadd.f32 %v5716_v32, %v5388_v48  ;;  %4771 = vmatmul.bf16.gmra.mxu0 %v10788_v39  ;;  %v5062_v0 = vadd.f32 %v5061_v26, %v4733_v57  ;;  %v11757_v32 = vld [vmem:[%s16519_s1 + $0xedc] sm:$0xf0]  ;;  %v10821_v39 = vld [vmem:[%s16519_s1 + $0xee0] sm:$0xf0]  ;;  %v11758_v48 = vld [vmem:[%s16519_s1 + $0xee4] sm:$0xf0] }
 0x3c4   :  { %5100 = vmatmul.bf16.gmra.mxu1 %v10792_v44  ;;  %v10827_v44 = vld [vmem:[%s16519_s1 + $0xec8] sm:$0xf]  ;;  %v10829_v26 = vld [vmem:[%s16519_s1 + $0xee8] sm:$0xf0]  ;;  %v10820_v57 = vor.u32 %v11757_v32, %v10819_v43  ;;  %v1302_v43 = vpop.permute.xlu1 %1301 }
 0x3c5   :  { %16586 = vst [vmem:[#allocation68_spill] sm:$0xff] %v14067_v9  ;;  %5429 = vmatmul.bf16.gmra.mxu2 %v10796_v17  ;;  %v1297_v17 = vpop.permute.xlu0 %1296 }
 0x3c6   :  { %5758 = vmatmul.bf16.gmra.mxu3 %v10800_v13 }
 0x3c8   :  { %v5390_v37 = vpop.f32.mrf.mxu2  ;;  %v4734_v7 = vpop.f32.mrf.mxu0 }
 0x3c9   :  { %v5719_v3 = vpop.f32.mrf.mxu3  ;;  %v5391_v16 = vadd.f32 %v5390_v37, %v5062_v0  ;;  %v5063_v8 = vpop.f32.mrf.mxu1  ;;  %v4735_v22 = vadd.f32 %v4734_v7, %v1292_v21  ;;  %v11753_v0 = vld [vmem:[%s16519_s1 + $0xec4] sm:$0xf]  ;;  %v10828_v7 = vor.u32 %v11758_v48, %v10827_v44 }
 0x3ca   :  { %v10824_v21 = vor.u32 %v11753_v0, %v10821_v39 }
 0x3cb   :  { %v14072_v40 = vadd.f32 %v5719_v3, %v5391_v16  ;;  %v5064_v27 = vadd.f32 %v5063_v8, %v4735_v22  ;;  %v10832_v8 = vor.u32 %v11754_v24, %v10829_v26 }
 0x3cd   :  { %16587 = vst [vmem:[#allocation69_spill] sm:$0xff] %v14072_v40 }
 0x3d0   :  { %v5392_v13 = vpop.f32.mrf.mxu2  ;;  %v4737_v3 = vpop.f32.mrf.mxu0 }
 0x3d1   :  { %v5721_v59 = vpop.f32.mrf.mxu3  ;;  %v5393_v37 = vadd.f32 %v5392_v13, %v5064_v27  ;;  %v5066_v16 = vpop.f32.mrf.mxu1  ;;  %v4738_v22 = vadd.f32 %v4737_v3, %v1297_v17  ;;  %v777_v27 = vld [vmem:[%s16520_s2 + $0x3c8] sm:$0xff]  ;;  %v10851_v13 = vld [vmem:[%s16519_s1 + $0xf00] sm:$0xf] }
 0x3d2   :  { %1391 = vperm.xlu1 %11856, %v777_v27   ;;  %v11766_v3 = vld [vmem:[%s16519_s1 + $0xf24] sm:$0xf0] }
 0x3d3   :  { %v14101_v40 = vadd.f32 %v5721_v59, %v5393_v37  ;;  %4776 = vmatmul.bf16.gmra.mxu0 %v10820_v57  ;;  %v5067_v9 = vadd.f32 %v5066_v16, %v4738_v22  ;;  %v11765_v59 = vld [vmem:[%s16519_s1 + $0xf1c] sm:$0xf0]  ;;  %v775_v57 = vld [vmem:[%s16520_s2 + $0x3b8] sm:$0xff]  ;;  %v10859_v37 = vld [vmem:[%s16519_s1 + $0xf08] sm:$0xf] }
 0x3d4   :  { %5105 = vmatmul.bf16.gmra.mxu1 %v10824_v21  ;;  %v10853_v21 = vld [vmem:[%s16519_s1 + $0xf20] sm:$0xf0]  ;;  %1381 = vperm.xlu2 %11857, %v775_v57   ;;  %v11762_v16 = vld [vmem:[%s16519_s1 + $0xf0c] sm:$0xf]  ;;  %v10852_v27 = vor.u32 %v11765_v59, %v10851_v13  ;;  %v1312_v13 = vpop.permute.xlu0 %1311 }
 0x3d5   :  { %16588 = vst [vmem:[#allocation70_spill] sm:$0xff] %v14101_v40  ;;  %5434 = vmatmul.bf16.gmra.mxu2 %v10828_v7  ;;  %v10861_v7 = vld [vmem:[%s16519_s1 + $0xf28] sm:$0xf0]  ;;  %v779_v40 = vld [vmem:[%s16520_s2 + $0x3d8] sm:$0xff] }
 0x3d6   :  { %5763 = vmatmul.bf16.gmra.mxu3 %v10832_v8  ;;  %v1307_v8 = vpop.permute.xlu2 %1306  ;;  %1401 = vperm.xlu0 %11855, %v779_v40   ;;  %v11769_v40 = vld [vmem:[%s16519_s1 + $0xf44] sm:$0xf] }
 0x3d8   :  { %v5395_v32 = vpop.f32.mrf.mxu2  ;;  %v4739_v44 = vpop.f32.mrf.mxu0 }
 0x3d9   :  { %v5724_v0 = vpop.f32.mrf.mxu3  ;;  %v5396_v39 = vadd.f32 %v5395_v32, %v5067_v9  ;;  %v5068_v48 = vpop.f32.mrf.mxu1  ;;  %v4740_v24 = vadd.f32 %v4739_v44, %v1302_v43  ;;  %v11761_v9 = vld [vmem:[%s16519_s1 + $0xf04] sm:$0xf]  ;;  %v10860_v44 = vor.u32 %v11766_v3, %v10859_v37 }
 0x3da   :  { %v10856_v43 = vor.u32 %v11761_v9, %v10853_v21 }
 0x3db   :  { %v14106_v26 = vadd.f32 %v5724_v0, %v5396_v39  ;;  %v5069_v17 = vadd.f32 %v5068_v48, %v4740_v24  ;;  %v10864_v48 = vor.u32 %v11762_v16, %v10861_v7 }
 0x3dd   :  { %16589 = vst [vmem:[#allocation71_spill] sm:$0xff] %v14106_v26 }
 0x3e0   :  { %v5397_v4 = vpop.f32.mrf.mxu2  ;;  %v4742_v0 = vpop.f32.mrf.mxu0 }
 0x3e1   :  { %v5726_v22 = vpop.f32.mrf.mxu3  ;;  %v5398_v32 = vadd.f32 %v5397_v4, %v5069_v17  ;;  %v5071_v39 = vpop.f32.mrf.mxu1  ;;  %v4743_v24 = vadd.f32 %v4742_v0, %v1307_v8  ;;  %v10883_v8 = vld [vmem:[%s16519_s1 + $0xf40] sm:$0xf] }
 0x3e2   :  { %v11773_v4 = vld [vmem:[%s16519_s1 + $0xf5c] sm:$0xf0]  ;;  %v1317_v0 = vpop.permute.xlu1 %1316 }
 0x3e3   :  { %v14135_v57 = vadd.f32 %v5726_v22, %v5398_v32  ;;  %4781 = vmatmul.bf16.gmra.mxu0 %v10852_v27  ;;  %v5072_v26 = vadd.f32 %v5071_v39, %v4743_v24  ;;  %v10891_v22 = vld [vmem:[%s16519_s1 + $0xf48] sm:$0xf]  ;;  %v10893_v32 = vld [vmem:[%s16519_s1 + $0xf68] sm:$0xf0] }
 0x3e4   :  { %5110 = vmatmul.bf16.gmra.mxu1 %v10856_v43  ;;  %v11774_v27 = vld [vmem:[%s16519_s1 + $0xf64] sm:$0xf0]  ;;  %v11770_v43 = vld [vmem:[%s16519_s1 + $0xf4c] sm:$0xf] }
 0x3e5   :  { %16590 = vst [vmem:[#allocation72_spill] sm:$0xff] %v14135_v57  ;;  %5439 = vmatmul.bf16.gmra.mxu2 %v10860_v44 }
 0x3e6   :  { %5768 = vmatmul.bf16.gmra.mxu3 %v10864_v48  ;;  %v10884_v48 = vor.u32 %v11773_v4, %v10883_v8  ;;  %v1322_v8 = vpop.permute.xlu2 %1321 }
 0x3e8   :  { %v5400_v59 = vpop.f32.mrf.mxu2  ;;  %v4744_v21 = vpop.f32.mrf.mxu0 }
 0x3e9   :  { %v5729_v17 = vpop.f32.mrf.mxu3  ;;  %v5401_v9 = vadd.f32 %v5400_v59, %v5072_v26  ;;  %v5073_v37 = vpop.f32.mrf.mxu1  ;;  %v4745_v3 = vadd.f32 %v4744_v21, %v1312_v13  ;;  %v10885_v26 = vld [vmem:[%s16519_s1 + $0xf60] sm:$0xf0]  ;;  %v10896_v21 = vor.u32 %v11770_v43, %v10893_v32 }
 0x3ea   :  { %v10888_v24 = vor.u32 %v11769_v40, %v10885_v26 }
 0x3eb   :  { %v14140_v16 = vadd.f32 %v5729_v17, %v5401_v9  ;;  %v5074_v7 = vadd.f32 %v5073_v37, %v4745_v3  ;;  %v10892_v9 = vor.u32 %v11774_v27, %v10891_v22  ;;  %v780_v37 = vld [vmem:[%s16520_s2 + $0x3e0] sm:$0xff]  ;;  %v778_v27 = vld [vmem:[%s16520_s2 + $0x3d0] sm:$0xff] }
 0x3ec   :  { %1406 = vperm.xlu1 %11856, %v780_v37   ;;  %1396 = vperm.xlu2 %11857, %v778_v27   ;;  %v782_v27 = vld [vmem:[%s16520_s2 + $0x3f0] sm:$0xff] }
 0x3ed   :  { %16591 = vst [vmem:[#allocation73_spill] sm:$0xff] %v14140_v16  ;;  %1416 = vperm.xlu0 %11855, %v782_v27  }
 0x3f0   :  { %v5402_v39 = vpop.f32.mrf.mxu2  ;;  %v4747_v59 = vpop.f32.mrf.mxu0 }
 0x3f1   :  { %v5731_v44 = vpop.f32.mrf.mxu3  ;;  %v5403_v13 = vadd.f32 %v5402_v39, %v5074_v7  ;;  %v5076_v17 = vpop.f32.mrf.mxu1  ;;  %v4748_v3 = vadd.f32 %v4747_v59, %v1317_v0  ;;  %v10915_v39 = vld [vmem:[%s16519_s1 + $0xf80] sm:$0xf]  ;;  %v11778_v59 = vld [vmem:[%s16519_s1 + $0xf8c] sm:$0xf] }
 0x3f3   :  { %v14169_v16 = vadd.f32 %v5731_v44, %v5403_v13  ;;  %4786 = vmatmul.bf16.gmra.mxu0 %v10884_v48  ;;  %v5077_v57 = vadd.f32 %v5076_v17, %v4748_v3  ;;  %v11781_v44 = vld [vmem:[%s16519_s1 + $0xf9c] sm:$0xf0]  ;;  %v10917_v48 = vld [vmem:[%s16519_s1 + $0xfa0] sm:$0xf0]  ;;  %v11782_v13 = vld [vmem:[%s16519_s1 + $0xfa4] sm:$0xf0] }
 0x3f4   :  { %5115 = vmatmul.bf16.gmra.mxu1 %v10888_v24  ;;  %v10923_v24 = vld [vmem:[%s16519_s1 + $0xf88] sm:$0xf]  ;;  %v10925_v17 = vld [vmem:[%s16519_s1 + $0xfa8] sm:$0xf0]  ;;  %v10916_v3 = vor.u32 %v11781_v44, %v10915_v39  ;;  %v1332_v39 = vpop.permute.xlu1 %1331 }
 0x3f5   :  { %16592 = vst [vmem:[#allocation74_spill] sm:$0xff] %v14169_v16  ;;  %5444 = vmatmul.bf16.gmra.mxu2 %v10892_v9  ;;  %v1327_v9 = vpop.permute.xlu0 %1326 }
 0x3f6   :  { %5773 = vmatmul.bf16.gmra.mxu3 %v10896_v21 }
 0x3f8   :  { %v5405_v4 = vpop.f32.mrf.mxu2  ;;  %v4749_v26 = vpop.f32.mrf.mxu0 }
 0x3f9   :  { %v5734_v7 = vpop.f32.mrf.mxu3  ;;  %v5406_v40 = vadd.f32 %v5405_v4, %v5077_v57  ;;  %v5078_v22 = vpop.f32.mrf.mxu1  ;;  %v4750_v43 = vadd.f32 %v4749_v26, %v1322_v8  ;;  %v11777_v57 = vld [vmem:[%s16519_s1 + $0xf84] sm:$0xf]  ;;  %v10924_v26 = vor.u32 %v11782_v13, %v10923_v24 }
 0x3fa   :  { %v10920_v8 = vor.u32 %v11777_v57, %v10917_v48 }
 0x3fb   :  { %v14174_v32 = vadd.f32 %v5734_v7, %v5406_v40  ;;  %v5079_v0 = vadd.f32 %v5078_v22, %v4750_v43  ;;  %v10928_v22 = vor.u32 %v11778_v59, %v10925_v17 }
 0x3fd   :  { %16593 = vst [vmem:[#allocation75_spill] sm:$0xff] %v14174_v32 }
 0x400   :  { %v5407_v21 = vpop.f32.mrf.mxu2  ;;  %v4752_v7 = vpop.f32.mrf.mxu0 }
 0x401   :  { %v5736_v37 = vpop.f32.mrf.mxu3  ;;  %v5408_v4 = vadd.f32 %v5407_v21, %v5079_v0  ;;  %v5081_v40 = vpop.f32.mrf.mxu1  ;;  %v4753_v43 = vadd.f32 %v4752_v7, %v1327_v9  ;;  %v783_v0 = vld [vmem:[%s16520_s2 + $0x3f8] sm:$0xff]  ;;  %v10947_v21 = vld [vmem:[%s16519_s1 + $0xfc0] sm:$0xf]  ;;  %v11790_v7 = vld [vmem:[%s16519_s1 + $0xfe4] sm:$0xf0] }
 0x402   :  { %1421 = vperm.xlu1 %11856, %v783_v0  }
 0x403   :  { %v14203_v32 = vadd.f32 %v5736_v37, %v5408_v4  ;;  %4791 = vmatmul.bf16.gmra.mxu0 %v10916_v3  ;;  %v5082_v16 = vadd.f32 %v5081_v40, %v4753_v43  ;;  %v11789_v37 = vld [vmem:[%s16519_s1 + $0xfdc] sm:$0xf0]  ;;  %v781_v3 = vld [vmem:[%s16520_s2 + $0x3e8] sm:$0xff] }
 0x404   :  { %5120 = vmatmul.bf16.gmra.mxu1 %v10920_v8  ;;  %v10949_v8 = vld [vmem:[%s16519_s1 + $0xfe0] sm:$0xf0]  ;;  %v10955_v4 = vld [vmem:[%s16519_s1 + $0xfc8] sm:$0xf]  ;;  %1411 = vperm.xlu2 %11857, %v781_v3   ;;  %v11786_v40 = vld [vmem:[%s16519_s1 + $0xfcc] sm:$0xf]  ;;  %v10948_v0 = vor.u32 %v11789_v37, %v10947_v21 }
 0x405   :  { %16594 = vst [vmem:[#allocation76_spill] sm:$0xff] %v14203_v32  ;;  %5449 = vmatmul.bf16.gmra.mxu2 %v10924_v26  ;;  %v10957_v26 = vld [vmem:[%s16519_s1 + $0xfe8] sm:$0xf0]  ;;  %v1342_v32 = vpop.permute.xlu0 %1341 }
 0x406   :  { %5778 = vmatmul.bf16.gmra.mxu3 %v10928_v22  ;;  %v1337_v22 = vpop.permute.xlu2 %1336 }
 0x408   :  { %v5410_v44 = vpop.f32.mrf.mxu2  ;;  %v4754_v24 = vpop.f32.mrf.mxu0 }
 0x409   :  { %v5739_v57 = vpop.f32.mrf.mxu3  ;;  %v5411_v48 = vadd.f32 %v5410_v44, %v5082_v16  ;;  %v5083_v13 = vpop.f32.mrf.mxu1  ;;  %v4755_v59 = vadd.f32 %v4754_v24, %v1332_v39  ;;  %v11785_v16 = vld [vmem:[%s16519_s1 + $0xfc4] sm:$0xf]  ;;  %v10956_v24 = vor.u32 %v11790_v7, %v10955_v4  ;;  %v11287_v4 = vld [vmem:[%s16519_s1 + $0x2c] sm:$0xf0]  ;;  %v11283_v7 = vld [vmem:[%s16519_s1 + $0x14] sm:$0xf] }
 0x40a   :  { %v10952_v39 = vor.u32 %v11785_v16, %v10949_v8  ;;  %v8947_v8 = vld [vmem:[%s16519_s1 + $0x10] sm:$0xf] }
 0x40b   :  { %v14208_v17 = vadd.f32 %v5739_v57, %v5411_v48  ;;  %v5084_v9 = vadd.f32 %v5083_v13, %v4755_v59  ;;  %v10960_v13 = vor.u32 %v11786_v40, %v10957_v26 }
 0x40d   :  { %16595 = vst [vmem:[#allocation77_spill] sm:$0xff] %v14208_v17 }
 0x410   :  { %v5412_v27 = vpop.f32.mrf.mxu2  ;;  %v4757_v57 = vpop.f32.mrf.mxu0 }
 0x411   :  { %v5741_v43 = vpop.f32.mrf.mxu3  ;;  %v5413_v44 = vadd.f32 %v5412_v27, %v5084_v9  ;;  %v5086_v48 = vpop.f32.mrf.mxu1  ;;  %v4758_v59 = vadd.f32 %v4757_v57, %v1337_v22  ;;  %v8948_v22 = vor.u32 %v11287_v4, %v8947_v8 }
 0x413   :  { %v14237_v3 = vadd.f32 %v5741_v43, %v5413_v44  ;;  %4796 = vmatmul.bf16.gmra.mxu0 %v10948_v0  ;;  %v5087_v17 = vadd.f32 %v5086_v48, %v4758_v59 }
 0x414   :  { %5125 = vmatmul.bf16.gmra.mxu1 %v10952_v39 }
 0x415   :  { %5454 = vmatmul.bf16.gmra.mxu2 %v10956_v24 }
 0x416   :  { %5783 = vmatmul.bf16.gmra.mxu3 %v10960_v13  ;;  %v7746_v13 = vld [vmem:[%s16521_s3 + $0x8] sm:$0xff] }
 0x417   :  { %7880 = vperm.xlu0 %11855, %v7746_v13  }
 0x418   :  { %v5415_v19 = vpop.f32.mrf.mxu2  ;;  %v4759_v41 = vpop.f32.mrf.mxu0 }
 0x419   :  { %v5744_v62 = vpop.f32.mrf.mxu3  ;;  %v5416_v5 = vadd.f32 %v5415_v19, %v5087_v17  ;;  %v5088_v21 = vpop.f32.mrf.mxu1  ;;  %v4760_v37 = vadd.f32 %v4759_v41, %v1342_v32  ;;  %v8949_v19 = vld [vmem:[%s16519_s1 + $0x30] sm:$0xf0]  ;;  %v8955_v41 = vld [vmem:[%s16519_s1 + $0x18] sm:$0xf]  ;;  %v8957_v32 = vld [vmem:[%s16519_s1 + $0x38] sm:$0xf0] }
 0x41a   :  { %v1347_v17 = vpop.permute.xlu1 %1346  ;;  %v8952_v27 = vor.u32 %v11283_v7, %v8949_v19 }
 0x41b   :  { %v14239_v9 = vadd.f32 %v5744_v62, %v5416_v5  ;;  %v5089_v16 = vadd.f32 %v5088_v21, %v4760_v37  ;;  %v11288_v5 = vld [vmem:[%s16519_s1 + $0x34] sm:$0xf0]  ;;  %v11284_v62 = vld [vmem:[%s16519_s1 + $0x1c] sm:$0xf]  ;;  %v7747_v21 = vld [vmem:[%s16521_s3 + $0x10] sm:$0xff]  ;;  %v1352_v37 = vpop.permute.xlu2 %1351 }
 0x41c   :  { %v8956_v44 = vor.u32 %v11288_v5, %v8955_v41  ;;  %v8960_v57 = vor.u32 %v11284_v62, %v8957_v32  ;;  %7885 = vperm.xlu1 %11856, %v7747_v21   ;;  %v7749_v62 = vld [vmem:[%s16521_s3 + $0x20] sm:$0xff] }
 0x41f   :  { %7895 = vperm.xlu0 %11855, %v7749_v62  }
 0x420   :  { %v5417_v40 = vpop.f32.mrf.mxu2  ;;  %v4762_v0 = vpop.f32.mrf.mxu0 }
 0x421   :  { %v5746_v26 = vpop.f32.mrf.mxu3  ;;  %v5418_v43 = vadd.f32 %v5417_v40, %v5089_v16  ;;  %v5091_v39 = vpop.f32.mrf.mxu1  ;;  %v4763_v48 = vadd.f32 %v4762_v0, %v1347_v17  ;;  %v8979_v17 = vld [vmem:[%s16519_s1 + $0x50] sm:$0xf]  ;;  %v11296_v0 = vld [vmem:[%s16519_s1 + $0x74] sm:$0xf0] }
 0x422   :  { %v11295_v40 = vld [vmem:[%s16519_s1 + $0x6c] sm:$0xf0] }
 0x423   :  { %v14265_v24 = vadd.f32 %v5746_v26, %v5418_v43  ;;  %5797 = vmatmul.bf16.vlgmr.msrb.gmra.mxu0 %v8948_v22  ;;  %v5092_v59 = vadd.f32 %v5091_v39, %v4763_v48  ;;  %v7750_v26 = vld [vmem:[%s16521_s3 + $0x28] sm:$0xff]  ;;  %v11291_v22 = vld [vmem:[%s16519_s1 + $0x54] sm:$0xf]  ;;  %v8987_v43 = vld [vmem:[%s16519_s1 + $0x58] sm:$0xf] }
 0x424   :  { %6126 = vmatmul.bf16.vlgmr.msrb.gmra.mxu1 %v8952_v27  ;;  %v8981_v27 = vld [vmem:[%s16519_s1 + $0x70] sm:$0xf0]  ;;  %v11292_v39 = vld [vmem:[%s16519_s1 + $0x5c] sm:$0xf]  ;;  %7900 = vperm.xlu1 %11856, %v7750_v26  }
 0x425   :  { %16596 = vst [vmem:[#allocation78_spill] sm:$0xff] %v14265_v24  ;;  %6455 = vmatmul.bf16.vlgmr.msrb.gmra.mxu2 %v8956_v44  ;;  %v8989_v44 = vld [vmem:[%s16519_s1 + $0x78] sm:$0xf0]  ;;  %v8984_v21 = vor.u32 %v11291_v22, %v8981_v27 }
 0x426   :  { %11217 = vmatmul.msk.bf16.vlgmr.msrb.gmra.mxu3 %vm4280_vm0, %v8960_v57  ;;  %v1357_v57 = vpop.permute.xlu0 %1356 }
 0x428   :  { %v5420_v16 = vpop.f32.mrf.mxu2  ;;  %v4764_v7 = vpop.f32.mrf.mxu0 }
 0x429   :  { %v5749_v8 = vpop.f32.mrf.mxu3  ;;  %v5421_v4 = vadd.f32 %v5420_v16, %v5092_v59  ;;  %v5093_v19 = vpop.f32.mrf.mxu1  ;;  %v4765_v41 = vadd.f32 %v4764_v7, %v1352_v37  ;;  %v8980_v59 = vor.u32 %v11295_v40, %v8979_v17  ;;  %v8992_v7 = vor.u32 %v11292_v39, %v8989_v44  ;;  %v7745_v44 = vld [vmem:[%s16521_s3] sm:$0xff] }
 0x42a   :  { %v1362_v17 = vpop.permute.xlu1 %1361  ;;  %7875 = vperm.xlu2 %11857, %v7745_v44  }
 0x42b   :  { %v14274_v5 = vadd.f32 %v5749_v8, %v5421_v4  ;;  %v5094_v32 = vadd.f32 %v5093_v19, %v4765_v41  ;;  %v8988_v4 = vor.u32 %v11296_v0, %v8987_v43 }
 0x42d   :  { %16597 = vst [vmem:[#allocation79_spill] sm:$0xff] %v14274_v5  ;;  %v7752_v5 = vld [vmem:[%s16521_s3 + $0x38] sm:$0xff] }
 0x42e   :  { %7910 = vperm.xlu0 %11855, %v7752_v5   ;;  %v9011_v5 = vld [vmem:[%s16519_s1 + $0x90] sm:$0xf] }
 0x430   :  { %v5422_v48 = vpop.f32.mrf.mxu2  ;;  %v4767_v16 = vpop.f32.mrf.mxu0 }
 0x431   :  { %v5751_v13 = vpop.f32.mrf.mxu3  ;;  %v5423_v37 = vadd.f32 %v5422_v48, %v5094_v32  ;;  %v5096_v8 = vpop.f32.mrf.mxu1  ;;  %v4768_v19 = vadd.f32 %v4767_v16, %v1357_v57  ;;  %v7753_v32 = vld [vmem:[%s16521_s3 + $0x40] sm:$0xff]  ;;  %v7755_v57 = vld [vmem:[%s16521_s3 + $0x50] sm:$0xff]  ;;  %v9019_v16 = vld [vmem:[%s16519_s1 + $0x98] sm:$0xf] }
 0x432   :  { %7915 = vperm.xlu1 %11856, %v7753_v32  }
 0x433   :  { %v14306_v41 = vadd.f32 %v5751_v13, %v5423_v37  ;;  %5802 = vmatmul.bf16.gmra.mxu0 %v8980_v59  ;;  %v5097_v62 = vadd.f32 %v5096_v8, %v4768_v19  ;;  %v11303_v13 = vld [vmem:[%s16519_s1 + $0xac] sm:$0xf0]  ;;  %v7756_v59 = vld [vmem:[%s16521_s3 + $0x58] sm:$0xff]  ;;  %v9013_v37 = vld [vmem:[%s16519_s1 + $0xb0] sm:$0xf0]  ;;  %v1367_v19 = vpop.permute.xlu2 %1366 }
 0x434   :  { %6131 = vmatmul.bf16.gmra.mxu1 %v8984_v21  ;;  %v11299_v21 = vld [vmem:[%s16519_s1 + $0x94] sm:$0xf]  ;;  %v11304_v8 = vld [vmem:[%s16519_s1 + $0xb4] sm:$0xf0] }
 0x435   :  { %16598 = vst [vmem:[#allocation80_spill] sm:$0xff] %v14306_v41  ;;  %6460 = vmatmul.bf16.gmra.mxu2 %v8988_v4  ;;  %v11300_v4 = vld [vmem:[%s16519_s1 + $0x9c] sm:$0xf]  ;;  %v7758_v41 = vld [vmem:[%s16521_s3 + $0x68] sm:$0xff] }
 0x436   :  { %11218 = vmatmul.msk.bf16.gmra.mxu3 %vm4280_vm0, %v8992_v7  ;;  %v9021_v7 = vld [vmem:[%s16519_s1 + $0xb8] sm:$0xf0]  ;;  %7925 = vperm.xlu0 %11855, %v7755_v57  }
 0x438   :  { %v5425_v40 = vpop.f32.mrf.mxu2  ;;  %v4769_v27 = vpop.f32.mrf.mxu0 }
 0x439   :  { %v5754_v26 = vpop.f32.mrf.mxu3  ;;  %v5426_v22 = vadd.f32 %v5425_v40, %v5097_v62  ;;  %v5098_v43 = vpop.f32.mrf.mxu1  ;;  %v4770_v0 = vadd.f32 %v4769_v27, %v1362_v17  ;;  %v9012_v17 = vor.u32 %v11303_v13, %v9011_v5  ;;  %v9016_v40 = vor.u32 %v11299_v21, %v9013_v37 }
 0x43a   :  { %7930 = vperm.xlu1 %11856, %v7756_v59   ;;  %v1372_v5 = vpop.permute.xlu0 %1371 }
 0x43b   :  { %v14315_v39 = vadd.f32 %v5754_v26, %v5426_v22  ;;  %v5099_v48 = vadd.f32 %v5098_v43, %v4770_v0  ;;  %v9020_v43 = vor.u32 %v11304_v8, %v9019_v16  ;;  %v9024_v0 = vor.u32 %v11300_v4, %v9021_v7  ;;  %v7748_v8 = vld [vmem:[%s16521_s3 + $0x18] sm:$0xff] }
 0x43c   :  { %7890 = vperm.xlu2 %11857, %v7748_v8  }
 0x43d   :  { %16599 = vst [vmem:[#allocation81_spill] sm:$0xff] %v14315_v39 }
 0x43e   :  { %7940 = vperm.xlu0 %11855, %v7758_v41  }
 0x440   :  { %v5427_v62 = vpop.f32.mrf.mxu2  ;;  %v4772_v22 = vpop.f32.mrf.mxu0 }
 0x441   :  { %v5756_v32 = vpop.f32.mrf.mxu3  ;;  %v5428_v26 = vadd.f32 %v5427_v62, %v5099_v48  ;;  %v5101_v27 = vpop.f32.mrf.mxu1  ;;  %v4773_v44 = vadd.f32 %v4772_v22, %v1367_v19  ;;  %v7759_v48 = vld [vmem:[%s16521_s3 + $0x70] sm:$0xff]  ;;  %v7761_v19 = vld [vmem:[%s16521_s3 + $0x80] sm:$0xff]  ;;  %v9051_v22 = vld [vmem:[%s16519_s1 + $0xd8] sm:$0xf] }
 0x442   :  { %7945 = vperm.xlu1 %11856, %v7759_v48   ;;  %v9043_v62 = vld [vmem:[%s16519_s1 + $0xd0] sm:$0xf] }
 0x443   :  { %v14350_v39 = vadd.f32 %v5756_v32, %v5428_v26  ;;  %5807 = vmatmul.bf16.gmra.mxu0 %v9012_v17  ;;  %v5102_v57 = vadd.f32 %v5101_v27, %v4773_v44  ;;  %v11311_v32 = vld [vmem:[%s16519_s1 + $0xec] sm:$0xf0]  ;;  %v7762_v17 = vld [vmem:[%s16521_s3 + $0x88] sm:$0xff]  ;;  %v9045_v26 = vld [vmem:[%s16519_s1 + $0xf0] sm:$0xf0]  ;;  %v1377_v44 = vpop.permute.xlu1 %1376 }
 0x444   :  { %6136 = vmatmul.bf16.gmra.mxu1 %v9016_v40  ;;  %v11307_v40 = vld [vmem:[%s16519_s1 + $0xd4] sm:$0xf]  ;;  %v11312_v27 = vld [vmem:[%s16519_s1 + $0xf4] sm:$0xf0] }
 0x445   :  { %16600 = vst [vmem:[#allocation82_spill] sm:$0xff] %v14350_v39  ;;  %6465 = vmatmul.bf16.gmra.mxu2 %v9020_v43  ;;  %v11308_v43 = vld [vmem:[%s16519_s1 + $0xdc] sm:$0xf] }
 0x446   :  { %11219 = vmatmul.msk.bf16.gmra.mxu3 %vm4280_vm0, %v9024_v0  ;;  %v9053_v0 = vld [vmem:[%s16519_s1 + $0xf8] sm:$0xf0]  ;;  %7955 = vperm.xlu0 %11855, %v7761_v19  }
 0x447   :  { %v9056_v8 = vor.u32 %v11308_v43, %v9053_v0  ;;  %v7764_v19 = vld [vmem:[%s16521_s3 + $0x98] sm:$0xff]  ;;  %v7754_v43 = vld [vmem:[%s16521_s3 + $0x48] sm:$0xff] }
 0x448   :  { %v5430_v13 = vpop.f32.mrf.mxu2  ;;  %v4774_v37 = vpop.f32.mrf.mxu0 }
 0x449   :  { %v5759_v59 = vpop.f32.mrf.mxu3  ;;  %v5431_v21 = vadd.f32 %v5430_v13, %v5102_v57  ;;  %v5103_v16 = vpop.f32.mrf.mxu1  ;;  %v4775_v4 = vadd.f32 %v4774_v37, %v1372_v5  ;;  %v9044_v5 = vor.u32 %v11311_v32, %v9043_v62  ;;  %v9048_v13 = vor.u32 %v11307_v40, %v9045_v26 }
 0x44a   :  { %7960 = vperm.xlu1 %11856, %v7762_v17   ;;  %v1382_v32 = vpop.permute.xlu2 %1381 }
 0x44b   :  { %v14362_v7 = vadd.f32 %v5759_v59, %v5431_v21  ;;  %v5104_v41 = vadd.f32 %v5103_v16, %v4775_v4  ;;  %v9052_v16 = vor.u32 %v11312_v27, %v9051_v22  ;;  %v7751_v4 = vld [vmem:[%s16521_s3 + $0x30] sm:$0xff] }
 0x44c   :  { %7905 = vperm.xlu2 %11857, %v7751_v4   ;;  %v9085_v4 = vld [vmem:[%s16519_s1 + $0x138] sm:$0xf0] }
 0x44d   :  { %16601 = vst [vmem:[#allocation83_spill] sm:$0xff] %v14362_v7 }
 0x44e   :  { %7970 = vperm.xlu0 %11855, %v7764_v19   ;;  %v1387_v19 = vpop.permute.xlu0 %1386 }
 0x450   :  { %v5432_v57 = vpop.f32.mrf.mxu2  ;;  %v4777_v21 = vpop.f32.mrf.mxu0 }
 0x451   :  { %v5761_v48 = vpop.f32.mrf.mxu3  ;;  %v5433_v59 = vadd.f32 %v5432_v57, %v5104_v41  ;;  %v5106_v37 = vpop.f32.mrf.mxu1  ;;  %v4778_v7 = vadd.f32 %v4777_v21, %v1377_v44  ;;  %v7765_v41 = vld [vmem:[%s16521_s3 + $0xa0] sm:$0xff]  ;;  %v7767_v44 = vld [vmem:[%s16521_s3 + $0xb0] sm:$0xff] }
 0x452   :  { %7975 = vperm.xlu1 %11856, %v7765_v41   ;;  %v9077_v21 = vld [vmem:[%s16519_s1 + $0x130] sm:$0xf0] }
 0x453   :  { %v14397_v39 = vadd.f32 %v5761_v48, %v5433_v59  ;;  %5812 = vmatmul.bf16.gmra.mxu0 %v9044_v5  ;;  %v5107_v62 = vadd.f32 %v5106_v37, %v4778_v7  ;;  %v9075_v48 = vld [vmem:[%s16519_s1 + $0x110] sm:$0xf]  ;;  %v11315_v59 = vld [vmem:[%s16519_s1 + $0x114] sm:$0xf]  ;;  %v9083_v37 = vld [vmem:[%s16519_s1 + $0x118] sm:$0xf] }
 0x454   :  { %6141 = vmatmul.bf16.gmra.mxu1 %v9048_v13  ;;  %7920 = vperm.xlu2 %11857, %v7754_v43   ;;  %v11319_v5 = vld [vmem:[%s16519_s1 + $0x12c] sm:$0xf0]  ;;  %v7768_v13 = vld [vmem:[%s16521_s3 + $0xb8] sm:$0xff] }
 0x455   :  { %16602 = vst [vmem:[#allocation84_spill] sm:$0xff] %v14397_v39  ;;  %6470 = vmatmul.bf16.gmra.mxu2 %v9052_v16  ;;  %v11320_v16 = vld [vmem:[%s16519_s1 + $0x134] sm:$0xf0] }
 0x456   :  { %11220 = vmatmul.msk.bf16.gmra.mxu3 %vm4280_vm0, %v9056_v8  ;;  %v11316_v8 = vld [vmem:[%s16519_s1 + $0x11c] sm:$0xf]  ;;  %7985 = vperm.xlu0 %11855, %v7767_v44   ;;  %v7770_v44 = vld [vmem:[%s16521_s3 + $0xc8] sm:$0xff] }
 0x457   :  { %v9088_v43 = vor.u32 %v11316_v8, %v9085_v4  ;;  %v7760_v8 = vld [vmem:[%s16521_s3 + $0x78] sm:$0xff] }
 0x458   :  { %v5435_v17 = vpop.f32.mrf.mxu2  ;;  %v4779_v22 = vpop.f32.mrf.mxu0 }
 0x459   :  { %v5764_v40 = vpop.f32.mrf.mxu3  ;;  %v5436_v26 = vadd.f32 %v5435_v17, %v5107_v62  ;;  %v5108_v27 = vpop.f32.mrf.mxu1  ;;  %v4780_v7 = vadd.f32 %v4779_v22, %v1382_v32  ;;  %v9076_v32 = vor.u32 %v11319_v5, %v9075_v48  ;;  %v9080_v17 = vor.u32 %v11315_v59, %v9077_v21 }
 0x45a   :  { %7990 = vperm.xlu1 %11856, %v7768_v13   ;;  %v1392_v5 = vpop.permute.xlu1 %1391 }
 0x45b   :  { %v14409_v0 = vadd.f32 %v5764_v40, %v5436_v26  ;;  %v5109_v57 = vadd.f32 %v5108_v27, %v4780_v7  ;;  %v9084_v27 = vor.u32 %v11320_v16, %v9083_v37  ;;  %v7757_v7 = vld [vmem:[%s16521_s3 + $0x60] sm:$0xff] }
 0x45c   :  { %7935 = vperm.xlu2 %11857, %v7757_v7   ;;  %v9117_v7 = vld [vmem:[%s16519_s1 + $0x178] sm:$0xf0] }
 0x45d   :  { %16603 = vst [vmem:[#allocation85_spill] sm:$0xff] %v14409_v0 }
 0x45e   :  { %8000 = vperm.xlu0 %11855, %v7770_v44   ;;  %v1397_v44 = vpop.permute.xlu2 %1396 }
 0x460   :  { %v5437_v62 = vpop.f32.mrf.mxu2  ;;  %v4782_v26 = vpop.f32.mrf.mxu0 }
 0x461   :  { %v5766_v41 = vpop.f32.mrf.mxu3  ;;  %v5438_v40 = vadd.f32 %v5437_v62, %v5109_v57  ;;  %v5111_v22 = vpop.f32.mrf.mxu1  ;;  %v4783_v0 = vadd.f32 %v4782_v26, %v1387_v19  ;;  %v7771_v57 = vld [vmem:[%s16521_s3 + $0xd0] sm:$0xff]  ;;  %v7773_v19 = vld [vmem:[%s16521_s3 + $0xe0] sm:$0xff] }
 0x462   :  { %8005 = vperm.xlu1 %11856, %v7771_v57   ;;  %v9109_v26 = vld [vmem:[%s16519_s1 + $0x170] sm:$0xf0] }
 0x463   :  { %v14444_v39 = vadd.f32 %v5766_v41, %v5438_v40  ;;  %5817 = vmatmul.bf16.gmra.mxu0 %v9076_v32  ;;  %v5112_v48 = vadd.f32 %v5111_v22, %v4783_v0  ;;  %v9107_v41 = vld [vmem:[%s16519_s1 + $0x150] sm:$0xf]  ;;  %v11323_v40 = vld [vmem:[%s16519_s1 + $0x154] sm:$0xf]  ;;  %v9115_v22 = vld [vmem:[%s16519_s1 + $0x158] sm:$0xf] }
 0x464   :  { %6146 = vmatmul.bf16.gmra.mxu1 %v9080_v17  ;;  %7950 = vperm.xlu2 %11857, %v7760_v8   ;;  %v11327_v32 = vld [vmem:[%s16519_s1 + $0x16c] sm:$0xf0]  ;;  %v7774_v17 = vld [vmem:[%s16521_s3 + $0xe8] sm:$0xff] }
 0x465   :  { %16604 = vst [vmem:[#allocation86_spill] sm:$0xff] %v14444_v39  ;;  %6475 = vmatmul.bf16.gmra.mxu2 %v9084_v27  ;;  %v11328_v27 = vld [vmem:[%s16519_s1 + $0x174] sm:$0xf0] }
 0x466   :  { %11221 = vmatmul.msk.bf16.gmra.mxu3 %vm4280_vm0, %v9088_v43  ;;  %v11324_v43 = vld [vmem:[%s16519_s1 + $0x15c] sm:$0xf]  ;;  %8015 = vperm.xlu0 %11855, %v7773_v19  }
 0x467   :  { %v9120_v8 = vor.u32 %v11324_v43, %v9117_v7  ;;  %v7776_v19 = vld [vmem:[%s16521_s3 + $0xf8] sm:$0xff]  ;;  %v7766_v43 = vld [vmem:[%s16521_s3 + $0xa8] sm:$0xff] }
 0x468   :  { %v5440_v13 = vpop.f32.mrf.mxu2  ;;  %v4784_v37 = vpop.f32.mrf.mxu0 }
 0x469   :  { %v5769_v59 = vpop.f32.mrf.mxu3  ;;  %v5441_v21 = vadd.f32 %v5440_v13, %v5112_v48  ;;  %v5113_v16 = vpop.f32.mrf.mxu1  ;;  %v4785_v0 = vadd.f32 %v4784_v37, %v1392_v5  ;;  %v9108_v5 = vor.u32 %v11327_v32, %v9107_v41  ;;  %v9112_v13 = vor.u32 %v11323_v40, %v9109_v26 }
 0x46a   :  { %8020 = vperm.xlu1 %11856, %v7774_v17   ;;  %v1402_v32 = vpop.permute.xlu0 %1401 }
 0x46b   :  { %v14456_v4 = vadd.f32 %v5769_v59, %v5441_v21  ;;  %v5114_v62 = vadd.f32 %v5113_v16, %v4785_v0  ;;  %v9116_v16 = vor.u32 %v11328_v27, %v9115_v22  ;;  %v7763_v0 = vld [vmem:[%s16521_s3 + $0x90] sm:$0xff] }
 0x46c   :  { %7965 = vperm.xlu2 %11857, %v7763_v0   ;;  %v9149_v0 = vld [vmem:[%s16519_s1 + $0x1b8] sm:$0xf0] }
 0x46d   :  { %16605 = vst [vmem:[#allocation87_spill] sm:$0xff] %v14456_v4 }
 0x46e   :  { %8030 = vperm.xlu0 %11855, %v7776_v19   ;;  %v1407_v19 = vpop.permute.xlu1 %1406 }
 0x470   :  { %v5442_v48 = vpop.f32.mrf.mxu2  ;;  %v4787_v21 = vpop.f32.mrf.mxu0 }
 0x471   :  { %v5771_v57 = vpop.f32.mrf.mxu3  ;;  %v5443_v59 = vadd.f32 %v5442_v48, %v5114_v62  ;;  %v5116_v37 = vpop.f32.mrf.mxu1  ;;  %v4788_v4 = vadd.f32 %v4787_v21, %v1397_v44  ;;  %v7777_v62 = vld [vmem:[%s16521_s3 + $0x100] sm:$0xff]  ;;  %v7779_v44 = vld [vmem:[%s16521_s3 + $0x110] sm:$0xff] }
 0x472   :  { %8035 = vperm.xlu1 %11856, %v7777_v62   ;;  %v9141_v21 = vld [vmem:[%s16519_s1 + $0x1b0] sm:$0xf0] }
 0x473   :  { %v14491_v39 = vadd.f32 %v5771_v57, %v5443_v59  ;;  %5822 = vmatmul.bf16.gmra.mxu0 %v9108_v5  ;;  %v5117_v41 = vadd.f32 %v5116_v37, %v4788_v4  ;;  %v9139_v57 = vld [vmem:[%s16519_s1 + $0x190] sm:$0xf]  ;;  %v11331_v59 = vld [vmem:[%s16519_s1 + $0x194] sm:$0xf]  ;;  %v9147_v37 = vld [vmem:[%s16519_s1 + $0x198] sm:$0xf] }
 0x474   :  { %6151 = vmatmul.bf16.gmra.mxu1 %v9112_v13  ;;  %7980 = vperm.xlu2 %11857, %v7766_v43   ;;  %v11335_v5 = vld [vmem:[%s16519_s1 + $0x1ac] sm:$0xf0]  ;;  %v7780_v13 = vld [vmem:[%s16521_s3 + $0x118] sm:$0xff] }
 0x475   :  { %16606 = vst [vmem:[#allocation88_spill] sm:$0xff] %v14491_v39  ;;  %6480 = vmatmul.bf16.gmra.mxu2 %v9116_v16  ;;  %v11336_v16 = vld [vmem:[%s16519_s1 + $0x1b4] sm:$0xf0] }
 0x476   :  { %11222 = vmatmul.msk.bf16.gmra.mxu3 %vm4280_vm0, %v9120_v8  ;;  %v11332_v8 = vld [vmem:[%s16519_s1 + $0x19c] sm:$0xf]  ;;  %8045 = vperm.xlu0 %11855, %v7779_v44   ;;  %v7782_v44 = vld [vmem:[%s16521_s3 + $0x128] sm:$0xff] }
 0x477   :  { %v9152_v43 = vor.u32 %v11332_v8, %v9149_v0  ;;  %v7772_v8 = vld [vmem:[%s16521_s3 + $0xd8] sm:$0xff] }
 0x478   :  { %v5445_v17 = vpop.f32.mrf.mxu2  ;;  %v4789_v22 = vpop.f32.mrf.mxu0 }
 0x479   :  { %v5774_v40 = vpop.f32.mrf.mxu3  ;;  %v5446_v26 = vadd.f32 %v5445_v17, %v5117_v41  ;;  %v5118_v27 = vpop.f32.mrf.mxu1  ;;  %v4790_v4 = vadd.f32 %v4789_v22, %v1402_v32  ;;  %v9140_v32 = vor.u32 %v11335_v5, %v9139_v57  ;;  %v9144_v17 = vor.u32 %v11331_v59, %v9141_v21 }
 0x47a   :  { %8050 = vperm.xlu1 %11856, %v7780_v13   ;;  %v1412_v5 = vpop.permute.xlu2 %1411 }
 0x47b   :  { %v14503_v7 = vadd.f32 %v5774_v40, %v5446_v26  ;;  %v5119_v48 = vadd.f32 %v5118_v27, %v4790_v4  ;;  %v9148_v27 = vor.u32 %v11336_v16, %v9147_v37  ;;  %v7769_v4 = vld [vmem:[%s16521_s3 + $0xc0] sm:$0xff] }
 0x47c   :  { %7995 = vperm.xlu2 %11857, %v7769_v4   ;;  %v1417_v4 = vpop.permute.xlu0 %1416 }
 0x47d   :  { %16607 = vst [vmem:[#allocation89_spill] sm:$0xff] %v14503_v7 }
 0x47e   :  { %8060 = vperm.xlu0 %11855, %v7782_v44   ;;  %v7786_v44 = vld [vmem:[%s16521_s3 + $0x148] sm:$0xff] }
 0x480   :  { %v5447_v41 = vpop.f32.mrf.mxu2  ;;  %v4792_v26 = vpop.f32.mrf.mxu0 }
 0x481   :  { %v5776_v62 = vpop.f32.mrf.mxu3  ;;  %v5448_v40 = vadd.f32 %v5447_v41, %v5119_v48  ;;  %v5121_v22 = vpop.f32.mrf.mxu1  ;;  %v4793_v7 = vadd.f32 %v4792_v26, %v1407_v19  ;;  %v7783_v48 = vld [vmem:[%s16521_s3 + $0x130] sm:$0xff]  ;;  %v7785_v19 = vld [vmem:[%s16521_s3 + $0x140] sm:$0xff]  ;;  %v9179_v26 = vld [vmem:[%s16519_s1 + $0x1d8] sm:$0xf] }
 0x482   :  { %8065 = vperm.xlu1 %11856, %v7783_v48  }
 0x483   :  { %v14538_v39 = vadd.f32 %v5776_v62, %v5448_v40  ;;  %5827 = vmatmul.bf16.gmra.mxu0 %v9140_v32  ;;  %v5122_v57 = vadd.f32 %v5121_v22, %v4793_v7  ;;  %v9171_v62 = vld [vmem:[%s16519_s1 + $0x1d0] sm:$0xf]  ;;  %v9173_v40 = vld [vmem:[%s16519_s1 + $0x1f0] sm:$0xf0]  ;;  %v11344_v22 = vld [vmem:[%s16519_s1 + $0x1f4] sm:$0xf0] }
 0x484   :  { %6156 = vmatmul.bf16.gmra.mxu1 %v9144_v17  ;;  %8010 = vperm.xlu2 %11857, %v7772_v8   ;;  %v11343_v32 = vld [vmem:[%s16519_s1 + $0x1ec] sm:$0xf0]  ;;  %v11339_v17 = vld [vmem:[%s16519_s1 + $0x1d4] sm:$0xf] }
 0x485   :  { %16608 = vst [vmem:[#allocation90_spill] sm:$0xff] %v14538_v39  ;;  %6485 = vmatmul.bf16.gmra.mxu2 %v9148_v27  ;;  %v11340_v27 = vld [vmem:[%s16519_s1 + $0x1dc] sm:$0xf] }
 0x486   :  { %11223 = vmatmul.msk.bf16.gmra.mxu3 %vm4280_vm0, %v9152_v43  ;;  %v9181_v43 = vld [vmem:[%s16519_s1 + $0x1f8] sm:$0xf0]  ;;  %8075 = vperm.xlu0 %11855, %v7785_v19  }
 0x487   :  { %v9184_v8 = vor.u32 %v11340_v27, %v9181_v43  ;;  %v7788_v39 = vld [vmem:[%s16521_s3 + $0x158] sm:$0xff]  ;;  %v7778_v43 = vld [vmem:[%s16521_s3 + $0x108] sm:$0xff] }
 0x488   :  { %v5450_v13 = vpop.f32.mrf.mxu2  ;;  %v4794_v37 = vpop.f32.mrf.mxu0 }
 0x489   :  { %v5779_v59 = vpop.f32.mrf.mxu3  ;;  %v5451_v21 = vadd.f32 %v5450_v13, %v5122_v57  ;;  %v5123_v16 = vpop.f32.mrf.mxu1  ;;  %v4795_v7 = vadd.f32 %v4794_v37, %v1412_v5  ;;  %v9172_v5 = vor.u32 %v11343_v32, %v9171_v62  ;;  %v9176_v13 = vor.u32 %v11339_v17, %v9173_v40  ;;  %v7789_v32 = vld [vmem:[%s16521_s3 + $0x160] sm:$0xff] }
 0x48a   :  { %8080 = vperm.xlu1 %11856, %v7786_v44  }
 0x48b   :  { %v14550_v0 = vadd.f32 %v5779_v59, %v5451_v21  ;;  %v5124_v41 = vadd.f32 %v5123_v16, %v4795_v7  ;;  %v9180_v16 = vor.u32 %v11344_v22, %v9179_v26  ;;  %v7775_v7 = vld [vmem:[%s16521_s3 + $0xf0] sm:$0xff] }
 0x48c   :  { %8025 = vperm.xlu2 %11857, %v7775_v7   ;;  %v7792_v7 = vld [vmem:[%s16521_s3 + $0x178] sm:$0xff] }
 0x48d   :  { %16609 = vst [vmem:[#allocation91_spill] sm:$0xff] %v14550_v0 }
 0x48e   :  { %8090 = vperm.xlu0 %11855, %v7788_v39   ;;  %v7791_v39 = vld [vmem:[%s16521_s3 + $0x170] sm:$0xff] }
 0x490   :  { %v5452_v57 = vpop.f32.mrf.mxu2  ;;  %v4797_v21 = vpop.f32.mrf.mxu0 }
 0x491   :  { %v5781_v48 = vpop.f32.mrf.mxu3  ;;  %v5453_v59 = vadd.f32 %v5452_v57, %v5124_v41  ;;  %v5126_v37 = vpop.f32.mrf.mxu1  ;;  %v4798_v19 = vadd.f32 %v4797_v21, %v1417_v4  ;;  %v9211_v21 = vld [vmem:[%s16519_s1 + $0x218] sm:$0xf] }
 0x492   :  { %v1422_v41 = vpop.permute.xlu1 %1421  ;;  %8095 = vperm.xlu1 %11856, %v7789_v32  }
 0x493   :  { %v14585_v0 = vadd.f32 %v5781_v48, %v5453_v59  ;;  %5832 = vmatmul.bf16.gmra.mxu0 %v9172_v5  ;;  %v5127_v62 = vadd.f32 %v5126_v37, %v4798_v19  ;;  %v9203_v48 = vld [vmem:[%s16519_s1 + $0x210] sm:$0xf]  ;;  %v9205_v59 = vld [vmem:[%s16519_s1 + $0x230] sm:$0xf0]  ;;  %v11352_v37 = vld [vmem:[%s16519_s1 + $0x234] sm:$0xf0] }
 0x494   :  { %6161 = vmatmul.bf16.gmra.mxu1 %v9176_v13  ;;  %8040 = vperm.xlu2 %11857, %v7778_v43   ;;  %v11351_v5 = vld [vmem:[%s16519_s1 + $0x22c] sm:$0xf0]  ;;  %v11347_v13 = vld [vmem:[%s16519_s1 + $0x214] sm:$0xf]  ;;  %v7781_v43 = vld [vmem:[%s16521_s3 + $0x120] sm:$0xff] }
 0x495   :  { %16610 = vst [vmem:[#allocation92_spill] sm:$0xff] %v14585_v0  ;;  %6490 = vmatmul.bf16.gmra.mxu2 %v9180_v16  ;;  %v11348_v16 = vld [vmem:[%s16519_s1 + $0x21c] sm:$0xf]  ;;  %v9208_v32 = vor.u32 %v11347_v13, %v9205_v59 }
 0x496   :  { %11224 = vmatmul.msk.bf16.gmra.mxu3 %vm4280_vm0, %v9184_v8  ;;  %v9213_v8 = vld [vmem:[%s16519_s1 + $0x238] sm:$0xf0]  ;;  %8105 = vperm.xlu0 %11855, %v7791_v39  }
 0x498   :  { %v5455_v17 = vpop.f32.mrf.mxu2  ;;  %v4799_v22 = vpop.f32.mrf.mxu0 }
 0x499   :  { %v5784_v40 = vpop.f32.mrf.mxu3  ;;  %v5456_v26 = vadd.f32 %v5455_v17, %v5127_v62  ;;  %v5128_v27 = vpop.f32.mrf.mxu1  ;;  %v4800_v4 = vadd.f32 %v4799_v22, %v1422_v41  ;;  %v9204_v41 = vor.u32 %v11351_v5, %v9203_v48  ;;  %v9212_v22 = vor.u32 %v11352_v37, %v9211_v21  ;;  %v7794_v48 = vld [vmem:[%s16521_s3 + $0x188] sm:$0xff] }
 0x49a   :  { %8110 = vperm.xlu1 %11856, %v7792_v7  }
 0x49b   :  { %v14597_v44 = vadd.f32 %v5784_v40, %v5456_v26  ;;  %v5129_v57 = vadd.f32 %v5128_v27, %v4800_v4  ;;  %v9216_v27 = vor.u32 %v11348_v16, %v9213_v8  ;;  %v7784_v16 = vld [vmem:[%s16521_s3 + $0x138] sm:$0xff] }
 0x49c   :  { %8055 = vperm.xlu2 %11857, %v7781_v43   ;;  %v9245_v43 = vld [vmem:[%s16519_s1 + $0x278] sm:$0xf0] }
 0x49d   :  { %16611 = vst [vmem:[#allocation93_spill] sm:$0xff] %v14597_v44 }
 0x49e   :  { %8120 = vperm.xlu0 %11855, %v7794_v48   ;;  %v7798_v48 = vld [vmem:[%s16521_s3 + $0x1a8] sm:$0xff] }
 0x4a0   :  { %v5457_v19 = vpop.f32.mrf.mxu2  ;;  %v5798_v40 = vpop.f32.mrf.mxu0 }
 0x4a1   :  { %v5786_v62 = vpop.f32.mrf.mxu3  ;;  %v5458_v17 = vadd.f32 %v5457_v19, %v5129_v57  ;;  %v6127_v26 = vpop.f32.mrf.mxu1  ;;  %v5799_v4 = vadd.f32 %v5798_v40, %v12309_v52  ;;  %v7795_v57 = vld [vmem:[%s16521_s3 + $0x190] sm:$0xff]  ;;  %v7797_v19 = vld [vmem:[%s16521_s3 + $0x1a0] sm:$0xff] }
 0x4a2   :  { %8125 = vperm.xlu1 %11856, %v7795_v57   ;;  %v9237_v40 = vld [vmem:[%s16519_s1 + $0x270] sm:$0xf0] }
 0x4a3   :  { %v14633_v39 = vadd.f32 %v5786_v62, %v5458_v17  ;;  %v6128_v5 = vadd.f32 %v6127_v26, %v5799_v4  ;;  %5837 = vmatmul.bf16.gmra.mxu0 %v9204_v41  ;;  %v9235_v41 = vld [vmem:[%s16519_s1 + $0x250] sm:$0xf]  ;;  %v11355_v17 = vld [vmem:[%s16519_s1 + $0x254] sm:$0xf]  ;;  %v9243_v26 = vld [vmem:[%s16519_s1 + $0x258] sm:$0xf] }
 0x4a4   :  { %6166 = vmatmul.bf16.gmra.mxu1 %v9208_v32  ;;  %8070 = vperm.xlu2 %11857, %v7784_v16   ;;  %v11359_v32 = vld [vmem:[%s16519_s1 + $0x26c] sm:$0xf0] }
 0x4a5   :  { %16612 = vst [vmem:[#allocation94_spill] sm:$0xff] %v14633_v39  ;;  %6495 = vmatmul.bf16.gmra.mxu2 %v9212_v22  ;;  %v11360_v22 = vld [vmem:[%s16519_s1 + $0x274] sm:$0xf0] }
 0x4a6   :  { %11225 = vmatmul.msk.bf16.gmra.mxu3 %vm4280_vm0, %v9216_v27  ;;  %v11356_v27 = vld [vmem:[%s16519_s1 + $0x25c] sm:$0xf]  ;;  %8135 = vperm.xlu0 %11855, %v7797_v19   ;;  %v7787_v19 = vld [vmem:[%s16521_s3 + $0x150] sm:$0xff] }
 0x4a7   :  { %v9248_v39 = vor.u32 %v11356_v27, %v9245_v43 }
 0x4a8   :  { %v6456_v13 = vpop.f32.mrf.mxu2  ;;  %v5800_v21 = vpop.f32.mrf.mxu0 }
 0x4a9   :  { %v6785_v52 = vpop.f32.mrf.mxu3  ;;  %v6457_v59 = vadd.f32 %v6456_v13, %v6128_v5  ;;  %v6129_v37 = vpop.f32.mrf.mxu1  ;;  %v5801_v8 = vadd.f32 %v5800_v21, %v12338_v10  ;;  %v9236_v13 = vor.u32 %v11359_v32, %v9235_v41  ;;  %v7800_v41 = vld [vmem:[%s16521_s3 + $0x1b8] sm:$0xff] }
 0x4aa   :  { %8140 = vperm.xlu1 %11856, %v7798_v48  }
 0x4ab   :  { %v6786_v7 = vadd.f32 %v6785_v52, %v6457_v59  ;;  %v6130_v62 = vadd.f32 %v6129_v37, %v5801_v8  ;;  %v9240_v52 = vor.u32 %v11355_v17, %v9237_v40  ;;  %v9244_v8 = vor.u32 %v11360_v22, %v9243_v26 }
 0x4ac   :  { %8085 = vperm.xlu2 %11857, %v7787_v19   ;;  %v11364_v19 = vld [vmem:[%s16519_s1 + $0x29c] sm:$0xf] }
 0x4ad   :  { %v7105_v10 = vadd.f32 3.0, %v6786_v7 }
 0x4ae   :  { %8150 = vperm.xlu0 %11855, %v7800_v41  }
 0x4af   :  { %v7233_v4 = vmax.f32 %v7105_v10, 0.0 }
 0x4b0   :  { %v6458_v5 = vpop.f32.mrf.mxu2  ;;  %v5803_v37 = vpop.f32.mrf.mxu0 }
 0x4b1   :  { %v6787_v57 = vpop.f32.mrf.mxu3  ;;  %v7361_v59 = vmin.f32 %v7233_v4, 6.0  ;;  %v6459_v21 = vadd.f32 %v6458_v5, %v6130_v62  ;;  %v6132_v16 = vpop.f32.mrf.mxu1  ;;  %v5804_v10 = vadd.f32 %v5803_v37, %v12343_v20  ;;  %v7801_v20 = vld [vmem:[%s16521_s3 + $0x1c0] sm:$0xff]  ;;  %v9269_v37 = vld [vmem:[%s16519_s1 + $0x2b0] sm:$0xf0] }
 0x4b2   :  { %v7876_v62 = vpop.permute.xlu2 %7875  ;;  %8155 = vperm.xlu1 %11856, %v7801_v20  }
 0x4b3   :  { %v7489_v44 = vmul.f32 %v7361_v59, %v6786_v7  ;;  %v6788_v0 = vadd.f32 %v6787_v57, %v6459_v21  ;;  %v6133_v32 = vadd.f32 %v6132_v16, %v5804_v10  ;;  %5842 = vmatmul.bf16.gmra.mxu0 %v9236_v13  ;;  %v7790_v57 = vld [vmem:[%s16521_s3 + $0x168] sm:$0xff]  ;;  %v11367_v59 = vld [vmem:[%s16519_s1 + $0x2ac] sm:$0xf0]  ;;  %v11363_v21 = vld [vmem:[%s16519_s1 + $0x294] sm:$0xf] }
 0x4b4   :  { %6171 = vmatmul.bf16.gmra.mxu1 %v9240_v52  ;;  %8100 = vperm.xlu2 %11857, %v7790_v57   ;;  %v9267_v52 = vld [vmem:[%s16519_s1 + $0x290] sm:$0xf]  ;;  %v9275_v16 = vld [vmem:[%s16519_s1 + $0x298] sm:$0xf] }
 0x4b5   :  { %v7106_v17 = vadd.f32 3.0, %v6788_v0  ;;  %6500 = vmatmul.bf16.gmra.mxu2 %v9244_v8  ;;  %v7617_v40 = vmul.f32 0.16666667, %v7489_v44  ;;  %v11368_v8 = vld [vmem:[%s16519_s1 + $0x2b4] sm:$0xf0] }
 0x4b6   :  { %11226 = vmatmul.msk.bf16.gmra.mxu3 %vm4280_vm0, %v9248_v39 }
 0x4b7   :  { %v7234_v26 = vmax.f32 %v7106_v17, 0.0  ;;  %v8513_v22 = vmul.f32 %v7876_v62, %v7617_v40  ;;  %v7881_v62 = vpop.permute.xlu0 %7880 }
 0x4b8   :  { %v6461_v7 = vpop.f32.mrf.mxu2  ;;  %v5805_v48 = vpop.f32.mrf.mxu0 }
 0x4b9   :  { %v6790_v27 = vpop.f32.mrf.mxu3  ;;  %v7362_v43 = vmin.f32 %v7234_v26, 6.0  ;;  %v6462_v4 = vadd.f32 %v6461_v7, %v6133_v32  ;;  %v6134_v5 = vpop.f32.mrf.mxu1  ;;  %v5806_v44 = vadd.f32 %v5805_v48, %v12372_v42  ;;  %v7803_v42 = vld [vmem:[%s16521_s3 + $0x1d0] sm:$0xff]  ;;  %v9277_v32 = vld [vmem:[%s16519_s1 + $0x2b8] sm:$0xf0] }
 0x4ba   :  { %8165 = vperm.xlu0 %11855, %v7803_v42   ;;  %v7804_v26 = vld [vmem:[%s16521_s3 + $0x1d8] sm:$0xff]  ;;  %v9280_v48 = vor.u32 %v11364_v19, %v9277_v32 }
 0x4bb   :  { %v7490_v39 = vmul.f32 %v7362_v43, %v6788_v0  ;;  %v6791_v13 = vadd.f32 %v6790_v27, %v6462_v4  ;;  %v6135_v0 = vadd.f32 %v6134_v5, %v5806_v44  ;;  %v9268_v27 = vor.u32 %v11367_v59, %v9267_v52  ;;  %8170 = vperm.xlu1 %11856, %v7804_v26  }
 0x4bc   :  { %v9272_v43 = vor.u32 %v11363_v21, %v9269_v37  ;;  %v9276_v4 = vor.u32 %v11368_v8, %v9275_v16  ;;  %v8642_v5 = vsel %vm8641_vm1, %v8513_v22, 0.0  ;;  %v7806_v22 = vld [vmem:[%s16521_s3 + $0x1e8] sm:$0xff]  ;;  %v7886_v16 = vpop.permute.xlu1 %7885 }
 0x4bd   :  { %v7618_v10 = vmul.f32 0.16666667, %v7490_v39  ;;  %v7107_v41 = vadd.f32 3.0, %v6791_v13 }
 0x4bf   :  { %v8514_v17 = vmul.f32 %v7881_v62, %v7618_v10  ;;  %v7235_v40 = vmax.f32 %v7107_v41, 0.0  ;;  %v7793_v41 = vld [vmem:[%s16521_s3 + $0x180] sm:$0xff] }
 0x4c0   :  { %v6463_v20 = vpop.f32.mrf.mxu2  ;;  %v5808_v42 = vpop.f32.mrf.mxu0  ;;  %8115 = vperm.xlu2 %11857, %v7793_v41  }
 0x4c1   :  { %v6792_v7 = vpop.f32.mrf.mxu3  ;;  %v8643_v57 = vsel %vm8641_vm1, %v8514_v17, 0.0  ;;  %v7363_v44 = vmin.f32 %v7235_v40, 6.0  ;;  %v6464_v39 = vadd.f32 %v6463_v20, %v6135_v0  ;;  %v6137_v10 = vpop.f32.mrf.mxu1  ;;  %v5809_v24 = vadd.f32 %v5808_v42, %v12377_v53  ;;  %v7807_v53 = vld [vmem:[%s16521_s3 + $0x1f0] sm:$0xff] }
 0x4c2   :  { %v8644_v62 = vadd.f32 %v8643_v57, %v8642_v5  ;;  %8180 = vperm.xlu0 %11855, %v7806_v22   ;;  %v9299_v5 = vld [vmem:[%s16519_s1 + $0x2d0] sm:$0xf]  ;;  %v9301_v42 = vld [vmem:[%s16519_s1 + $0x2f0] sm:$0xf0]  ;;  %v11372_v22 = vld [vmem:[%s16519_s1 + $0x2dc] sm:$0xf] }
 0x4c3   :  { %v7491_v52 = vmul.f32 %v7363_v44, %v6791_v13  ;;  %v6793_v59 = vadd.f32 %v6792_v7, %v6464_v39  ;;  %v6138_v21 = vadd.f32 %v6137_v10, %v5809_v24  ;;  %5847 = vmatmul.bf16.gmra.mxu0 %v9268_v27  ;;  %8185 = vperm.xlu1 %11856, %v7807_v53   ;;  %v7796_v7 = vld [vmem:[%s16521_s3 + $0x198] sm:$0xff]  ;;  %v11375_v57 = vld [vmem:[%s16519_s1 + $0x2ec] sm:$0xf0]  ;;  %v7809_v44 = vld [vmem:[%s16521_s3 + $0x200] sm:$0xff] }
 0x4c4   :  { %6176 = vmatmul.bf16.gmra.mxu1 %v9272_v43  ;;  %v9307_v10 = vld [vmem:[%s16519_s1 + $0x2d8] sm:$0xf]  ;;  %v9300_v53 = vor.u32 %v11375_v57, %v9299_v5 }
 0x4c5   :  { %v7619_v37 = vmul.f32 0.16666667, %v7491_v52  ;;  %v7108_v0 = vadd.f32 3.0, %v6793_v59  ;;  %6505 = vmatmul.bf16.gmra.mxu2 %v9276_v4  ;;  %v11376_v52 = vld [vmem:[%s16519_s1 + $0x2f4] sm:$0xf0] }
 0x4c6   :  { %11227 = vmatmul.msk.bf16.gmra.mxu3 %vm4280_vm0, %v9280_v48  ;;  %v7812_v57 = vld [vmem:[%s16521_s3 + $0x218] sm:$0xff] }
 0x4c7   :  { %v8515_v8 = vmul.f32 %v7886_v16, %v7619_v37  ;;  %v7236_v19 = vmax.f32 %v7108_v0, 0.0  ;;  %v7810_v16 = vld [vmem:[%s16521_s3 + $0x208] sm:$0xff] }
 0x4c8   :  { %v6466_v13 = vpop.f32.mrf.mxu2  ;;  %v5810_v26 = vpop.f32.mrf.mxu0  ;;  %8130 = vperm.xlu2 %11857, %v7796_v7  }
 0x4c9   :  { %v6795_v32 = vpop.f32.mrf.mxu3  ;;  %v8645_v24 = vsel %vm8641_vm1, %v8515_v8, 0.0  ;;  %v7364_v17 = vmin.f32 %v7236_v19, 6.0  ;;  %v6467_v40 = vadd.f32 %v6466_v13, %v6138_v21  ;;  %v6139_v20 = vpop.f32.mrf.mxu1  ;;  %v5811_v43 = vadd.f32 %v5810_v26, %v12406_v12  ;;  %v11371_v12 = vld [vmem:[%s16519_s1 + $0x2d4] sm:$0xf]  ;;  %v9309_v21 = vld [vmem:[%s16519_s1 + $0x2f8] sm:$0xf0] }
 0x4ca   :  { %v8646_v27 = vadd.f32 %v8645_v24, %v8644_v62  ;;  %8195 = vperm.xlu0 %11855, %v7809_v44   ;;  %v9304_v13 = vor.u32 %v11371_v12, %v9301_v42  ;;  %v9312_v7 = vor.u32 %v11372_v22, %v9309_v21 }
 0x4cb   :  { %v7492_v4 = vmul.f32 %v7364_v17, %v6793_v59  ;;  %v6796_v48 = vadd.f32 %v6795_v32, %v6467_v40  ;;  %v6140_v39 = vadd.f32 %v6139_v20, %v5811_v43  ;;  %v7891_v59 = vpop.permute.xlu2 %7890  ;;  %v9308_v32 = vor.u32 %v11376_v52, %v9307_v10  ;;  %8200 = vperm.xlu1 %11856, %v7810_v16   ;;  %v7799_v43 = vld [vmem:[%s16521_s3 + $0x1b0] sm:$0xff]  ;;  %v7896_v10 = vpop.permute.xlu0 %7895  ;;  %v7802_v16 = vld [vmem:[%s16521_s3 + $0x1c8] sm:$0xff] }
 0x4cd   :  { %v7620_v41 = vmul.f32 0.16666667, %v7492_v4  ;;  %v7109_v62 = vadd.f32 3.0, %v6796_v48 }
 0x4cf   :  { %v8516_v37 = vmul.f32 %v7891_v59, %v7620_v41  ;;  %v7237_v0 = vmax.f32 %v7109_v62, 0.0 }
 0x4d0   :  { %v6468_v8 = vpop.f32.mrf.mxu2  ;;  %v5813_v26 = vpop.f32.mrf.mxu0  ;;  %8145 = vperm.xlu2 %11857, %v7799_v43  }
 0x4d1   :  { %v6797_v19 = vpop.f32.mrf.mxu3  ;;  %v8647_v24 = vsel %vm8641_vm1, %v8516_v37, 0.0  ;;  %v7365_v17 = vmin.f32 %v7237_v0, 6.0  ;;  %v6469_v40 = vadd.f32 %v6468_v8, %v6140_v39  ;;  %v6142_v20 = vpop.f32.mrf.mxu1  ;;  %v5814_v44 = vadd.f32 %v5813_v26, %v12411_v23  ;;  %v7813_v23 = vld [vmem:[%s16521_s3 + $0x220] sm:$0xff]  ;;  %v9333_v26 = vld [vmem:[%s16519_s1 + $0x330] sm:$0xf0] }
 0x4d2   :  { %v8648_v4 = vadd.f32 %v8647_v24, %v8646_v27  ;;  %8210 = vperm.xlu0 %11855, %v7812_v57   ;;  %v11383_v24 = vld [vmem:[%s16519_s1 + $0x32c] sm:$0xf0] }
 0x4d3   :  { %v7493_v41 = vmul.f32 %v7365_v17, %v6796_v48  ;;  %v6798_v5 = vadd.f32 %v6797_v19, %v6469_v40  ;;  %v6143_v12 = vadd.f32 %v6142_v20, %v5814_v44  ;;  %5852 = vmatmul.bf16.gmra.mxu0 %v9300_v53  ;;  %8215 = vperm.xlu1 %11856, %v7813_v23   ;;  %v7815_v17 = vld [vmem:[%s16521_s3 + $0x230] sm:$0xff]  ;;  %v9339_v20 = vld [vmem:[%s16519_s1 + $0x318] sm:$0xf]  ;;  %v7901_v44 = vpop.permute.xlu1 %7900 }
 0x4d4   :  { %6181 = vmatmul.bf16.gmra.mxu1 %v9304_v13 }
 0x4d5   :  { %v7621_v39 = vmul.f32 0.16666667, %v7493_v41  ;;  %v7110_v42 = vadd.f32 3.0, %v6798_v5  ;;  %6510 = vmatmul.bf16.gmra.mxu2 %v9308_v32  ;;  %v9331_v32 = vld [vmem:[%s16519_s1 + $0x310] sm:$0xf] }
 0x4d6   :  { %11228 = vmatmul.msk.bf16.gmra.mxu3 %vm4280_vm0, %v9312_v7  ;;  %v11380_v41 = vld [vmem:[%s16519_s1 + $0x31c] sm:$0xf] }
 0x4d7   :  { %v8517_v27 = vmul.f32 %v7896_v10, %v7621_v39  ;;  %v7238_v62 = vmax.f32 %v7110_v42, 0.0  ;;  %v7816_v39 = vld [vmem:[%s16521_s3 + $0x238] sm:$0xff] }
 0x4d8   :  { %v6471_v48 = vpop.f32.mrf.mxu2  ;;  %v5815_v37 = vpop.f32.mrf.mxu0  ;;  %8160 = vperm.xlu2 %11857, %v7802_v16  }
 0x4d9   :  { %v6800_v52 = vpop.f32.mrf.mxu3  ;;  %v8649_v59 = vsel %vm8641_vm1, %v8517_v27, 0.0  ;;  %v7366_v22 = vmin.f32 %v7238_v62, 6.0  ;;  %v6472_v21 = vadd.f32 %v6471_v48, %v6143_v12  ;;  %v6144_v0 = vpop.f32.mrf.mxu1  ;;  %v5816_v19 = vadd.f32 %v5815_v37, %v12440_v46  ;;  %v11379_v46 = vld [vmem:[%s16519_s1 + $0x314] sm:$0xf] }
 0x4da   :  { %v8650_v8 = vadd.f32 %v8649_v59, %v8648_v4  ;;  %v11384_v4 = vld [vmem:[%s16519_s1 + $0x334] sm:$0xf0]  ;;  %8225 = vperm.xlu0 %11855, %v7815_v17   ;;  %v9332_v27 = vor.u32 %v11383_v24, %v9331_v32  ;;  %v9336_v62 = vor.u32 %v11379_v46, %v9333_v26  ;;  %v7818_v24 = vld [vmem:[%s16521_s3 + $0x248] sm:$0xff]  ;;  %v7906_v26 = vpop.permute.xlu2 %7905 }
 0x4db   :  { %v7494_v53 = vmul.f32 %v7366_v22, %v6798_v5  ;;  %v6801_v13 = vadd.f32 %v6800_v52, %v6472_v21  ;;  %v6145_v40 = vadd.f32 %v6144_v0, %v5816_v19  ;;  %v9341_v5 = vld [vmem:[%s16519_s1 + $0x338] sm:$0xf0]  ;;  %v9340_v23 = vor.u32 %v11384_v4, %v9339_v20  ;;  %8230 = vperm.xlu1 %11856, %v7816_v39   ;;  %v7805_v0 = vld [vmem:[%s16521_s3 + $0x1e0] sm:$0xff] }
 0x4dc   :  { %v9344_v37 = vor.u32 %v11380_v41, %v9341_v5 }
 0x4dd   :  { %v7622_v7 = vmul.f32 0.16666667, %v7494_v53  ;;  %v7111_v43 = vadd.f32 3.0, %v6801_v13 }
 0x4df   :  { %v8518_v57 = vmul.f32 %v7901_v44, %v7622_v7  ;;  %v7239_v12 = vmax.f32 %v7111_v43, 0.0 }
 0x4e0   :  { %v6473_v42 = vpop.f32.mrf.mxu2  ;;  %v5818_v22 = vpop.f32.mrf.mxu0  ;;  %8175 = vperm.xlu2 %11857, %v7805_v0  }
 0x4e1   :  { %v6802_v10 = vpop.f32.mrf.mxu3  ;;  %v8651_v48 = vsel %vm8641_vm1, %v8518_v57, 0.0  ;;  %v7367_v52 = vmin.f32 %v7239_v12, 6.0  ;;  %v6474_v59 = vadd.f32 %v6473_v42, %v6145_v40  ;;  %v6147_v21 = vpop.f32.mrf.mxu1  ;;  %v5819_v19 = vadd.f32 %v5818_v22, %v12445_v58  ;;  %v7819_v58 = vld [vmem:[%s16521_s3 + $0x250] sm:$0xff]  ;;  %v7808_v57 = vld [vmem:[%s16521_s3 + $0x1f8] sm:$0xff] }
 0x4e2   :  { %v8652_v16 = vadd.f32 %v8651_v48, %v8650_v8  ;;  %8240 = vperm.xlu0 %11855, %v7818_v24   ;;  %v7911_v0 = vpop.permute.xlu0 %7910  ;;  %v7822_v24 = vld [vmem:[%s16521_s3 + $0x268] sm:$0xff] }
 0x4e3   :  { %v7495_v53 = vmul.f32 %v7367_v52, %v6801_v13  ;;  %v6803_v32 = vadd.f32 %v6802_v10, %v6474_v59  ;;  %v6148_v17 = vadd.f32 %v6147_v21, %v5819_v19  ;;  %5857 = vmatmul.bf16.gmra.mxu0 %v9332_v27  ;;  %8245 = vperm.xlu1 %11856, %v7819_v58   ;;  %v9363_v27 = vld [vmem:[%s16519_s1 + $0x350] sm:$0xf]  ;;  %v9365_v52 = vld [vmem:[%s16519_s1 + $0x370] sm:$0xf0]  ;;  %v9371_v59 = vld [vmem:[%s16519_s1 + $0x358] sm:$0xf] }
 0x4e4   :  { %6186 = vmatmul.bf16.gmra.mxu1 %v9336_v62  ;;  %v11391_v62 = vld [vmem:[%s16519_s1 + $0x36c] sm:$0xf0]  ;;  %v9373_v19 = vld [vmem:[%s16519_s1 + $0x378] sm:$0xf0] }
 0x4e5   :  { %v7623_v40 = vmul.f32 0.16666667, %v7495_v53  ;;  %v7112_v46 = vadd.f32 3.0, %v6803_v32  ;;  %6515 = vmatmul.bf16.gmra.mxu2 %v9340_v23  ;;  %v7821_v23 = vld [vmem:[%s16521_s3 + $0x260] sm:$0xff] }
 0x4e6   :  { %11229 = vmatmul.msk.bf16.gmra.mxu3 %vm4280_vm0, %v9344_v37  ;;  %v11392_v37 = vld [vmem:[%s16519_s1 + $0x374] sm:$0xf0] }
 0x4e7   :  { %v8519_v8 = vmul.f32 %v7906_v26, %v7623_v40  ;;  %v7240_v20 = vmax.f32 %v7112_v46, 0.0  ;;  %v9364_v46 = vor.u32 %v11391_v62, %v9363_v27 }
 0x4e8   :  { %v6476_v13 = vpop.f32.mrf.mxu2  ;;  %v5820_v41 = vpop.f32.mrf.mxu0  ;;  %8190 = vperm.xlu2 %11857, %v7808_v57  }
 0x4e9   :  { %v6805_v7 = vpop.f32.mrf.mxu3  ;;  %v8653_v43 = vsel %vm8641_vm1, %v8519_v8, 0.0  ;;  %v7368_v4 = vmin.f32 %v7240_v20, 6.0  ;;  %v6477_v44 = vadd.f32 %v6476_v13, %v6148_v17  ;;  %v6149_v5 = vpop.f32.mrf.mxu1  ;;  %v5821_v39 = vadd.f32 %v5820_v41, %v12474_v18  ;;  %v11387_v18 = vld [vmem:[%s16519_s1 + $0x354] sm:$0xf] }
 0x4ea   :  { %v8654_v12 = vadd.f32 %v8653_v43, %v8652_v16  ;;  %v11388_v16 = vld [vmem:[%s16519_s1 + $0x35c] sm:$0xf]  ;;  %8255 = vperm.xlu0 %11855, %v7821_v23   ;;  %v9368_v26 = vor.u32 %v11387_v18, %v9365_v52  ;;  %v9372_v8 = vor.u32 %v11392_v37, %v9371_v59 }
 0x4eb   :  { %v7496_v42 = vmul.f32 %v7368_v4, %v6803_v32  ;;  %v6806_v10 = vadd.f32 %v6805_v7, %v6477_v44  ;;  %v6150_v48 = vadd.f32 %v6149_v5, %v5821_v39  ;;  %8260 = vperm.xlu1 %11856, %v7822_v24   ;;  %v9376_v4 = vor.u32 %v11388_v16, %v9373_v19  ;;  %v7811_v44 = vld [vmem:[%s16521_s3 + $0x210] sm:$0xff]  ;;  %v7814_v16 = vld [vmem:[%s16521_s3 + $0x228] sm:$0xff] }
 0x4ed   :  { %v7624_v22 = vmul.f32 0.16666667, %v7496_v42  ;;  %v7113_v21 = vadd.f32 3.0, %v6806_v10  ;;  %v7824_v42 = vld [vmem:[%s16521_s3 + $0x278] sm:$0xff] }
 0x4ef   :  { %v8520_v53 = vmul.f32 %v7911_v0, %v7624_v22  ;;  %v7241_v32 = vmax.f32 %v7113_v21, 0.0 }
 0x4f0   :  { %v6478_v17 = vpop.f32.mrf.mxu2  ;;  %v5823_v7 = vpop.f32.mrf.mxu0  ;;  %8205 = vperm.xlu2 %11857, %v7811_v44   ;;  %v9405_v44 = vld [vmem:[%s16519_s1 + $0x3b8] sm:$0xf0] }
 0x4f1   :  { %v6807_v40 = vpop.f32.mrf.mxu3  ;;  %v8655_v20 = vsel %vm8641_vm1, %v8520_v53, 0.0  ;;  %v7369_v58 = vmin.f32 %v7241_v32, 6.0  ;;  %v6479_v13 = vadd.f32 %v6478_v17, %v6150_v48  ;;  %v6152_v43 = vpop.f32.mrf.mxu1  ;;  %v5824_v5 = vadd.f32 %v5823_v7, %v12479_v30  ;;  %v7825_v30 = vld [vmem:[%s16521_s3 + $0x280] sm:$0xff]  ;;  %v9395_v17 = vld [vmem:[%s16519_s1 + $0x390] sm:$0xf] }
 0x4f2   :  { %v8656_v41 = vadd.f32 %v8655_v20, %v8654_v12  ;;  %v7916_v48 = vpop.permute.xlu1 %7915  ;;  %8270 = vperm.xlu0 %11855, %v7824_v42   ;;  %v9403_v20 = vld [vmem:[%s16519_s1 + $0x398] sm:$0xf] }
 0x4f3   :  { %v7497_v57 = vmul.f32 %v7369_v58, %v6806_v10  ;;  %v6808_v39 = vadd.f32 %v6807_v40, %v6479_v13  ;;  %v6153_v27 = vadd.f32 %v6152_v43, %v5824_v5  ;;  %5862 = vmatmul.bf16.gmra.mxu0 %v9364_v46  ;;  %8275 = vperm.xlu1 %11856, %v7825_v30   ;;  %v11399_v40 = vld [vmem:[%s16519_s1 + $0x3ac] sm:$0xf0]  ;;  %v11400_v7 = vld [vmem:[%s16519_s1 + $0x3b4] sm:$0xf0]  ;;  %v7921_v43 = vpop.permute.xlu2 %7920 }
 0x4f4   :  { %6191 = vmatmul.bf16.gmra.mxu1 %v9368_v26  ;;  %v7827_v46 = vld [vmem:[%s16521_s3 + $0x290] sm:$0xff] }
 0x4f5   :  { %v7625_v62 = vmul.f32 0.16666667, %v7497_v57  ;;  %v7114_v23 = vadd.f32 3.0, %v6808_v39  ;;  %6520 = vmatmul.bf16.gmra.mxu2 %v9372_v8  ;;  %v9397_v8 = vld [vmem:[%s16519_s1 + $0x3b0] sm:$0xf0]  ;;  %v7828_v57 = vld [vmem:[%s16521_s3 + $0x298] sm:$0xff] }
 0x4f6   :  { %11230 = vmatmul.msk.bf16.gmra.mxu3 %vm4280_vm0, %v9376_v4  ;;  %v11396_v4 = vld [vmem:[%s16519_s1 + $0x39c] sm:$0xf] }
 0x4f7   :  { %v8521_v12 = vmul.f32 %v7916_v48, %v7625_v62  ;;  %v7242_v18 = vmax.f32 %v7114_v23, 0.0  ;;  %v9404_v23 = vor.u32 %v11400_v7, %v9403_v20  ;;  %v7820_v7 = vld [vmem:[%s16521_s3 + $0x258] sm:$0xff] }
 0x4f8   :  { %v6481_v10 = vpop.f32.mrf.mxu2  ;;  %v5825_v37 = vpop.f32.mrf.mxu0  ;;  %8220 = vperm.xlu2 %11857, %v7814_v16   ;;  %v7830_v16 = vld [vmem:[%s16521_s3 + $0x2a8] sm:$0xff] }
 0x4f9   :  { %v6810_v52 = vpop.f32.mrf.mxu3  ;;  %v8657_v59 = vsel %vm8641_vm1, %v8521_v12, 0.0  ;;  %v7370_v22 = vmin.f32 %v7242_v18, 6.0  ;;  %v6482_v21 = vadd.f32 %v6481_v10, %v6153_v27  ;;  %v6154_v0 = vpop.f32.mrf.mxu1  ;;  %v5826_v53 = vadd.f32 %v5825_v37, %v12508_v56  ;;  %v11395_v56 = vld [vmem:[%s16519_s1 + $0x394] sm:$0xf] }
 0x4fa   :  { %v8658_v19 = vadd.f32 %v8657_v59, %v8656_v41  ;;  %8285 = vperm.xlu0 %11855, %v7827_v46   ;;  %v9396_v27 = vor.u32 %v11399_v40, %v9395_v17  ;;  %v9400_v62 = vor.u32 %v11395_v56, %v9397_v8  ;;  %v7817_v59 = vld [vmem:[%s16521_s3 + $0x240] sm:$0xff]  ;;  %v7926_v40 = vpop.permute.xlu0 %7925 }
 0x4fb   :  { %v7498_v32 = vmul.f32 %v7370_v22, %v6808_v39  ;;  %v6811_v24 = vadd.f32 %v6810_v52, %v6482_v21  ;;  %v6155_v26 = vadd.f32 %v6154_v0, %v5826_v53  ;;  %8290 = vperm.xlu1 %11856, %v7828_v57   ;;  %v9408_v52 = vor.u32 %v11396_v4, %v9405_v44  ;;  %v11407_v57 = vld [vmem:[%s16519_s1 + $0x3ec] sm:$0xf0] }
 0x4fd   :  { %v7626_v58 = vmul.f32 0.16666667, %v7498_v32  ;;  %v7115_v13 = vadd.f32 3.0, %v6811_v24 }
 0x4ff   :  { %v8522_v41 = vmul.f32 %v7921_v43, %v7626_v58  ;;  %v7243_v5 = vmax.f32 %v7115_v13, 0.0 }
 0x500   :  { %v6483_v39 = vpop.f32.mrf.mxu2  ;;  %v5828_v30 = vpop.f32.mrf.mxu0  ;;  %8235 = vperm.xlu2 %11857, %v7817_v59  }
 0x501   :  { %v6812_v42 = vpop.f32.mrf.mxu3  ;;  %v8659_v48 = vsel %vm8641_vm1, %v8522_v41, 0.0  ;;  %v7371_v12 = vmin.f32 %v7243_v5, 6.0  ;;  %v6484_v18 = vadd.f32 %v6483_v39, %v6155_v26  ;;  %v6157_v10 = vpop.f32.mrf.mxu1  ;;  %v5829_v21 = vadd.f32 %v5828_v30, %v12522_v6  ;;  %v7831_v6 = vld [vmem:[%s16521_s3 + $0x2b0] sm:$0xff]  ;;  %v7833_v39 = vld [vmem:[%s16521_s3 + $0x2c0] sm:$0xff]  ;;  %v11404_v30 = vld [vmem:[%s16519_s1 + $0x3dc] sm:$0xf] }
 0x502   :  { %v8660_v22 = vadd.f32 %v8659_v48, %v8658_v19  ;;  %8300 = vperm.xlu0 %11855, %v7830_v16   ;;  %v9427_v5 = vld [vmem:[%s16519_s1 + $0x3d0] sm:$0xf] }
 0x503   :  { %v7499_v37 = vmul.f32 %v7371_v12, %v6811_v24  ;;  %v6813_v0 = vadd.f32 %v6812_v42, %v6484_v18  ;;  %v6158_v53 = vadd.f32 %v6157_v10, %v5829_v21  ;;  %5867 = vmatmul.bf16.gmra.mxu0 %v9396_v27  ;;  %8305 = vperm.xlu1 %11856, %v7831_v6   ;;  %v9429_v27 = vld [vmem:[%s16519_s1 + $0x3f0] sm:$0xf0]  ;;  %v11408_v12 = vld [vmem:[%s16519_s1 + $0x3f4] sm:$0xf0]  ;;  %v7931_v18 = vpop.permute.xlu1 %7930  ;;  %v9437_v10 = vld [vmem:[%s16519_s1 + $0x3f8] sm:$0xf0] }
 0x504   :  { %6196 = vmatmul.bf16.gmra.mxu1 %v9400_v62  ;;  %v9435_v62 = vld [vmem:[%s16519_s1 + $0x3d8] sm:$0xf]  ;;  %v9440_v6 = vor.u32 %v11404_v30, %v9437_v10  ;;  %v9459_v10 = vld [vmem:[%s16519_s1 + $0x410] sm:$0xf] }
 0x505   :  { %v7627_v32 = vmul.f32 0.16666667, %v7499_v37  ;;  %v7116_v17 = vadd.f32 3.0, %v6813_v0  ;;  %6525 = vmatmul.bf16.gmra.mxu2 %v9404_v23 }
 0x506   :  { %11231 = vmatmul.msk.bf16.gmra.mxu3 %vm4280_vm0, %v9408_v52 }
 0x507   :  { %v8523_v19 = vmul.f32 %v7926_v40, %v7627_v32  ;;  %v7244_v46 = vmax.f32 %v7116_v17, 0.0 }
 0x508   :  { %v6486_v24 = vpop.f32.mrf.mxu2  ;;  %v5830_v58 = vpop.f32.mrf.mxu0  ;;  %8250 = vperm.xlu2 %11857, %v7820_v7  }
 0x509   :  { %v6815_v26 = vpop.f32.mrf.mxu3  ;;  %v8661_v56 = vsel %vm8641_vm1, %v8523_v19, 0.0  ;;  %v7372_v8 = vmin.f32 %v7244_v46, 6.0  ;;  %v6487_v20 = vadd.f32 %v6486_v24, %v6158_v53  ;;  %v6159_v13 = vpop.f32.mrf.mxu1  ;;  %v5831_v4 = vadd.f32 %v5830_v58, %v12554_v35  ;;  %v11403_v35 = vld [vmem:[%s16519_s1 + $0x3d4] sm:$0xf]  ;;  %v7836_v58 = vld [vmem:[%s16521_s3 + $0x2d8] sm:$0xff] }
 0x50a   :  { %v8662_v43 = vadd.f32 %v8661_v56, %v8660_v22  ;;  %8315 = vperm.xlu0 %11855, %v7833_v39   ;;  %v7834_v22 = vld [vmem:[%s16521_s3 + $0x2c8] sm:$0xff]  ;;  %v9432_v16 = vor.u32 %v11403_v35, %v9429_v27  ;;  %v9436_v53 = vor.u32 %v11408_v12, %v9435_v62  ;;  %v7823_v24 = vld [vmem:[%s16521_s3 + $0x270] sm:$0xff] }
 0x50b   :  { %v7500_v44 = vmul.f32 %v7372_v8, %v6813_v0  ;;  %v6816_v41 = vadd.f32 %v6815_v26, %v6487_v20  ;;  %v6160_v42 = vadd.f32 %v6159_v13, %v5831_v4  ;;  %v9428_v0 = vor.u32 %v11407_v57, %v9427_v5  ;;  %8320 = vperm.xlu1 %11856, %v7834_v22  }
 0x50d   :  { %v7628_v23 = vmul.f32 0.16666667, %v7500_v44  ;;  %v7117_v48 = vadd.f32 3.0, %v6816_v41  ;;  %v7936_v44 = vpop.permute.xlu2 %7935 }
 0x50f   :  { %v8524_v52 = vmul.f32 %v7931_v18, %v7628_v23  ;;  %v7245_v59 = vmax.f32 %v7117_v48, 0.0  ;;  %v7826_v23 = vld [vmem:[%s16521_s3 + $0x288] sm:$0xff] }
 0x510   :  { %v6488_v21 = vpop.f32.mrf.mxu2  ;;  %v5833_v19 = vpop.f32.mrf.mxu0  ;;  %8265 = vperm.xlu2 %11857, %v7823_v24  }
 0x511   :  { %v6817_v37 = vpop.f32.mrf.mxu3  ;;  %v8663_v32 = vsel %vm8641_vm1, %v8524_v52, 0.0  ;;  %v7373_v17 = vmin.f32 %v7245_v59, 6.0  ;;  %v6489_v40 = vadd.f32 %v6488_v21, %v6160_v42  ;;  %v6162_v46 = vpop.f32.mrf.mxu1  ;;  %v5834_v56 = vadd.f32 %v5833_v19, %v12559_v47  ;;  %v7837_v47 = vld [vmem:[%s16521_s3 + $0x2e0] sm:$0xff]  ;;  %v11415_v52 = vld [vmem:[%s16519_s1 + $0x42c] sm:$0xf0] }
 0x512   :  { %v8664_v26 = vadd.f32 %v8663_v32, %v8662_v43  ;;  %8330 = vperm.xlu0 %11855, %v7836_v58   ;;  %v7839_v59 = vld [vmem:[%s16521_s3 + $0x2f0] sm:$0xff]  ;;  %v7941_v32 = vpop.permute.xlu0 %7940 }
 0x513   :  { %v7501_v8 = vmul.f32 %v7373_v17, %v6816_v41  ;;  %v6818_v20 = vadd.f32 %v6817_v37, %v6489_v40  ;;  %v6163_v13 = vadd.f32 %v6162_v46, %v5834_v56  ;;  %5872 = vmatmul.bf16.gmra.mxu0 %v9428_v0  ;;  %8335 = vperm.xlu1 %11856, %v7837_v47   ;;  %v9461_v21 = vld [vmem:[%s16519_s1 + $0x430] sm:$0xf0]  ;;  %v9467_v37 = vld [vmem:[%s16519_s1 + $0x418] sm:$0xf]  ;;  %v11412_v17 = vld [vmem:[%s16519_s1 + $0x41c] sm:$0xf] }
 0x514   :  { %6201 = vmatmul.bf16.gmra.mxu1 %v9432_v16  ;;  %v9469_v40 = vld [vmem:[%s16519_s1 + $0x438] sm:$0xf0]  ;;  %v9460_v56 = vor.u32 %v11415_v52, %v9459_v10 }
 0x515   :  { %v7629_v7 = vmul.f32 0.16666667, %v7501_v8  ;;  %v7118_v4 = vadd.f32 3.0, %v6818_v20  ;;  %6530 = vmatmul.bf16.gmra.mxu2 %v9436_v53  ;;  %v11416_v53 = vld [vmem:[%s16519_s1 + $0x434] sm:$0xf0] }
 0x516   :  { %11232 = vmatmul.msk.bf16.gmra.mxu3 %vm4280_vm0, %v9440_v6  ;;  %v7840_v6 = vld [vmem:[%s16521_s3 + $0x2f8] sm:$0xff] }
 0x517   :  { %v8525_v43 = vmul.f32 %v7936_v44, %v7629_v7  ;;  %v7246_v5 = vmax.f32 %v7118_v4, 0.0 }
 0x518   :  { %v6491_v41 = vpop.f32.mrf.mxu2  ;;  %v5835_v27 = vpop.f32.mrf.mxu0  ;;  %8280 = vperm.xlu2 %11857, %v7826_v23  }
 0x519   :  { %v6820_v57 = vpop.f32.mrf.mxu3  ;;  %v8665_v39 = vsel %vm8641_vm1, %v8525_v43, 0.0  ;;  %v7374_v42 = vmin.f32 %v7246_v5, 6.0  ;;  %v6492_v35 = vadd.f32 %v6491_v41, %v6163_v13  ;;  %v6164_v62 = vpop.f32.mrf.mxu1  ;;  %v5836_v12 = vadd.f32 %v5835_v27, %v12588_v11  ;;  %v11411_v11 = vld [vmem:[%s16519_s1 + $0x414] sm:$0xf]  ;;  %v7829_v5 = vld [vmem:[%s16521_s3 + $0x2a0] sm:$0xff] }
 0x51a   :  { %v8666_v48 = vadd.f32 %v8665_v39, %v8664_v26  ;;  %8345 = vperm.xlu0 %11855, %v7839_v59   ;;  %v9464_v8 = vor.u32 %v11411_v11, %v9461_v21  ;;  %v9472_v43 = vor.u32 %v11412_v17, %v9469_v40  ;;  %v7946_v23 = vpop.permute.xlu1 %7945  ;;  %v7832_v21 = vld [vmem:[%s16521_s3 + $0x2b8] sm:$0xff]  ;;  %v11423_v17 = vld [vmem:[%s16519_s1 + $0x46c] sm:$0xf0]  ;;  %v7845_v40 = vld [vmem:[%s16521_s3 + $0x320] sm:$0xff] }
 0x51b   :  { %v7502_v18 = vmul.f32 %v7374_v42, %v6818_v20  ;;  %v6821_v30 = vadd.f32 %v6820_v57, %v6492_v35  ;;  %v6165_v22 = vadd.f32 %v6164_v62, %v5836_v12  ;;  %v9468_v20 = vor.u32 %v11416_v53, %v9467_v37  ;;  %8350 = vperm.xlu1 %11856, %v7840_v6   ;;  %v7842_v42 = vld [vmem:[%s16521_s3 + $0x308] sm:$0xff]  ;;  %v9499_v6 = vld [vmem:[%s16519_s1 + $0x458] sm:$0xf] }
 0x51d   :  { %v7630_v0 = vmul.f32 0.16666667, %v7502_v18  ;;  %v7119_v16 = vadd.f32 3.0, %v6821_v30 }
 0x51f   :  { %v8526_v19 = vmul.f32 %v7941_v32, %v7630_v0  ;;  %v7247_v46 = vmax.f32 %v7119_v16, 0.0  ;;  %v9491_v32 = vld [vmem:[%s16519_s1 + $0x450] sm:$0xf] }
 0x520   :  { %v6493_v24 = vpop.f32.mrf.mxu2  ;;  %v5838_v4 = vpop.f32.mrf.mxu0  ;;  %8295 = vperm.xlu2 %11857, %v7829_v5   ;;  %v9492_v5 = vor.u32 %v11423_v17, %v9491_v32 }
 0x521   :  { %v6822_v26 = vpop.f32.mrf.mxu3  ;;  %v8667_v58 = vsel %vm8641_vm1, %v8526_v19, 0.0  ;;  %v7375_v13 = vmin.f32 %v7247_v46, 6.0  ;;  %v6494_v7 = vadd.f32 %v6493_v24, %v6165_v22  ;;  %v6167_v44 = vpop.f32.mrf.mxu1  ;;  %v5839_v41 = vadd.f32 %v5838_v4, %v12593_v25  ;;  %v7843_v25 = vld [vmem:[%s16521_s3 + $0x310] sm:$0xff]  ;;  %v7846_v4 = vld [vmem:[%s16521_s3 + $0x328] sm:$0xff] }
 0x522   :  { %v8668_v47 = vadd.f32 %v8667_v58, %v8666_v48  ;;  %8360 = vperm.xlu0 %11855, %v7842_v42   ;;  %v9493_v46 = vld [vmem:[%s16519_s1 + $0x470] sm:$0xf0]  ;;  %v9501_v58 = vld [vmem:[%s16519_s1 + $0x478] sm:$0xf0] }
 0x523   :  { %v7503_v57 = vmul.f32 %v7375_v13, %v6821_v30  ;;  %v6823_v39 = vadd.f32 %v6822_v26, %v6494_v7  ;;  %v6168_v35 = vadd.f32 %v6167_v44, %v5839_v41  ;;  %5877 = vmatmul.bf16.gmra.mxu0 %v9460_v56  ;;  %8365 = vperm.xlu1 %11856, %v7843_v25   ;;  %v11424_v56 = vld [vmem:[%s16519_s1 + $0x474] sm:$0xf0] }
 0x524   :  { %6206 = vmatmul.bf16.gmra.mxu1 %v9464_v8  ;;  %v7951_v8 = vpop.permute.xlu2 %7950  ;;  %v9500_v41 = vor.u32 %v11424_v56, %v9499_v6  ;;  %v11431_v56 = vld [vmem:[%s16519_s1 + $0x4ac] sm:$0xf0] }
 0x525   :  { %v7631_v27 = vmul.f32 0.16666667, %v7503_v57  ;;  %v7120_v62 = vadd.f32 3.0, %v6823_v39  ;;  %6535 = vmatmul.bf16.gmra.mxu2 %v9468_v20  ;;  %v11420_v20 = vld [vmem:[%s16519_s1 + $0x45c] sm:$0xf] }
 0x526   :  { %11233 = vmatmul.msk.bf16.gmra.mxu3 %vm4280_vm0, %v9472_v43 }
 0x527   :  { %v8527_v48 = vmul.f32 %v7946_v23, %v7631_v27  ;;  %v7248_v12 = vmax.f32 %v7120_v62, 0.0  ;;  %v9504_v62 = vor.u32 %v11420_v20, %v9501_v58  ;;  %v7835_v23 = vld [vmem:[%s16521_s3 + $0x2d0] sm:$0xff] }
 0x528   :  { %v6496_v18 = vpop.f32.mrf.mxu2  ;;  %v5840_v22 = vpop.f32.mrf.mxu0  ;;  %8310 = vperm.xlu2 %11857, %v7832_v21   ;;  %v9525_v58 = vld [vmem:[%s16519_s1 + $0x4b0] sm:$0xf0] }
 0x529   :  { %v6825_v30 = vpop.f32.mrf.mxu3  ;;  %v8669_v10 = vsel %vm8641_vm1, %v8527_v48, 0.0  ;;  %v7376_v52 = vmin.f32 %v7248_v12, 6.0  ;;  %v6497_v59 = vadd.f32 %v6496_v18, %v6168_v35  ;;  %v6169_v11 = vpop.f32.mrf.mxu1  ;;  %v5841_v0 = vadd.f32 %v5840_v22, %v12622_v54  ;;  %v11419_v54 = vld [vmem:[%s16519_s1 + $0x454] sm:$0xf] }
 0x52a   :  { %v8670_v37 = vadd.f32 %v8669_v10, %v8668_v47  ;;  %8375 = vperm.xlu0 %11855, %v7845_v40   ;;  %v9496_v47 = vor.u32 %v11419_v54, %v9493_v46  ;;  %v7956_v22 = vpop.permute.xlu0 %7955 }
 0x52b   :  { %v7504_v16 = vmul.f32 %v7376_v52, %v6823_v39  ;;  %v6826_v53 = vadd.f32 %v6825_v30, %v6497_v59  ;;  %v6170_v19 = vadd.f32 %v6169_v11, %v5841_v0  ;;  %8380 = vperm.xlu1 %11856, %v7846_v4   ;;  %v7848_v30 = vld [vmem:[%s16521_s3 + $0x338] sm:$0xff] }
 0x52d   :  { %v7632_v24 = vmul.f32 0.16666667, %v7504_v16  ;;  %v7121_v26 = vadd.f32 3.0, %v6826_v53 }
 0x52f   :  { %v8528_v13 = vmul.f32 %v7951_v8, %v7632_v24  ;;  %v7249_v7 = vmax.f32 %v7121_v26, 0.0  ;;  %v9523_v26 = vld [vmem:[%s16519_s1 + $0x490] sm:$0xf] }
 0x530   :  { %v6498_v44 = vpop.f32.mrf.mxu2  ;;  %v5843_v35 = vpop.f32.mrf.mxu0  ;;  %8325 = vperm.xlu2 %11857, %v7835_v23   ;;  %v7851_v8 = vld [vmem:[%s16521_s3 + $0x350] sm:$0xff] }
 0x531   :  { %v6827_v43 = vpop.f32.mrf.mxu3  ;;  %v8671_v57 = vsel %vm8641_vm1, %v8528_v13, 0.0  ;;  %v7377_v39 = vmin.f32 %v7249_v7, 6.0  ;;  %v6499_v42 = vadd.f32 %v6498_v44, %v6170_v19  ;;  %v6172_v27 = vpop.f32.mrf.mxu1  ;;  %v5844_v12 = vadd.f32 %v5843_v35, %v12627_v2  ;;  %v7849_v2 = vld [vmem:[%s16521_s3 + $0x340] sm:$0xff]  ;;  %v7838_v19 = vld [vmem:[%s16521_s3 + $0x2e8] sm:$0xff]  ;;  %v9531_v13 = vld [vmem:[%s16519_s1 + $0x498] sm:$0xf] }
 0x532   :  { %v8672_v48 = vadd.f32 %v8671_v57, %v8670_v37  ;;  %8390 = vperm.xlu0 %11855, %v7848_v30   ;;  %v11432_v44 = vld [vmem:[%s16519_s1 + $0x4b4] sm:$0xf0] }
 0x533   :  { %v7505_v25 = vmul.f32 %v7377_v39, %v6826_v53  ;;  %v6828_v18 = vadd.f32 %v6827_v43, %v6499_v42  ;;  %v6173_v10 = vadd.f32 %v6172_v27, %v5844_v12  ;;  %5882 = vmatmul.bf16.gmra.mxu0 %v9492_v5  ;;  %8395 = vperm.xlu1 %11856, %v7849_v2   ;;  %v7961_v43 = vpop.permute.xlu1 %7960  ;;  %v11428_v5 = vld [vmem:[%s16519_s1 + $0x49c] sm:$0xf]  ;;  %v7854_v2 = vld [vmem:[%s16521_s3 + $0x368] sm:$0xff] }
 0x534   :  { %6211 = vmatmul.bf16.gmra.mxu1 %v9496_v47  ;;  %v9533_v47 = vld [vmem:[%s16519_s1 + $0x4b8] sm:$0xf0]  ;;  %v9524_v27 = vor.u32 %v11431_v56, %v9523_v26  ;;  %v9532_v23 = vor.u32 %v11432_v44, %v9531_v13  ;;  %v9555_v13 = vld [vmem:[%s16519_s1 + $0x4d0] sm:$0xf] }
 0x535   :  { %v7633_v52 = vmul.f32 0.16666667, %v7505_v25  ;;  %v7122_v59 = vadd.f32 3.0, %v6828_v18  ;;  %6540 = vmatmul.bf16.gmra.mxu2 %v9500_v41  ;;  %v7852_v39 = vld [vmem:[%s16521_s3 + $0x358] sm:$0xff] }
 0x536   :  { %11234 = vmatmul.msk.bf16.gmra.mxu3 %vm4280_vm0, %v9504_v62  ;;  %v7844_v56 = vld [vmem:[%s16521_s3 + $0x318] sm:$0xff] }
 0x537   :  { %v8529_v11 = vmul.f32 %v7956_v22, %v7633_v52  ;;  %v7250_v21 = vmax.f32 %v7122_v59, 0.0  ;;  %v7841_v52 = vld [vmem:[%s16521_s3 + $0x300] sm:$0xff] }
 0x538   :  { %v6501_v37 = vpop.f32.mrf.mxu2  ;;  %v5845_v17 = vpop.f32.mrf.mxu0  ;;  %8340 = vperm.xlu2 %11857, %v7838_v19  }
 0x539   :  { %v6830_v0 = vpop.f32.mrf.mxu3  ;;  %v8673_v16 = vsel %vm8641_vm1, %v8529_v11, 0.0  ;;  %v7378_v53 = vmin.f32 %v7250_v21, 6.0  ;;  %v6502_v32 = vadd.f32 %v6501_v37, %v6173_v10  ;;  %v6174_v40 = vpop.f32.mrf.mxu1  ;;  %v5846_v46 = vadd.f32 %v5845_v17, %v12656_v33  ;;  %v11427_v33 = vld [vmem:[%s16519_s1 + $0x494] sm:$0xf] }
 0x53a   :  { %v8674_v54 = vadd.f32 %v8673_v16, %v8672_v48  ;;  %8405 = vperm.xlu0 %11855, %v7851_v8   ;;  %v9528_v62 = vor.u32 %v11427_v33, %v9525_v58  ;;  %v9536_v10 = vor.u32 %v11428_v5, %v9533_v47  ;;  %v9563_v5 = vld [vmem:[%s16519_s1 + $0x4d8] sm:$0xf] }
 0x53b   :  { %v7506_v6 = vmul.f32 %v7378_v53, %v6828_v18  ;;  %v6831_v24 = vadd.f32 %v6830_v0, %v6502_v32  ;;  %v6175_v20 = vadd.f32 %v6174_v40, %v5846_v46  ;;  %8410 = vperm.xlu1 %11856, %v7852_v39   ;;  %v7966_v53 = vpop.permute.xlu2 %7965  ;;  %v7971_v39 = vpop.permute.xlu0 %7970 }
 0x53d   :  { %v7634_v7 = vmul.f32 0.16666667, %v7506_v6  ;;  %v7123_v4 = vadd.f32 3.0, %v6831_v24 }
 0x53f   :  { %v8530_v41 = vmul.f32 %v7961_v43, %v7634_v7  ;;  %v7251_v57 = vmax.f32 %v7123_v4, 0.0  ;;  %v11439_v7 = vld [vmem:[%s16519_s1 + $0x4ec] sm:$0xf0]  ;;  %v7857_v4 = vld [vmem:[%s16521_s3 + $0x380] sm:$0xff]  ;;  %v9557_v43 = vld [vmem:[%s16519_s1 + $0x4f0] sm:$0xf0] }
 0x540   :  { %v6503_v42 = vpop.f32.mrf.mxu2  ;;  %v5848_v18 = vpop.f32.mrf.mxu0  ;;  %8355 = vperm.xlu2 %11857, %v7841_v52  }
 0x541   :  { %v6832_v35 = vpop.f32.mrf.mxu3  ;;  %v8675_v48 = vsel %vm8641_vm1, %v8530_v41, 0.0  ;;  %v7379_v12 = vmin.f32 %v7251_v57, 6.0  ;;  %v6504_v25 = vadd.f32 %v6503_v42, %v6175_v20  ;;  %v6177_v30 = vpop.f32.mrf.mxu1  ;;  %v5849_v22 = vadd.f32 %v5848_v18, %v12661_v45  ;;  %v7855_v45 = vld [vmem:[%s16521_s3 + $0x370] sm:$0xff]  ;;  %v11440_v57 = vld [vmem:[%s16519_s1 + $0x4f4] sm:$0xf0] }
 0x542   :  { %v8676_v59 = vadd.f32 %v8675_v48, %v8674_v54  ;;  %8420 = vperm.xlu0 %11855, %v7854_v2   ;;  %v11436_v42 = vld [vmem:[%s16519_s1 + $0x4dc] sm:$0xf]  ;;  %v7847_v2 = vld [vmem:[%s16521_s3 + $0x330] sm:$0xff] }
 0x543   :  { %v7507_v11 = vmul.f32 %v7379_v12, %v6831_v24  ;;  %v6833_v21 = vadd.f32 %v6832_v35, %v6504_v25  ;;  %v6178_v37 = vadd.f32 %v6177_v30, %v5849_v22  ;;  %5887 = vmatmul.bf16.gmra.mxu0 %v9524_v27  ;;  %8425 = vperm.xlu1 %11856, %v7855_v45   ;;  %v9565_v35 = vld [vmem:[%s16519_s1 + $0x4f8] sm:$0xf0] }
 0x544   :  { %6216 = vmatmul.bf16.gmra.mxu1 %v9528_v62  ;;  %v9556_v25 = vor.u32 %v11439_v7, %v9555_v13  ;;  %v9564_v30 = vor.u32 %v11440_v57, %v9563_v5  ;;  %v7863_v5 = vld [vmem:[%s16521_s3 + $0x3b0] sm:$0xff]  ;;  %v9595_v57 = vld [vmem:[%s16519_s1 + $0x518] sm:$0xf] }
 0x545   :  { %v7635_v0 = vmul.f32 0.16666667, %v7507_v11  ;;  %v7124_v16 = vadd.f32 3.0, %v6833_v21  ;;  %6545 = vmatmul.bf16.gmra.mxu2 %v9532_v23  ;;  %v7858_v23 = vld [vmem:[%s16521_s3 + $0x388] sm:$0xff] }
 0x546   :  { %11235 = vmatmul.msk.bf16.gmra.mxu3 %vm4280_vm0, %v9536_v10 }
 0x547   :  { %v8531_v32 = vmul.f32 %v7966_v53, %v7635_v0  ;;  %v7252_v17 = vmax.f32 %v7124_v16, 0.0 }
 0x548   :  { %v6506_v40 = vpop.f32.mrf.mxu2  ;;  %v5850_v24 = vpop.f32.mrf.mxu0  ;;  %8370 = vperm.xlu2 %11857, %v7844_v56  }
 0x549   :  { %v6835_v19 = vpop.f32.mrf.mxu3  ;;  %v8677_v54 = vsel %vm8641_vm1, %v8531_v32, 0.0  ;;  %v7380_v46 = vmin.f32 %v7252_v17, 6.0  ;;  %v6507_v6 = vadd.f32 %v6506_v40, %v6178_v37  ;;  %v6179_v26 = vpop.f32.mrf.mxu1  ;;  %v5851_v20 = vadd.f32 %v5850_v24, %v12690_v15  ;;  %v11435_v15 = vld [vmem:[%s16519_s1 + $0x4d4] sm:$0xf]  ;;  %v7860_v32 = vld [vmem:[%s16521_s3 + $0x398] sm:$0xff] }
 0x54a   :  { %v8678_v8 = vadd.f32 %v8677_v54, %v8676_v59  ;;  %8435 = vperm.xlu0 %11855, %v7857_v4   ;;  %v9560_v18 = vor.u32 %v11435_v15, %v9557_v43  ;;  %v9587_v15 = vld [vmem:[%s16519_s1 + $0x510] sm:$0xf] }
 0x54b   :  { %v7508_v33 = vmul.f32 %v7380_v46, %v6833_v21  ;;  %v6836_v58 = vadd.f32 %v6835_v19, %v6507_v6  ;;  %v6180_v44 = vadd.f32 %v6179_v26, %v5851_v20  ;;  %8440 = vperm.xlu1 %11856, %v7858_v23   ;;  %v9568_v21 = vor.u32 %v11436_v42, %v9565_v35  ;;  %v7976_v19 = vpop.permute.xlu1 %7975  ;;  %v11447_v43 = vld [vmem:[%s16519_s1 + $0x52c] sm:$0xf0]  ;;  %v11448_v35 = vld [vmem:[%s16519_s1 + $0x534] sm:$0xf0]  ;;  %v9597_v23 = vld [vmem:[%s16519_s1 + $0x538] sm:$0xf0] }
 0x54d   :  { %v7636_v47 = vmul.f32 0.16666667, %v7508_v33  ;;  %v7125_v41 = vadd.f32 3.0, %v6836_v58 }
 0x54f   :  { %v8532_v27 = vmul.f32 %v7971_v39, %v7636_v47  ;;  %v7253_v62 = vmax.f32 %v7125_v41, 0.0  ;;  %v9589_v41 = vld [vmem:[%s16519_s1 + $0x530] sm:$0xf0] }
 0x550   :  { %v6508_v48 = vpop.f32.mrf.mxu2  ;;  %v5853_v22 = vpop.f32.mrf.mxu0  ;;  %8385 = vperm.xlu2 %11857, %v7847_v2  }
 0x551   :  { %v6837_v12 = vpop.f32.mrf.mxu3  ;;  %v8679_v10 = vsel %vm8641_vm1, %v8532_v27, 0.0  ;;  %v7381_v52 = vmin.f32 %v7253_v62, 6.0  ;;  %v6509_v59 = vadd.f32 %v6508_v48, %v6180_v44  ;;  %v6182_v11 = vpop.f32.mrf.mxu1  ;;  %v5854_v0 = vadd.f32 %v5853_v22, %v12695_v29  ;;  %v7861_v29 = vld [vmem:[%s16521_s3 + $0x3a0] sm:$0xff]  ;;  %v11444_v62 = vld [vmem:[%s16519_s1 + $0x51c] sm:$0xf] }
 0x552   :  { %v8680_v37 = vadd.f32 %v8679_v10, %v8678_v8  ;;  %8450 = vperm.xlu0 %11855, %v7860_v32   ;;  %v7981_v27 = vpop.permute.xlu2 %7980  ;;  %v9588_v10 = vor.u32 %v11447_v43, %v9587_v15 }
 0x553   :  { %v7509_v16 = vmul.f32 %v7381_v52, %v6836_v58  ;;  %v6838_v53 = vadd.f32 %v6837_v12, %v6509_v59  ;;  %v6183_v17 = vadd.f32 %v6182_v11, %v5854_v0  ;;  %5892 = vmatmul.bf16.gmra.mxu0 %v9556_v25  ;;  %8455 = vperm.xlu1 %11856, %v7861_v29   ;;  %v7850_v58 = vld [vmem:[%s16521_s3 + $0x348] sm:$0xff]  ;;  %v7864_v25 = vld [vmem:[%s16521_s3 + $0x3b8] sm:$0xff]  ;;  %v7986_v29 = vpop.permute.xlu0 %7985 }
 0x554   :  { %6221 = vmatmul.bf16.gmra.mxu1 %v9560_v18  ;;  %v9596_v59 = vor.u32 %v11448_v35, %v9595_v57  ;;  %v9600_v0 = vor.u32 %v11444_v62, %v9597_v23  ;;  %v9621_v57 = vld [vmem:[%s16519_s1 + $0x570] sm:$0xf0]  ;;  %v7991_v62 = vpop.permute.xlu1 %7990  ;;  %v11452_v23 = vld [vmem:[%s16519_s1 + $0x55c] sm:$0xf] }
 0x555   :  { %v7637_v45 = vmul.f32 0.16666667, %v7509_v16  ;;  %v7126_v40 = vadd.f32 3.0, %v6838_v53  ;;  %6550 = vmatmul.bf16.gmra.mxu2 %v9564_v30  ;;  %v7853_v16 = vld [vmem:[%s16521_s3 + $0x360] sm:$0xff] }
 0x556   :  { %11236 = vmatmul.msk.bf16.gmra.mxu3 %vm4280_vm0, %v9568_v21 }
 0x557   :  { %v8533_v54 = vmul.f32 %v7976_v19, %v7637_v45  ;;  %v7254_v46 = vmax.f32 %v7126_v40, 0.0  ;;  %v7866_v40 = vld [vmem:[%s16521_s3 + $0x3c8] sm:$0xff] }
 0x558   :  { %v6511_v6 = vpop.f32.mrf.mxu2  ;;  %v5855_v20 = vpop.f32.mrf.mxu0  ;;  %8400 = vperm.xlu2 %11857, %v7850_v58  }
 0x559   :  { %v6840_v24 = vpop.f32.mrf.mxu3  ;;  %v8681_v26 = vsel %vm8641_vm1, %v8533_v54, 0.0  ;;  %v7382_v56 = vmin.f32 %v7254_v46, 6.0  ;;  %v6512_v8 = vadd.f32 %v6511_v6, %v6183_v17  ;;  %v6184_v33 = vpop.f32.mrf.mxu1  ;;  %v5856_v7 = vadd.f32 %v5855_v20, %v12724_v63  ;;  %v11443_v63 = vld [vmem:[%s16519_s1 + $0x514] sm:$0xf] }
 0x55a   :  { %v8682_v13 = vadd.f32 %v8681_v26, %v8680_v37  ;;  %8465 = vperm.xlu0 %11855, %v7863_v5   ;;  %v9592_v52 = vor.u32 %v11443_v63, %v9589_v41  ;;  %v9619_v5 = vld [vmem:[%s16519_s1 + $0x550] sm:$0xf]  ;;  %v7869_v63 = vld [vmem:[%s16521_s3 + $0x3e0] sm:$0xff] }
 0x55b   :  { %v7510_v4 = vmul.f32 %v7382_v56, %v6838_v53  ;;  %v6841_v44 = vadd.f32 %v6840_v24, %v6512_v8  ;;  %v6185_v47 = vadd.f32 %v6184_v33, %v5856_v7  ;;  %8470 = vperm.xlu1 %11856, %v7864_v25   ;;  %v7856_v7 = vld [vmem:[%s16521_s3 + $0x378] sm:$0xff] }
 0x55d   :  { %v7638_v39 = vmul.f32 0.16666667, %v7510_v4  ;;  %v7127_v42 = vadd.f32 3.0, %v6841_v44 }
 0x55f   :  { %v8534_v48 = vmul.f32 %v7981_v27, %v7638_v39  ;;  %v7255_v12 = vmax.f32 %v7127_v42, 0.0  ;;  %v9627_v39 = vld [vmem:[%s16519_s1 + $0x558] sm:$0xf] }
 0x560   :  { %v6513_v18 = vpop.f32.mrf.mxu2  ;;  %v5858_v2 = vpop.f32.mrf.mxu0  ;;  %8415 = vperm.xlu2 %11857, %v7853_v16   ;;  %v11456_v27 = vld [vmem:[%s16519_s1 + $0x574] sm:$0xf0] }
 0x561   :  { %v6842_v30 = vpop.f32.mrf.mxu3  ;;  %v8683_v22 = vsel %vm8641_vm1, %v8534_v48, 0.0  ;;  %v7383_v11 = vmin.f32 %v7255_v12, 6.0  ;;  %v6514_v21 = vadd.f32 %v6513_v18, %v6185_v47  ;;  %v6187_v37 = vpop.f32.mrf.mxu1  ;;  %v5859_v32 = vadd.f32 %v5858_v2, %v12729_v14  ;;  %v7867_v14 = vld [vmem:[%s16521_s3 + $0x3d0] sm:$0xff]  ;;  %v9629_v48 = vld [vmem:[%s16519_s1 + $0x578] sm:$0xf0]  ;;  %v7870_v18 = vld [vmem:[%s16521_s3 + $0x3e8] sm:$0xff] }
 0x562   :  { %v8684_v53 = vadd.f32 %v8683_v22, %v8682_v13  ;;  %8480 = vperm.xlu0 %11855, %v7866_v40   ;;  %v11455_v47 = vld [vmem:[%s16519_s1 + $0x56c] sm:$0xf0]  ;;  %v9628_v22 = vor.u32 %v11456_v27, %v9627_v39  ;;  %v9632_v16 = vor.u32 %v11452_v23, %v9629_v48  ;;  %v11460_v27 = vld [vmem:[%s16519_s1 + $0x59c] sm:$0xf] }
 0x563   :  { %v7511_v17 = vmul.f32 %v7383_v11, %v6841_v44  ;;  %v6843_v45 = vadd.f32 %v6842_v30, %v6514_v21  ;;  %v6188_v19 = vadd.f32 %v6187_v37, %v5859_v32  ;;  %5897 = vmatmul.bf16.gmra.mxu0 %v9588_v10  ;;  %8485 = vperm.xlu1 %11856, %v7867_v14  }
 0x564   :  { %6226 = vmatmul.bf16.gmra.mxu1 %v9592_v52  ;;  %v9620_v52 = vor.u32 %v11455_v47, %v9619_v5  ;;  %v9651_v5 = vld [vmem:[%s16519_s1 + $0x590] sm:$0xf] }
 0x565   :  { %v7639_v54 = vmul.f32 0.16666667, %v7511_v17  ;;  %v7128_v46 = vadd.f32 3.0, %v6843_v45  ;;  %6555 = vmatmul.bf16.gmra.mxu2 %v9596_v59  ;;  %v11463_v47 = vld [vmem:[%s16519_s1 + $0x5ac] sm:$0xf0] }
 0x566   :  { %11237 = vmatmul.msk.bf16.gmra.mxu3 %vm4280_vm0, %v9600_v0 }
 0x567   :  { %v8535_v6 = vmul.f32 %v7986_v29, %v7639_v54  ;;  %v7256_v24 = vmax.f32 %v7128_v46, 0.0 }
 0x568   :  { %v6516_v26 = vpop.f32.mrf.mxu2  ;;  %v5860_v58 = vpop.f32.mrf.mxu0  ;;  %8430 = vperm.xlu2 %11857, %v7856_v7   ;;  %v7862_v7 = vld [vmem:[%s16521_s3 + $0x3a8] sm:$0xff] }
 0x569   :  { %v6845_v56 = vpop.f32.mrf.mxu3  ;;  %v8685_v8 = vsel %vm8641_vm1, %v8535_v6, 0.0  ;;  %v7384_v20 = vmin.f32 %v7256_v24, 6.0  ;;  %v6517_v33 = vadd.f32 %v6516_v26, %v6188_v19  ;;  %v6189_v13 = vpop.f32.mrf.mxu1  ;;  %v5861_v44 = vadd.f32 %v5860_v58, %v12758_v49  ;;  %v11451_v49 = vld [vmem:[%s16519_s1 + $0x554] sm:$0xf]  ;;  %v7872_v19 = vld [vmem:[%s16521_s3 + $0x3f8] sm:$0xff] }
 0x56a   :  { %v8686_v4 = vadd.f32 %v8685_v8, %v8684_v53  ;;  %8495 = vperm.xlu0 %11855, %v7869_v63   ;;  %v9624_v59 = vor.u32 %v11451_v49, %v9621_v57  ;;  %v7859_v53 = vld [vmem:[%s16521_s3 + $0x390] sm:$0xff]  ;;  %v7996_v6 = vpop.permute.xlu2 %7995  ;;  %v9659_v49 = vld [vmem:[%s16519_s1 + $0x598] sm:$0xf] }
 0x56b   :  { %v7512_v15 = vmul.f32 %v7384_v20, %v6843_v45  ;;  %v6846_v43 = vadd.f32 %v6845_v56, %v6517_v33  ;;  %v6190_v41 = vadd.f32 %v6189_v13, %v5861_v44  ;;  %8500 = vperm.xlu1 %11856, %v7870_v18   ;;  %v9652_v18 = vor.u32 %v11463_v47, %v9651_v5  ;;  %v11472_v47 = vld [vmem:[%s16519_s1 + $0x5f4] sm:$0xf0] }
 0x56d   :  { %v7640_v42 = vmul.f32 0.16666667, %v7512_v15  ;;  %v7129_v35 = vadd.f32 3.0, %v6846_v43 }
 0x56f   :  { %v8536_v12 = vmul.f32 %v7991_v62, %v7640_v42  ;;  %v7257_v25 = vmax.f32 %v7129_v35, 0.0  ;;  %v11464_v42 = vld [vmem:[%s16519_s1 + $0x5b4] sm:$0xf0]  ;;  %v8001_v35 = vpop.permute.xlu0 %8000  ;;  %v9661_v62 = vld [vmem:[%s16519_s1 + $0x5b8] sm:$0xf0] }
 0x570   :  { %v6518_v30 = vpop.f32.mrf.mxu2  ;;  %v5863_v37 = vpop.f32.mrf.mxu0  ;;  %8445 = vperm.xlu2 %11857, %v7859_v53  }
 0x571   :  { %v6847_v10 = vpop.f32.mrf.mxu3  ;;  %v8687_v11 = vsel %vm8641_vm1, %v8536_v12, 0.0  ;;  %v7385_v21 = vmin.f32 %v7257_v25, 6.0  ;;  %v6519_v2 = vadd.f32 %v6518_v30, %v6190_v41  ;;  %v6192_v0 = vpop.f32.mrf.mxu1  ;;  %v5864_v17 = vadd.f32 %v5863_v37, %v12763_v1  ;;  %v8903_v1 = vld [vmem:[#allocation2] sm:$0x1]  ;;  %v11459_v41 = vld [vmem:[%s16519_s1 + $0x594] sm:$0xf] }
 0x572   :  { %v8688_v32 = vadd.f32 %v8687_v11, %v8686_v4  ;;  %8510 = vperm.xlu0 %11855, %v7872_v19   ;;  %v7865_v37 = vld [vmem:[%s16521_s3 + $0x3c0] sm:$0xff]  ;;  %v8006_v19 = vpop.permute.xlu1 %8005 }
 0x573   :  { %v7513_v45 = vmul.f32 %v7385_v21, %v6846_v43  ;;  %v6848_v40 = vadd.f32 %v6847_v10, %v6519_v2  ;;  %v6193_v54 = vadd.f32 %v6192_v0, %v5864_v17  ;;  %5902 = vmatmul.bf16.gmra.mxu0 %v9620_v52  ;;  %8906 = vperm.xlu1 %11856, %v8903_v1  }
 0x574   :  { %6231 = vmatmul.bf16.gmra.mxu1 %v9624_v59  ;;  %v9660_v10 = vor.u32 %v11464_v42, %v9659_v49  ;;  %v9664_v2 = vor.u32 %v11460_v27, %v9661_v62 }
 0x575   :  { %v7641_v46 = vmul.f32 0.16666667, %v7513_v45  ;;  %v7130_v29 = vadd.f32 3.0, %v6848_v40  ;;  %6560 = vmatmul.bf16.gmra.mxu2 %v9628_v22 }
 0x576   :  { %11238 = vmatmul.msk.bf16.gmra.mxu3 %vm4280_vm0, %v9632_v16 }
 0x577   :  { %v8537_v24 = vmul.f32 %v7996_v6, %v7641_v46  ;;  %v7258_v14 = vmax.f32 %v7130_v29, 0.0 }
 0x578   :  { %v6521_v26 = vpop.f32.mrf.mxu2  ;;  %v5865_v58 = vpop.f32.mrf.mxu0  ;;  %8460 = vperm.xlu2 %11857, %v7862_v7   ;;  %v11471_v7 = vld [vmem:[%s16519_s1 + $0x5ec] sm:$0xf0] }
 0x579   :  { %v6850_v56 = vpop.f32.mrf.mxu3  ;;  %v8689_v8 = vsel %vm8641_vm1, %v8537_v24, 0.0  ;;  %v7386_v20 = vmin.f32 %v7258_v14, 6.0  ;;  %v6522_v33 = vadd.f32 %v6521_v26, %v6193_v54  ;;  %v6194_v13 = vpop.f32.mrf.mxu1  ;;  %v5866_v44 = vadd.f32 %v5865_v58, %v12792_v38  ;;  %v9653_v38 = vld [vmem:[%s16519_s1 + $0x5b0] sm:$0xf0] }
 0x57a   :  { %v8690_v4 = vadd.f32 %v8689_v8, %v8688_v32  ;;  %v9656_v30 = vor.u32 %v11459_v41, %v9653_v38  ;;  %v11468_v41 = vld [vmem:[%s16519_s1 + $0x5dc] sm:$0xf] }
 0x57b   :  { %v7514_v15 = vmul.f32 %v7386_v20, %v6848_v40  ;;  %v6851_v43 = vadd.f32 %v6850_v56, %v6522_v33  ;;  %v6195_v63 = vadd.f32 %v6194_v13, %v5866_v44  ;;  %v7868_v56 = vld [vmem:[%s16521_s3 + $0x3d8] sm:$0xff]  ;;  %v9683_v13 = vld [vmem:[%s16519_s1 + $0x5d0] sm:$0xf]  ;;  %v11467_v44 = vld [vmem:[%s16519_s1 + $0x5d4] sm:$0xf] }
 0x57c   :  { %v9693_v38 = vld [vmem:[%s16519_s1 + $0x5f8] sm:$0xf0] }
 0x57d   :  { %v7642_v57 = vmul.f32 0.16666667, %v7514_v15  ;;  %v7131_v39 = vadd.f32 3.0, %v6851_v43  ;;  %v9691_v15 = vld [vmem:[%s16519_s1 + $0x5d8] sm:$0xf] }
 0x57e   :  { %v9692_v62 = vor.u32 %v11472_v47, %v9691_v15 }
 0x57f   :  { %v8538_v23 = vmul.f32 %v8001_v35, %v7642_v57  ;;  %v7259_v48 = vmax.f32 %v7131_v39, 0.0  ;;  %v9684_v35 = vor.u32 %v11471_v7, %v9683_v13  ;;  %v11476_v13 = vld [vmem:[%s16519_s1 + $0x61c] sm:$0xf] }
 0x580   :  { %v6523_v12 = vpop.f32.mrf.mxu2  ;;  %v5868_v11 = vpop.f32.mrf.mxu0  ;;  %8475 = vperm.xlu2 %11857, %v7865_v37   ;;  %v9725_v7 = vld [vmem:[%s16519_s1 + $0x638] sm:$0xf0] }
 0x581   :  { %v6852_v25 = vpop.f32.mrf.mxu3  ;;  %v8691_v52 = vsel %vm8641_vm1, %v8538_v23, 0.0  ;;  %v7387_v59 = vmin.f32 %v7259_v48, 6.0  ;;  %v6524_v22 = vadd.f32 %v6523_v12, %v6195_v63  ;;  %v6197_v21 = vpop.f32.mrf.mxu1  ;;  %v5869_v16 = vadd.f32 %v5868_v11, %v12803_v60 }
 0x582   :  { %v8692_v0 = vadd.f32 %v8691_v52, %v8690_v4  ;;  %v8011_v63 = vpop.permute.xlu2 %8010 }
 0x583   :  { %v7515_v53 = vmul.f32 %v7387_v59, %v6851_v43  ;;  %v6853_v32 = vadd.f32 %v6852_v25, %v6524_v22  ;;  %v6198_v17 = vadd.f32 %v6197_v21, %v5869_v16  ;;  %5907 = vmatmul.bf16.gmra.mxu0 %v9652_v18 }
 0x584   :  { %6236 = vmatmul.bf16.gmra.mxu1 %v9656_v30  ;;  %v9696_v30 = vor.u32 %v11468_v41, %v9693_v38 }
 0x585   :  { %v7643_v45 = vmul.f32 0.16666667, %v7515_v53  ;;  %v7132_v40 = vadd.f32 3.0, %v6853_v32  ;;  %6565 = vmatmul.bf16.gmra.mxu2 %v9660_v10  ;;  %v7871_v10 = vld [vmem:[%s16521_s3 + $0x3f0] sm:$0xff] }
 0x586   :  { %11239 = vmatmul.msk.bf16.gmra.mxu3 %vm4280_vm0, %v9664_v2 }
 0x587   :  { %v8539_v54 = vmul.f32 %v8006_v19, %v7643_v45  ;;  %v7260_v46 = vmax.f32 %v7132_v40, 0.0 }
 0x588   :  { %v6526_v29 = vpop.f32.mrf.mxu2  ;;  %v5870_v1 = vpop.f32.mrf.mxu0  ;;  %8490 = vperm.xlu2 %11857, %v7868_v56   ;;  %v9717_v56 = vld [vmem:[%s16519_s1 + $0x630] sm:$0xf0] }
 0x589   :  { %v6855_v6 = vpop.f32.mrf.mxu3  ;;  %v8693_v24 = vsel %vm8641_vm1, %v8539_v54, 0.0  ;;  %v7388_v14 = vmin.f32 %v7260_v46, 6.0  ;;  %v6527_v60 = vadd.f32 %v6526_v29, %v6198_v17  ;;  %v6199_v26 = vpop.f32.mrf.mxu1  ;;  %v5871_v20 = vadd.f32 %v5870_v1, %v12835_v36  ;;  %v9685_v36 = vld [vmem:[%s16519_s1 + $0x5f0] sm:$0xf0] }
 0x58a   :  { %v8694_v8 = vadd.f32 %v8693_v24, %v8692_v0  ;;  %v9688_v27 = vor.u32 %v11467_v44, %v9685_v36  ;;  %v8016_v0 = vpop.permute.xlu0 %8015 }
 0x58b   :  { %v7516_v33 = vmul.f32 %v7388_v14, %v6853_v32  ;;  %v6856_v58 = vadd.f32 %v6855_v6, %v6527_v60  ;;  %v6200_v4 = vadd.f32 %v6199_v26, %v5871_v20  ;;  %v9715_v14 = vld [vmem:[%s16519_s1 + $0x610] sm:$0xf]  ;;  %v11475_v26 = vld [vmem:[%s16519_s1 + $0x614] sm:$0xf] }
 0x58c   :  { %v11479_v60 = vld [vmem:[%s16519_s1 + $0x62c] sm:$0xf0] }
 0x58d   :  { %v7644_v43 = vmul.f32 0.16666667, %v7516_v33  ;;  %v7133_v5 = vadd.f32 3.0, %v6856_v58  ;;  %v11480_v33 = vld [vmem:[%s16519_s1 + $0x634] sm:$0xf0] }
 0x58f   :  { %v8540_v49 = vmul.f32 %v8011_v63, %v7644_v43  ;;  %v7261_v57 = vmax.f32 %v7133_v5, 0.0  ;;  %v9716_v43 = vor.u32 %v11479_v60, %v9715_v14  ;;  %v9720_v5 = vor.u32 %v11475_v26, %v9717_v56 }
 0x590   :  { %v6528_v39 = vpop.f32.mrf.mxu2  ;;  %v5873_v25 = vpop.f32.mrf.mxu0  ;;  %8505 = vperm.xlu2 %11857, %v7871_v10  }
 0x591   :  { %v6857_v42 = vpop.f32.mrf.mxu3  ;;  %v8695_v23 = vsel %vm8641_vm1, %v8540_v49, 0.0  ;;  %v7389_v48 = vmin.f32 %v7261_v57, 6.0  ;;  %v6529_v12 = vadd.f32 %v6528_v39, %v6200_v4  ;;  %v6202_v18 = vpop.f32.mrf.mxu1  ;;  %v5874_v59 = vadd.f32 %v5873_v25, %v12840_v55 }
 0x592   :  { %v8696_v52 = vadd.f32 %v8695_v23, %v8694_v8  ;;  %v9728_v39 = vor.u32 %v11476_v13, %v9725_v7  ;;  %v8026_v25 = vpop.permute.xlu2 %8025 }
 0x593   :  { %v7517_v22 = vmul.f32 %v7389_v48, %v6856_v58  ;;  %v6858_v11 = vadd.f32 %v6857_v42, %v6529_v12  ;;  %v6203_v21 = vadd.f32 %v6202_v18, %v5874_v59  ;;  %5912 = vmatmul.bf16.gmra.mxu0 %v9684_v35  ;;  %v8021_v58 = vpop.permute.xlu1 %8020 }
 0x594   :  { %6241 = vmatmul.bf16.gmra.mxu1 %v9688_v27 }
 0x595   :  { %v7645_v2 = vmul.f32 0.16666667, %v7517_v22  ;;  %v7134_v37 = vadd.f32 3.0, %v6858_v11  ;;  %6570 = vmatmul.bf16.gmra.mxu2 %v9692_v62 }
 0x596   :  { %11240 = vmatmul.msk.bf16.gmra.mxu3 %vm4280_vm0, %v9696_v30 }
 0x597   :  { %v8541_v16 = vmul.f32 %v8016_v0, %v7645_v2  ;;  %v7262_v53 = vmax.f32 %v7134_v37, 0.0 }
 0x598   :  { %v6531_v32 = vpop.f32.mrf.mxu2  ;;  %v5875_v19 = vpop.f32.mrf.mxu0 }
 0x599   :  { %v6860_v17 = vpop.f32.mrf.mxu3  ;;  %v8697_v45 = vsel %vm8641_vm1, %v8541_v16, 0.0  ;;  %v7390_v40 = vmin.f32 %v7262_v53, 6.0  ;;  %v6532_v55 = vadd.f32 %v6531_v32, %v6203_v21  ;;  %v6204_v54 = vpop.f32.mrf.mxu1  ;;  %v5876_v29 = vadd.f32 %v5875_v19, %v12869_v31  ;;  %v9723_v31 = vld [vmem:[%s16519_s1 + $0x618] sm:$0xf]  ;;  %v9747_v53 = vld [vmem:[%s16519_s1 + $0x650] sm:$0xf] }
 0x59a   :  { %v8698_v46 = vadd.f32 %v8697_v45, %v8696_v52  ;;  %v9724_v47 = vor.u32 %v11480_v33, %v9723_v31  ;;  %v11487_v32 = vld [vmem:[%s16519_s1 + $0x66c] sm:$0xf0]  ;;  %v11483_v45 = vld [vmem:[%s16519_s1 + $0x654] sm:$0xf] }
 0x59b   :  { %v7518_v6 = vmul.f32 %v7390_v40, %v6858_v11  ;;  %v6861_v24 = vadd.f32 %v6860_v17, %v6532_v55  ;;  %v6205_v1 = vadd.f32 %v6204_v54, %v5876_v29  ;;  %v9749_v40 = vld [vmem:[%s16519_s1 + $0x670] sm:$0xf0]  ;;  %v11488_v54 = vld [vmem:[%s16519_s1 + $0x674] sm:$0xf0]  ;;  %v11484_v29 = vld [vmem:[%s16519_s1 + $0x65c] sm:$0xf]  ;;  %v9748_v26 = vor.u32 %v11487_v32, %v9747_v53 }
 0x59c   :  { %v9752_v56 = vor.u32 %v11483_v45, %v9749_v40 }
 0x59d   :  { %v7646_v8 = vmul.f32 0.16666667, %v7518_v6  ;;  %v7135_v20 = vadd.f32 3.0, %v6861_v24  ;;  %v9757_v6 = vld [vmem:[%s16519_s1 + $0x678] sm:$0xf0] }
 0x59e   :  { %v9760_v7 = vor.u32 %v11484_v29, %v9757_v6 }
 0x59f   :  { %v8542_v4 = vmul.f32 %v8021_v58, %v7646_v8  ;;  %v7263_v44 = vmax.f32 %v7135_v20, 0.0 }
 0x5a0   :  { %v6533_v36 = vpop.f32.mrf.mxu2  ;;  %v5878_v49 = vpop.f32.mrf.mxu0 }
 0x5a1   :  { %v6862_v15 = vpop.f32.mrf.mxu3  ;;  %v8699_v63 = vsel %vm8641_vm1, %v8542_v4, 0.0  ;;  %v7391_v41 = vmin.f32 %v7263_v44, 6.0  ;;  %v6534_v38 = vadd.f32 %v6533_v36, %v6205_v1  ;;  %v6207_v57 = vpop.f32.mrf.mxu1  ;;  %v5879_v35 = vadd.f32 %v5878_v49, %v12874_v50 }
 0x5a2   :  { %v8700_v42 = vadd.f32 %v8699_v63, %v8698_v46  ;;  %v8031_v46 = vpop.permute.xlu0 %8030  ;;  %v8036_v63 = vpop.permute.xlu1 %8035 }
 0x5a3   :  { %v7519_v27 = vmul.f32 %v7391_v41, %v6861_v24  ;;  %v6863_v62 = vadd.f32 %v6862_v15, %v6534_v38  ;;  %v6208_v23 = vadd.f32 %v6207_v57, %v5879_v35  ;;  %5917 = vmatmul.bf16.gmra.mxu0 %v9716_v43 }
 0x5a4   :  { %6246 = vmatmul.bf16.gmra.mxu1 %v9720_v5 }
 0x5a5   :  { %v7647_v48 = vmul.f32 0.16666667, %v7519_v27  ;;  %v7136_v12 = vadd.f32 3.0, %v6863_v62  ;;  %6575 = vmatmul.bf16.gmra.mxu2 %v9724_v47 }
 0x5a6   :  { %11241 = vmatmul.msk.bf16.gmra.mxu3 %vm4280_vm0, %v9728_v39 }
 0x5a7   :  { %v8543_v18 = vmul.f32 %v8026_v25, %v7647_v48  ;;  %v7264_v30 = vmax.f32 %v7136_v12, 0.0  ;;  %v9779_v25 = vld [vmem:[%s16519_s1 + $0x690] sm:$0xf] }
 0x5a8   :  { %v6536_v10 = vpop.f32.mrf.mxu2  ;;  %v5880_v50 = vpop.f32.mrf.mxu0 }
 0x5a9   :  { %v6865_v52 = vpop.f32.mrf.mxu3  ;;  %v8701_v59 = vsel %vm8641_vm1, %v8543_v18, 0.0  ;;  %v7392_v22 = vmin.f32 %v7264_v30, 6.0  ;;  %v6537_v11 = vadd.f32 %v6536_v10, %v6208_v23  ;;  %v6209_v21 = vpop.f32.mrf.mxu1  ;;  %v5881_v37 = vadd.f32 %v5880_v50, %v12903_v28  ;;  %v9755_v28 = vld [vmem:[%s16519_s1 + $0x658] sm:$0xf]  ;;  %v11495_v18 = vld [vmem:[%s16519_s1 + $0x6ac] sm:$0xf0] }
 0x5aa   :  { %v8702_v2 = vadd.f32 %v8701_v59, %v8700_v42  ;;  %v9756_v31 = vor.u32 %v11488_v54, %v9755_v28  ;;  %v11491_v10 = vld [vmem:[%s16519_s1 + $0x694] sm:$0xf]  ;;  %v8041_v50 = vpop.permute.xlu2 %8040  ;;  %v9780_v32 = vor.u32 %v11495_v18, %v9779_v25 }
 0x5ab   :  { %v7520_v0 = vmul.f32 %v7392_v22, %v6863_v62  ;;  %v6866_v16 = vadd.f32 %v6865_v52, %v6537_v11  ;;  %v6210_v17 = vadd.f32 %v6209_v21, %v5881_v37  ;;  %v9781_v52 = vld [vmem:[%s16519_s1 + $0x6b0] sm:$0xf0]  ;;  %v11496_v11 = vld [vmem:[%s16519_s1 + $0x6b4] sm:$0xf0]  ;;  %v11492_v21 = vld [vmem:[%s16519_s1 + $0x69c] sm:$0xf] }
 0x5ad   :  { %v7648_v55 = vmul.f32 0.16666667, %v7520_v0  ;;  %v7137_v19 = vadd.f32 3.0, %v6866_v16 }
 0x5af   :  { %v8544_v24 = vmul.f32 %v8031_v46, %v7648_v55  ;;  %v7265_v14 = vmax.f32 %v7137_v19, 0.0 }
 0x5b0   :  { %v6538_v60 = vpop.f32.mrf.mxu2  ;;  %v5883_v58 = vpop.f32.mrf.mxu0 }
 0x5b1   :  { %v6867_v1 = vpop.f32.mrf.mxu3  ;;  %v8703_v8 = vsel %vm8641_vm1, %v8544_v24, 0.0  ;;  %v7393_v20 = vmin.f32 %v7265_v14, 6.0  ;;  %v6539_v33 = vadd.f32 %v6538_v60, %v6210_v17  ;;  %v6212_v13 = vpop.f32.mrf.mxu1  ;;  %v5884_v44 = vadd.f32 %v5883_v58, %v12908_v51 }
 0x5b2   :  { %v8704_v4 = vadd.f32 %v8703_v8, %v8702_v2  ;;  %v9789_v2 = vld [vmem:[%s16519_s1 + $0x6b8] sm:$0xf0]  ;;  %v9784_v17 = vor.u32 %v11491_v10, %v9781_v52 }
 0x5b3   :  { %v7521_v36 = vmul.f32 %v7393_v20, %v6866_v16  ;;  %v6868_v15 = vadd.f32 %v6867_v1, %v6539_v33  ;;  %v6213_v43 = vadd.f32 %v6212_v13, %v5884_v44  ;;  %5922 = vmatmul.bf16.gmra.mxu0 %v9748_v26  ;;  %v9792_v46 = vor.u32 %v11492_v21, %v9789_v2  ;;  %v16614_v2 = vld [vmem:[#allocation7_spill] sm:$0xff] }
 0x5b4   :  { %6251 = vmatmul.bf16.gmra.mxu1 %v9752_v56  ;;  %v8046_v56 = vpop.permute.xlu0 %8045 }
 0x5b5   :  { %v7649_v5 = vmul.f32 0.16666667, %v7521_v36  ;;  %v7138_v47 = vadd.f32 3.0, %v6868_v15  ;;  %6580 = vmatmul.bf16.gmra.mxu2 %v9756_v31  ;;  %v16613_v36 = vld [vmem:[#allocation6_spill] sm:$0xff] }
 0x5b6   :  { %11242 = vmatmul.msk.bf16.gmra.mxu3 %vm4280_vm0, %v9760_v7 }
 0x5b7   :  { %v8545_v41 = vmul.f32 %v8036_v63, %v7649_v5  ;;  %v7266_v38 = vmax.f32 %v7138_v47, 0.0  ;;  %v9811_v47 = vld [vmem:[%s16519_s1 + $0x6d0] sm:$0xf] }
 0x5b8   :  { %v6541_v49 = vpop.f32.mrf.mxu2  ;;  %v5885_v51 = vpop.f32.mrf.mxu0  ;;  %v11503_v63 = vld [vmem:[%s16519_s1 + $0x6ec] sm:$0xf0] }
 0x5b9   :  { %v6870_v57 = vpop.f32.mrf.mxu3  ;;  %v8705_v39 = vsel %vm8641_vm1, %v8545_v41, 0.0  ;;  %v7394_v42 = vmin.f32 %v7266_v38, 6.0  ;;  %v6542_v35 = vadd.f32 %v6541_v49, %v6213_v43  ;;  %v6214_v27 = vpop.f32.mrf.mxu1  ;;  %v5886_v23 = vadd.f32 %v5885_v51, %v12937_v34  ;;  %v9787_v34 = vld [vmem:[%s16519_s1 + $0x698] sm:$0xf]  ;;  %v11499_v38 = vld [vmem:[%s16519_s1 + $0x6d4] sm:$0xf] }
 0x5ba   :  { %v8706_v62 = vadd.f32 %v8705_v39, %v8704_v4  ;;  %v9788_v45 = vor.u32 %v11496_v11, %v9787_v34  ;;  %v9813_v49 = vld [vmem:[%s16519_s1 + $0x6f0] sm:$0xf0]  ;;  %v8051_v51 = vpop.permute.xlu1 %8050  ;;  %v9812_v18 = vor.u32 %v11503_v63, %v9811_v47 }
 0x5bb   :  { %v7522_v48 = vmul.f32 %v7394_v42, %v6868_v15  ;;  %v6871_v12 = vadd.f32 %v6870_v57, %v6542_v35  ;;  %v6215_v30 = vadd.f32 %v6214_v27, %v5886_v23  ;;  %v9819_v57 = vld [vmem:[%s16519_s1 + $0x6d8] sm:$0xf]  ;;  %v11500_v27 = vld [vmem:[%s16519_s1 + $0x6dc] sm:$0xf] }
 0x5bc   :  { %v11504_v35 = vld [vmem:[%s16519_s1 + $0x6f4] sm:$0xf0] }
 0x5bd   :  { %v7650_v59 = vmul.f32 0.16666667, %v7522_v48  ;;  %v7139_v22 = vadd.f32 3.0, %v6871_v12  ;;  %v9820_v10 = vor.u32 %v11504_v35, %v9819_v57 }
 0x5bf   :  { %v8546_v37 = vmul.f32 %v8041_v50, %v7650_v59  ;;  %v7267_v0 = vmax.f32 %v7139_v22, 0.0 }
 0x5c0   :  { %v6543_v16 = vpop.f32.mrf.mxu2  ;;  %v5888_v19 = vpop.f32.mrf.mxu0 }
 0x5c1   :  { %v6872_v53 = vpop.f32.mrf.mxu3  ;;  %v8707_v40 = vsel %vm8641_vm1, %v8546_v37, 0.0  ;;  %v7395_v28 = vmin.f32 %v7267_v0, 6.0  ;;  %v6544_v55 = vadd.f32 %v6543_v16, %v6215_v30  ;;  %v6217_v54 = vpop.f32.mrf.mxu1  ;;  %v5889_v6 = vadd.f32 %v5888_v19, %v12942_v61 }
 0x5c2   :  { %v8708_v29 = vadd.f32 %v8707_v40, %v8706_v62  ;;  %v9821_v62 = vld [vmem:[%s16519_s1 + $0x6f8] sm:$0xf0]  ;;  %v9816_v30 = vor.u32 %v11499_v38, %v9813_v49 }
 0x5c3   :  { %v7523_v24 = vmul.f32 %v7395_v28, %v6871_v12  ;;  %v6873_v14 = vadd.f32 %v6872_v53, %v6544_v55  ;;  %v6218_v60 = vadd.f32 %v6217_v54, %v5889_v6  ;;  %5927 = vmatmul.bf16.gmra.mxu0 %v9780_v32  ;;  %v9824_v50 = vor.u32 %v11500_v27, %v9821_v62 }
 0x5c4   :  { %6256 = vmatmul.bf16.gmra.mxu1 %v9784_v17 }
 0x5c5   :  { %v7651_v1 = vmul.f32 0.16666667, %v7523_v24  ;;  %v7140_v26 = vadd.f32 3.0, %v6873_v14  ;;  %6585 = vmatmul.bf16.gmra.mxu2 %v9788_v45  ;;  %v8056_v45 = vpop.permute.xlu2 %8055 }
 0x5c6   :  { %11243 = vmatmul.msk.bf16.gmra.mxu3 %vm4280_vm0, %v9792_v46 }
 0x5c7   :  { %v8547_v31 = vmul.f32 %v8046_v56, %v7651_v1  ;;  %v7268_v8 = vmax.f32 %v7140_v26, 0.0 }
 0x5c8   :  { %v6546_v20 = vpop.f32.mrf.mxu2  ;;  %v5890_v61 = vpop.f32.mrf.mxu0 }
 0x5c9   :  { %v6875_v33 = vpop.f32.mrf.mxu3  ;;  %v8709_v58 = vsel %vm8641_vm1, %v8547_v31, 0.0  ;;  %v7396_v13 = vmin.f32 %v7268_v8, 6.0  ;;  %v6547_v7 = vadd.f32 %v6546_v20, %v6218_v60  ;;  %v6219_v4 = vpop.f32.mrf.mxu1  ;;  %v5891_v15 = vadd.f32 %v5890_v61, %v16613_v36  ;;  %v16615_v60 = vld [vmem:[#allocation8_spill] sm:$0xff]  ;;  %v11508_v36 = vld [vmem:[%s16519_s1 + $0x71c] sm:$0xf] }
 0x5ca   :  { %v8710_v44 = vadd.f32 %v8709_v58, %v8708_v29  ;;  %v9843_v31 = vld [vmem:[%s16519_s1 + $0x710] sm:$0xf]  ;;  %v9845_v58 = vld [vmem:[%s16519_s1 + $0x730] sm:$0xf0] }
 0x5cb   :  { %v7524_v43 = vmul.f32 %v7396_v13, %v6873_v14  ;;  %v6876_v5 = vadd.f32 %v6875_v33, %v6547_v7  ;;  %v6220_v41 = vadd.f32 %v6219_v4, %v5891_v15  ;;  %v11511_v8 = vld [vmem:[%s16519_s1 + $0x72c] sm:$0xf0]  ;;  %v11507_v33 = vld [vmem:[%s16519_s1 + $0x714] sm:$0xf]  ;;  %v9851_v13 = vld [vmem:[%s16519_s1 + $0x718] sm:$0xf] }
 0x5cc   :  { %v11512_v4 = vld [vmem:[%s16519_s1 + $0x734] sm:$0xf0]  ;;  %v9853_v15 = vld [vmem:[%s16519_s1 + $0x738] sm:$0xf0]  ;;  %v9848_v38 = vor.u32 %v11507_v33, %v9845_v58 }
 0x5cd   :  { %v7652_v39 = vmul.f32 0.16666667, %v7524_v43  ;;  %v7141_v42 = vadd.f32 3.0, %v6876_v5  ;;  %v9852_v49 = vor.u32 %v11512_v4, %v9851_v13  ;;  %v9856_v27 = vor.u32 %v11508_v36, %v9853_v15 }
 0x5cf   :  { %v8548_v23 = vmul.f32 %v8051_v51, %v7652_v39  ;;  %v7269_v48 = vmax.f32 %v7141_v42, 0.0 }
 0x5d0   :  { %v6548_v12 = vpop.f32.mrf.mxu2  ;;  %v5893_v22 = vpop.f32.mrf.mxu0 }
 0x5d1   :  { %v6877_v25 = vpop.f32.mrf.mxu3  ;;  %v8711_v52 = vsel %vm8641_vm1, %v8548_v23, 0.0  ;;  %v7397_v34 = vmin.f32 %v7269_v48, 6.0  ;;  %v6549_v59 = vadd.f32 %v6548_v12, %v6220_v41  ;;  %v6222_v11 = vpop.f32.mrf.mxu1  ;;  %v5894_v37 = vadd.f32 %v5893_v22, %v16614_v2  ;;  %v16616_v23 = vld [vmem:[#allocation9_spill] sm:$0xff] }
 0x5d2   :  { %v8712_v21 = vadd.f32 %v8711_v52, %v8710_v44  ;;  %v8061_v44 = vpop.permute.xlu0 %8060  ;;  %v9844_v41 = vor.u32 %v11511_v8, %v9843_v31  ;;  %v8066_v52 = vpop.permute.xlu1 %8065 }
 0x5d3   :  { %v7525_v0 = vmul.f32 %v7397_v34, %v6876_v5  ;;  %v6878_v16 = vadd.f32 %v6877_v25, %v6549_v59  ;;  %v6223_v53 = vadd.f32 %v6222_v11, %v5894_v37  ;;  %5932 = vmatmul.bf16.gmra.mxu0 %v9812_v18 }
 0x5d4   :  { %6261 = vmatmul.bf16.gmra.mxu1 %v9816_v30 }
 0x5d5   :  { %v7653_v32 = vmul.f32 0.16666667, %v7525_v0  ;;  %v7142_v17 = vadd.f32 3.0, %v6878_v16  ;;  %6590 = vmatmul.bf16.gmra.mxu2 %v9820_v10 }
 0x5d6   :  { %11244 = vmatmul.msk.bf16.gmra.mxu3 %vm4280_vm0, %v9824_v50 }
 0x5d7   :  { %v8549_v40 = vmul.f32 %v8056_v45, %v7653_v32  ;;  %v7270_v28 = vmax.f32 %v7142_v17, 0.0 }
 0x5d8   :  { %v6551_v55 = vpop.f32.mrf.mxu2  ;;  %v5895_v6 = vpop.f32.mrf.mxu0 }
 0x5d9   :  { %v6880_v19 = vpop.f32.mrf.mxu3  ;;  %v8713_v54 = vsel %vm8641_vm1, %v8549_v40, 0.0  ;;  %v7398_v46 = vmin.f32 %v7270_v28, 6.0  ;;  %v6552_v29 = vadd.f32 %v6551_v55, %v6223_v53  ;;  %v6224_v24 = vpop.f32.mrf.mxu1  ;;  %v5896_v1 = vadd.f32 %v5895_v6, %v16615_v60  ;;  %v16617_v53 = vld [vmem:[#allocation10_spill] sm:$0xff]  ;;  %v9875_v40 = vld [vmem:[%s16519_s1 + $0x750] sm:$0xf] }
 0x5da   :  { %v8714_v14 = vadd.f32 %v8713_v54, %v8712_v21  ;;  %v11519_v28 = vld [vmem:[%s16519_s1 + $0x76c] sm:$0xf0]  ;;  %v9877_v54 = vld [vmem:[%s16519_s1 + $0x770] sm:$0xf0]  ;;  %v11516_v60 = vld [vmem:[%s16519_s1 + $0x75c] sm:$0xf] }
 0x5db   :  { %v7526_v26 = vmul.f32 %v7398_v46, %v6878_v16  ;;  %v6881_v56 = vadd.f32 %v6880_v19, %v6552_v29  ;;  %v6225_v20 = vadd.f32 %v6224_v24, %v5896_v1  ;;  %v11515_v19 = vld [vmem:[%s16519_s1 + $0x754] sm:$0xf]  ;;  %v9883_v46 = vld [vmem:[%s16519_s1 + $0x758] sm:$0xf]  ;;  %v9885_v1 = vld [vmem:[%s16519_s1 + $0x778] sm:$0xf0] }
 0x5dc   :  { %v11520_v24 = vld [vmem:[%s16519_s1 + $0x774] sm:$0xf0]  ;;  %v9880_v33 = vor.u32 %v11515_v19, %v9877_v54  ;;  %v9888_v36 = vor.u32 %v11516_v60, %v9885_v1 }
 0x5dd   :  { %v7654_v7 = vmul.f32 0.16666667, %v7526_v26  ;;  %v7143_v61 = vadd.f32 3.0, %v6881_v56  ;;  %v9884_v58 = vor.u32 %v11520_v24, %v9883_v46 }
 0x5df   :  { %v8550_v43 = vmul.f32 %v8061_v44, %v7654_v7  ;;  %v7271_v5 = vmax.f32 %v7143_v61, 0.0 }
 0x5e0   :  { %v6553_v47 = vpop.f32.mrf.mxu2  ;;  %v5898_v35 = vpop.f32.mrf.mxu0 }
 0x5e1   :  { %v6882_v63 = vpop.f32.mrf.mxu3  ;;  %v8715_v57 = vsel %vm8641_vm1, %v8550_v43, 0.0  ;;  %v7399_v39 = vmin.f32 %v7271_v5, 6.0  ;;  %v6554_v42 = vadd.f32 %v6553_v47, %v6225_v20  ;;  %v6227_v51 = vpop.f32.mrf.mxu1  ;;  %v5899_v48 = vadd.f32 %v5898_v35, %v16616_v23  ;;  %v16618_v43 = vld [vmem:[#allocation11_spill] sm:$0xff] }
 0x5e2   :  { %v8716_v62 = vadd.f32 %v8715_v57, %v8714_v14  ;;  %v8071_v14 = vpop.permute.xlu2 %8070  ;;  %v9876_v20 = vor.u32 %v11519_v28, %v9875_v40  ;;  %v8076_v57 = vpop.permute.xlu0 %8075 }
 0x5e3   :  { %v7527_v12 = vmul.f32 %v7399_v39, %v6881_v56  ;;  %v6883_v25 = vadd.f32 %v6882_v63, %v6554_v42  ;;  %v6228_v18 = vadd.f32 %v6227_v51, %v5899_v48  ;;  %5937 = vmatmul.bf16.gmra.mxu0 %v9844_v41 }
 0x5e4   :  { %6266 = vmatmul.bf16.gmra.mxu1 %v9848_v38 }
 0x5e5   :  { %v7655_v30 = vmul.f32 0.16666667, %v7527_v12  ;;  %v7144_v10 = vadd.f32 3.0, %v6883_v25  ;;  %6595 = vmatmul.bf16.gmra.mxu2 %v9852_v49 }
 0x5e6   :  { %11245 = vmatmul.msk.bf16.gmra.mxu3 %vm4280_vm0, %v9856_v27 }
 0x5e7   :  { %v8551_v34 = vmul.f32 %v8066_v52, %v7655_v30  ;;  %v7272_v59 = vmax.f32 %v7144_v10, 0.0 }
 0x5e8   :  { %v6556_v22 = vpop.f32.mrf.mxu2  ;;  %v5900_v37 = vpop.f32.mrf.mxu0 }
 0x5e9   :  { %v6885_v11 = vpop.f32.mrf.mxu3  ;;  %v8717_v50 = vsel %vm8641_vm1, %v8551_v34, 0.0  ;;  %v7400_v21 = vmin.f32 %v7272_v59, 6.0  ;;  %v6557_v2 = vadd.f32 %v6556_v22, %v6228_v18  ;;  %v6229_v0 = vpop.f32.mrf.mxu1  ;;  %v5901_v32 = vadd.f32 %v5900_v37, %v16617_v53  ;;  %v16619_v18 = vld [vmem:[#allocation12_spill] sm:$0xff]  ;;  %v11524_v53 = vld [vmem:[%s16519_s1 + $0x79c] sm:$0xf] }
 0x5ea   :  { %v8718_v16 = vadd.f32 %v8717_v50, %v8716_v62  ;;  %v9907_v34 = vld [vmem:[%s16519_s1 + $0x790] sm:$0xf]  ;;  %v9909_v50 = vld [vmem:[%s16519_s1 + $0x7b0] sm:$0xf0] }
 0x5eb   :  { %v7528_v17 = vmul.f32 %v7400_v21, %v6883_v25  ;;  %v6886_v45 = vadd.f32 %v6885_v11, %v6557_v2  ;;  %v6230_v55 = vadd.f32 %v6229_v0, %v5901_v32  ;;  %v11527_v59 = vld [vmem:[%s16519_s1 + $0x7ac] sm:$0xf0]  ;;  %v11523_v11 = vld [vmem:[%s16519_s1 + $0x794] sm:$0xf]  ;;  %v9915_v21 = vld [vmem:[%s16519_s1 + $0x798] sm:$0xf] }
 0x5ec   :  { %v11528_v0 = vld [vmem:[%s16519_s1 + $0x7b4] sm:$0xf0]  ;;  %v9917_v32 = vld [vmem:[%s16519_s1 + $0x7b8] sm:$0xf0]  ;;  %v9912_v19 = vor.u32 %v11523_v11, %v9909_v50 }
 0x5ed   :  { %v7656_v29 = vmul.f32 0.16666667, %v7528_v17  ;;  %v7145_v6 = vadd.f32 3.0, %v6886_v45  ;;  %v9916_v54 = vor.u32 %v11528_v0, %v9915_v21  ;;  %v9920_v60 = vor.u32 %v11524_v53, %v9917_v32 }
 0x5ef   :  { %v8552_v26 = vmul.f32 %v8071_v14, %v7656_v29  ;;  %v7273_v56 = vmax.f32 %v7145_v6, 0.0 }
 0x5f0   :  { %v6558_v31 = vpop.f32.mrf.mxu2  ;;  %v5903_v4 = vpop.f32.mrf.mxu0 }
 0x5f1   :  { %v6887_v8 = vpop.f32.mrf.mxu3  ;;  %v8719_v13 = vsel %vm8641_vm1, %v8552_v26, 0.0  ;;  %v7401_v7 = vmin.f32 %v7273_v56, 6.0  ;;  %v6559_v61 = vadd.f32 %v6558_v31, %v6230_v55  ;;  %v6232_v44 = vpop.f32.mrf.mxu1  ;;  %v5904_v5 = vadd.f32 %v5903_v4, %v16618_v43  ;;  %v16620_v26 = vld [vmem:[#allocation13_spill] sm:$0xff] }
 0x5f2   :  { %v8720_v15 = vadd.f32 %v8719_v13, %v8718_v16  ;;  %v8081_v16 = vpop.permute.xlu1 %8080  ;;  %v9908_v55 = vor.u32 %v11527_v59, %v9907_v34  ;;  %v8086_v13 = vpop.permute.xlu2 %8085 }
 0x5f3   :  { %v7529_v47 = vmul.f32 %v7401_v7, %v6886_v45  ;;  %v6888_v63 = vadd.f32 %v6887_v8, %v6559_v61  ;;  %v6233_v41 = vadd.f32 %v6232_v44, %v5904_v5  ;;  %5942 = vmatmul.bf16.gmra.mxu0 %v9876_v20 }
 0x5f4   :  { %6271 = vmatmul.bf16.gmra.mxu1 %v9880_v33 }
 0x5f5   :  { %v7657_v38 = vmul.f32 0.16666667, %v7529_v47  ;;  %v7146_v49 = vadd.f32 3.0, %v6888_v63  ;;  %6600 = vmatmul.bf16.gmra.mxu2 %v9884_v58 }
 0x5f6   :  { %11246 = vmatmul.msk.bf16.gmra.mxu3 %vm4280_vm0, %v9888_v36 }
 0x5f7   :  { %v8553_v39 = vmul.f32 %v8076_v57, %v7657_v38  ;;  %v7274_v42 = vmax.f32 %v7146_v49, 0.0 }
 0x5f8   :  { %v6561_v35 = vpop.f32.mrf.mxu2  ;;  %v5905_v48 = vpop.f32.mrf.mxu0 }
 0x5f9   :  { %v6890_v51 = vpop.f32.mrf.mxu3  ;;  %v8721_v27 = vsel %vm8641_vm1, %v8553_v39, 0.0  ;;  %v7402_v62 = vmin.f32 %v7274_v42, 6.0  ;;  %v6562_v23 = vadd.f32 %v6561_v35, %v6233_v41  ;;  %v6234_v12 = vpop.f32.mrf.mxu1  ;;  %v5906_v30 = vadd.f32 %v5905_v48, %v16619_v18  ;;  %v16621_v41 = vld [vmem:[#allocation14_spill] sm:$0xff]  ;;  %v9939_v39 = vld [vmem:[%s16519_s1 + $0x7d0] sm:$0xf] }
 0x5fa   :  { %v8722_v25 = vadd.f32 %v8721_v27, %v8720_v15  ;;  %v11535_v42 = vld [vmem:[%s16519_s1 + $0x7ec] sm:$0xf0]  ;;  %v9941_v27 = vld [vmem:[%s16519_s1 + $0x7f0] sm:$0xf0]  ;;  %v11532_v18 = vld [vmem:[%s16519_s1 + $0x7dc] sm:$0xf] }
 0x5fb   :  { %v7530_v10 = vmul.f32 %v7402_v62, %v6888_v63  ;;  %v6891_v52 = vadd.f32 %v6890_v51, %v6562_v23  ;;  %v6235_v22 = vadd.f32 %v6234_v12, %v5906_v30  ;;  %v11531_v51 = vld [vmem:[%s16519_s1 + $0x7d4] sm:$0xf]  ;;  %v9947_v62 = vld [vmem:[%s16519_s1 + $0x7d8] sm:$0xf]  ;;  %v9949_v30 = vld [vmem:[%s16519_s1 + $0x7f8] sm:$0xf0] }
 0x5fc   :  { %v11536_v12 = vld [vmem:[%s16519_s1 + $0x7f4] sm:$0xf0]  ;;  %v9944_v11 = vor.u32 %v11531_v51, %v9941_v27  ;;  %v9952_v53 = vor.u32 %v11532_v18, %v9949_v30 }
 0x5fd   :  { %v7658_v2 = vmul.f32 0.16666667, %v7530_v10  ;;  %v7147_v37 = vadd.f32 3.0, %v6891_v52  ;;  %v9948_v50 = vor.u32 %v11536_v12, %v9947_v62 }
 0x5ff   :  { %v8554_v17 = vmul.f32 %v8081_v16, %v7658_v2  ;;  %v7275_v45 = vmax.f32 %v7147_v37, 0.0 }
 0x600   :  { %v6563_v40 = vpop.f32.mrf.mxu2  ;;  %v5908_v24 = vpop.f32.mrf.mxu0 }
 0x601   :  { %v6892_v28 = vpop.f32.mrf.mxu3  ;;  %v8723_v46 = vsel %vm8641_vm1, %v8554_v17, 0.0  ;;  %v7403_v29 = vmin.f32 %v7275_v45, 6.0  ;;  %v6564_v6 = vadd.f32 %v6563_v40, %v6235_v22  ;;  %v6237_v14 = vpop.f32.mrf.mxu1  ;;  %v5909_v56 = vadd.f32 %v5908_v24, %v16620_v26  ;;  %v16622_v17 = vld [vmem:[#allocation15_spill] sm:$0xff] }
 0x602   :  { %v8724_v1 = vadd.f32 %v8723_v46, %v8722_v25  ;;  %v8091_v25 = vpop.permute.xlu0 %8090  ;;  %v9940_v22 = vor.u32 %v11535_v42, %v9939_v39  ;;  %v8096_v46 = vpop.permute.xlu1 %8095 }
 0x603   :  { %v7531_v31 = vmul.f32 %v7403_v29, %v6891_v52  ;;  %v6893_v8 = vadd.f32 %v6892_v28, %v6564_v6  ;;  %v6238_v20 = vadd.f32 %v6237_v14, %v5909_v56  ;;  %5947 = vmatmul.bf16.gmra.mxu0 %v9908_v55 }
 0x604   :  { %6276 = vmatmul.bf16.gmra.mxu1 %v9912_v19 }
 0x605   :  { %v7659_v33 = vmul.f32 0.16666667, %v7531_v31  ;;  %v7148_v58 = vadd.f32 3.0, %v6893_v8  ;;  %6605 = vmatmul.bf16.gmra.mxu2 %v9916_v54 }
 0x606   :  { %11247 = vmatmul.msk.bf16.gmra.mxu3 %vm4280_vm0, %v9920_v60 }
 0x607   :  { %v8555_v7 = vmul.f32 %v8086_v13, %v7659_v33  ;;  %v7276_v61 = vmax.f32 %v7148_v58, 0.0 }
 0x608   :  { %v6566_v4 = vpop.f32.mrf.mxu2  ;;  %v5910_v5 = vpop.f32.mrf.mxu0 }
 0x609   :  { %v6895_v44 = vpop.f32.mrf.mxu3  ;;  %v8725_v36 = vsel %vm8641_vm1, %v8555_v7, 0.0  ;;  %v7404_v15 = vmin.f32 %v7276_v61, 6.0  ;;  %v6567_v43 = vadd.f32 %v6566_v4, %v6238_v20  ;;  %v6239_v47 = vpop.f32.mrf.mxu1  ;;  %v5911_v38 = vadd.f32 %v5910_v5, %v16621_v41  ;;  %v16623_v20 = vld [vmem:[#allocation16_spill] sm:$0xff]  ;;  %v11540_v41 = vld [vmem:[%s16519_s1 + $0x81c] sm:$0xf] }
 0x60a   :  { %v8726_v63 = vadd.f32 %v8725_v36, %v8724_v1  ;;  %v9971_v7 = vld [vmem:[%s16519_s1 + $0x810] sm:$0xf]  ;;  %v9973_v36 = vld [vmem:[%s16519_s1 + $0x830] sm:$0xf0] }
 0x60b   :  { %v7532_v49 = vmul.f32 %v7404_v15, %v6893_v8  ;;  %v6896_v57 = vadd.f32 %v6895_v44, %v6567_v43  ;;  %v6240_v35 = vadd.f32 %v6239_v47, %v5911_v38  ;;  %v11543_v61 = vld [vmem:[%s16519_s1 + $0x82c] sm:$0xf0]  ;;  %v11539_v44 = vld [vmem:[%s16519_s1 + $0x814] sm:$0xf]  ;;  %v9979_v15 = vld [vmem:[%s16519_s1 + $0x818] sm:$0xf] }
 0x60c   :  { %v11544_v47 = vld [vmem:[%s16519_s1 + $0x834] sm:$0xf0]  ;;  %v9981_v38 = vld [vmem:[%s16519_s1 + $0x838] sm:$0xf0]  ;;  %v9976_v51 = vor.u32 %v11539_v44, %v9973_v36 }
 0x60d   :  { %v7660_v23 = vmul.f32 0.16666667, %v7532_v49  ;;  %v7149_v48 = vadd.f32 3.0, %v6896_v57  ;;  %v9980_v27 = vor.u32 %v11544_v47, %v9979_v15  ;;  %v9984_v18 = vor.u32 %v11540_v41, %v9981_v38 }
 0x60f   :  { %v8556_v10 = vmul.f32 %v8091_v25, %v7660_v23  ;;  %v7277_v52 = vmax.f32 %v7149_v48, 0.0 }
 0x610   :  { %v6568_v34 = vpop.f32.mrf.mxu2  ;;  %v5913_v0 = vpop.f32.mrf.mxu0 }
 0x611   :  { %v6897_v59 = vpop.f32.mrf.mxu3  ;;  %v8727_v21 = vsel %vm8641_vm1, %v8556_v10, 0.0  ;;  %v7405_v2 = vmin.f32 %v7277_v52, 6.0  ;;  %v6569_v37 = vadd.f32 %v6568_v34, %v6240_v35  ;;  %v6242_v16 = vpop.f32.mrf.mxu1  ;;  %v5914_v45 = vadd.f32 %v5913_v0, %v16622_v17  ;;  %v16624_v10 = vld [vmem:[#allocation17_spill] sm:$0xff] }
 0x612   :  { %v8728_v32 = vadd.f32 %v8727_v21, %v8726_v63  ;;  %v8101_v63 = vpop.permute.xlu2 %8100  ;;  %v9972_v35 = vor.u32 %v11543_v61, %v9971_v7  ;;  %v8106_v21 = vpop.permute.xlu0 %8105 }
 0x613   :  { %v7533_v40 = vmul.f32 %v7405_v2, %v6896_v57  ;;  %v6898_v28 = vadd.f32 %v6897_v59, %v6569_v37  ;;  %v6243_v55 = vadd.f32 %v6242_v16, %v5914_v45  ;;  %5952 = vmatmul.bf16.gmra.mxu0 %v9940_v22 }
 0x614   :  { %6281 = vmatmul.bf16.gmra.mxu1 %v9944_v11 }
 0x615   :  { %v7661_v19 = vmul.f32 0.16666667, %v7533_v40  ;;  %v7150_v54 = vadd.f32 3.0, %v6898_v28  ;;  %6610 = vmatmul.bf16.gmra.mxu2 %v9948_v50 }
 0x616   :  { %11248 = vmatmul.msk.bf16.gmra.mxu3 %vm4280_vm0, %v9952_v53 }
 0x617   :  { %v8557_v29 = vmul.f32 %v8096_v46, %v7661_v19  ;;  %v7278_v6 = vmax.f32 %v7150_v54, 0.0 }
 0x618   :  { %v6571_v24 = vpop.f32.mrf.mxu2  ;;  %v5915_v56 = vpop.f32.mrf.mxu0 }
 0x619   :  { %v6900_v14 = vpop.f32.mrf.mxu3  ;;  %v8729_v60 = vsel %vm8641_vm1, %v8557_v29, 0.0  ;;  %v7406_v1 = vmin.f32 %v7278_v6, 6.0  ;;  %v6572_v26 = vadd.f32 %v6571_v24, %v6243_v55  ;;  %v6244_v31 = vpop.f32.mrf.mxu1  ;;  %v5916_v33 = vadd.f32 %v5915_v56, %v16623_v20  ;;  %v16625_v55 = vld [vmem:[#allocation18_spill] sm:$0xff]  ;;  %v10003_v29 = vld [vmem:[%s16519_s1 + $0x850] sm:$0xf] }
 0x61a   :  { %v8730_v8 = vadd.f32 %v8729_v60, %v8728_v32  ;;  %v11551_v6 = vld [vmem:[%s16519_s1 + $0x86c] sm:$0xf0]  ;;  %v10005_v60 = vld [vmem:[%s16519_s1 + $0x870] sm:$0xf0]  ;;  %v11548_v20 = vld [vmem:[%s16519_s1 + $0x85c] sm:$0xf] }
 0x61b   :  { %v7534_v58 = vmul.f32 %v7406_v1, %v6898_v28  ;;  %v6901_v13 = vadd.f32 %v6900_v14, %v6572_v26  ;;  %v6245_v4 = vadd.f32 %v6244_v31, %v5916_v33  ;;  %v11547_v14 = vld [vmem:[%s16519_s1 + $0x854] sm:$0xf]  ;;  %v10011_v1 = vld [vmem:[%s16519_s1 + $0x858] sm:$0xf]  ;;  %v10013_v33 = vld [vmem:[%s16519_s1 + $0x878] sm:$0xf0] }
 0x61c   :  { %v11552_v31 = vld [vmem:[%s16519_s1 + $0x874] sm:$0xf0]  ;;  %v10008_v44 = vor.u32 %v11547_v14, %v10005_v60  ;;  %v10016_v41 = vor.u32 %v11548_v20, %v10013_v33 }
 0x61d   :  { %v7662_v43 = vmul.f32 0.16666667, %v7534_v58  ;;  %v7151_v5 = vadd.f32 3.0, %v6901_v13  ;;  %v10012_v36 = vor.u32 %v11552_v31, %v10011_v1 }
 0x61f   :  { %v8558_v49 = vmul.f32 %v8101_v63, %v7662_v43  ;;  %v7279_v57 = vmax.f32 %v7151_v5, 0.0 }
 0x620   :  { %v6573_v39 = vpop.f32.mrf.mxu2  ;;  %v5918_v12 = vpop.f32.mrf.mxu0 }
 0x621   :  { %v6902_v42 = vpop.f32.mrf.mxu3  ;;  %v8731_v62 = vsel %vm8641_vm1, %v8558_v49, 0.0  ;;  %v7407_v23 = vmin.f32 %v7279_v57, 6.0  ;;  %v6574_v48 = vadd.f32 %v6573_v39, %v6245_v4  ;;  %v6247_v25 = vpop.f32.mrf.mxu1  ;;  %v5919_v52 = vadd.f32 %v5918_v12, %v16624_v10  ;;  %v16626_v49 = vld [vmem:[#allocation19_spill] sm:$0xff] }
 0x622   :  { %v8732_v30 = vadd.f32 %v8731_v62, %v8730_v8  ;;  %v8111_v8 = vpop.permute.xlu1 %8110  ;;  %v10004_v4 = vor.u32 %v11551_v6, %v10003_v29  ;;  %v8116_v62 = vpop.permute.xlu2 %8115 }
 0x623   :  { %v7535_v34 = vmul.f32 %v7407_v23, %v6901_v13  ;;  %v6903_v59 = vadd.f32 %v6902_v42, %v6574_v48  ;;  %v6248_v22 = vadd.f32 %v6247_v25, %v5919_v52  ;;  %5957 = vmatmul.bf16.gmra.mxu0 %v9972_v35 }
 0x624   :  { %6286 = vmatmul.bf16.gmra.mxu1 %v9976_v51 }
 0x625   :  { %v7663_v11 = vmul.f32 0.16666667, %v7535_v34  ;;  %v7152_v50 = vadd.f32 3.0, %v6903_v59  ;;  %6615 = vmatmul.bf16.gmra.mxu2 %v9980_v27 }
 0x626   :  { %11249 = vmatmul.msk.bf16.gmra.mxu3 %vm4280_vm0, %v9984_v18 }
 0x627   :  { %v8559_v2 = vmul.f32 %v8106_v21, %v7663_v11  ;;  %v7280_v37 = vmax.f32 %v7152_v50, 0.0 }
 0x628   :  { %v6576_v0 = vpop.f32.mrf.mxu2  ;;  %v5920_v45 = vpop.f32.mrf.mxu0 }
 0x629   :  { %v6905_v16 = vpop.f32.mrf.mxu3  ;;  %v8733_v53 = vsel %vm8641_vm1, %v8559_v2, 0.0  ;;  %v7408_v32 = vmin.f32 %v7280_v37, 6.0  ;;  %v6577_v17 = vadd.f32 %v6576_v0, %v6248_v22  ;;  %v6249_v40 = vpop.f32.mrf.mxu1  ;;  %v5921_v19 = vadd.f32 %v5920_v45, %v16625_v55  ;;  %v16627_v22 = vld [vmem:[#allocation20_spill] sm:$0xff]  ;;  %v11556_v55 = vld [vmem:[%s16519_s1 + $0x89c] sm:$0xf] }
 0x62a   :  { %v8734_v28 = vadd.f32 %v8733_v53, %v8732_v30  ;;  %v10035_v2 = vld [vmem:[%s16519_s1 + $0x890] sm:$0xf]  ;;  %v10037_v53 = vld [vmem:[%s16519_s1 + $0x8b0] sm:$0xf0] }
 0x62b   :  { %v7536_v54 = vmul.f32 %v7408_v32, %v6903_v59  ;;  %v6906_v46 = vadd.f32 %v6905_v16, %v6577_v17  ;;  %v6250_v24 = vadd.f32 %v6249_v40, %v5921_v19  ;;  %v11559_v37 = vld [vmem:[%s16519_s1 + $0x8ac] sm:$0xf0]  ;;  %v11555_v16 = vld [vmem:[%s16519_s1 + $0x894] sm:$0xf]  ;;  %v10043_v32 = vld [vmem:[%s16519_s1 + $0x898] sm:$0xf] }
 0x62c   :  { %v11560_v40 = vld [vmem:[%s16519_s1 + $0x8b4] sm:$0xf0]  ;;  %v10045_v19 = vld [vmem:[%s16519_s1 + $0x8b8] sm:$0xf0]  ;;  %v10040_v14 = vor.u32 %v11555_v16, %v10037_v53 }
 0x62d   :  { %v7664_v26 = vmul.f32 0.16666667, %v7536_v54  ;;  %v7153_v56 = vadd.f32 3.0, %v6906_v46  ;;  %v10044_v60 = vor.u32 %v11560_v40, %v10043_v32  ;;  %v10048_v20 = vor.u32 %v11556_v55, %v10045_v19 }
 0x62f   :  { %v8560_v58 = vmul.f32 %v8111_v8, %v7664_v26  ;;  %v7281_v13 = vmax.f32 %v7153_v56, 0.0 }
 0x630   :  { %v6578_v7 = vpop.f32.mrf.mxu2  ;;  %v5923_v47 = vpop.f32.mrf.mxu0 }
 0x631   :  { %v6907_v61 = vpop.f32.mrf.mxu3  ;;  %v8735_v15 = vsel %vm8641_vm1, %v8560_v58, 0.0  ;;  %v7409_v43 = vmin.f32 %v7281_v13, 6.0  ;;  %v6579_v5 = vadd.f32 %v6578_v7, %v6250_v24  ;;  %v6252_v63 = vpop.f32.mrf.mxu1  ;;  %v5924_v57 = vadd.f32 %v5923_v47, %v16626_v49  ;;  %v16628_v58 = vld [vmem:[#allocation21_spill] sm:$0xff] }
 0x632   :  { %v8736_v38 = vadd.f32 %v8735_v15, %v8734_v28  ;;  %v8121_v28 = vpop.permute.xlu0 %8120  ;;  %v10036_v24 = vor.u32 %v11559_v37, %v10035_v2  ;;  %v8126_v15 = vpop.permute.xlu1 %8125 }
 0x633   :  { %v7537_v39 = vmul.f32 %v7409_v43, %v6906_v46  ;;  %v6908_v42 = vadd.f32 %v6907_v61, %v6579_v5  ;;  %v6253_v35 = vadd.f32 %v6252_v63, %v5924_v57  ;;  %5962 = vmatmul.bf16.gmra.mxu0 %v10004_v4 }
 0x634   :  { %6291 = vmatmul.bf16.gmra.mxu1 %v10008_v44 }
 0x635   :  { %v7665_v51 = vmul.f32 0.16666667, %v7537_v39  ;;  %v7154_v27 = vadd.f32 3.0, %v6908_v42  ;;  %6620 = vmatmul.bf16.gmra.mxu2 %v10012_v36 }
 0x636   :  { %11250 = vmatmul.msk.bf16.gmra.mxu3 %vm4280_vm0, %v10016_v41 }
 0x637   :  { %v8561_v23 = vmul.f32 %v8116_v62, %v7665_v51  ;;  %v7282_v48 = vmax.f32 %v7154_v27, 0.0 }
 0x638   :  { %v6581_v12 = vpop.f32.mrf.mxu2  ;;  %v5925_v52 = vpop.f32.mrf.mxu0 }
 0x639   :  { %v6910_v25 = vpop.f32.mrf.mxu3  ;;  %v8737_v18 = vsel %vm8641_vm1, %v8561_v23, 0.0  ;;  %v7410_v30 = vmin.f32 %v7282_v48, 6.0  ;;  %v6582_v10 = vadd.f32 %v6581_v12, %v6253_v35  ;;  %v6254_v34 = vpop.f32.mrf.mxu1  ;;  %v5926_v11 = vadd.f32 %v5925_v52, %v16627_v22  ;;  %v16629_v35 = vld [vmem:[#allocation22_spill] sm:$0xff]  ;;  %v10067_v23 = vld [vmem:[%s16519_s1 + $0x8d0] sm:$0xf] }
 0x63a   :  { %v8738_v59 = vadd.f32 %v8737_v18, %v8736_v38  ;;  %v11567_v48 = vld [vmem:[%s16519_s1 + $0x8ec] sm:$0xf0]  ;;  %v10069_v18 = vld [vmem:[%s16519_s1 + $0x8f0] sm:$0xf0]  ;;  %v11564_v22 = vld [vmem:[%s16519_s1 + $0x8dc] sm:$0xf] }
 0x63b   :  { %v7538_v50 = vmul.f32 %v7410_v30, %v6908_v42  ;;  %v6911_v21 = vadd.f32 %v6910_v25, %v6582_v10  ;;  %v6255_v0 = vadd.f32 %v6254_v34, %v5926_v11  ;;  %v11563_v25 = vld [vmem:[%s16519_s1 + $0x8d4] sm:$0xf]  ;;  %v10075_v30 = vld [vmem:[%s16519_s1 + $0x8d8] sm:$0xf]  ;;  %v10077_v11 = vld [vmem:[%s16519_s1 + $0x8f8] sm:$0xf0] }
 0x63c   :  { %v11568_v34 = vld [vmem:[%s16519_s1 + $0x8f4] sm:$0xf0]  ;;  %v10072_v16 = vor.u32 %v11563_v25, %v10069_v18  ;;  %v10080_v55 = vor.u32 %v11564_v22, %v10077_v11 }
 0x63d   :  { %v7666_v17 = vmul.f32 0.16666667, %v7538_v50  ;;  %v7155_v45 = vadd.f32 3.0, %v6911_v21  ;;  %v10076_v53 = vor.u32 %v11568_v34, %v10075_v30 }
 0x63f   :  { %v8562_v54 = vmul.f32 %v8121_v28, %v7666_v17  ;;  %v7283_v46 = vmax.f32 %v7155_v45, 0.0 }
 0x640   :  { %v6583_v29 = vpop.f32.mrf.mxu2  ;;  %v5928_v31 = vpop.f32.mrf.mxu0 }
 0x641   :  { %v6912_v6 = vpop.f32.mrf.mxu3  ;;  %v8739_v1 = vsel %vm8641_vm1, %v8562_v54, 0.0  ;;  %v7411_v26 = vmin.f32 %v7283_v46, 6.0  ;;  %v6584_v56 = vadd.f32 %v6583_v29, %v6255_v0  ;;  %v6257_v8 = vpop.f32.mrf.mxu1  ;;  %v5929_v13 = vadd.f32 %v5928_v31, %v16628_v58  ;;  %v16630_v54 = vld [vmem:[#allocation23_spill] sm:$0xff] }
 0x642   :  { %v8740_v33 = vadd.f32 %v8739_v1, %v8738_v59  ;;  %v8131_v59 = vpop.permute.xlu2 %8130  ;;  %v10068_v0 = vor.u32 %v11567_v48, %v10067_v23  ;;  %v8136_v1 = vpop.permute.xlu0 %8135 }
 0x643   :  { %v7539_v7 = vmul.f32 %v7411_v26, %v6911_v21  ;;  %v6913_v61 = vadd.f32 %v6912_v6, %v6584_v56  ;;  %v6258_v4 = vadd.f32 %v6257_v8, %v5929_v13  ;;  %5967 = vmatmul.bf16.gmra.mxu0 %v10036_v24 }
 0x644   :  { %6296 = vmatmul.bf16.gmra.mxu1 %v10040_v14 }
 0x645   :  { %v7667_v44 = vmul.f32 0.16666667, %v7539_v7  ;;  %v7156_v36 = vadd.f32 3.0, %v6913_v61  ;;  %6625 = vmatmul.bf16.gmra.mxu2 %v10044_v60 }
 0x646   :  { %11251 = vmatmul.msk.bf16.gmra.mxu3 %vm4280_vm0, %v10048_v20 }
 0x647   :  { %v8563_v43 = vmul.f32 %v8126_v15, %v7667_v44  ;;  %v7284_v5 = vmax.f32 %v7156_v36, 0.0 }
 0x648   :  { %v6586_v47 = vpop.f32.mrf.mxu2  ;;  %v5930_v57 = vpop.f32.mrf.mxu0 }
 0x649   :  { %v6915_v63 = vpop.f32.mrf.mxu3  ;;  %v8741_v41 = vsel %vm8641_vm1, %v8563_v43, 0.0  ;;  %v7412_v38 = vmin.f32 %v7284_v5, 6.0  ;;  %v6587_v49 = vadd.f32 %v6586_v47, %v6258_v4  ;;  %v6259_v39 = vpop.f32.mrf.mxu1  ;;  %v5931_v51 = vadd.f32 %v5930_v57, %v16629_v35  ;;  %v16631_v4 = vld [vmem:[#allocation24_spill] sm:$0xff]  ;;  %v11572_v35 = vld [vmem:[%s16519_s1 + $0x91c] sm:$0xf] }
 0x64a   :  { %v8742_v42 = vadd.f32 %v8741_v41, %v8740_v33  ;;  %v10099_v43 = vld [vmem:[%s16519_s1 + $0x910] sm:$0xf]  ;;  %v10101_v41 = vld [vmem:[%s16519_s1 + $0x930] sm:$0xf0] }
 0x64b   :  { %v7540_v27 = vmul.f32 %v7412_v38, %v6913_v61  ;;  %v6916_v62 = vadd.f32 %v6915_v63, %v6587_v49  ;;  %v6260_v12 = vadd.f32 %v6259_v39, %v5931_v51  ;;  %v11575_v5 = vld [vmem:[%s16519_s1 + $0x92c] sm:$0xf0]  ;;  %v11571_v63 = vld [vmem:[%s16519_s1 + $0x914] sm:$0xf]  ;;  %v10107_v38 = vld [vmem:[%s16519_s1 + $0x918] sm:$0xf] }
 0x64c   :  { %v11576_v39 = vld [vmem:[%s16519_s1 + $0x934] sm:$0xf0]  ;;  %v10109_v51 = vld [vmem:[%s16519_s1 + $0x938] sm:$0xf0]  ;;  %v10104_v25 = vor.u32 %v11571_v63, %v10101_v41 }
 0x64d   :  { %v7668_v10 = vmul.f32 0.16666667, %v7540_v27  ;;  %v7157_v52 = vadd.f32 3.0, %v6916_v62  ;;  %v10108_v18 = vor.u32 %v11576_v39, %v10107_v38  ;;  %v10112_v22 = vor.u32 %v11572_v35, %v10109_v51 }
 0x64f   :  { %v8564_v50 = vmul.f32 %v8131_v59, %v7668_v10  ;;  %v7285_v21 = vmax.f32 %v7157_v52, 0.0 }
 0x650   :  { %v6588_v2 = vpop.f32.mrf.mxu2  ;;  %v5933_v40 = vpop.f32.mrf.mxu0 }
 0x651   :  { %v6917_v37 = vpop.f32.mrf.mxu3  ;;  %v8743_v32 = vsel %vm8641_vm1, %v8564_v50, 0.0  ;;  %v7413_v17 = vmin.f32 %v7285_v21, 6.0  ;;  %v6589_v45 = vadd.f32 %v6588_v2, %v6260_v12  ;;  %v6262_v28 = vpop.f32.mrf.mxu1  ;;  %v5934_v46 = vadd.f32 %v5933_v40, %v16630_v54  ;;  %v16632_v50 = vld [vmem:[#allocation25_spill] sm:$0xff] }
 0x652   :  { %v8744_v19 = vadd.f32 %v8743_v32, %v8742_v42  ;;  %v8141_v42 = vpop.permute.xlu1 %8140  ;;  %v10100_v12 = vor.u32 %v11575_v5, %v10099_v43  ;;  %v8146_v32 = vpop.permute.xlu2 %8145 }
 0x653   :  { %v7541_v29 = vmul.f32 %v7413_v17, %v6916_v62  ;;  %v6918_v6 = vadd.f32 %v6917_v37, %v6589_v45  ;;  %v6263_v24 = vadd.f32 %v6262_v28, %v5934_v46  ;;  %5972 = vmatmul.bf16.gmra.mxu0 %v10068_v0 }
 0x654   :  { %6301 = vmatmul.bf16.gmra.mxu1 %v10072_v16 }
 0x655   :  { %v7669_v14 = vmul.f32 0.16666667, %v7541_v29  ;;  %v7158_v60 = vadd.f32 3.0, %v6918_v6  ;;  %6630 = vmatmul.bf16.gmra.mxu2 %v10076_v53 }
 0x656   :  { %11252 = vmatmul.msk.bf16.gmra.mxu3 %vm4280_vm0, %v10080_v55 }
 0x657   :  { %v8565_v26 = vmul.f32 %v8136_v1, %v7669_v14  ;;  %v7286_v56 = vmax.f32 %v7158_v60, 0.0 }
 0x658   :  { %v6591_v31 = vpop.f32.mrf.mxu2  ;;  %v5935_v13 = vpop.f32.mrf.mxu0 }
 0x659   :  { %v6920_v8 = vpop.f32.mrf.mxu3  ;;  %v8745_v20 = vsel %vm8641_vm1, %v8565_v26, 0.0  ;;  %v7414_v33 = vmin.f32 %v7286_v56, 6.0  ;;  %v6592_v58 = vadd.f32 %v6591_v31, %v6263_v24  ;;  %v6264_v7 = vpop.f32.mrf.mxu1  ;;  %v5936_v44 = vadd.f32 %v5935_v13, %v16631_v4  ;;  %v16633_v24 = vld [vmem:[#allocation26_spill] sm:$0xff]  ;;  %v10131_v26 = vld [vmem:[%s16519_s1 + $0x950] sm:$0xf] }
 0x65a   :  { %v8746_v61 = vadd.f32 %v8745_v20, %v8744_v19  ;;  %v11583_v56 = vld [vmem:[%s16519_s1 + $0x96c] sm:$0xf0]  ;;  %v10133_v20 = vld [vmem:[%s16519_s1 + $0x970] sm:$0xf0]  ;;  %v11580_v4 = vld [vmem:[%s16519_s1 + $0x95c] sm:$0xf] }
 0x65b   :  { %v7542_v36 = vmul.f32 %v7414_v33, %v6918_v6  ;;  %v6921_v15 = vadd.f32 %v6920_v8, %v6592_v58  ;;  %v6265_v47 = vadd.f32 %v6264_v7, %v5936_v44  ;;  %v11579_v8 = vld [vmem:[%s16519_s1 + $0x954] sm:$0xf]  ;;  %v10139_v33 = vld [vmem:[%s16519_s1 + $0x958] sm:$0xf]  ;;  %v10141_v44 = vld [vmem:[%s16519_s1 + $0x978] sm:$0xf0] }
 0x65c   :  { %v11584_v7 = vld [vmem:[%s16519_s1 + $0x974] sm:$0xf0]  ;;  %v10136_v63 = vor.u32 %v11579_v8, %v10133_v20  ;;  %v10144_v35 = vor.u32 %v11580_v4, %v10141_v44 }
 0x65d   :  { %v7670_v49 = vmul.f32 0.16666667, %v7542_v36  ;;  %v7159_v57 = vadd.f32 3.0, %v6921_v15  ;;  %v10140_v41 = vor.u32 %v11584_v7, %v10139_v33 }
 0x65f   :  { %v8566_v27 = vmul.f32 %v8141_v42, %v7670_v49  ;;  %v7287_v62 = vmax.f32 %v7159_v57, 0.0 }
 0x660   :  { %v6593_v23 = vpop.f32.mrf.mxu2  ;;  %v5938_v34 = vpop.f32.mrf.mxu0 }
 0x661   :  { %v6922_v48 = vpop.f32.mrf.mxu3  ;;  %v8747_v30 = vsel %vm8641_vm1, %v8566_v27, 0.0  ;;  %v7415_v10 = vmin.f32 %v7287_v62, 6.0  ;;  %v6594_v52 = vadd.f32 %v6593_v23, %v6265_v47  ;;  %v6267_v59 = vpop.f32.mrf.mxu1  ;;  %v5939_v21 = vadd.f32 %v5938_v34, %v16632_v50  ;;  %v16634_v27 = vld [vmem:[#allocation27_spill] sm:$0xff] }
 0x662   :  { %v8748_v11 = vadd.f32 %v8747_v30, %v8746_v61  ;;  %v8151_v61 = vpop.permute.xlu0 %8150  ;;  %v10132_v47 = vor.u32 %v11583_v56, %v10131_v26  ;;  %v8156_v30 = vpop.permute.xlu1 %8155 }
 0x663   :  { %v7543_v2 = vmul.f32 %v7415_v10, %v6921_v15  ;;  %v6923_v37 = vadd.f32 %v6922_v48, %v6594_v52  ;;  %v6268_v0 = vadd.f32 %v6267_v59, %v5939_v21  ;;  %5977 = vmatmul.bf16.gmra.mxu0 %v10100_v12 }
 0x664   :  { %6306 = vmatmul.bf16.gmra.mxu1 %v10104_v25 }
 0x665   :  { %v7671_v16 = vmul.f32 0.16666667, %v7543_v2  ;;  %v7160_v53 = vadd.f32 3.0, %v6923_v37  ;;  %6635 = vmatmul.bf16.gmra.mxu2 %v10108_v18 }
 0x666   :  { %11253 = vmatmul.msk.bf16.gmra.mxu3 %vm4280_vm0, %v10112_v22 }
 0x667   :  { %v8567_v17 = vmul.f32 %v8146_v32, %v7671_v16  ;;  %v7288_v45 = vmax.f32 %v7160_v53, 0.0 }
 0x668   :  { %v6596_v40 = vpop.f32.mrf.mxu2  ;;  %v5940_v46 = vpop.f32.mrf.mxu0 }
 0x669   :  { %v6925_v28 = vpop.f32.mrf.mxu3  ;;  %v8749_v55 = vsel %vm8641_vm1, %v8567_v17, 0.0  ;;  %v7416_v19 = vmin.f32 %v7288_v45, 6.0  ;;  %v6597_v54 = vadd.f32 %v6596_v40, %v6268_v0  ;;  %v6269_v29 = vpop.f32.mrf.mxu1  ;;  %v5941_v14 = vadd.f32 %v5940_v46, %v16633_v24  ;;  %v16635_v0 = vld [vmem:[#allocation28_spill] sm:$0xff]  ;;  %v11588_v24 = vld [vmem:[%s16519_s1 + $0x99c] sm:$0xf] }
 0x66a   :  { %v8750_v6 = vadd.f32 %v8749_v55, %v8748_v11  ;;  %v10163_v17 = vld [vmem:[%s16519_s1 + $0x990] sm:$0xf]  ;;  %v10165_v55 = vld [vmem:[%s16519_s1 + $0x9b0] sm:$0xf0] }
 0x66b   :  { %v7544_v60 = vmul.f32 %v7416_v19, %v6923_v37  ;;  %v6926_v1 = vadd.f32 %v6925_v28, %v6597_v54  ;;  %v6270_v31 = vadd.f32 %v6269_v29, %v5941_v14  ;;  %v11591_v45 = vld [vmem:[%s16519_s1 + $0x9ac] sm:$0xf0]  ;;  %v11587_v28 = vld [vmem:[%s16519_s1 + $0x994] sm:$0xf]  ;;  %v10171_v19 = vld [vmem:[%s16519_s1 + $0x998] sm:$0xf] }
 0x66c   :  { %v11592_v29 = vld [vmem:[%s16519_s1 + $0x9b4] sm:$0xf0]  ;;  %v10173_v14 = vld [vmem:[%s16519_s1 + $0x9b8] sm:$0xf0]  ;;  %v10168_v8 = vor.u32 %v11587_v28, %v10165_v55 }
 0x66d   :  { %v7672_v58 = vmul.f32 0.16666667, %v7544_v60  ;;  %v7161_v13 = vadd.f32 3.0, %v6926_v1  ;;  %v10172_v20 = vor.u32 %v11592_v29, %v10171_v19  ;;  %v10176_v4 = vor.u32 %v11588_v24, %v10173_v14 }
 0x66f   :  { %v8568_v36 = vmul.f32 %v8151_v61, %v7672_v58  ;;  %v7289_v15 = vmax.f32 %v7161_v13, 0.0 }
 0x670   :  { %v6598_v43 = vpop.f32.mrf.mxu2  ;;  %v5943_v39 = vpop.f32.mrf.mxu0 }
 0x671   :  { %v6927_v5 = vpop.f32.mrf.mxu3  ;;  %v8751_v38 = vsel %vm8641_vm1, %v8568_v36, 0.0  ;;  %v7417_v49 = vmin.f32 %v7289_v15, 6.0  ;;  %v6599_v57 = vadd.f32 %v6598_v43, %v6270_v31  ;;  %v6272_v42 = vpop.f32.mrf.mxu1  ;;  %v5944_v62 = vadd.f32 %v5943_v39, %v16634_v27  ;;  %v16636_v36 = vld [vmem:[#allocation29_spill] sm:$0xff] }
 0x672   :  { %v8752_v51 = vadd.f32 %v8751_v38, %v8750_v6  ;;  %v8161_v6 = vpop.permute.xlu2 %8160  ;;  %v10164_v31 = vor.u32 %v11591_v45, %v10163_v17  ;;  %v8166_v38 = vpop.permute.xlu0 %8165 }
 0x673   :  { %v7545_v23 = vmul.f32 %v7417_v49, %v6926_v1  ;;  %v6928_v48 = vadd.f32 %v6927_v5, %v6599_v57  ;;  %v6273_v12 = vadd.f32 %v6272_v42, %v5944_v62  ;;  %5982 = vmatmul.bf16.gmra.mxu0 %v10132_v47 }
 0x674   :  { %6311 = vmatmul.bf16.gmra.mxu1 %v10136_v63 }
 0x675   :  { %v7673_v25 = vmul.f32 0.16666667, %v7545_v23  ;;  %v7162_v18 = vadd.f32 3.0, %v6928_v48  ;;  %6640 = vmatmul.bf16.gmra.mxu2 %v10140_v41 }
 0x676   :  { %11254 = vmatmul.msk.bf16.gmra.mxu3 %vm4280_vm0, %v10144_v35 }
 0x677   :  { %v8569_v10 = vmul.f32 %v8156_v30, %v7673_v25  ;;  %v7290_v52 = vmax.f32 %v7162_v18, 0.0 }
 0x678   :  { %v6601_v34 = vpop.f32.mrf.mxu2  ;;  %v5945_v21 = vpop.f32.mrf.mxu0 }
 0x679   :  { %v6930_v59 = vpop.f32.mrf.mxu3  ;;  %v8753_v22 = vsel %vm8641_vm1, %v8569_v10, 0.0  ;;  %v7418_v11 = vmin.f32 %v7290_v52, 6.0  ;;  %v6602_v50 = vadd.f32 %v6601_v34, %v6273_v12  ;;  %v6274_v2 = vpop.f32.mrf.mxu1  ;;  %v5946_v16 = vadd.f32 %v5945_v21, %v16635_v0  ;;  %v16637_v12 = vld [vmem:[#allocation30_spill] sm:$0xff]  ;;  %v10195_v10 = vld [vmem:[%s16519_s1 + $0x9d0] sm:$0xf] }
 0x67a   :  { %v8754_v37 = vadd.f32 %v8753_v22, %v8752_v51  ;;  %v11599_v52 = vld [vmem:[%s16519_s1 + $0x9ec] sm:$0xf0]  ;;  %v10197_v22 = vld [vmem:[%s16519_s1 + $0x9f0] sm:$0xf0]  ;;  %v11596_v0 = vld [vmem:[%s16519_s1 + $0x9dc] sm:$0xf] }
 0x67b   :  { %v7546_v53 = vmul.f32 %v7418_v11, %v6928_v48  ;;  %v6931_v32 = vadd.f32 %v6930_v59, %v6602_v50  ;;  %v6275_v40 = vadd.f32 %v6274_v2, %v5946_v16  ;;  %v11595_v59 = vld [vmem:[%s16519_s1 + $0x9d4] sm:$0xf]  ;;  %v10203_v11 = vld [vmem:[%s16519_s1 + $0x9d8] sm:$0xf]  ;;  %v10205_v16 = vld [vmem:[%s16519_s1 + $0x9f8] sm:$0xf0] }
 0x67c   :  { %v11600_v2 = vld [vmem:[%s16519_s1 + $0x9f4] sm:$0xf0]  ;;  %v10200_v28 = vor.u32 %v11595_v59, %v10197_v22  ;;  %v10208_v24 = vor.u32 %v11596_v0, %v10205_v16 }
 0x67d   :  { %v7674_v54 = vmul.f32 0.16666667, %v7546_v53  ;;  %v7163_v46 = vadd.f32 3.0, %v6931_v32  ;;  %v10204_v55 = vor.u32 %v11600_v2, %v10203_v11 }
 0x67f   :  { %v8570_v60 = vmul.f32 %v8161_v6, %v7674_v54  ;;  %v7291_v1 = vmax.f32 %v7163_v46, 0.0 }
 0x680   :  { %v6603_v26 = vpop.f32.mrf.mxu2  ;;  %v5948_v7 = vpop.f32.mrf.mxu0 }
 0x681   :  { %v6932_v56 = vpop.f32.mrf.mxu3  ;;  %v8755_v33 = vsel %vm8641_vm1, %v8570_v60, 0.0  ;;  %v7419_v58 = vmin.f32 %v7291_v1, 6.0  ;;  %v6604_v13 = vadd.f32 %v6603_v26, %v6275_v40  ;;  %v6277_v61 = vpop.f32.mrf.mxu1  ;;  %v5949_v15 = vadd.f32 %v5948_v7, %v16636_v36  ;;  %v16638_v60 = vld [vmem:[#allocation31_spill] sm:$0xff] }
 0x682   :  { %v8756_v44 = vadd.f32 %v8755_v33, %v8754_v37  ;;  %v8171_v37 = vpop.permute.xlu1 %8170  ;;  %v10196_v40 = vor.u32 %v11599_v52, %v10195_v10  ;;  %v8176_v33 = vpop.permute.xlu2 %8175 }
 0x683   :  { %v7547_v43 = vmul.f32 %v7419_v58, %v6931_v32  ;;  %v6933_v5 = vadd.f32 %v6932_v56, %v6604_v13  ;;  %v6278_v47 = vadd.f32 %v6277_v61, %v5949_v15  ;;  %5987 = vmatmul.bf16.gmra.mxu0 %v10164_v31 }
 0x684   :  { %6316 = vmatmul.bf16.gmra.mxu1 %v10168_v8 }
 0x685   :  { %v7675_v63 = vmul.f32 0.16666667, %v7547_v43  ;;  %v7164_v41 = vadd.f32 3.0, %v6933_v5  ;;  %6645 = vmatmul.bf16.gmra.mxu2 %v10172_v20 }
 0x686   :  { %11255 = vmatmul.msk.bf16.gmra.mxu3 %vm4280_vm0, %v10176_v4 }
 0x687   :  { %v8571_v49 = vmul.f32 %v8166_v38, %v7675_v63  ;;  %v7292_v57 = vmax.f32 %v7164_v41, 0.0 }
 0x688   :  { %v6606_v39 = vpop.f32.mrf.mxu2  ;;  %v5950_v62 = vpop.f32.mrf.mxu0 }
 0x689   :  { %v6935_v42 = vpop.f32.mrf.mxu3  ;;  %v8757_v35 = vsel %vm8641_vm1, %v8571_v49, 0.0  ;;  %v7420_v51 = vmin.f32 %v7292_v57, 6.0  ;;  %v6607_v27 = vadd.f32 %v6606_v39, %v6278_v47  ;;  %v6279_v23 = vpop.f32.mrf.mxu1  ;;  %v5951_v25 = vadd.f32 %v5950_v62, %v16637_v12  ;;  %v16639_v47 = vld [vmem:[#allocation32_spill] sm:$0xff]  ;;  %v11604_v12 = vld [vmem:[%s16519_s1 + $0xa1c] sm:$0xf] }
 0x68a   :  { %v8758_v48 = vadd.f32 %v8757_v35, %v8756_v44  ;;  %v10227_v49 = vld [vmem:[%s16519_s1 + $0xa10] sm:$0xf]  ;;  %v10229_v35 = vld [vmem:[%s16519_s1 + $0xa30] sm:$0xf0] }
 0x68b   :  { %v7548_v18 = vmul.f32 %v7420_v51, %v6933_v5  ;;  %v6936_v30 = vadd.f32 %v6935_v42, %v6607_v27  ;;  %v6280_v34 = vadd.f32 %v6279_v23, %v5951_v25  ;;  %v11607_v57 = vld [vmem:[%s16519_s1 + $0xa2c] sm:$0xf0]  ;;  %v11603_v42 = vld [vmem:[%s16519_s1 + $0xa14] sm:$0xf]  ;;  %v10235_v51 = vld [vmem:[%s16519_s1 + $0xa18] sm:$0xf] }
 0x68c   :  { %v11608_v23 = vld [vmem:[%s16519_s1 + $0xa34] sm:$0xf0]  ;;  %v10237_v25 = vld [vmem:[%s16519_s1 + $0xa38] sm:$0xf0]  ;;  %v10232_v59 = vor.u32 %v11603_v42, %v10229_v35 }
 0x68d   :  { %v7676_v50 = vmul.f32 0.16666667, %v7548_v18  ;;  %v7165_v21 = vadd.f32 3.0, %v6936_v30  ;;  %v10236_v22 = vor.u32 %v11608_v23, %v10235_v51  ;;  %v10240_v0 = vor.u32 %v11604_v12, %v10237_v25 }
 0x68f   :  { %v8572_v53 = vmul.f32 %v8171_v37, %v7676_v50  ;;  %v7293_v32 = vmax.f32 %v7165_v21, 0.0 }
 0x690   :  { %v6608_v17 = vpop.f32.mrf.mxu2  ;;  %v5953_v29 = vpop.f32.mrf.mxu0 }
 0x691   :  { %v6937_v45 = vpop.f32.mrf.mxu3  ;;  %v8759_v19 = vsel %vm8641_vm1, %v8572_v53, 0.0  ;;  %v7421_v54 = vmin.f32 %v7293_v32, 6.0  ;;  %v6609_v46 = vadd.f32 %v6608_v17, %v6280_v34  ;;  %v6282_v6 = vpop.f32.mrf.mxu1  ;;  %v5954_v1 = vadd.f32 %v5953_v29, %v16638_v60  ;;  %v16640_v53 = vld [vmem:[#allocation33_spill] sm:$0xff] }
 0x692   :  { %v8760_v14 = vadd.f32 %v8759_v19, %v8758_v48  ;;  %v8181_v48 = vpop.permute.xlu0 %8180  ;;  %v10228_v34 = vor.u32 %v11607_v57, %v10227_v49  ;;  %v8186_v19 = vpop.permute.xlu1 %8185 }
 0x693   :  { %v7549_v26 = vmul.f32 %v7421_v54, %v6936_v30  ;;  %v6938_v56 = vadd.f32 %v6937_v45, %v6609_v46  ;;  %v6283_v31 = vadd.f32 %v6282_v6, %v5954_v1  ;;  %5992 = vmatmul.bf16.gmra.mxu0 %v10196_v40 }
 0x694   :  { %6321 = vmatmul.bf16.gmra.mxu1 %v10200_v28 }
 0x695   :  { %v7677_v8 = vmul.f32 0.16666667, %v7549_v26  ;;  %v7166_v20 = vadd.f32 3.0, %v6938_v56  ;;  %6650 = vmatmul.bf16.gmra.mxu2 %v10204_v55 }
 0x696   :  { %11256 = vmatmul.msk.bf16.gmra.mxu3 %vm4280_vm0, %v10208_v24 }
 0x697   :  { %v8573_v58 = vmul.f32 %v8176_v33, %v7677_v8  ;;  %v7294_v13 = vmax.f32 %v7166_v20, 0.0 }
 0x698   :  { %v6611_v7 = vpop.f32.mrf.mxu2  ;;  %v5955_v15 = vpop.f32.mrf.mxu0 }
 0x699   :  { %v6940_v61 = vpop.f32.mrf.mxu3  ;;  %v8761_v4 = vsel %vm8641_vm1, %v8573_v58, 0.0  ;;  %v7422_v44 = vmin.f32 %v7294_v13, 6.0  ;;  %v6612_v36 = vadd.f32 %v6611_v7, %v6283_v31  ;;  %v6284_v43 = vpop.f32.mrf.mxu1  ;;  %v5956_v63 = vadd.f32 %v5955_v15, %v16639_v47  ;;  %v16641_v31 = vld [vmem:[#allocation34_spill] sm:$0xff]  ;;  %v10259_v58 = vld [vmem:[%s16519_s1 + $0xa50] sm:$0xf] }
 0x69a   :  { %v8762_v5 = vadd.f32 %v8761_v4, %v8760_v14  ;;  %v11615_v13 = vld [vmem:[%s16519_s1 + $0xa6c] sm:$0xf0]  ;;  %v10261_v4 = vld [vmem:[%s16519_s1 + $0xa70] sm:$0xf0]  ;;  %v11612_v47 = vld [vmem:[%s16519_s1 + $0xa5c] sm:$0xf] }
 0x69b   :  { %v7550_v41 = vmul.f32 %v7422_v44, %v6938_v56  ;;  %v6941_v38 = vadd.f32 %v6940_v61, %v6612_v36  ;;  %v6285_v39 = vadd.f32 %v6284_v43, %v5956_v63  ;;  %v11611_v61 = vld [vmem:[%s16519_s1 + $0xa54] sm:$0xf]  ;;  %v10267_v44 = vld [vmem:[%s16519_s1 + $0xa58] sm:$0xf]  ;;  %v10269_v63 = vld [vmem:[%s16519_s1 + $0xa78] sm:$0xf0] }
 0x69c   :  { %v11616_v43 = vld [vmem:[%s16519_s1 + $0xa74] sm:$0xf0]  ;;  %v10264_v42 = vor.u32 %v11611_v61, %v10261_v4  ;;  %v10272_v12 = vor.u32 %v11612_v47, %v10269_v63 }
 0x69d   :  { %v7678_v27 = vmul.f32 0.16666667, %v7550_v41  ;;  %v7167_v62 = vadd.f32 3.0, %v6941_v38  ;;  %v10268_v35 = vor.u32 %v11616_v43, %v10267_v44 }
 0x69f   :  { %v8574_v18 = vmul.f32 %v8181_v48, %v7678_v27  ;;  %v7295_v30 = vmax.f32 %v7167_v62, 0.0 }
 0x6a0   :  { %v6613_v10 = vpop.f32.mrf.mxu2  ;;  %v5958_v2 = vpop.f32.mrf.mxu0 }
 0x6a1   :  { %v6942_v52 = vpop.f32.mrf.mxu3  ;;  %v8763_v11 = vsel %vm8641_vm1, %v8574_v18, 0.0  ;;  %v7423_v50 = vmin.f32 %v7295_v30, 6.0  ;;  %v6614_v21 = vadd.f32 %v6613_v10, %v6285_v39  ;;  %v6287_v37 = vpop.f32.mrf.mxu1  ;;  %v5959_v32 = vadd.f32 %v5958_v2, %v16640_v53  ;;  %v16642_v18 = vld [vmem:[#allocation35_spill] sm:$0xff] }
 0x6a2   :  { %v8764_v16 = vadd.f32 %v8763_v11, %v8762_v5  ;;  %v8191_v5 = vpop.permute.xlu2 %8190  ;;  %v10260_v39 = vor.u32 %v11615_v13, %v10259_v58  ;;  %v8196_v11 = vpop.permute.xlu0 %8195 }
 0x6a3   :  { %v7551_v17 = vmul.f32 %v7423_v50, %v6941_v38  ;;  %v6943_v45 = vadd.f32 %v6942_v52, %v6614_v21  ;;  %v6288_v40 = vadd.f32 %v6287_v37, %v5959_v32  ;;  %5997 = vmatmul.bf16.gmra.mxu0 %v10228_v34 }
 0x6a4   :  { %6326 = vmatmul.bf16.gmra.mxu1 %v10232_v59 }
 0x6a5   :  { %v7679_v28 = vmul.f32 0.16666667, %v7551_v17  ;;  %v7168_v55 = vadd.f32 3.0, %v6943_v45  ;;  %6655 = vmatmul.bf16.gmra.mxu2 %v10236_v22 }
 0x6a6   :  { %11257 = vmatmul.msk.bf16.gmra.mxu3 %vm4280_vm0, %v10240_v0 }
 0x6a7   :  { %v8575_v54 = vmul.f32 %v8186_v19, %v7679_v28  ;;  %v7296_v46 = vmax.f32 %v7168_v55, 0.0 }
 0x6a8   :  { %v6616_v29 = vpop.f32.mrf.mxu2  ;;  %v5960_v1 = vpop.f32.mrf.mxu0 }
 0x6a9   :  { %v6945_v6 = vpop.f32.mrf.mxu3  ;;  %v8765_v24 = vsel %vm8641_vm1, %v8575_v54, 0.0  ;;  %v7424_v14 = vmin.f32 %v7296_v46, 6.0  ;;  %v6617_v60 = vadd.f32 %v6616_v29, %v6288_v40  ;;  %v6289_v26 = vpop.f32.mrf.mxu1  ;;  %v5961_v8 = vadd.f32 %v5960_v1, %v16641_v31  ;;  %v16643_v40 = vld [vmem:[#allocation36_spill] sm:$0xff]  ;;  %v11620_v31 = vld [vmem:[%s16519_s1 + $0xa9c] sm:$0xf] }
 0x6aa   :  { %v8766_v56 = vadd.f32 %v8765_v24, %v8764_v16  ;;  %v10291_v54 = vld [vmem:[%s16519_s1 + $0xa90] sm:$0xf]  ;;  %v10293_v24 = vld [vmem:[%s16519_s1 + $0xab0] sm:$0xf0] }
 0x6ab   :  { %v7552_v20 = vmul.f32 %v7424_v14, %v6943_v45  ;;  %v6946_v33 = vadd.f32 %v6945_v6, %v6617_v60  ;;  %v6290_v7 = vadd.f32 %v6289_v26, %v5961_v8  ;;  %v11623_v46 = vld [vmem:[%s16519_s1 + $0xaac] sm:$0xf0]  ;;  %v11619_v6 = vld [vmem:[%s16519_s1 + $0xa94] sm:$0xf]  ;;  %v10299_v14 = vld [vmem:[%s16519_s1 + $0xa98] sm:$0xf] }
 0x6ac   :  { %v11624_v26 = vld [vmem:[%s16519_s1 + $0xab4] sm:$0xf0]  ;;  %v10301_v8 = vld [vmem:[%s16519_s1 + $0xab8] sm:$0xf0]  ;;  %v10296_v61 = vor.u32 %v11619_v6, %v10293_v24 }
 0x6ad   :  { %v7680_v36 = vmul.f32 0.16666667, %v7552_v20  ;;  %v7169_v15 = vadd.f32 3.0, %v6946_v33  ;;  %v10300_v4 = vor.u32 %v11624_v26, %v10299_v14  ;;  %v10304_v47 = vor.u32 %v11620_v31, %v10301_v8 }
 0x6af   :  { %v8576_v41 = vmul.f32 %v8191_v5, %v7680_v36  ;;  %v7297_v38 = vmax.f32 %v7169_v15, 0.0 }
 0x6b0   :  { %v6618_v49 = vpop.f32.mrf.mxu2  ;;  %v5963_v23 = vpop.f32.mrf.mxu0 }
 0x6b1   :  { %v6947_v57 = vpop.f32.mrf.mxu3  ;;  %v8767_v51 = vsel %vm8641_vm1, %v8576_v41, 0.0  ;;  %v7425_v27 = vmin.f32 %v7297_v38, 6.0  ;;  %v6619_v62 = vadd.f32 %v6618_v49, %v6290_v7  ;;  %v6292_v48 = vpop.f32.mrf.mxu1  ;;  %v5964_v30 = vadd.f32 %v5963_v23, %v16642_v18  ;;  %v16644_v41 = vld [vmem:[#allocation37_spill] sm:$0xff] }
 0x6b2   :  { %v8768_v25 = vadd.f32 %v8767_v51, %v8766_v56  ;;  %v8201_v56 = vpop.permute.xlu1 %8200  ;;  %v10292_v7 = vor.u32 %v11623_v46, %v10291_v54  ;;  %v8206_v51 = vpop.permute.xlu2 %8205 }
 0x6b3   :  { %v7553_v10 = vmul.f32 %v7425_v27, %v6946_v33  ;;  %v6948_v52 = vadd.f32 %v6947_v57, %v6619_v62  ;;  %v6293_v34 = vadd.f32 %v6292_v48, %v5964_v30  ;;  %6002 = vmatmul.bf16.gmra.mxu0 %v10260_v39 }
 0x6b4   :  { %6331 = vmatmul.bf16.gmra.mxu1 %v10264_v42 }
 0x6b5   :  { %v7681_v59 = vmul.f32 0.16666667, %v7553_v10  ;;  %v7170_v22 = vadd.f32 3.0, %v6948_v52  ;;  %6660 = vmatmul.bf16.gmra.mxu2 %v10268_v35 }
 0x6b6   :  { %11258 = vmatmul.msk.bf16.gmra.mxu3 %vm4280_vm0, %v10272_v12 }
 0x6b7   :  { %v8577_v50 = vmul.f32 %v8196_v11, %v7681_v59  ;;  %v7298_v21 = vmax.f32 %v7170_v22, 0.0 }
 0x6b8   :  { %v6621_v2 = vpop.f32.mrf.mxu2  ;;  %v5965_v32 = vpop.f32.mrf.mxu0 }
 0x6b9   :  { %v6950_v37 = vpop.f32.mrf.mxu3  ;;  %v8769_v0 = vsel %vm8641_vm1, %v8577_v50, 0.0  ;;  %v7426_v16 = vmin.f32 %v7298_v21, 6.0  ;;  %v6622_v53 = vadd.f32 %v6621_v2, %v6293_v34  ;;  %v6294_v17 = vpop.f32.mrf.mxu1  ;;  %v5966_v28 = vadd.f32 %v5965_v32, %v16643_v40  ;;  %v16645_v34 = vld [vmem:[#allocation38_spill] sm:$0xff]  ;;  %v10323_v50 = vld [vmem:[%s16519_s1 + $0xad0] sm:$0xf] }
 0x6ba   :  { %v8770_v45 = vadd.f32 %v8769_v0, %v8768_v25  ;;  %v11631_v21 = vld [vmem:[%s16519_s1 + $0xaec] sm:$0xf0]  ;;  %v10325_v0 = vld [vmem:[%s16519_s1 + $0xaf0] sm:$0xf0]  ;;  %v11628_v40 = vld [vmem:[%s16519_s1 + $0xadc] sm:$0xf] }
 0x6bb   :  { %v7554_v55 = vmul.f32 %v7426_v16, %v6948_v52  ;;  %v6951_v19 = vadd.f32 %v6950_v37, %v6622_v53  ;;  %v6295_v29 = vadd.f32 %v6294_v17, %v5966_v28  ;;  %v11627_v37 = vld [vmem:[%s16519_s1 + $0xad4] sm:$0xf]  ;;  %v10331_v16 = vld [vmem:[%s16519_s1 + $0xad8] sm:$0xf]  ;;  %v10333_v28 = vld [vmem:[%s16519_s1 + $0xaf8] sm:$0xf0] }
 0x6bc   :  { %v11632_v17 = vld [vmem:[%s16519_s1 + $0xaf4] sm:$0xf0]  ;;  %v10328_v6 = vor.u32 %v11627_v37, %v10325_v0  ;;  %v10336_v31 = vor.u32 %v11628_v40, %v10333_v28 }
 0x6bd   :  { %v7682_v60 = vmul.f32 0.16666667, %v7554_v55  ;;  %v7171_v1 = vadd.f32 3.0, %v6951_v19  ;;  %v10332_v24 = vor.u32 %v11632_v17, %v10331_v16 }
 0x6bf   :  { %v8578_v20 = vmul.f32 %v8201_v56, %v7682_v60  ;;  %v7299_v33 = vmax.f32 %v7171_v1, 0.0 }
 0x6c0   :  { %v6623_v58 = vpop.f32.mrf.mxu2  ;;  %v5968_v43 = vpop.f32.mrf.mxu0 }
 0x6c1   :  { %v6952_v13 = vpop.f32.mrf.mxu3  ;;  %v8771_v44 = vsel %vm8641_vm1, %v8578_v20, 0.0  ;;  %v7427_v36 = vmin.f32 %v7299_v33, 6.0  ;;  %v6624_v15 = vadd.f32 %v6623_v58, %v6295_v29  ;;  %v6297_v5 = vpop.f32.mrf.mxu1  ;;  %v5969_v38 = vadd.f32 %v5968_v43, %v16644_v41  ;;  %v16646_v20 = vld [vmem:[#allocation39_spill] sm:$0xff] }
 0x6c2   :  { %v8772_v63 = vadd.f32 %v8771_v44, %v8770_v45  ;;  %v8211_v45 = vpop.permute.xlu0 %8210  ;;  %v10324_v29 = vor.u32 %v11631_v21, %v10323_v50  ;;  %v8216_v44 = vpop.permute.xlu1 %8215 }
 0x6c3   :  { %v7555_v49 = vmul.f32 %v7427_v36, %v6951_v19  ;;  %v6953_v57 = vadd.f32 %v6952_v13, %v6624_v15  ;;  %v6298_v39 = vadd.f32 %v6297_v5, %v5969_v38  ;;  %6007 = vmatmul.bf16.gmra.mxu0 %v10292_v7 }
 0x6c4   :  { %6336 = vmatmul.bf16.gmra.mxu1 %v10296_v61 }
 0x6c5   :  { %v7683_v42 = vmul.f32 0.16666667, %v7555_v49  ;;  %v7172_v35 = vadd.f32 3.0, %v6953_v57  ;;  %6665 = vmatmul.bf16.gmra.mxu2 %v10300_v4 }
 0x6c6   :  { %11259 = vmatmul.msk.bf16.gmra.mxu3 %vm4280_vm0, %v10304_v47 }
 0x6c7   :  { %v8579_v27 = vmul.f32 %v8206_v51, %v7683_v42  ;;  %v7300_v62 = vmax.f32 %v7172_v35, 0.0 }
 0x6c8   :  { %v6626_v23 = vpop.f32.mrf.mxu2  ;;  %v5970_v30 = vpop.f32.mrf.mxu0 }
 0x6c9   :  { %v6955_v48 = vpop.f32.mrf.mxu3  ;;  %v8773_v12 = vsel %vm8641_vm1, %v8579_v27, 0.0  ;;  %v7428_v25 = vmin.f32 %v7300_v62, 6.0  ;;  %v6627_v18 = vadd.f32 %v6626_v23, %v6298_v39  ;;  %v6299_v10 = vpop.f32.mrf.mxu1  ;;  %v5971_v59 = vadd.f32 %v5970_v30, %v16645_v34  ;;  %v16647_v39 = vld [vmem:[#allocation40_spill] sm:$0xff]  ;;  %v11636_v34 = vld [vmem:[%s16519_s1 + $0xb1c] sm:$0xf] }
 0x6ca   :  { %v8774_v52 = vadd.f32 %v8773_v12, %v8772_v63  ;;  %v10355_v27 = vld [vmem:[%s16519_s1 + $0xb10] sm:$0xf]  ;;  %v10357_v12 = vld [vmem:[%s16519_s1 + $0xb30] sm:$0xf0] }
 0x6cb   :  { %v7556_v22 = vmul.f32 %v7428_v25, %v6953_v57  ;;  %v6956_v11 = vadd.f32 %v6955_v48, %v6627_v18  ;;  %v6300_v2 = vadd.f32 %v6299_v10, %v5971_v59  ;;  %v11639_v62 = vld [vmem:[%s16519_s1 + $0xb2c] sm:$0xf0]  ;;  %v11635_v48 = vld [vmem:[%s16519_s1 + $0xb14] sm:$0xf]  ;;  %v10363_v25 = vld [vmem:[%s16519_s1 + $0xb18] sm:$0xf] }
 0x6cc   :  { %v11640_v10 = vld [vmem:[%s16519_s1 + $0xb34] sm:$0xf0]  ;;  %v10365_v59 = vld [vmem:[%s16519_s1 + $0xb38] sm:$0xf0]  ;;  %v10360_v37 = vor.u32 %v11635_v48, %v10357_v12 }
 0x6cd   :  { %v7684_v53 = vmul.f32 0.16666667, %v7556_v22  ;;  %v7173_v32 = vadd.f32 3.0, %v6956_v11  ;;  %v10364_v0 = vor.u32 %v11640_v10, %v10363_v25  ;;  %v10368_v40 = vor.u32 %v11636_v34, %v10365_v59 }
 0x6cf   :  { %v8580_v55 = vmul.f32 %v8211_v45, %v7684_v53  ;;  %v7301_v19 = vmax.f32 %v7173_v32, 0.0 }
 0x6d0   :  { %v6628_v54 = vpop.f32.mrf.mxu2  ;;  %v5973_v26 = vpop.f32.mrf.mxu0 }
 0x6d1   :  { %v6957_v46 = vpop.f32.mrf.mxu3  ;;  %v8775_v14 = vsel %vm8641_vm1, %v8580_v55, 0.0  ;;  %v7429_v60 = vmin.f32 %v7301_v19, 6.0  ;;  %v6629_v1 = vadd.f32 %v6628_v54, %v6300_v2  ;;  %v6302_v56 = vpop.f32.mrf.mxu1  ;;  %v5974_v33 = vadd.f32 %v5973_v26, %v16646_v20  ;;  %v16648_v55 = vld [vmem:[#allocation41_spill] sm:$0xff] }
 0x6d2   :  { %v8776_v8 = vadd.f32 %v8775_v14, %v8774_v52  ;;  %v8221_v52 = vpop.permute.xlu2 %8220  ;;  %v10356_v2 = vor.u32 %v11639_v62, %v10355_v27  ;;  %v8226_v14 = vpop.permute.xlu0 %8225 }
 0x6d3   :  { %v7557_v58 = vmul.f32 %v7429_v60, %v6956_v11  ;;  %v6958_v13 = vadd.f32 %v6957_v46, %v6629_v1  ;;  %v6303_v7 = vadd.f32 %v6302_v56, %v5974_v33  ;;  %6012 = vmatmul.bf16.gmra.mxu0 %v10324_v29 }
 0x6d4   :  { %6341 = vmatmul.bf16.gmra.mxu1 %v10328_v6 }
 0x6d5   :  { %v7685_v61 = vmul.f32 0.16666667, %v7557_v58  ;;  %v7174_v4 = vadd.f32 3.0, %v6958_v13  ;;  %6670 = vmatmul.bf16.gmra.mxu2 %v10332_v24 }
 0x6d6   :  { %11260 = vmatmul.msk.bf16.gmra.mxu3 %vm4280_vm0, %v10336_v31 }
 0x6d7   :  { %v8581_v36 = vmul.f32 %v8216_v44, %v7685_v61  ;;  %v7302_v15 = vmax.f32 %v7174_v4, 0.0 }
 0x6d8   :  { %v6631_v43 = vpop.f32.mrf.mxu2  ;;  %v5975_v38 = vpop.f32.mrf.mxu0 }
 0x6d9   :  { %v6960_v5 = vpop.f32.mrf.mxu3  ;;  %v8777_v47 = vsel %vm8641_vm1, %v8581_v36, 0.0  ;;  %v7430_v63 = vmin.f32 %v7302_v15, 6.0  ;;  %v6632_v41 = vadd.f32 %v6631_v43, %v6303_v7  ;;  %v6304_v49 = vpop.f32.mrf.mxu1  ;;  %v5976_v42 = vadd.f32 %v5975_v38, %v16647_v39  ;;  %v16649_v7 = vld [vmem:[#allocation42_spill] sm:$0xff]  ;;  %v10387_v36 = vld [vmem:[%s16519_s1 + $0xb50] sm:$0xf] }
 0x6da   :  { %v8778_v57 = vadd.f32 %v8777_v47, %v8776_v8  ;;  %v11647_v15 = vld [vmem:[%s16519_s1 + $0xb6c] sm:$0xf0]  ;;  %v10389_v47 = vld [vmem:[%s16519_s1 + $0xb70] sm:$0xf0]  ;;  %v11644_v39 = vld [vmem:[%s16519_s1 + $0xb5c] sm:$0xf] }
 0x6db   :  { %v7558_v35 = vmul.f32 %v7430_v63, %v6958_v13  ;;  %v6961_v51 = vadd.f32 %v6960_v5, %v6632_v41  ;;  %v6305_v23 = vadd.f32 %v6304_v49, %v5976_v42  ;;  %v11643_v5 = vld [vmem:[%s16519_s1 + $0xb54] sm:$0xf]  ;;  %v10395_v63 = vld [vmem:[%s16519_s1 + $0xb58] sm:$0xf]  ;;  %v10397_v42 = vld [vmem:[%s16519_s1 + $0xb78] sm:$0xf0] }
 0x6dc   :  { %v11648_v49 = vld [vmem:[%s16519_s1 + $0xb74] sm:$0xf0]  ;;  %v10392_v48 = vor.u32 %v11643_v5, %v10389_v47  ;;  %v10400_v34 = vor.u32 %v11644_v39, %v10397_v42 }
 0x6dd   :  { %v7686_v18 = vmul.f32 0.16666667, %v7558_v35  ;;  %v7175_v30 = vadd.f32 3.0, %v6961_v51  ;;  %v10396_v12 = vor.u32 %v11648_v49, %v10395_v63 }
 0x6df   :  { %v8582_v22 = vmul.f32 %v8221_v52, %v7686_v18  ;;  %v7303_v11 = vmax.f32 %v7175_v30, 0.0 }
 0x6e0   :  { %v6633_v50 = vpop.f32.mrf.mxu2  ;;  %v5978_v17 = vpop.f32.mrf.mxu0 }
 0x6e1   :  { %v6962_v21 = vpop.f32.mrf.mxu3  ;;  %v8779_v16 = vsel %vm8641_vm1, %v8582_v22, 0.0  ;;  %v7431_v53 = vmin.f32 %v7303_v11, 6.0  ;;  %v6634_v32 = vadd.f32 %v6633_v50, %v6305_v23  ;;  %v6307_v45 = vpop.f32.mrf.mxu1  ;;  %v5979_v19 = vadd.f32 %v5978_v17, %v16648_v55  ;;  %v16650_v22 = vld [vmem:[#allocation43_spill] sm:$0xff] }
 0x6e2   :  { %v8780_v28 = vadd.f32 %v8779_v16, %v8778_v57  ;;  %v8231_v57 = vpop.permute.xlu1 %8230  ;;  %v10388_v23 = vor.u32 %v11647_v15, %v10387_v36  ;;  %v8236_v16 = vpop.permute.xlu2 %8235 }
 0x6e3   :  { %v7559_v54 = vmul.f32 %v7431_v53, %v6961_v51  ;;  %v6963_v46 = vadd.f32 %v6962_v21, %v6634_v32  ;;  %v6308_v29 = vadd.f32 %v6307_v45, %v5979_v19  ;;  %6017 = vmatmul.bf16.gmra.mxu0 %v10356_v2 }
 0x6e4   :  { %6346 = vmatmul.bf16.gmra.mxu1 %v10360_v37 }
 0x6e5   :  { %v7687_v6 = vmul.f32 0.16666667, %v7559_v54  ;;  %v7176_v24 = vadd.f32 3.0, %v6963_v46  ;;  %6675 = vmatmul.bf16.gmra.mxu2 %v10364_v0 }
 0x6e6   :  { %11261 = vmatmul.msk.bf16.gmra.mxu3 %vm4280_vm0, %v10368_v40 }
 0x6e7   :  { %v8583_v60 = vmul.f32 %v8226_v14, %v7687_v6  ;;  %v7304_v1 = vmax.f32 %v7176_v24, 0.0 }
 0x6e8   :  { %v6636_v26 = vpop.f32.mrf.mxu2  ;;  %v5980_v33 = vpop.f32.mrf.mxu0 }
 0x6e9   :  { %v6965_v56 = vpop.f32.mrf.mxu3  ;;  %v8781_v31 = vsel %vm8641_vm1, %v8583_v60, 0.0  ;;  %v7432_v8 = vmin.f32 %v7304_v1, 6.0  ;;  %v6637_v20 = vadd.f32 %v6636_v26, %v6308_v29  ;;  %v6309_v58 = vpop.f32.mrf.mxu1  ;;  %v5981_v61 = vadd.f32 %v5980_v33, %v16649_v7  ;;  %v16651_v29 = vld [vmem:[#allocation44_spill] sm:$0xff]  ;;  %v11652_v7 = vld [vmem:[%s16519_s1 + $0xb9c] sm:$0xf] }
 0x6ea   :  { %v8782_v13 = vadd.f32 %v8781_v31, %v8780_v28  ;;  %v10419_v60 = vld [vmem:[%s16519_s1 + $0xb90] sm:$0xf]  ;;  %v10421_v31 = vld [vmem:[%s16519_s1 + $0xbb0] sm:$0xf0] }
 0x6eb   :  { %v7560_v4 = vmul.f32 %v7432_v8, %v6963_v46  ;;  %v6966_v44 = vadd.f32 %v6965_v56, %v6637_v20  ;;  %v6310_v43 = vadd.f32 %v6309_v58, %v5981_v61  ;;  %v11655_v1 = vld [vmem:[%s16519_s1 + $0xbac] sm:$0xf0]  ;;  %v11651_v56 = vld [vmem:[%s16519_s1 + $0xb94] sm:$0xf]  ;;  %v10427_v8 = vld [vmem:[%s16519_s1 + $0xb98] sm:$0xf] }
 0x6ec   :  { %v11656_v58 = vld [vmem:[%s16519_s1 + $0xbb4] sm:$0xf0]  ;;  %v10429_v61 = vld [vmem:[%s16519_s1 + $0xbb8] sm:$0xf0]  ;;  %v10424_v5 = vor.u32 %v11651_v56, %v10421_v31 }
 0x6ed   :  { %v7688_v41 = vmul.f32 0.16666667, %v7560_v4  ;;  %v7177_v38 = vadd.f32 3.0, %v6966_v44  ;;  %v10428_v47 = vor.u32 %v11656_v58, %v10427_v8  ;;  %v10432_v39 = vor.u32 %v11652_v7, %v10429_v61 }
 0x6ef   :  { %v8584_v35 = vmul.f32 %v8231_v57, %v7688_v41  ;;  %v7305_v51 = vmax.f32 %v7177_v38, 0.0 }
 0x6f0   :  { %v6638_v27 = vpop.f32.mrf.mxu2  ;;  %v5983_v10 = vpop.f32.mrf.mxu0 }
 0x6f1   :  { %v6967_v62 = vpop.f32.mrf.mxu3  ;;  %v8783_v25 = vsel %vm8641_vm1, %v8584_v35, 0.0  ;;  %v7433_v18 = vmin.f32 %v7305_v51, 6.0  ;;  %v6639_v30 = vadd.f32 %v6638_v27, %v6310_v43  ;;  %v6312_v52 = vpop.f32.mrf.mxu1  ;;  %v5984_v11 = vadd.f32 %v5983_v10, %v16650_v22  ;;  %v16652_v35 = vld [vmem:[#allocation45_spill] sm:$0xff] }
 0x6f2   :  { %v8784_v59 = vadd.f32 %v8783_v25, %v8782_v13  ;;  %v8241_v13 = vpop.permute.xlu0 %8240  ;;  %v10420_v43 = vor.u32 %v11655_v1, %v10419_v60  ;;  %v8246_v25 = vpop.permute.xlu1 %8245 }
 0x6f3   :  { %v7561_v50 = vmul.f32 %v7433_v18, %v6966_v44  ;;  %v6968_v21 = vadd.f32 %v6967_v62, %v6639_v30  ;;  %v6313_v2 = vadd.f32 %v6312_v52, %v5984_v11  ;;  %6022 = vmatmul.bf16.gmra.mxu0 %v10388_v23 }
 0x6f4   :  { %6351 = vmatmul.bf16.gmra.mxu1 %v10392_v48 }
 0x6f5   :  { %v7689_v37 = vmul.f32 0.16666667, %v7561_v50  ;;  %v7178_v0 = vadd.f32 3.0, %v6968_v21  ;;  %6680 = vmatmul.bf16.gmra.mxu2 %v10396_v12 }
 0x6f6   :  { %11262 = vmatmul.msk.bf16.gmra.mxu3 %vm4280_vm0, %v10400_v34 }
 0x6f7   :  { %v8585_v53 = vmul.f32 %v8236_v16, %v7689_v37  ;;  %v7306_v32 = vmax.f32 %v7178_v0, 0.0 }
 0x6f8   :  { %v6641_v17 = vpop.f32.mrf.mxu2  ;;  %v5985_v19 = vpop.f32.mrf.mxu0 }
 0x6f9   :  { %v6970_v45 = vpop.f32.mrf.mxu3  ;;  %v8785_v40 = vsel %vm8641_vm1, %v8585_v53, 0.0  ;;  %v7434_v28 = vmin.f32 %v7306_v32, 6.0  ;;  %v6642_v55 = vadd.f32 %v6641_v17, %v6313_v2  ;;  %v6314_v54 = vpop.f32.mrf.mxu1  ;;  %v5986_v6 = vadd.f32 %v5985_v19, %v16651_v29  ;;  %v16653_v2 = vld [vmem:[#allocation46_spill] sm:$0xff]  ;;  %v10451_v53 = vld [vmem:[%s16519_s1 + $0xbd0] sm:$0xf] }
 0x6fa   :  { %v8786_v46 = vadd.f32 %v8785_v40, %v8784_v59  ;;  %v11663_v32 = vld [vmem:[%s16519_s1 + $0xbec] sm:$0xf0]  ;;  %v10453_v40 = vld [vmem:[%s16519_s1 + $0xbf0] sm:$0xf0]  ;;  %v11660_v29 = vld [vmem:[%s16519_s1 + $0xbdc] sm:$0xf] }
 0x6fb   :  { %v7562_v24 = vmul.f32 %v7434_v28, %v6968_v21  ;;  %v6971_v14 = vadd.f32 %v6970_v45, %v6642_v55  ;;  %v6315_v26 = vadd.f32 %v6314_v54, %v5986_v6  ;;  %v11659_v45 = vld [vmem:[%s16519_s1 + $0xbd4] sm:$0xf]  ;;  %v10459_v28 = vld [vmem:[%s16519_s1 + $0xbd8] sm:$0xf]  ;;  %v10461_v6 = vld [vmem:[%s16519_s1 + $0xbf8] sm:$0xf0] }
 0x6fc   :  { %v11664_v54 = vld [vmem:[%s16519_s1 + $0xbf4] sm:$0xf0]  ;;  %v10456_v56 = vor.u32 %v11659_v45, %v10453_v40  ;;  %v10464_v7 = vor.u32 %v11660_v29, %v10461_v6 }
 0x6fd   :  { %v7690_v20 = vmul.f32 0.16666667, %v7562_v24  ;;  %v7179_v33 = vadd.f32 3.0, %v6971_v14  ;;  %v10460_v31 = vor.u32 %v11664_v54, %v10459_v28 }
 0x6ff   :  { %v8586_v4 = vmul.f32 %v8241_v13, %v7690_v20  ;;  %v7307_v44 = vmax.f32 %v7179_v33, 0.0 }
 0x700   :  { %v6643_v36 = vpop.f32.mrf.mxu2  ;;  %v5988_v49 = vpop.f32.mrf.mxu0 }
 0x701   :  { %v6972_v15 = vpop.f32.mrf.mxu3  ;;  %v8787_v63 = vsel %vm8641_vm1, %v8586_v4, 0.0  ;;  %v7435_v41 = vmin.f32 %v7307_v44, 6.0  ;;  %v6644_v38 = vadd.f32 %v6643_v36, %v6315_v26  ;;  %v6317_v57 = vpop.f32.mrf.mxu1  ;;  %v5989_v51 = vadd.f32 %v5988_v49, %v16652_v35  ;;  %v16654_v4 = vld [vmem:[#allocation47_spill] sm:$0xff] }
 0x702   :  { %v8788_v42 = vadd.f32 %v8787_v63, %v8786_v46  ;;  %v8251_v46 = vpop.permute.xlu2 %8250  ;;  %v10452_v26 = vor.u32 %v11663_v32, %v10451_v53  ;;  %v8256_v63 = vpop.permute.xlu0 %8255 }
 0x703   :  { %v7563_v27 = vmul.f32 %v7435_v41, %v6971_v14  ;;  %v6973_v62 = vadd.f32 %v6972_v15, %v6644_v38  ;;  %v6318_v23 = vadd.f32 %v6317_v57, %v5989_v51  ;;  %6027 = vmatmul.bf16.gmra.mxu0 %v10420_v43 }
 0x704   :  { %6356 = vmatmul.bf16.gmra.mxu1 %v10424_v5 }
 0x705   :  { %v7691_v48 = vmul.f32 0.16666667, %v7563_v27  ;;  %v7180_v12 = vadd.f32 3.0, %v6973_v62  ;;  %6685 = vmatmul.bf16.gmra.mxu2 %v10428_v47 }
 0x706   :  { %11263 = vmatmul.msk.bf16.gmra.mxu3 %vm4280_vm0, %v10432_v39 }
 0x707   :  { %v8587_v18 = vmul.f32 %v8246_v25, %v7691_v48  ;;  %v7308_v30 = vmax.f32 %v7180_v12, 0.0 }
 0x708   :  { %v6646_v10 = vpop.f32.mrf.mxu2  ;;  %v5990_v11 = vpop.f32.mrf.mxu0 }
 0x709   :  { %v6975_v52 = vpop.f32.mrf.mxu3  ;;  %v8789_v34 = vsel %vm8641_vm1, %v8587_v18, 0.0  ;;  %v7436_v59 = vmin.f32 %v7308_v30, 6.0  ;;  %v6647_v22 = vadd.f32 %v6646_v10, %v6318_v23  ;;  %v6319_v50 = vpop.f32.mrf.mxu1  ;;  %v5991_v37 = vadd.f32 %v5990_v11, %v16653_v2  ;;  %v16655_v23 = vld [vmem:[#allocation48_spill] sm:$0xff]  ;;  %v11668_v2 = vld [vmem:[%s16519_s1 + $0xc1c] sm:$0xf] }
 0x70a   :  { %v8790_v21 = vadd.f32 %v8789_v34, %v8788_v42  ;;  %v10483_v18 = vld [vmem:[%s16519_s1 + $0xc10] sm:$0xf]  ;;  %v10485_v34 = vld [vmem:[%s16519_s1 + $0xc30] sm:$0xf0] }
 0x70b   :  { %v7564_v0 = vmul.f32 %v7436_v59, %v6973_v62  ;;  %v6976_v16 = vadd.f32 %v6975_v52, %v6647_v22  ;;  %v6320_v17 = vadd.f32 %v6319_v50, %v5991_v37  ;;  %v11671_v30 = vld [vmem:[%s16519_s1 + $0xc2c] sm:$0xf0]  ;;  %v11667_v52 = vld [vmem:[%s16519_s1 + $0xc14] sm:$0xf]  ;;  %v10491_v59 = vld [vmem:[%s16519_s1 + $0xc18] sm:$0xf] }
 0x70c   :  { %v11672_v50 = vld [vmem:[%s16519_s1 + $0xc34] sm:$0xf0]  ;;  %v10493_v37 = vld [vmem:[%s16519_s1 + $0xc38] sm:$0xf0]  ;;  %v10488_v45 = vor.u32 %v11667_v52, %v10485_v34 }
 0x70d   :  { %v7692_v55 = vmul.f32 0.16666667, %v7564_v0  ;;  %v7181_v19 = vadd.f32 3.0, %v6976_v16  ;;  %v10492_v40 = vor.u32 %v11672_v50, %v10491_v59  ;;  %v10496_v29 = vor.u32 %v11668_v2, %v10493_v37 }
 0x70f   :  { %v8588_v24 = vmul.f32 %v8251_v46, %v7692_v55  ;;  %v7309_v14 = vmax.f32 %v7181_v19, 0.0 }
 0x710   :  { %v6648_v60 = vpop.f32.mrf.mxu2  ;;  %v5993_v58 = vpop.f32.mrf.mxu0 }
 0x711   :  { %v6977_v1 = vpop.f32.mrf.mxu3  ;;  %v8791_v8 = vsel %vm8641_vm1, %v8588_v24, 0.0  ;;  %v7437_v20 = vmin.f32 %v7309_v14, 6.0  ;;  %v6649_v33 = vadd.f32 %v6648_v60, %v6320_v17  ;;  %v6322_v13 = vpop.f32.mrf.mxu1  ;;  %v5994_v44 = vadd.f32 %v5993_v58, %v16654_v4  ;;  %v16656_v24 = vld [vmem:[#allocation49_spill] sm:$0xff] }
 0x712   :  { %v8792_v61 = vadd.f32 %v8791_v8, %v8790_v21  ;;  %v8261_v21 = vpop.permute.xlu1 %8260  ;;  %v10484_v17 = vor.u32 %v11671_v30, %v10483_v18  ;;  %v8266_v8 = vpop.permute.xlu2 %8265 }
 0x713   :  { %v7565_v36 = vmul.f32 %v7437_v20, %v6976_v16  ;;  %v6978_v15 = vadd.f32 %v6977_v1, %v6649_v33  ;;  %v6323_v43 = vadd.f32 %v6322_v13, %v5994_v44  ;;  %6032 = vmatmul.bf16.gmra.mxu0 %v10452_v26 }
 0x714   :  { %6361 = vmatmul.bf16.gmra.mxu1 %v10456_v56 }
 0x715   :  { %v7693_v5 = vmul.f32 0.16666667, %v7565_v36  ;;  %v7182_v47 = vadd.f32 3.0, %v6978_v15  ;;  %6690 = vmatmul.bf16.gmra.mxu2 %v10460_v31 }
 0x716   :  { %11264 = vmatmul.msk.bf16.gmra.mxu3 %vm4280_vm0, %v10464_v7 }
 0x717   :  { %v8589_v41 = vmul.f32 %v8256_v63, %v7693_v5  ;;  %v7310_v38 = vmax.f32 %v7182_v47, 0.0 }
 0x718   :  { %v6651_v49 = vpop.f32.mrf.mxu2  ;;  %v5995_v51 = vpop.f32.mrf.mxu0 }
 0x719   :  { %v6980_v57 = vpop.f32.mrf.mxu3  ;;  %v8793_v39 = vsel %vm8641_vm1, %v8589_v41, 0.0  ;;  %v7438_v42 = vmin.f32 %v7310_v38, 6.0  ;;  %v6652_v35 = vadd.f32 %v6651_v49, %v6323_v43  ;;  %v6324_v27 = vpop.f32.mrf.mxu1  ;;  %v5996_v48 = vadd.f32 %v5995_v51, %v16655_v23  ;;  %v16657_v43 = vld [vmem:[#allocation50_spill] sm:$0xff]  ;;  %v10515_v41 = vld [vmem:[%s16519_s1 + $0xc50] sm:$0xf] }
 0x71a   :  { %v8794_v62 = vadd.f32 %v8793_v39, %v8792_v61  ;;  %v11679_v38 = vld [vmem:[%s16519_s1 + $0xc6c] sm:$0xf0]  ;;  %v10517_v39 = vld [vmem:[%s16519_s1 + $0xc70] sm:$0xf0]  ;;  %v11676_v23 = vld [vmem:[%s16519_s1 + $0xc5c] sm:$0xf] }
 0x71b   :  { %v7566_v12 = vmul.f32 %v7438_v42, %v6978_v15  ;;  %v6981_v25 = vadd.f32 %v6980_v57, %v6652_v35  ;;  %v6325_v10 = vadd.f32 %v6324_v27, %v5996_v48  ;;  %v11675_v57 = vld [vmem:[%s16519_s1 + $0xc54] sm:$0xf]  ;;  %v10523_v42 = vld [vmem:[%s16519_s1 + $0xc58] sm:$0xf]  ;;  %v10525_v48 = vld [vmem:[%s16519_s1 + $0xc78] sm:$0xf0] }
 0x71c   :  { %v11680_v27 = vld [vmem:[%s16519_s1 + $0xc74] sm:$0xf0]  ;;  %v10520_v52 = vor.u32 %v11675_v57, %v10517_v39  ;;  %v10528_v2 = vor.u32 %v11676_v23, %v10525_v48 }
 0x71d   :  { %v7694_v22 = vmul.f32 0.16666667, %v7566_v12  ;;  %v7183_v11 = vadd.f32 3.0, %v6981_v25  ;;  %v10524_v34 = vor.u32 %v11680_v27, %v10523_v42 }
 0x71f   :  { %v8590_v0 = vmul.f32 %v8261_v21, %v7694_v22  ;;  %v7311_v16 = vmax.f32 %v7183_v11, 0.0 }
 0x720   :  { %v6653_v53 = vpop.f32.mrf.mxu2  ;;  %v5998_v54 = vpop.f32.mrf.mxu0 }
 0x721   :  { %v6982_v32 = vpop.f32.mrf.mxu3  ;;  %v8795_v28 = vsel %vm8641_vm1, %v8590_v0, 0.0  ;;  %v7439_v55 = vmin.f32 %v7311_v16, 6.0  ;;  %v6654_v19 = vadd.f32 %v6653_v53, %v6325_v10  ;;  %v6327_v46 = vpop.f32.mrf.mxu1  ;;  %v5999_v14 = vadd.f32 %v5998_v54, %v16656_v24  ;;  %v16658_v0 = vld [vmem:[#allocation51_spill] sm:$0xff] }
 0x722   :  { %v8796_v6 = vadd.f32 %v8795_v28, %v8794_v62  ;;  %v8271_v62 = vpop.permute.xlu0 %8270  ;;  %v10516_v10 = vor.u32 %v11679_v38, %v10515_v41  ;;  %v8276_v28 = vpop.permute.xlu1 %8275 }
 0x723   :  { %v7567_v60 = vmul.f32 %v7439_v55, %v6981_v25  ;;  %v6983_v1 = vadd.f32 %v6982_v32, %v6654_v19  ;;  %v6328_v26 = vadd.f32 %v6327_v46, %v5999_v14  ;;  %6037 = vmatmul.bf16.gmra.mxu0 %v10484_v17 }
 0x724   :  { %6366 = vmatmul.bf16.gmra.mxu1 %v10488_v45 }
 0x725   :  { %v7695_v56 = vmul.f32 0.16666667, %v7567_v60  ;;  %v7184_v31 = vadd.f32 3.0, %v6983_v1  ;;  %6695 = vmatmul.bf16.gmra.mxu2 %v10492_v40 }
 0x726   :  { %11265 = vmatmul.msk.bf16.gmra.mxu3 %vm4280_vm0, %v10496_v29 }
 0x727   :  { %v8591_v20 = vmul.f32 %v8266_v8, %v7695_v56  ;;  %v7312_v33 = vmax.f32 %v7184_v31, 0.0 }
 0x728   :  { %v6656_v58 = vpop.f32.mrf.mxu2  ;;  %v6000_v44 = vpop.f32.mrf.mxu0 }
 0x729   :  { %v6985_v13 = vpop.f32.mrf.mxu3  ;;  %v8797_v7 = vsel %vm8641_vm1, %v8591_v20, 0.0  ;;  %v7440_v61 = vmin.f32 %v7312_v33, 6.0  ;;  %v6657_v4 = vadd.f32 %v6656_v58, %v6328_v26  ;;  %v6329_v36 = vpop.f32.mrf.mxu1  ;;  %v6001_v5 = vadd.f32 %v6000_v44, %v16657_v43  ;;  %v16659_v26 = vld [vmem:[#allocation52_spill] sm:$0xff]  ;;  %v11684_v43 = vld [vmem:[%s16519_s1 + $0xc9c] sm:$0xf] }
 0x72a   :  { %v8798_v15 = vadd.f32 %v8797_v7, %v8796_v6  ;;  %v10547_v20 = vld [vmem:[%s16519_s1 + $0xc90] sm:$0xf]  ;;  %v10549_v7 = vld [vmem:[%s16519_s1 + $0xcb0] sm:$0xf0] }
 0x72b   :  { %v7568_v47 = vmul.f32 %v7440_v61, %v6983_v1  ;;  %v6986_v63 = vadd.f32 %v6985_v13, %v6657_v4  ;;  %v6330_v49 = vadd.f32 %v6329_v36, %v6001_v5  ;;  %v11687_v33 = vld [vmem:[%s16519_s1 + $0xcac] sm:$0xf0]  ;;  %v11683_v13 = vld [vmem:[%s16519_s1 + $0xc94] sm:$0xf]  ;;  %v10555_v61 = vld [vmem:[%s16519_s1 + $0xc98] sm:$0xf] }
 0x72c   :  { %v11688_v36 = vld [vmem:[%s16519_s1 + $0xcb4] sm:$0xf0]  ;;  %v10557_v5 = vld [vmem:[%s16519_s1 + $0xcb8] sm:$0xf0]  ;;  %v10552_v57 = vor.u32 %v11683_v13, %v10549_v7 }
 0x72d   :  { %v7696_v35 = vmul.f32 0.16666667, %v7568_v47  ;;  %v7185_v51 = vadd.f32 3.0, %v6986_v63  ;;  %v10556_v39 = vor.u32 %v11688_v36, %v10555_v61  ;;  %v10560_v23 = vor.u32 %v11684_v43, %v10557_v5 }
 0x72f   :  { %v8592_v12 = vmul.f32 %v8271_v62, %v7696_v35  ;;  %v7313_v25 = vmax.f32 %v7185_v51, 0.0 }
 0x730   :  { %v6658_v18 = vpop.f32.mrf.mxu2  ;;  %v6003_v50 = vpop.f32.mrf.mxu0 }
 0x731   :  { %v6987_v30 = vpop.f32.mrf.mxu3  ;;  %v8799_v59 = vsel %vm8641_vm1, %v8592_v12, 0.0  ;;  %v7441_v22 = vmin.f32 %v7313_v25, 6.0  ;;  %v6659_v11 = vadd.f32 %v6658_v18, %v6330_v49  ;;  %v6332_v21 = vpop.f32.mrf.mxu1  ;;  %v6004_v16 = vadd.f32 %v6003_v50, %v16658_v0  ;;  %v16660_v12 = vld [vmem:[#allocation53_spill] sm:$0xff] }
 0x732   :  { %v8800_v37 = vadd.f32 %v8799_v59, %v8798_v15  ;;  %v8281_v15 = vpop.permute.xlu2 %8280  ;;  %v10548_v49 = vor.u32 %v11687_v33, %v10547_v20  ;;  %v8286_v59 = vpop.permute.xlu0 %8285 }
 0x733   :  { %v7569_v53 = vmul.f32 %v7441_v22, %v6986_v63  ;;  %v6988_v32 = vadd.f32 %v6987_v30, %v6659_v11  ;;  %v6333_v17 = vadd.f32 %v6332_v21, %v6004_v16  ;;  %6042 = vmatmul.bf16.gmra.mxu0 %v10516_v10 }
 0x734   :  { %6371 = vmatmul.bf16.gmra.mxu1 %v10520_v52 }
 0x735   :  { %v7697_v45 = vmul.f32 0.16666667, %v7569_v53  ;;  %v7186_v40 = vadd.f32 3.0, %v6988_v32  ;;  %6700 = vmatmul.bf16.gmra.mxu2 %v10524_v34 }
 0x736   :  { %11266 = vmatmul.msk.bf16.gmra.mxu3 %vm4280_vm0, %v10528_v2 }
 0x737   :  { %v8593_v55 = vmul.f32 %v8276_v28, %v7697_v45  ;;  %v7314_v19 = vmax.f32 %v7186_v40, 0.0 }
 0x738   :  { %v6661_v54 = vpop.f32.mrf.mxu2  ;;  %v6005_v14 = vpop.f32.mrf.mxu0 }
 0x739   :  { %v6990_v46 = vpop.f32.mrf.mxu3  ;;  %v8801_v29 = vsel %vm8641_vm1, %v8593_v55, 0.0  ;;  %v7442_v6 = vmin.f32 %v7314_v19, 6.0  ;;  %v6662_v24 = vadd.f32 %v6661_v54, %v6333_v17  ;;  %v6334_v60 = vpop.f32.mrf.mxu1  ;;  %v6006_v56 = vadd.f32 %v6005_v14, %v16659_v26  ;;  %v16661_v17 = vld [vmem:[#allocation54_spill] sm:$0xff]  ;;  %v10579_v55 = vld [vmem:[%s16519_s1 + $0xcd0] sm:$0xf] }
 0x73a   :  { %v8802_v1 = vadd.f32 %v8801_v29, %v8800_v37  ;;  %v11695_v19 = vld [vmem:[%s16519_s1 + $0xcec] sm:$0xf0]  ;;  %v10581_v29 = vld [vmem:[%s16519_s1 + $0xcf0] sm:$0xf0]  ;;  %v11692_v26 = vld [vmem:[%s16519_s1 + $0xcdc] sm:$0xf] }
 0x73b   :  { %v7570_v31 = vmul.f32 %v7442_v6, %v6988_v32  ;;  %v6991_v8 = vadd.f32 %v6990_v46, %v6662_v24  ;;  %v6335_v58 = vadd.f32 %v6334_v60, %v6006_v56  ;;  %v11691_v46 = vld [vmem:[%s16519_s1 + $0xcd4] sm:$0xf]  ;;  %v10587_v6 = vld [vmem:[%s16519_s1 + $0xcd8] sm:$0xf]  ;;  %v10589_v56 = vld [vmem:[%s16519_s1 + $0xcf8] sm:$0xf0] }
 0x73c   :  { %v11696_v60 = vld [vmem:[%s16519_s1 + $0xcf4] sm:$0xf0]  ;;  %v10584_v13 = vor.u32 %v11691_v46, %v10581_v29  ;;  %v10592_v43 = vor.u32 %v11692_v26, %v10589_v56 }
 0x73d   :  { %v7698_v4 = vmul.f32 0.16666667, %v7570_v31  ;;  %v7187_v44 = vadd.f32 3.0, %v6991_v8  ;;  %v10588_v7 = vor.u32 %v11696_v60, %v10587_v6 }
 0x73f   :  { %v8594_v47 = vmul.f32 %v8281_v15, %v7698_v4  ;;  %v7315_v63 = vmax.f32 %v7187_v44, 0.0 }
 0x740   :  { %v6663_v41 = vpop.f32.mrf.mxu2  ;;  %v6008_v27 = vpop.f32.mrf.mxu0 }
 0x741   :  { %v6992_v38 = vpop.f32.mrf.mxu3  ;;  %v8803_v42 = vsel %vm8641_vm1, %v8594_v47, 0.0  ;;  %v7443_v35 = vmin.f32 %v7315_v63, 6.0  ;;  %v6664_v51 = vadd.f32 %v6663_v41, %v6335_v58  ;;  %v6337_v62 = vpop.f32.mrf.mxu1  ;;  %v6009_v25 = vadd.f32 %v6008_v27, %v16660_v12  ;;  %v16662_v47 = vld [vmem:[#allocation55_spill] sm:$0xff] }
 0x742   :  { %v8804_v48 = vadd.f32 %v8803_v42, %v8802_v1  ;;  %v8291_v1 = vpop.permute.xlu1 %8290  ;;  %v10580_v58 = vor.u32 %v11695_v19, %v10579_v55  ;;  %v8296_v42 = vpop.permute.xlu2 %8295 }
 0x743   :  { %v7571_v18 = vmul.f32 %v7443_v35, %v6991_v8  ;;  %v6993_v30 = vadd.f32 %v6992_v38, %v6664_v51  ;;  %v6338_v10 = vadd.f32 %v6337_v62, %v6009_v25  ;;  %6047 = vmatmul.bf16.gmra.mxu0 %v10548_v49 }
 0x744   :  { %6376 = vmatmul.bf16.gmra.mxu1 %v10552_v57 }
 0x745   :  { %v7699_v52 = vmul.f32 0.16666667, %v7571_v18  ;;  %v7188_v34 = vadd.f32 3.0, %v6993_v30  ;;  %6705 = vmatmul.bf16.gmra.mxu2 %v10556_v39 }
 0x746   :  { %11267 = vmatmul.msk.bf16.gmra.mxu3 %vm4280_vm0, %v10560_v23 }
 0x747   :  { %v8595_v22 = vmul.f32 %v8286_v59, %v7699_v52  ;;  %v7316_v11 = vmax.f32 %v7188_v34, 0.0 }
 0x748   :  { %v6666_v50 = vpop.f32.mrf.mxu2  ;;  %v6010_v16 = vpop.f32.mrf.mxu0 }
 0x749   :  { %v6995_v21 = vpop.f32.mrf.mxu3  ;;  %v8805_v2 = vsel %vm8641_vm1, %v8595_v22, 0.0  ;;  %v7444_v37 = vmin.f32 %v7316_v11, 6.0  ;;  %v6667_v0 = vadd.f32 %v6666_v50, %v6338_v10  ;;  %v6339_v53 = vpop.f32.mrf.mxu1  ;;  %v6011_v45 = vadd.f32 %v6010_v16, %v16661_v17  ;;  %v16663_v10 = vld [vmem:[#allocation56_spill] sm:$0xff]  ;;  %v11700_v17 = vld [vmem:[%s16519_s1 + $0xd1c] sm:$0xf] }
 0x74a   :  { %v8806_v32 = vadd.f32 %v8805_v2, %v8804_v48  ;;  %v10611_v22 = vld [vmem:[%s16519_s1 + $0xd10] sm:$0xf]  ;;  %v10613_v2 = vld [vmem:[%s16519_s1 + $0xd30] sm:$0xf0] }
 0x74b   :  { %v7572_v40 = vmul.f32 %v7444_v37, %v6993_v30  ;;  %v6996_v28 = vadd.f32 %v6995_v21, %v6667_v0  ;;  %v6340_v54 = vadd.f32 %v6339_v53, %v6011_v45  ;;  %v11703_v11 = vld [vmem:[%s16519_s1 + $0xd2c] sm:$0xf0]  ;;  %v11699_v21 = vld [vmem:[%s16519_s1 + $0xd14] sm:$0xf]  ;;  %v10619_v37 = vld [vmem:[%s16519_s1 + $0xd18] sm:$0xf] }
 0x74c   :  { %v11704_v53 = vld [vmem:[%s16519_s1 + $0xd34] sm:$0xf0]  ;;  %v10621_v45 = vld [vmem:[%s16519_s1 + $0xd38] sm:$0xf0]  ;;  %v10616_v46 = vor.u32 %v11699_v21, %v10613_v2 }
 0x74d   :  { %v7700_v24 = vmul.f32 0.16666667, %v7572_v40  ;;  %v7189_v14 = vadd.f32 3.0, %v6996_v28  ;;  %v10620_v29 = vor.u32 %v11704_v53, %v10619_v37  ;;  %v10624_v26 = vor.u32 %v11700_v17, %v10621_v45 }
 0x74f   :  { %v8596_v31 = vmul.f32 %v8291_v1, %v7700_v24  ;;  %v7317_v8 = vmax.f32 %v7189_v14, 0.0 }
 0x750   :  { %v6668_v20 = vpop.f32.mrf.mxu2  ;;  %v6013_v36 = vpop.f32.mrf.mxu0 }
 0x751   :  { %v6997_v33 = vpop.f32.mrf.mxu3  ;;  %v8807_v61 = vsel %vm8641_vm1, %v8596_v31, 0.0  ;;  %v7445_v4 = vmin.f32 %v7317_v8, 6.0  ;;  %v6669_v44 = vadd.f32 %v6668_v20, %v6340_v54  ;;  %v6342_v15 = vpop.f32.mrf.mxu1  ;;  %v6014_v63 = vadd.f32 %v6013_v36, %v16662_v47  ;;  %v16664_v31 = vld [vmem:[#allocation57_spill] sm:$0xff] }
 0x752   :  { %v8808_v5 = vadd.f32 %v8807_v61, %v8806_v32  ;;  %v8301_v32 = vpop.permute.xlu0 %8300  ;;  %v10612_v54 = vor.u32 %v11703_v11, %v10611_v22  ;;  %v8306_v61 = vpop.permute.xlu1 %8305 }
 0x753   :  { %v7573_v41 = vmul.f32 %v7445_v4, %v6996_v28  ;;  %v6998_v38 = vadd.f32 %v6997_v33, %v6669_v44  ;;  %v6343_v49 = vadd.f32 %v6342_v15, %v6014_v63  ;;  %6052 = vmatmul.bf16.gmra.mxu0 %v10580_v58 }
 0x754   :  { %6381 = vmatmul.bf16.gmra.mxu1 %v10584_v13 }
 0x755   :  { %v7701_v57 = vmul.f32 0.16666667, %v7573_v41  ;;  %v7190_v39 = vadd.f32 3.0, %v6998_v38  ;;  %6710 = vmatmul.bf16.gmra.mxu2 %v10588_v7 }
 0x756   :  { %11268 = vmatmul.msk.bf16.gmra.mxu3 %vm4280_vm0, %v10592_v43 }
 0x757   :  { %v8597_v35 = vmul.f32 %v8296_v42, %v7701_v57  ;;  %v7318_v51 = vmax.f32 %v7190_v39, 0.0 }
 0x758   :  { %v6671_v27 = vpop.f32.mrf.mxu2  ;;  %v6015_v25 = vpop.f32.mrf.mxu0 }
 0x759   :  { %v7000_v62 = vpop.f32.mrf.mxu3  ;;  %v8809_v23 = vsel %vm8641_vm1, %v8597_v35, 0.0  ;;  %v7446_v48 = vmin.f32 %v7318_v51, 6.0  ;;  %v6672_v12 = vadd.f32 %v6671_v27, %v6343_v49  ;;  %v6344_v18 = vpop.f32.mrf.mxu1  ;;  %v6016_v52 = vadd.f32 %v6015_v25, %v16663_v10  ;;  %v16665_v49 = vld [vmem:[#allocation58_spill] sm:$0xff]  ;;  %v10643_v35 = vld [vmem:[%s16519_s1 + $0xd50] sm:$0xf] }
 0x75a   :  { %v8810_v30 = vadd.f32 %v8809_v23, %v8808_v5  ;;  %v11711_v51 = vld [vmem:[%s16519_s1 + $0xd6c] sm:$0xf0]  ;;  %v10645_v23 = vld [vmem:[%s16519_s1 + $0xd70] sm:$0xf0]  ;;  %v11708_v10 = vld [vmem:[%s16519_s1 + $0xd5c] sm:$0xf] }
 0x75b   :  { %v7574_v34 = vmul.f32 %v7446_v48, %v6998_v38  ;;  %v7001_v59 = vadd.f32 %v7000_v62, %v6672_v12  ;;  %v6345_v50 = vadd.f32 %v6344_v18, %v6016_v52  ;;  %v11707_v62 = vld [vmem:[%s16519_s1 + $0xd54] sm:$0xf]  ;;  %v10651_v48 = vld [vmem:[%s16519_s1 + $0xd58] sm:$0xf]  ;;  %v10653_v52 = vld [vmem:[%s16519_s1 + $0xd78] sm:$0xf0] }
 0x75c   :  { %v11712_v18 = vld [vmem:[%s16519_s1 + $0xd74] sm:$0xf0]  ;;  %v10648_v21 = vor.u32 %v11707_v62, %v10645_v23  ;;  %v10656_v17 = vor.u32 %v11708_v10, %v10653_v52 }
 0x75d   :  { %v7702_v0 = vmul.f32 0.16666667, %v7574_v34  ;;  %v7191_v16 = vadd.f32 3.0, %v7001_v59  ;;  %v10652_v2 = vor.u32 %v11712_v18, %v10651_v48 }
 0x75f   :  { %v8598_v40 = vmul.f32 %v8301_v32, %v7702_v0  ;;  %v7319_v28 = vmax.f32 %v7191_v16, 0.0 }
 0x760   :  { %v6673_v55 = vpop.f32.mrf.mxu2  ;;  %v6018_v60 = vpop.f32.mrf.mxu0 }
 0x761   :  { %v7002_v19 = vpop.f32.mrf.mxu3  ;;  %v8811_v6 = vsel %vm8641_vm1, %v8598_v40, 0.0  ;;  %v7447_v24 = vmin.f32 %v7319_v28, 6.0  ;;  %v6674_v14 = vadd.f32 %v6673_v55, %v6345_v50  ;;  %v6347_v1 = vpop.f32.mrf.mxu1  ;;  %v6019_v8 = vadd.f32 %v6018_v60, %v16664_v31  ;;  %v16666_v40 = vld [vmem:[#allocation59_spill] sm:$0xff] }
 0x762   :  { %v8812_v56 = vadd.f32 %v8811_v6, %v8810_v30  ;;  %v8311_v30 = vpop.permute.xlu2 %8310  ;;  %v10644_v50 = vor.u32 %v11711_v51, %v10643_v35  ;;  %v8316_v6 = vpop.permute.xlu0 %8315 }
 0x763   :  { %v7575_v20 = vmul.f32 %v7447_v24, %v7001_v59  ;;  %v7003_v33 = vadd.f32 %v7002_v19, %v6674_v14  ;;  %v6348_v58 = vadd.f32 %v6347_v1, %v6019_v8  ;;  %6057 = vmatmul.bf16.gmra.mxu0 %v10612_v54 }
 0x764   :  { %6386 = vmatmul.bf16.gmra.mxu1 %v10616_v46 }
 0x765   :  { %v7703_v13 = vmul.f32 0.16666667, %v7575_v20  ;;  %v7192_v7 = vadd.f32 3.0, %v7003_v33  ;;  %6715 = vmatmul.bf16.gmra.mxu2 %v10620_v29 }
 0x766   :  { %11269 = vmatmul.msk.bf16.gmra.mxu3 %vm4280_vm0, %v10624_v26 }
 0x767   :  { %v8599_v4 = vmul.f32 %v8306_v61, %v7703_v13  ;;  %v7320_v44 = vmax.f32 %v7192_v7, 0.0 }
 0x768   :  { %v6676_v36 = vpop.f32.mrf.mxu2  ;;  %v6020_v63 = vpop.f32.mrf.mxu0 }
 0x769   :  { %v7005_v15 = vpop.f32.mrf.mxu3  ;;  %v8813_v43 = vsel %vm8641_vm1, %v8599_v4, 0.0  ;;  %v7448_v5 = vmin.f32 %v7320_v44, 6.0  ;;  %v6677_v47 = vadd.f32 %v6676_v36, %v6348_v58  ;;  %v6349_v41 = vpop.f32.mrf.mxu1  ;;  %v6021_v57 = vadd.f32 %v6020_v63, %v16665_v49  ;;  %v16667_v58 = vld [vmem:[#allocation60_spill] sm:$0xff]  ;;  %v11716_v49 = vld [vmem:[%s16519_s1 + $0xd9c] sm:$0xf] }
 0x76a   :  { %v8814_v38 = vadd.f32 %v8813_v43, %v8812_v56  ;;  %v10675_v4 = vld [vmem:[%s16519_s1 + $0xd90] sm:$0xf]  ;;  %v10677_v43 = vld [vmem:[%s16519_s1 + $0xdb0] sm:$0xf0] }
 0x76b   :  { %v7576_v39 = vmul.f32 %v7448_v5, %v7003_v33  ;;  %v7006_v42 = vadd.f32 %v7005_v15, %v6677_v47  ;;  %v6350_v27 = vadd.f32 %v6349_v41, %v6021_v57  ;;  %v11719_v44 = vld [vmem:[%s16519_s1 + $0xdac] sm:$0xf0]  ;;  %v11715_v15 = vld [vmem:[%s16519_s1 + $0xd94] sm:$0xf]  ;;  %v10683_v5 = vld [vmem:[%s16519_s1 + $0xd98] sm:$0xf] }
 0x76c   :  { %v11720_v41 = vld [vmem:[%s16519_s1 + $0xdb4] sm:$0xf0]  ;;  %v10685_v57 = vld [vmem:[%s16519_s1 + $0xdb8] sm:$0xf0]  ;;  %v10680_v62 = vor.u32 %v11715_v15, %v10677_v43 }
 0x76d   :  { %v7704_v12 = vmul.f32 0.16666667, %v7576_v39  ;;  %v7193_v25 = vadd.f32 3.0, %v7006_v42  ;;  %v10684_v23 = vor.u32 %v11720_v41, %v10683_v5  ;;  %v10688_v10 = vor.u32 %v11716_v49, %v10685_v57 }
 0x76f   :  { %v8600_v34 = vmul.f32 %v8311_v30, %v7704_v12  ;;  %v7321_v59 = vmax.f32 %v7193_v25, 0.0 }
 0x770   :  { %v6678_v22 = vpop.f32.mrf.mxu2  ;;  %v6023_v53 = vpop.f32.mrf.mxu0 }
 0x771   :  { %v7007_v11 = vpop.f32.mrf.mxu3  ;;  %v8815_v37 = vsel %vm8641_vm1, %v8600_v34, 0.0  ;;  %v7449_v0 = vmin.f32 %v7321_v59, 6.0  ;;  %v6679_v16 = vadd.f32 %v6678_v22, %v6350_v27  ;;  %v6352_v32 = vpop.f32.mrf.mxu1  ;;  %v6024_v28 = vadd.f32 %v6023_v53, %v16666_v40  ;;  %v16668_v34 = vld [vmem:[#allocation61_spill] sm:$0xff] }
 0x772   :  { %v8816_v45 = vadd.f32 %v8815_v37, %v8814_v38  ;;  %v8321_v38 = vpop.permute.xlu1 %8320  ;;  %v10676_v27 = vor.u32 %v11719_v44, %v10675_v4  ;;  %v8326_v37 = vpop.permute.xlu2 %8325 }
 0x773   :  { %v7577_v55 = vmul.f32 %v7449_v0, %v7006_v42  ;;  %v7008_v19 = vadd.f32 %v7007_v11, %v6679_v16  ;;  %v6353_v54 = vadd.f32 %v6352_v32, %v6024_v28  ;;  %6062 = vmatmul.bf16.gmra.mxu0 %v10644_v50 }
 0x774   :  { %6391 = vmatmul.bf16.gmra.mxu1 %v10648_v21 }
 0x775   :  { %v7705_v46 = vmul.f32 0.16666667, %v7577_v55  ;;  %v7194_v29 = vadd.f32 3.0, %v7008_v19  ;;  %6720 = vmatmul.bf16.gmra.mxu2 %v10652_v2 }
 0x776   :  { %11270 = vmatmul.msk.bf16.gmra.mxu3 %vm4280_vm0, %v10656_v17 }
 0x777   :  { %v8601_v24 = vmul.f32 %v8316_v6, %v7705_v46  ;;  %v7322_v14 = vmax.f32 %v7194_v29, 0.0 }
 0x778   :  { %v6681_v60 = vpop.f32.mrf.mxu2  ;;  %v6025_v8 = vpop.f32.mrf.mxu0 }
 0x779   :  { %v7010_v1 = vpop.f32.mrf.mxu3  ;;  %v8817_v26 = vsel %vm8641_vm1, %v8601_v24, 0.0  ;;  %v7450_v56 = vmin.f32 %v7322_v14, 6.0  ;;  %v6682_v31 = vadd.f32 %v6681_v60, %v6353_v54  ;;  %v6354_v20 = vpop.f32.mrf.mxu1  ;;  %v6026_v13 = vadd.f32 %v6025_v8, %v16667_v58  ;;  %v16669_v54 = vld [vmem:[#allocation62_spill] sm:$0xff]  ;;  %v10707_v24 = vld [vmem:[%s16519_s1 + $0xdd0] sm:$0xf] }
 0x77a   :  { %v8818_v33 = vadd.f32 %v8817_v26, %v8816_v45  ;;  %v11727_v14 = vld [vmem:[%s16519_s1 + $0xdec] sm:$0xf0]  ;;  %v10709_v26 = vld [vmem:[%s16519_s1 + $0xdf0] sm:$0xf0]  ;;  %v11724_v58 = vld [vmem:[%s16519_s1 + $0xddc] sm:$0xf] }
 0x77b   :  { %v7578_v7 = vmul.f32 %v7450_v56, %v7008_v19  ;;  %v7011_v61 = vadd.f32 %v7010_v1, %v6682_v31  ;;  %v6355_v36 = vadd.f32 %v6354_v20, %v6026_v13  ;;  %v11723_v1 = vld [vmem:[%s16519_s1 + $0xdd4] sm:$0xf]  ;;  %v10715_v56 = vld [vmem:[%s16519_s1 + $0xdd8] sm:$0xf]  ;;  %v10717_v13 = vld [vmem:[%s16519_s1 + $0xdf8] sm:$0xf0] }
 0x77c   :  { %v11728_v20 = vld [vmem:[%s16519_s1 + $0xdf4] sm:$0xf0]  ;;  %v10712_v15 = vor.u32 %v11723_v1, %v10709_v26  ;;  %v10720_v49 = vor.u32 %v11724_v58, %v10717_v13 }
 0x77d   :  { %v7706_v47 = vmul.f32 0.16666667, %v7578_v7  ;;  %v7195_v63 = vadd.f32 3.0, %v7011_v61  ;;  %v10716_v43 = vor.u32 %v11728_v20, %v10715_v56 }
 0x77f   :  { %v8602_v39 = vmul.f32 %v8321_v38, %v7706_v47  ;;  %v7323_v42 = vmax.f32 %v7195_v63, 0.0 }
 0x780   :  { %v6683_v35 = vpop.f32.mrf.mxu2  ;;  %v6028_v18 = vpop.f32.mrf.mxu0 }
 0x781   :  { %v7012_v51 = vpop.f32.mrf.mxu3  ;;  %v8819_v48 = vsel %vm8641_vm1, %v8602_v39, 0.0  ;;  %v7451_v12 = vmin.f32 %v7323_v42, 6.0  ;;  %v6684_v25 = vadd.f32 %v6683_v35, %v6355_v36  ;;  %v6357_v30 = vpop.f32.mrf.mxu1  ;;  %v6029_v59 = vadd.f32 %v6028_v18, %v16668_v34  ;;  %v16670_v39 = vld [vmem:[#allocation63_spill] sm:$0xff] }
 0x782   :  { %v8820_v52 = vadd.f32 %v8819_v48, %v8818_v33  ;;  %v8331_v33 = vpop.permute.xlu0 %8330  ;;  %v10708_v36 = vor.u32 %v11727_v14, %v10707_v24  ;;  %v8336_v48 = vpop.permute.xlu1 %8335 }
 0x783   :  { %v7579_v22 = vmul.f32 %v7451_v12, %v7011_v61  ;;  %v7013_v11 = vadd.f32 %v7012_v51, %v6684_v25  ;;  %v6358_v50 = vadd.f32 %v6357_v30, %v6029_v59  ;;  %6067 = vmatmul.bf16.gmra.mxu0 %v10676_v27 }
 0x784   :  { %6396 = vmatmul.bf16.gmra.mxu1 %v10680_v62 }
 0x785   :  { %v7707_v21 = vmul.f32 0.16666667, %v7579_v22  ;;  %v7196_v2 = vadd.f32 3.0, %v7013_v11  ;;  %6725 = vmatmul.bf16.gmra.mxu2 %v10684_v23 }
 0x786   :  { %11271 = vmatmul.msk.bf16.gmra.mxu3 %vm4280_vm0, %v10688_v10 }
 0x787   :  { %v8603_v0 = vmul.f32 %v8326_v37, %v7707_v21  ;;  %v7324_v16 = vmax.f32 %v7196_v2, 0.0 }
 0x788   :  { %v6686_v53 = vpop.f32.mrf.mxu2  ;;  %v6030_v28 = vpop.f32.mrf.mxu0 }
 0x789   :  { %v7015_v32 = vpop.f32.mrf.mxu3  ;;  %v8821_v17 = vsel %vm8641_vm1, %v8603_v0, 0.0  ;;  %v7452_v45 = vmin.f32 %v7324_v16, 6.0  ;;  %v6687_v40 = vadd.f32 %v6686_v53, %v6358_v50  ;;  %v6359_v55 = vpop.f32.mrf.mxu1  ;;  %v6031_v46 = vadd.f32 %v6030_v28, %v16669_v54  ;;  %v16671_v50 = vld [vmem:[#allocation64_spill] sm:$0xff]  ;;  %v11732_v54 = vld [vmem:[%s16519_s1 + $0xe1c] sm:$0xf] }
 0x78a   :  { %v8822_v19 = vadd.f32 %v8821_v17, %v8820_v52  ;;  %v10739_v0 = vld [vmem:[%s16519_s1 + $0xe10] sm:$0xf]  ;;  %v10741_v17 = vld [vmem:[%s16519_s1 + $0xe30] sm:$0xf0] }
 0x78b   :  { %v7580_v29 = vmul.f32 %v7452_v45, %v7013_v11  ;;  %v7016_v6 = vadd.f32 %v7015_v32, %v6687_v40  ;;  %v6360_v60 = vadd.f32 %v6359_v55, %v6031_v46  ;;  %v11735_v16 = vld [vmem:[%s16519_s1 + $0xe2c] sm:$0xf0]  ;;  %v11731_v32 = vld [vmem:[%s16519_s1 + $0xe14] sm:$0xf]  ;;  %v10747_v45 = vld [vmem:[%s16519_s1 + $0xe18] sm:$0xf] }
 0x78c   :  { %v11736_v55 = vld [vmem:[%s16519_s1 + $0xe34] sm:$0xf0]  ;;  %v10749_v46 = vld [vmem:[%s16519_s1 + $0xe38] sm:$0xf0]  ;;  %v10744_v1 = vor.u32 %v11731_v32, %v10741_v17 }
 0x78d   :  { %v7708_v31 = vmul.f32 0.16666667, %v7580_v29  ;;  %v7197_v8 = vadd.f32 3.0, %v7016_v6  ;;  %v10748_v26 = vor.u32 %v11736_v55, %v10747_v45  ;;  %v10752_v58 = vor.u32 %v11732_v54, %v10749_v46 }
 0x78f   :  { %v8604_v7 = vmul.f32 %v8331_v33, %v7708_v31  ;;  %v7325_v61 = vmax.f32 %v7197_v8, 0.0 }
 0x790   :  { %v6688_v4 = vpop.f32.mrf.mxu2  ;;  %v6033_v41 = vpop.f32.mrf.mxu0 }
 0x791   :  { %v7017_v44 = vpop.f32.mrf.mxu3  ;;  %v8823_v5 = vsel %vm8641_vm1, %v8604_v7, 0.0  ;;  %v7453_v47 = vmin.f32 %v7325_v61, 6.0  ;;  %v6689_v63 = vadd.f32 %v6688_v4, %v6360_v60  ;;  %v6362_v38 = vpop.f32.mrf.mxu1  ;;  %v6034_v42 = vadd.f32 %v6033_v41, %v16670_v39  ;;  %v16672_v7 = vld [vmem:[#allocation65_spill] sm:$0xff] }
 0x792   :  { %v8824_v57 = vadd.f32 %v8823_v5, %v8822_v19  ;;  %v8341_v19 = vpop.permute.xlu2 %8340  ;;  %v10740_v60 = vor.u32 %v11735_v16, %v10739_v0  ;;  %v8346_v5 = vpop.permute.xlu0 %8345 }
 0x793   :  { %v7581_v35 = vmul.f32 %v7453_v47, %v7016_v6  ;;  %v7018_v51 = vadd.f32 %v7017_v44, %v6689_v63  ;;  %v6363_v27 = vadd.f32 %v6362_v38, %v6034_v42  ;;  %6072 = vmatmul.bf16.gmra.mxu0 %v10708_v36 }
 0x794   :  { %6401 = vmatmul.bf16.gmra.mxu1 %v10712_v15 }
 0x795   :  { %v7709_v62 = vmul.f32 0.16666667, %v7581_v35  ;;  %v7198_v23 = vadd.f32 3.0, %v7018_v51  ;;  %6730 = vmatmul.bf16.gmra.mxu2 %v10716_v43 }
 0x796   :  { %11272 = vmatmul.msk.bf16.gmra.mxu3 %vm4280_vm0, %v10720_v49 }
 0x797   :  { %v8605_v12 = vmul.f32 %v8336_v48, %v7709_v62  ;;  %v7326_v25 = vmax.f32 %v7198_v23, 0.0 }
 0x798   :  { %v6691_v18 = vpop.f32.mrf.mxu2  ;;  %v6035_v59 = vpop.f32.mrf.mxu0 }
 0x799   :  { %v7020_v30 = vpop.f32.mrf.mxu3  ;;  %v8825_v10 = vsel %vm8641_vm1, %v8605_v12, 0.0  ;;  %v7454_v52 = vmin.f32 %v7326_v25, 6.0  ;;  %v6692_v34 = vadd.f32 %v6691_v18, %v6363_v27  ;;  %v6364_v22 = vpop.f32.mrf.mxu1  ;;  %v6036_v21 = vadd.f32 %v6035_v59, %v16671_v50  ;;  %v16673_v27 = vld [vmem:[#allocation66_spill] sm:$0xff]  ;;  %v10771_v12 = vld [vmem:[%s16519_s1 + $0xe50] sm:$0xf] }
 0x79a   :  { %v8826_v11 = vadd.f32 %v8825_v10, %v8824_v57  ;;  %v11743_v25 = vld [vmem:[%s16519_s1 + $0xe6c] sm:$0xf0]  ;;  %v10773_v10 = vld [vmem:[%s16519_s1 + $0xe70] sm:$0xf0]  ;;  %v11740_v50 = vld [vmem:[%s16519_s1 + $0xe5c] sm:$0xf] }
 0x79b   :  { %v7582_v2 = vmul.f32 %v7454_v52, %v7018_v51  ;;  %v7021_v37 = vadd.f32 %v7020_v30, %v6692_v34  ;;  %v6365_v53 = vadd.f32 %v6364_v22, %v6036_v21  ;;  %v11739_v30 = vld [vmem:[%s16519_s1 + $0xe54] sm:$0xf]  ;;  %v10779_v52 = vld [vmem:[%s16519_s1 + $0xe58] sm:$0xf]  ;;  %v10781_v21 = vld [vmem:[%s16519_s1 + $0xe78] sm:$0xf0] }
 0x79c   :  { %v11744_v22 = vld [vmem:[%s16519_s1 + $0xe74] sm:$0xf0]  ;;  %v10776_v32 = vor.u32 %v11739_v30, %v10773_v10  ;;  %v10784_v54 = vor.u32 %v11740_v50, %v10781_v21 }
 0x79d   :  { %v7710_v40 = vmul.f32 0.16666667, %v7582_v2  ;;  %v7199_v28 = vadd.f32 3.0, %v7021_v37  ;;  %v10780_v17 = vor.u32 %v11744_v22, %v10779_v52 }
 0x79f   :  { %v8606_v29 = vmul.f32 %v8341_v19, %v7710_v40  ;;  %v7327_v6 = vmax.f32 %v7199_v28, 0.0 }
 0x7a0   :  { %v6693_v24 = vpop.f32.mrf.mxu2  ;;  %v6038_v20 = vpop.f32.mrf.mxu0 }
 0x7a1   :  { %v7022_v14 = vpop.f32.mrf.mxu3  ;;  %v8827_v56 = vsel %vm8641_vm1, %v8606_v29, 0.0  ;;  %v7455_v31 = vmin.f32 %v7327_v6, 6.0  ;;  %v6694_v8 = vadd.f32 %v6693_v24, %v6365_v53  ;;  %v6367_v33 = vpop.f32.mrf.mxu1  ;;  %v6039_v61 = vadd.f32 %v6038_v20, %v16672_v7  ;;  %v16674_v29 = vld [vmem:[#allocation67_spill] sm:$0xff] }
 0x7a2   :  { %v8828_v13 = vadd.f32 %v8827_v56, %v8826_v11  ;;  %v8351_v11 = vpop.permute.xlu1 %8350  ;;  %v10772_v53 = vor.u32 %v11743_v25, %v10771_v12  ;;  %v8356_v56 = vpop.permute.xlu2 %8355 }
 0x7a3   :  { %v7583_v4 = vmul.f32 %v7455_v31, %v7021_v37  ;;  %v7023_v44 = vadd.f32 %v7022_v14, %v6694_v8  ;;  %v6368_v36 = vadd.f32 %v6367_v33, %v6039_v61  ;;  %6077 = vmatmul.bf16.gmra.mxu0 %v10740_v60 }
 0x7a4   :  { %6406 = vmatmul.bf16.gmra.mxu1 %v10744_v1 }
 0x7a5   :  { %v7711_v15 = vmul.f32 0.16666667, %v7583_v4  ;;  %v7200_v43 = vadd.f32 3.0, %v7023_v44  ;;  %6735 = vmatmul.bf16.gmra.mxu2 %v10748_v26 }
 0x7a6   :  { %11273 = vmatmul.msk.bf16.gmra.mxu3 %vm4280_vm0, %v10752_v58 }
 0x7a7   :  { %v8607_v47 = vmul.f32 %v8346_v5, %v7711_v15  ;;  %v7328_v63 = vmax.f32 %v7200_v43, 0.0 }
 0x7a8   :  { %v6696_v41 = vpop.f32.mrf.mxu2  ;;  %v6040_v42 = vpop.f32.mrf.mxu0 }
 0x7a9   :  { %v7025_v38 = vpop.f32.mrf.mxu3  ;;  %v8829_v49 = vsel %vm8641_vm1, %v8607_v47, 0.0  ;;  %v7456_v57 = vmin.f32 %v7328_v63, 6.0  ;;  %v6697_v39 = vadd.f32 %v6696_v41, %v6368_v36  ;;  %v6369_v35 = vpop.f32.mrf.mxu1  ;;  %v6041_v62 = vadd.f32 %v6040_v42, %v16673_v27  ;;  %v16675_v36 = vld [vmem:[#allocation68_spill] sm:$0xff]  ;;  %v11748_v27 = vld [vmem:[%s16519_s1 + $0xe9c] sm:$0xf] }
 0x7aa   :  { %v8830_v51 = vadd.f32 %v8829_v49, %v8828_v13  ;;  %v10803_v47 = vld [vmem:[%s16519_s1 + $0xe90] sm:$0xf]  ;;  %v10805_v49 = vld [vmem:[%s16519_s1 + $0xeb0] sm:$0xf0] }
 0x7ab   :  { %v7584_v23 = vmul.f32 %v7456_v57, %v7023_v44  ;;  %v7026_v48 = vadd.f32 %v7025_v38, %v6697_v39  ;;  %v6370_v18 = vadd.f32 %v6369_v35, %v6041_v62  ;;  %v11751_v63 = vld [vmem:[%s16519_s1 + $0xeac] sm:$0xf0]  ;;  %v11747_v38 = vld [vmem:[%s16519_s1 + $0xe94] sm:$0xf]  ;;  %v10811_v57 = vld [vmem:[%s16519_s1 + $0xe98] sm:$0xf] }
 0x7ac   :  { %v11752_v35 = vld [vmem:[%s16519_s1 + $0xeb4] sm:$0xf0]  ;;  %v10813_v62 = vld [vmem:[%s16519_s1 + $0xeb8] sm:$0xf0]  ;;  %v10808_v30 = vor.u32 %v11747_v38, %v10805_v49 }
 0x7ad   :  { %v7712_v34 = vmul.f32 0.16666667, %v7584_v23  ;;  %v7201_v59 = vadd.f32 3.0, %v7026_v48  ;;  %v10812_v10 = vor.u32 %v11752_v35, %v10811_v57  ;;  %v10816_v50 = vor.u32 %v11748_v27, %v10813_v62 }
 0x7af   :  { %v8608_v2 = vmul.f32 %v8351_v11, %v7712_v34  ;;  %v7329_v37 = vmax.f32 %v7201_v59, 0.0 }
 0x7b0   :  { %v6698_v0 = vpop.f32.mrf.mxu2  ;;  %v6043_v55 = vpop.f32.mrf.mxu0 }
 0x7b1   :  { %v7027_v16 = vpop.f32.mrf.mxu3  ;;  %v8831_v45 = vsel %vm8641_vm1, %v8608_v2, 0.0  ;;  %v7457_v40 = vmin.f32 %v7329_v37, 6.0  ;;  %v6699_v28 = vadd.f32 %v6698_v0, %v6370_v18  ;;  %v6372_v19 = vpop.f32.mrf.mxu1  ;;  %v6044_v6 = vadd.f32 %v6043_v55, %v16674_v29  ;;  %v16676_v2 = vld [vmem:[#allocation69_spill] sm:$0xff] }
 0x7b2   :  { %v8832_v46 = vadd.f32 %v8831_v45, %v8830_v51  ;;  %v8361_v51 = vpop.permute.xlu0 %8360  ;;  %v10804_v18 = vor.u32 %v11751_v63, %v10803_v47  ;;  %v8366_v45 = vpop.permute.xlu1 %8365 }
 0x7b3   :  { %v7585_v24 = vmul.f32 %v7457_v40, %v7026_v48  ;;  %v7028_v14 = vadd.f32 %v7027_v16, %v6699_v28  ;;  %v6373_v60 = vadd.f32 %v6372_v19, %v6044_v6  ;;  %6082 = vmatmul.bf16.gmra.mxu0 %v10772_v53 }
 0x7b4   :  { %6411 = vmatmul.bf16.gmra.mxu1 %v10776_v32 }
 0x7b5   :  { %v7713_v1 = vmul.f32 0.16666667, %v7585_v24  ;;  %v7202_v26 = vadd.f32 3.0, %v7028_v14  ;;  %6740 = vmatmul.bf16.gmra.mxu2 %v10780_v17 }
 0x7b6   :  { %11274 = vmatmul.msk.bf16.gmra.mxu3 %vm4280_vm0, %v10784_v54 }
 0x7b7   :  { %v8609_v31 = vmul.f32 %v8356_v56, %v7713_v1  ;;  %v7330_v8 = vmax.f32 %v7202_v26, 0.0 }
 0x7b8   :  { %v6701_v20 = vpop.f32.mrf.mxu2  ;;  %v6045_v61 = vpop.f32.mrf.mxu0 }
 0x7b9   :  { %v7030_v33 = vpop.f32.mrf.mxu3  ;;  %v8833_v58 = vsel %vm8641_vm1, %v8609_v31, 0.0  ;;  %v7458_v13 = vmin.f32 %v7330_v8, 6.0  ;;  %v6702_v7 = vadd.f32 %v6701_v20, %v6373_v60  ;;  %v6374_v4 = vpop.f32.mrf.mxu1  ;;  %v6046_v15 = vadd.f32 %v6045_v61, %v16675_v36  ;;  %v16677_v60 = vld [vmem:[#allocation70_spill] sm:$0xff]  ;;  %v10835_v31 = vld [vmem:[%s16519_s1 + $0xed0] sm:$0xf] }
 0x7ba   :  { %v8834_v44 = vadd.f32 %v8833_v58, %v8832_v46  ;;  %v11759_v8 = vld [vmem:[%s16519_s1 + $0xeec] sm:$0xf0]  ;;  %v10837_v58 = vld [vmem:[%s16519_s1 + $0xef0] sm:$0xf0]  ;;  %v11756_v36 = vld [vmem:[%s16519_s1 + $0xedc] sm:$0xf] }
 0x7bb   :  { %v7586_v43 = vmul.f32 %v7458_v13, %v7028_v14  ;;  %v7031_v5 = vadd.f32 %v7030_v33, %v6702_v7  ;;  %v6375_v41 = vadd.f32 %v6374_v4, %v6046_v15  ;;  %v11755_v33 = vld [vmem:[%s16519_s1 + $0xed4] sm:$0xf]  ;;  %v10843_v13 = vld [vmem:[%s16519_s1 + $0xed8] sm:$0xf]  ;;  %v10845_v15 = vld [vmem:[%s16519_s1 + $0xef8] sm:$0xf0] }
 0x7bc   :  { %v11760_v4 = vld [vmem:[%s16519_s1 + $0xef4] sm:$0xf0]  ;;  %v10840_v38 = vor.u32 %v11755_v33, %v10837_v58  ;;  %v10848_v27 = vor.u32 %v11756_v36, %v10845_v15 }
 0x7bd   :  { %v7714_v39 = vmul.f32 0.16666667, %v7586_v43  ;;  %v7203_v42 = vadd.f32 3.0, %v7031_v5  ;;  %v10844_v49 = vor.u32 %v11760_v4, %v10843_v13 }
 0x7bf   :  { %v8610_v23 = vmul.f32 %v8361_v51, %v7714_v39  ;;  %v7331_v48 = vmax.f32 %v7203_v42, 0.0 }
 0x7c0   :  { %v6703_v12 = vpop.f32.mrf.mxu2  ;;  %v6048_v22 = vpop.f32.mrf.mxu0 }
 0x7c1   :  { %v7032_v25 = vpop.f32.mrf.mxu3  ;;  %v8835_v52 = vsel %vm8641_vm1, %v8610_v23, 0.0  ;;  %v7459_v34 = vmin.f32 %v7331_v48, 6.0  ;;  %v6704_v59 = vadd.f32 %v6703_v12, %v6375_v41  ;;  %v6377_v11 = vpop.f32.mrf.mxu1  ;;  %v6049_v37 = vadd.f32 %v6048_v22, %v16676_v2  ;;  %v16678_v23 = vld [vmem:[#allocation71_spill] sm:$0xff] }
 0x7c2   :  { %v8836_v21 = vadd.f32 %v8835_v52, %v8834_v44  ;;  %v8371_v44 = vpop.permute.xlu2 %8370  ;;  %v10836_v41 = vor.u32 %v11759_v8, %v10835_v31  ;;  %v8376_v52 = vpop.permute.xlu0 %8375 }
 0x7c3   :  { %v7587_v0 = vmul.f32 %v7459_v34, %v7031_v5  ;;  %v7033_v16 = vadd.f32 %v7032_v25, %v6704_v59  ;;  %v6378_v53 = vadd.f32 %v6377_v11, %v6049_v37  ;;  %6087 = vmatmul.bf16.gmra.mxu0 %v10804_v18 }
 0x7c4   :  { %6416 = vmatmul.bf16.gmra.mxu1 %v10808_v30 }
 0x7c5   :  { %v7715_v32 = vmul.f32 0.16666667, %v7587_v0  ;;  %v7204_v17 = vadd.f32 3.0, %v7033_v16  ;;  %6745 = vmatmul.bf16.gmra.mxu2 %v10812_v10 }
 0x7c6   :  { %11275 = vmatmul.msk.bf16.gmra.mxu3 %vm4280_vm0, %v10816_v50 }
 0x7c7   :  { %v8611_v40 = vmul.f32 %v8366_v45, %v7715_v32  ;;  %v7332_v28 = vmax.f32 %v7204_v17, 0.0 }
 0x7c8   :  { %v6706_v55 = vpop.f32.mrf.mxu2  ;;  %v6050_v6 = vpop.f32.mrf.mxu0 }
 0x7c9   :  { %v7035_v19 = vpop.f32.mrf.mxu3  ;;  %v8837_v54 = vsel %vm8641_vm1, %v8611_v40, 0.0  ;;  %v7460_v46 = vmin.f32 %v7332_v28, 6.0  ;;  %v6707_v29 = vadd.f32 %v6706_v55, %v6378_v53  ;;  %v6379_v24 = vpop.f32.mrf.mxu1  ;;  %v6051_v1 = vadd.f32 %v6050_v6, %v16677_v60  ;;  %v16679_v53 = vld [vmem:[#allocation72_spill] sm:$0xff]  ;;  %v11764_v60 = vld [vmem:[%s16519_s1 + $0xf1c] sm:$0xf] }
 0x7ca   :  { %v8838_v14 = vadd.f32 %v8837_v54, %v8836_v21  ;;  %v10867_v40 = vld [vmem:[%s16519_s1 + $0xf10] sm:$0xf]  ;;  %v10869_v54 = vld [vmem:[%s16519_s1 + $0xf30] sm:$0xf0] }
 0x7cb   :  { %v7588_v26 = vmul.f32 %v7460_v46, %v7033_v16  ;;  %v7036_v56 = vadd.f32 %v7035_v19, %v6707_v29  ;;  %v6380_v20 = vadd.f32 %v6379_v24, %v6051_v1  ;;  %v11767_v28 = vld [vmem:[%s16519_s1 + $0xf2c] sm:$0xf0]  ;;  %v11763_v19 = vld [vmem:[%s16519_s1 + $0xf14] sm:$0xf]  ;;  %v10875_v46 = vld [vmem:[%s16519_s1 + $0xf18] sm:$0xf] }
 0x7cc   :  { %v11768_v24 = vld [vmem:[%s16519_s1 + $0xf34] sm:$0xf0]  ;;  %v10877_v1 = vld [vmem:[%s16519_s1 + $0xf38] sm:$0xf0]  ;;  %v10872_v33 = vor.u32 %v11763_v19, %v10869_v54 }
 0x7cd   :  { %v7716_v7 = vmul.f32 0.16666667, %v7588_v26  ;;  %v7205_v61 = vadd.f32 3.0, %v7036_v56  ;;  %v10876_v58 = vor.u32 %v11768_v24, %v10875_v46  ;;  %v10880_v36 = vor.u32 %v11764_v60, %v10877_v1 }
 0x7cf   :  { %v8612_v43 = vmul.f32 %v8371_v44, %v7716_v7  ;;  %v7333_v5 = vmax.f32 %v7205_v61, 0.0 }
 0x7d0   :  { %v6708_v47 = vpop.f32.mrf.mxu2  ;;  %v6053_v35 = vpop.f32.mrf.mxu0 }
 0x7d1   :  { %v7037_v63 = vpop.f32.mrf.mxu3  ;;  %v8839_v57 = vsel %vm8641_vm1, %v8612_v43, 0.0  ;;  %v7461_v39 = vmin.f32 %v7333_v5, 6.0  ;;  %v6709_v42 = vadd.f32 %v6708_v47, %v6380_v20  ;;  %v6382_v51 = vpop.f32.mrf.mxu1  ;;  %v6054_v48 = vadd.f32 %v6053_v35, %v16678_v23  ;;  %v16680_v43 = vld [vmem:[#allocation73_spill] sm:$0xff] }
 0x7d2   :  { %v8840_v62 = vadd.f32 %v8839_v57, %v8838_v14  ;;  %v8381_v14 = vpop.permute.xlu1 %8380  ;;  %v10868_v20 = vor.u32 %v11767_v28, %v10867_v40  ;;  %v8386_v57 = vpop.permute.xlu2 %8385 }
 0x7d3   :  { %v7589_v12 = vmul.f32 %v7461_v39, %v7036_v56  ;;  %v7038_v25 = vadd.f32 %v7037_v63, %v6709_v42  ;;  %v6383_v18 = vadd.f32 %v6382_v51, %v6054_v48  ;;  %6092 = vmatmul.bf16.gmra.mxu0 %v10836_v41 }
 0x7d4   :  { %6421 = vmatmul.bf16.gmra.mxu1 %v10840_v38 }
 0x7d5   :  { %v7717_v30 = vmul.f32 0.16666667, %v7589_v12  ;;  %v7206_v10 = vadd.f32 3.0, %v7038_v25  ;;  %6750 = vmatmul.bf16.gmra.mxu2 %v10844_v49 }
 0x7d6   :  { %11276 = vmatmul.msk.bf16.gmra.mxu3 %vm4280_vm0, %v10848_v27 }
 0x7d7   :  { %v8613_v34 = vmul.f32 %v8376_v52, %v7717_v30  ;;  %v7334_v59 = vmax.f32 %v7206_v10, 0.0 }
 0x7d8   :  { %v6711_v22 = vpop.f32.mrf.mxu2  ;;  %v6055_v37 = vpop.f32.mrf.mxu0 }
 0x7d9   :  { %v7040_v11 = vpop.f32.mrf.mxu3  ;;  %v8841_v50 = vsel %vm8641_vm1, %v8613_v34, 0.0  ;;  %v7462_v21 = vmin.f32 %v7334_v59, 6.0  ;;  %v6712_v2 = vadd.f32 %v6711_v22, %v6383_v18  ;;  %v6384_v0 = vpop.f32.mrf.mxu1  ;;  %v6056_v32 = vadd.f32 %v6055_v37, %v16679_v53  ;;  %v16681_v18 = vld [vmem:[#allocation74_spill] sm:$0xff]  ;;  %v10899_v34 = vld [vmem:[%s16519_s1 + $0xf50] sm:$0xf] }
 0x7da   :  { %v8842_v16 = vadd.f32 %v8841_v50, %v8840_v62  ;;  %v11775_v59 = vld [vmem:[%s16519_s1 + $0xf6c] sm:$0xf0]  ;;  %v10901_v50 = vld [vmem:[%s16519_s1 + $0xf70] sm:$0xf0]  ;;  %v11772_v53 = vld [vmem:[%s16519_s1 + $0xf5c] sm:$0xf] }
 0x7db   :  { %v7590_v17 = vmul.f32 %v7462_v21, %v7038_v25  ;;  %v7041_v45 = vadd.f32 %v7040_v11, %v6712_v2  ;;  %v6385_v55 = vadd.f32 %v6384_v0, %v6056_v32  ;;  %v11771_v11 = vld [vmem:[%s16519_s1 + $0xf54] sm:$0xf]  ;;  %v10907_v21 = vld [vmem:[%s16519_s1 + $0xf58] sm:$0xf]  ;;  %v10909_v32 = vld [vmem:[%s16519_s1 + $0xf78] sm:$0xf0] }
 0x7dc   :  { %v11776_v0 = vld [vmem:[%s16519_s1 + $0xf74] sm:$0xf0]  ;;  %v10904_v19 = vor.u32 %v11771_v11, %v10901_v50  ;;  %v10912_v60 = vor.u32 %v11772_v53, %v10909_v32 }
 0x7dd   :  { %v7718_v29 = vmul.f32 0.16666667, %v7590_v17  ;;  %v7207_v6 = vadd.f32 3.0, %v7041_v45  ;;  %v10908_v54 = vor.u32 %v11776_v0, %v10907_v21 }
 0x7df   :  { %v8614_v26 = vmul.f32 %v8381_v14, %v7718_v29  ;;  %v7335_v56 = vmax.f32 %v7207_v6, 0.0 }
 0x7e0   :  { %v6713_v31 = vpop.f32.mrf.mxu2  ;;  %v6058_v4 = vpop.f32.mrf.mxu0 }
 0x7e1   :  { %v7042_v8 = vpop.f32.mrf.mxu3  ;;  %v8843_v13 = vsel %vm8641_vm1, %v8614_v26, 0.0  ;;  %v7463_v7 = vmin.f32 %v7335_v56, 6.0  ;;  %v6714_v61 = vadd.f32 %v6713_v31, %v6385_v55  ;;  %v6387_v44 = vpop.f32.mrf.mxu1  ;;  %v6059_v5 = vadd.f32 %v6058_v4, %v16680_v43  ;;  %v16682_v26 = vld [vmem:[#allocation75_spill] sm:$0xff] }
 0x7e2   :  { %v8844_v15 = vadd.f32 %v8843_v13, %v8842_v16  ;;  %v8391_v16 = vpop.permute.xlu0 %8390  ;;  %v10900_v55 = vor.u32 %v11775_v59, %v10899_v34  ;;  %v8396_v13 = vpop.permute.xlu1 %8395 }
 0x7e3   :  { %v7591_v47 = vmul.f32 %v7463_v7, %v7041_v45  ;;  %v7043_v63 = vadd.f32 %v7042_v8, %v6714_v61  ;;  %v6388_v41 = vadd.f32 %v6387_v44, %v6059_v5  ;;  %6097 = vmatmul.bf16.gmra.mxu0 %v10868_v20 }
 0x7e4   :  { %6426 = vmatmul.bf16.gmra.mxu1 %v10872_v33 }
 0x7e5   :  { %v7719_v38 = vmul.f32 0.16666667, %v7591_v47  ;;  %v7208_v49 = vadd.f32 3.0, %v7043_v63  ;;  %6755 = vmatmul.bf16.gmra.mxu2 %v10876_v58 }
 0x7e6   :  { %11277 = vmatmul.msk.bf16.gmra.mxu3 %vm4280_vm0, %v10880_v36 }
 0x7e7   :  { %v8615_v39 = vmul.f32 %v8386_v57, %v7719_v38  ;;  %v7336_v42 = vmax.f32 %v7208_v49, 0.0 }
 0x7e8   :  { %v6716_v35 = vpop.f32.mrf.mxu2  ;;  %v6060_v48 = vpop.f32.mrf.mxu0 }
 0x7e9   :  { %v7045_v51 = vpop.f32.mrf.mxu3  ;;  %v8845_v27 = vsel %vm8641_vm1, %v8615_v39, 0.0  ;;  %v7464_v62 = vmin.f32 %v7336_v42, 6.0  ;;  %v6717_v23 = vadd.f32 %v6716_v35, %v6388_v41  ;;  %v6389_v12 = vpop.f32.mrf.mxu1  ;;  %v6061_v30 = vadd.f32 %v6060_v48, %v16681_v18  ;;  %v16683_v41 = vld [vmem:[#allocation76_spill] sm:$0xff]  ;;  %v11780_v18 = vld [vmem:[%s16519_s1 + $0xf9c] sm:$0xf] }
 0x7ea   :  { %v8846_v25 = vadd.f32 %v8845_v27, %v8844_v15  ;;  %v10931_v39 = vld [vmem:[%s16519_s1 + $0xf90] sm:$0xf]  ;;  %v10933_v27 = vld [vmem:[%s16519_s1 + $0xfb0] sm:$0xf0] }
 0x7eb   :  { %v7592_v10 = vmul.f32 %v7464_v62, %v7043_v63  ;;  %v7046_v52 = vadd.f32 %v7045_v51, %v6717_v23  ;;  %v6390_v22 = vadd.f32 %v6389_v12, %v6061_v30  ;;  %v11783_v42 = vld [vmem:[%s16519_s1 + $0xfac] sm:$0xf0]  ;;  %v11779_v51 = vld [vmem:[%s16519_s1 + $0xf94] sm:$0xf]  ;;  %v10939_v62 = vld [vmem:[%s16519_s1 + $0xf98] sm:$0xf] }
 0x7ec   :  { %v11784_v12 = vld [vmem:[%s16519_s1 + $0xfb4] sm:$0xf0]  ;;  %v10941_v30 = vld [vmem:[%s16519_s1 + $0xfb8] sm:$0xf0]  ;;  %v10936_v11 = vor.u32 %v11779_v51, %v10933_v27 }
 0x7ed   :  { %v7720_v2 = vmul.f32 0.16666667, %v7592_v10  ;;  %v7209_v37 = vadd.f32 3.0, %v7046_v52  ;;  %v10940_v50 = vor.u32 %v11784_v12, %v10939_v62  ;;  %v10944_v53 = vor.u32 %v11780_v18, %v10941_v30 }
 0x7ef   :  { %v8616_v17 = vmul.f32 %v8391_v16, %v7720_v2  ;;  %v7337_v45 = vmax.f32 %v7209_v37, 0.0 }
 0x7f0   :  { %v6718_v40 = vpop.f32.mrf.mxu2  ;;  %v6063_v24 = vpop.f32.mrf.mxu0 }
 0x7f1   :  { %v7047_v28 = vpop.f32.mrf.mxu3  ;;  %v8847_v46 = vsel %vm8641_vm1, %v8616_v17, 0.0  ;;  %v7465_v29 = vmin.f32 %v7337_v45, 6.0  ;;  %v6719_v6 = vadd.f32 %v6718_v40, %v6390_v22  ;;  %v6392_v14 = vpop.f32.mrf.mxu1  ;;  %v6064_v56 = vadd.f32 %v6063_v24, %v16682_v26  ;;  %v16684_v17 = vld [vmem:[#allocation77_spill] sm:$0xff] }
 0x7f2   :  { %v8848_v1 = vadd.f32 %v8847_v46, %v8846_v25  ;;  %v8401_v25 = vpop.permute.xlu2 %8400  ;;  %v10932_v22 = vor.u32 %v11783_v42, %v10931_v39  ;;  %v8406_v46 = vpop.permute.xlu0 %8405 }
 0x7f3   :  { %v7593_v31 = vmul.f32 %v7465_v29, %v7046_v52  ;;  %v7048_v8 = vadd.f32 %v7047_v28, %v6719_v6  ;;  %v6393_v20 = vadd.f32 %v6392_v14, %v6064_v56  ;;  %6102 = vmatmul.bf16.gmra.mxu0 %v10900_v55 }
 0x7f4   :  { %6431 = vmatmul.bf16.gmra.mxu1 %v10904_v19 }
 0x7f5   :  { %v7721_v33 = vmul.f32 0.16666667, %v7593_v31  ;;  %v7210_v58 = vadd.f32 3.0, %v7048_v8  ;;  %6760 = vmatmul.bf16.gmra.mxu2 %v10908_v54 }
 0x7f6   :  { %11278 = vmatmul.msk.bf16.gmra.mxu3 %vm4280_vm0, %v10912_v60 }
 0x7f7   :  { %v8617_v7 = vmul.f32 %v8396_v13, %v7721_v33  ;;  %v7338_v61 = vmax.f32 %v7210_v58, 0.0  ;;  %v10963_v13 = vld [vmem:[%s16519_s1 + $0xfd0] sm:$0xf] }
 0x7f8   :  { %v6721_v4 = vpop.f32.mrf.mxu2  ;;  %v6065_v5 = vpop.f32.mrf.mxu0 }
 0x7f9   :  { %v7050_v44 = vpop.f32.mrf.mxu3  ;;  %v8849_v36 = vsel %vm8641_vm1, %v8617_v7, 0.0  ;;  %v7466_v15 = vmin.f32 %v7338_v61, 6.0  ;;  %v6722_v43 = vadd.f32 %v6721_v4, %v6393_v20  ;;  %v6394_v47 = vpop.f32.mrf.mxu1  ;;  %v6066_v38 = vadd.f32 %v6065_v5, %v16683_v41  ;;  %v11791_v7 = vld [vmem:[%s16519_s1 + $0xfec] sm:$0xf0]  ;;  %v11787_v4 = vld [vmem:[%s16519_s1 + $0xfd4] sm:$0xf] }
 0x7fa   :  { %v8850_v63 = vadd.f32 %v8849_v36, %v8848_v1  ;;  %v8411_v5 = vpop.permute.xlu1 %8410  ;;  %v10964_v39 = vor.u32 %v11791_v7, %v10963_v13 }
 0x7fb   :  { %v7594_v49 = vmul.f32 %v7466_v15, %v7048_v8  ;;  %v7051_v57 = vadd.f32 %v7050_v44, %v6722_v43  ;;  %v6395_v35 = vadd.f32 %v6394_v47, %v6066_v38  ;;  %v10965_v44 = vld [vmem:[%s16519_s1 + $0xff0] sm:$0xf0]  ;;  %v11792_v43 = vld [vmem:[%s16519_s1 + $0xff4] sm:$0xf0]  ;;  %v11788_v47 = vld [vmem:[%s16519_s1 + $0xfdc] sm:$0xf] }
 0x7fc   :  { %v10968_v42 = vor.u32 %v11787_v4, %v10965_v44 }
 0x7fd   :  { %v7722_v23 = vmul.f32 0.16666667, %v7594_v49  ;;  %v7211_v48 = vadd.f32 3.0, %v7051_v57 }
 0x7ff   :  { %v8618_v10 = vmul.f32 %v8401_v25, %v7722_v23  ;;  %v7339_v52 = vmax.f32 %v7211_v48, 0.0 }
 0x800   :  { %v6723_v34 = vpop.f32.mrf.mxu2  ;;  %v6068_v0 = vpop.f32.mrf.mxu0 }
 0x801   :  { %v7052_v59 = vpop.f32.mrf.mxu3  ;;  %v8851_v21 = vsel %vm8641_vm1, %v8618_v10, 0.0  ;;  %v7467_v2 = vmin.f32 %v7339_v52, 6.0  ;;  %v6724_v37 = vadd.f32 %v6723_v34, %v6395_v35  ;;  %v6397_v16 = vpop.f32.mrf.mxu1  ;;  %v6069_v45 = vadd.f32 %v6068_v0, %v16684_v17  ;;  %v16685_v17 = vld [vmem:[#allocation78_spill] sm:$0xff] }
 0x802   :  { %v8852_v32 = vadd.f32 %v8851_v21, %v8850_v63  ;;  %v10973_v63 = vld [vmem:[%s16519_s1 + $0xff8] sm:$0xf0]  ;;  %v8426_v44 = vpop.permute.xlu1 %8425 }
 0x803   :  { %v7595_v40 = vmul.f32 %v7467_v2, %v7051_v57  ;;  %v7053_v28 = vadd.f32 %v7052_v59, %v6724_v37  ;;  %v6398_v55 = vadd.f32 %v6397_v16, %v6069_v45  ;;  %6107 = vmatmul.bf16.gmra.mxu0 %v10932_v22  ;;  %v10976_v12 = vor.u32 %v11788_v47, %v10973_v63  ;;  %v8416_v22 = vpop.permute.xlu2 %8415 }
 0x804   :  { %6436 = vmatmul.bf16.gmra.mxu1 %v10936_v11 }
 0x805   :  { %v7723_v19 = vmul.f32 0.16666667, %v7595_v40  ;;  %v7212_v54 = vadd.f32 3.0, %v7053_v28  ;;  %6765 = vmatmul.bf16.gmra.mxu2 %v10940_v50 }
 0x806   :  { %11279 = vmatmul.msk.bf16.gmra.mxu3 %vm4280_vm0, %v10944_v53 }
 0x807   :  { %v8619_v29 = vmul.f32 %v8406_v46, %v7723_v19  ;;  %v7340_v6 = vmax.f32 %v7212_v54, 0.0  ;;  %v8421_v46 = vpop.permute.xlu0 %8420 }
 0x808   :  { %v6726_v24 = vpop.f32.mrf.mxu2  ;;  %v6070_v56 = vpop.f32.mrf.mxu0 }
 0x809   :  { %v7055_v14 = vpop.f32.mrf.mxu3  ;;  %v8853_v60 = vsel %vm8641_vm1, %v8619_v29, 0.0  ;;  %v7468_v1 = vmin.f32 %v7340_v6, 6.0  ;;  %v6727_v26 = vadd.f32 %v6726_v24, %v6398_v55  ;;  %v6399_v31 = vpop.f32.mrf.mxu1  ;;  %v6071_v20 = vadd.f32 %v6070_v56, %v14237_v3  ;;  %v10971_v3 = vld [vmem:[%s16519_s1 + $0xfd8] sm:$0xf]  ;;  %s11885_s1 = smov [#allocation3]  }
 0x80a   :  { %v8854_v8 = vadd.f32 %v8853_v60, %v8852_v32  ;;  %v10972_v35 = vor.u32 %v11792_v43, %v10971_v3  ;;  %s8918_s6 = sshll.u32 %s11885_s1, 4  ;;  %s8919_s6 = int_to_ptr.vmem [resolvable:$true] %s8918_s6 }
 0x80b   :  { %v7596_v33 = vmul.f32 %v7468_v1, %v7053_v28  ;;  %v7056_v58 = vadd.f32 %v7055_v14, %v6727_v26  ;;  %v6400_v61 = vadd.f32 %v6399_v31, %v6071_v20  ;;  %v16686_v20 = vld [vmem:[#allocation79_spill] sm:$0xff] }
 0x80d   :  { %v7724_v36 = vmul.f32 0.16666667, %v7596_v33  ;;  %v7213_v15 = vadd.f32 3.0, %v7056_v58 }
 0x80f   :  { %v8620_v41 = vmul.f32 %v8411_v5, %v7724_v36  ;;  %v7341_v38 = vmax.f32 %v7213_v15, 0.0 }
 0x810   :  { %v6728_v49 = vpop.f32.mrf.mxu2  ;;  %v6073_v23 = vpop.f32.mrf.mxu0 }
 0x811   :  { %v7057_v57 = vpop.f32.mrf.mxu3  ;;  %v8855_v51 = vsel %vm8641_vm1, %v8620_v41, 0.0  ;;  %v7469_v27 = vmin.f32 %v7341_v38, 6.0  ;;  %v6729_v62 = vadd.f32 %v6728_v49, %v6400_v61  ;;  %v6402_v48 = vpop.f32.mrf.mxu1  ;;  %v6074_v18 = vadd.f32 %v6073_v23, %v14239_v9 }
 0x812   :  { %v8856_v25 = vadd.f32 %v8855_v51, %v8854_v8  ;;  %v8431_v23 = vpop.permute.xlu2 %8430 }
 0x813   :  { %v7597_v30 = vmul.f32 %v7469_v27, %v7056_v58  ;;  %v7058_v10 = vadd.f32 %v7057_v57, %v6729_v62  ;;  %v6403_v52 = vadd.f32 %v6402_v48, %v6074_v18  ;;  %6112 = vmatmul.bf16.gmra.mxu0 %v10964_v39  ;;  %v16687_v57 = vld [vmem:[#allocation80_spill] sm:$0xff] }
 0x814   :  { %6441 = vmatmul.bf16.gmra.mxu1 %v10968_v42 }
 0x815   :  { %v7725_v34 = vmul.f32 0.16666667, %v7597_v30  ;;  %v7214_v59 = vadd.f32 3.0, %v7058_v10  ;;  %6770 = vmatmul.bf16.gmra.mxu2 %v10972_v35 }
 0x816   :  { %11280 = vmatmul.msk.bf16.gmra.mxu3 %vm4280_vm0, %v10976_v12 }
 0x817   :  { %v8621_v11 = vmul.f32 %v8416_v22, %v7725_v34  ;;  %v7342_v50 = vmax.f32 %v7214_v59, 0.0 }
 0x818   :  { %v6731_v21 = vpop.f32.mrf.mxu2  ;;  %v6075_v9 = vpop.f32.mrf.mxu0 }
 0x819   :  { %v7060_v2 = vpop.f32.mrf.mxu3  ;;  %v8857_v37 = vsel %vm8641_vm1, %v8621_v11, 0.0  ;;  %v7470_v0 = vmin.f32 %v7342_v50, 6.0  ;;  %v6732_v16 = vadd.f32 %v6731_v21, %v6403_v52  ;;  %v6404_v53 = vpop.f32.mrf.mxu1  ;;  %v6076_v45 = vadd.f32 %v6075_v9, %v16685_v17  ;;  %v16688_v11 = vld [vmem:[#allocation81_spill] sm:$0xff] }
 0x81a   :  { %v8858_v32 = vadd.f32 %v8857_v37, %v8856_v25  ;;  %v8436_v9 = vpop.permute.xlu0 %8435 }
 0x81b   :  { %v7598_v40 = vmul.f32 %v7470_v0, %v7058_v10  ;;  %v7061_v28 = vadd.f32 %v7060_v2, %v6732_v16  ;;  %v6405_v55 = vadd.f32 %v6404_v53, %v6076_v45 }
 0x81d   :  { %v7726_v19 = vmul.f32 0.16666667, %v7598_v40  ;;  %v7215_v54 = vadd.f32 3.0, %v7061_v28 }
 0x81f   :  { %v8622_v29 = vmul.f32 %v8421_v46, %v7726_v19  ;;  %v7343_v6 = vmax.f32 %v7215_v54, 0.0 }
 0x820   :  { %v6733_v24 = vpop.f32.mrf.mxu2  ;;  %v6078_v56 = vpop.f32.mrf.mxu0 }
 0x821   :  { %v7062_v14 = vpop.f32.mrf.mxu3  ;;  %v8859_v60 = vsel %vm8641_vm1, %v8622_v29, 0.0  ;;  %v7471_v1 = vmin.f32 %v7343_v6, 6.0  ;;  %v6734_v26 = vadd.f32 %v6733_v24, %v6405_v55  ;;  %v6407_v31 = vpop.f32.mrf.mxu1  ;;  %v6079_v33 = vadd.f32 %v6078_v56, %v16686_v20  ;;  %v16689_v29 = vld [vmem:[#allocation82_spill] sm:$0xff] }
 0x822   :  { %v8860_v8 = vadd.f32 %v8859_v60, %v8858_v32  ;;  %v8441_v56 = vpop.permute.xlu1 %8440 }
 0x823   :  { %v7599_v58 = vmul.f32 %v7471_v1, %v7061_v28  ;;  %v7063_v13 = vadd.f32 %v7062_v14, %v6734_v26  ;;  %v6408_v7 = vadd.f32 %v6407_v31, %v6079_v33 }
 0x825   :  { %v7727_v61 = vmul.f32 0.16666667, %v7599_v58  ;;  %v7216_v4 = vadd.f32 3.0, %v7063_v13 }
 0x827   :  { %v8623_v3 = vmul.f32 %v8426_v44, %v7727_v61  ;;  %v7344_v36 = vmax.f32 %v7216_v4, 0.0 }
 0x828   :  { %v6736_v15 = vpop.f32.mrf.mxu2  ;;  %v6080_v41 = vpop.f32.mrf.mxu0 }
 0x829   :  { %v7065_v43 = vpop.f32.mrf.mxu3  ;;  %v8861_v5 = vsel %vm8641_vm1, %v8623_v3, 0.0  ;;  %v7472_v47 = vmin.f32 %v7344_v36, 6.0  ;;  %v6737_v63 = vadd.f32 %v6736_v15, %v6408_v7  ;;  %v6409_v38 = vpop.f32.mrf.mxu1  ;;  %v6081_v39 = vadd.f32 %v6080_v41, %v16687_v57  ;;  %v16690_v3 = vld [vmem:[#allocation83_spill] sm:$0xff] }
 0x82a   :  { %v8862_v49 = vadd.f32 %v8861_v5, %v8860_v8  ;;  %v8446_v41 = vpop.permute.xlu2 %8445 }
 0x82b   :  { %v7600_v42 = vmul.f32 %v7472_v47, %v7063_v13  ;;  %v7066_v35 = vadd.f32 %v7065_v43, %v6737_v63  ;;  %v6410_v51 = vadd.f32 %v6409_v38, %v6081_v39 }
 0x82d   :  { %v7728_v27 = vmul.f32 0.16666667, %v7600_v42  ;;  %v7217_v62 = vadd.f32 3.0, %v7066_v35 }
 0x82f   :  { %v8624_v48 = vmul.f32 %v8431_v23, %v7728_v27  ;;  %v7345_v12 = vmax.f32 %v7217_v62, 0.0 }
 0x830   :  { %v6738_v25 = vpop.f32.mrf.mxu2  ;;  %v6083_v34 = vpop.f32.mrf.mxu0 }
 0x831   :  { %v7067_v18 = vpop.f32.mrf.mxu3  ;;  %v8863_v30 = vsel %vm8641_vm1, %v8624_v48, 0.0  ;;  %v7473_v10 = vmin.f32 %v7345_v12, 6.0  ;;  %v6739_v52 = vadd.f32 %v6738_v25, %v6410_v51  ;;  %v6412_v59 = vpop.f32.mrf.mxu1  ;;  %v6084_v50 = vadd.f32 %v6083_v34, %v16688_v11  ;;  %v16691_v25 = vld [vmem:[#allocation84_spill] sm:$0xff] }
 0x832   :  { %v8864_v22 = vadd.f32 %v8863_v30, %v8862_v49 }
 0x833   :  { %v7601_v21 = vmul.f32 %v7473_v10, %v7066_v35  ;;  %v7068_v2 = vadd.f32 %v7067_v18, %v6739_v52  ;;  %v6413_v37 = vadd.f32 %v6412_v59, %v6084_v50  ;;  %v8451_v52 = vpop.permute.xlu0 %8450 }
 0x835   :  { %v7729_v0 = vmul.f32 0.16666667, %v7601_v21  ;;  %v7218_v16 = vadd.f32 3.0, %v7068_v2 }
 0x837   :  { %v8625_v53 = vmul.f32 %v8436_v9, %v7729_v0  ;;  %v7346_v32 = vmax.f32 %v7218_v16, 0.0 }
 0x838   :  { %v6741_v17 = vpop.f32.mrf.mxu2  ;;  %v6085_v19 = vpop.f32.mrf.mxu0 }
 0x839   :  { %v7070_v45 = vpop.f32.mrf.mxu3  ;;  %v8865_v40 = vsel %vm8641_vm1, %v8625_v53, 0.0  ;;  %v7474_v28 = vmin.f32 %v7346_v32, 6.0  ;;  %v6742_v55 = vadd.f32 %v6741_v17, %v6413_v37  ;;  %v6414_v54 = vpop.f32.mrf.mxu1  ;;  %v6086_v6 = vadd.f32 %v6085_v19, %v16689_v29  ;;  %v16692_v17 = vld [vmem:[#allocation85_spill] sm:$0xff] }
 0x83a   :  { %v8866_v46 = vadd.f32 %v8865_v40, %v8864_v22 }
 0x83b   :  { %v7602_v24 = vmul.f32 %v7474_v28, %v7068_v2  ;;  %v7071_v14 = vadd.f32 %v7070_v45, %v6742_v55  ;;  %v6415_v60 = vadd.f32 %v6414_v54, %v6086_v6  ;;  %v8456_v55 = vpop.permute.xlu1 %8455 }
 0x83d   :  { %v7730_v1 = vmul.f32 0.16666667, %v7602_v24  ;;  %v7219_v26 = vadd.f32 3.0, %v7071_v14 }
 0x83f   :  { %v8626_v31 = vmul.f32 %v8441_v56, %v7730_v1  ;;  %v7347_v8 = vmax.f32 %v7219_v26, 0.0 }
 0x840   :  { %v6743_v20 = vpop.f32.mrf.mxu2  ;;  %v6088_v61 = vpop.f32.mrf.mxu0 }
 0x841   :  { %v7072_v33 = vpop.f32.mrf.mxu3  ;;  %v8867_v58 = vsel %vm8641_vm1, %v8626_v31, 0.0  ;;  %v7475_v13 = vmin.f32 %v7347_v8, 6.0  ;;  %v6744_v7 = vadd.f32 %v6743_v20, %v6415_v60  ;;  %v6417_v4 = vpop.f32.mrf.mxu1  ;;  %v6089_v36 = vadd.f32 %v6088_v61, %v16690_v3  ;;  %v16693_v20 = vld [vmem:[#allocation86_spill] sm:$0xff] }
 0x842   :  { %v8868_v44 = vadd.f32 %v8867_v58, %v8866_v46 }
 0x843   :  { %v7603_v15 = vmul.f32 %v7475_v13, %v7071_v14  ;;  %v7073_v43 = vadd.f32 %v7072_v33, %v6744_v7  ;;  %v6418_v5 = vadd.f32 %v6417_v4, %v6089_v36  ;;  %v8461_v7 = vpop.permute.xlu2 %8460 }
 0x845   :  { %v7731_v47 = vmul.f32 0.16666667, %v7603_v15  ;;  %v7220_v63 = vadd.f32 3.0, %v7073_v43 }
 0x847   :  { %v8627_v38 = vmul.f32 %v8446_v41, %v7731_v47  ;;  %v7348_v49 = vmax.f32 %v7220_v63, 0.0 }
 0x848   :  { %v6746_v57 = vpop.f32.mrf.mxu2  ;;  %v6090_v27 = vpop.f32.mrf.mxu0 }
 0x849   :  { %v7075_v39 = vpop.f32.mrf.mxu3  ;;  %v8869_v42 = vsel %vm8641_vm1, %v8627_v38, 0.0  ;;  %v7476_v35 = vmin.f32 %v7348_v49, 6.0  ;;  %v6747_v51 = vadd.f32 %v6746_v57, %v6418_v5  ;;  %v6419_v62 = vpop.f32.mrf.mxu1  ;;  %v6091_v18 = vadd.f32 %v6090_v27, %v16691_v25  ;;  %v16694_v57 = vld [vmem:[#allocation87_spill] sm:$0xff] }
 0x84a   :  { %v8870_v23 = vadd.f32 %v8869_v42, %v8868_v44 }
 0x84b   :  { %v7604_v48 = vmul.f32 %v7476_v35, %v7073_v43  ;;  %v7076_v12 = vadd.f32 %v7075_v39, %v6747_v51  ;;  %v6420_v22 = vadd.f32 %v6419_v62, %v6091_v18  ;;  %v8466_v51 = vpop.permute.xlu0 %8465 }
 0x84d   :  { %v7732_v30 = vmul.f32 0.16666667, %v7604_v48  ;;  %v7221_v10 = vadd.f32 3.0, %v7076_v12 }
 0x84f   :  { %v8628_v34 = vmul.f32 %v8451_v52, %v7732_v30  ;;  %v7349_v59 = vmax.f32 %v7221_v10, 0.0 }
 0x850   :  { %v6748_v11 = vpop.f32.mrf.mxu2  ;;  %v6093_v0 = vpop.f32.mrf.mxu0 }
 0x851   :  { %v7077_v50 = vpop.f32.mrf.mxu3  ;;  %v8871_v21 = vsel %vm8641_vm1, %v8628_v34, 0.0  ;;  %v7477_v2 = vmin.f32 %v7349_v59, 6.0  ;;  %v6749_v37 = vadd.f32 %v6748_v11, %v6420_v22  ;;  %v6422_v16 = vpop.f32.mrf.mxu1  ;;  %v6094_v45 = vadd.f32 %v6093_v0, %v16692_v17  ;;  %v16695_v11 = vld [vmem:[#allocation88_spill] sm:$0xff] }
 0x852   :  { %v8872_v9 = vadd.f32 %v8871_v21, %v8870_v23 }
 0x853   :  { %v7605_v53 = vmul.f32 %v7477_v2, %v7076_v12  ;;  %v7078_v32 = vadd.f32 %v7077_v50, %v6749_v37  ;;  %v6423_v46 = vadd.f32 %v6422_v16, %v6094_v45  ;;  %v8471_v37 = vpop.permute.xlu1 %8470 }
 0x855   :  { %v7733_v40 = vmul.f32 0.16666667, %v7605_v53  ;;  %v7222_v28 = vadd.f32 3.0, %v7078_v32 }
 0x857   :  { %v8629_v19 = vmul.f32 %v8456_v55, %v7733_v40  ;;  %v7350_v54 = vmax.f32 %v7222_v28, 0.0 }
 0x858   :  { %v6751_v29 = vpop.f32.mrf.mxu2  ;;  %v6095_v1 = vpop.f32.mrf.mxu0 }
 0x859   :  { %v7080_v6 = vpop.f32.mrf.mxu3  ;;  %v8873_v24 = vsel %vm8641_vm1, %v8629_v19, 0.0  ;;  %v7478_v14 = vmin.f32 %v7350_v54, 6.0  ;;  %v6752_v60 = vadd.f32 %v6751_v29, %v6423_v46  ;;  %v6424_v26 = vpop.f32.mrf.mxu1  ;;  %v6096_v33 = vadd.f32 %v6095_v1, %v16693_v20  ;;  %v16696_v29 = vld [vmem:[#allocation89_spill] sm:$0xff] }
 0x85a   :  { %v8874_v56 = vadd.f32 %v8873_v24, %v8872_v9 }
 0x85b   :  { %v7606_v31 = vmul.f32 %v7478_v14, %v7078_v32  ;;  %v7081_v8 = vadd.f32 %v7080_v6, %v6752_v60  ;;  %v6425_v44 = vadd.f32 %v6424_v26, %v6096_v33  ;;  %v8476_v60 = vpop.permute.xlu2 %8475 }
 0x85d   :  { %v7734_v58 = vmul.f32 0.16666667, %v7606_v31  ;;  %v7223_v13 = vadd.f32 3.0, %v7081_v8 }
 0x85f   :  { %v8630_v61 = vmul.f32 %v8461_v7, %v7734_v58  ;;  %v7351_v4 = vmax.f32 %v7223_v13, 0.0 }
 0x860   :  { %v6753_v3 = vpop.f32.mrf.mxu2  ;;  %v6098_v47 = vpop.f32.mrf.mxu0 }
 0x861   :  { %v7082_v36 = vpop.f32.mrf.mxu3  ;;  %v8875_v15 = vsel %vm8641_vm1, %v8630_v61, 0.0  ;;  %v7479_v43 = vmin.f32 %v7351_v4, 6.0  ;;  %v6754_v5 = vadd.f32 %v6753_v3, %v6425_v44  ;;  %v6427_v63 = vpop.f32.mrf.mxu1  ;;  %v6099_v39 = vadd.f32 %v6098_v47, %v16694_v57  ;;  %v16697_v3 = vld [vmem:[#allocation90_spill] sm:$0xff] }
 0x862   :  { %v8876_v41 = vadd.f32 %v8875_v15, %v8874_v56 }
 0x863   :  { %v7607_v38 = vmul.f32 %v7479_v43, %v7081_v8  ;;  %v7083_v49 = vadd.f32 %v7082_v36, %v6754_v5  ;;  %v6428_v23 = vadd.f32 %v6427_v63, %v6099_v39  ;;  %v8481_v5 = vpop.permute.xlu0 %8480 }
 0x865   :  { %v7735_v42 = vmul.f32 0.16666667, %v7607_v38  ;;  %v7224_v35 = vadd.f32 3.0, %v7083_v49 }
 0x867   :  { %v8631_v27 = vmul.f32 %v8466_v51, %v7735_v42  ;;  %v7352_v62 = vmax.f32 %v7224_v35, 0.0 }
 0x868   :  { %v6756_v48 = vpop.f32.mrf.mxu2  ;;  %v6100_v10 = vpop.f32.mrf.mxu0 }
 0x869   :  { %v7085_v12 = vpop.f32.mrf.mxu3  ;;  %v8877_v25 = vsel %vm8641_vm1, %v8631_v27, 0.0  ;;  %v7480_v18 = vmin.f32 %v7352_v62, 6.0  ;;  %v6757_v30 = vadd.f32 %v6756_v48, %v6428_v23  ;;  %v6429_v52 = vpop.f32.mrf.mxu1  ;;  %v6101_v50 = vadd.f32 %v6100_v10, %v16695_v11  ;;  %v16698_v48 = vld [vmem:[#allocation91_spill] sm:$0xff] }
 0x86a   :  { %v8878_v34 = vadd.f32 %v8877_v25, %v8876_v41 }
 0x86b   :  { %v7608_v59 = vmul.f32 %v7480_v18, %v7083_v49  ;;  %v7086_v22 = vadd.f32 %v7085_v12, %v6757_v30  ;;  %v6430_v9 = vadd.f32 %v6429_v52, %v6101_v50  ;;  %v8486_v30 = vpop.permute.xlu1 %8485 }
 0x86d   :  { %v7736_v21 = vmul.f32 0.16666667, %v7608_v59  ;;  %v7225_v2 = vadd.f32 3.0, %v7086_v22 }
 0x86f   :  { %v8632_v0 = vmul.f32 %v8471_v37, %v7736_v21  ;;  %v7353_v16 = vmax.f32 %v7225_v2, 0.0 }
 0x870   :  { %v6758_v53 = vpop.f32.mrf.mxu2  ;;  %v6103_v28 = vpop.f32.mrf.mxu0 }
 0x871   :  { %v7087_v32 = vpop.f32.mrf.mxu3  ;;  %v8879_v17 = vsel %vm8641_vm1, %v8632_v0, 0.0  ;;  %v7481_v45 = vmin.f32 %v7353_v16, 6.0  ;;  %v6759_v40 = vadd.f32 %v6758_v53, %v6430_v9  ;;  %v6432_v55 = vpop.f32.mrf.mxu1  ;;  %v6104_v6 = vadd.f32 %v6103_v28, %v16696_v29  ;;  %v16699_v53 = vld [vmem:[#allocation92_spill] sm:$0xff] }
 0x872   :  { %v8880_v19 = vadd.f32 %v8879_v17, %v8878_v34 }
 0x873   :  { %v7609_v54 = vmul.f32 %v7481_v45, %v7086_v22  ;;  %v7088_v46 = vadd.f32 %v7087_v32, %v6759_v40  ;;  %v6433_v56 = vadd.f32 %v6432_v55, %v6104_v6  ;;  %v8491_v40 = vpop.permute.xlu2 %8490 }
 0x875   :  { %v7737_v24 = vmul.f32 0.16666667, %v7609_v54  ;;  %v7226_v14 = vadd.f32 3.0, %v7088_v46 }
 0x877   :  { %v8633_v1 = vmul.f32 %v8476_v60, %v7737_v24  ;;  %v7354_v26 = vmax.f32 %v7226_v14, 0.0 }
 0x878   :  { %v6761_v31 = vpop.f32.mrf.mxu2  ;;  %v6105_v13 = vpop.f32.mrf.mxu0 }
 0x879   :  { %v7090_v8 = vpop.f32.mrf.mxu3  ;;  %v8881_v20 = vsel %vm8641_vm1, %v8633_v1, 0.0  ;;  %v7482_v33 = vmin.f32 %v7354_v26, 6.0  ;;  %v6762_v58 = vadd.f32 %v6761_v31, %v6433_v56  ;;  %v6434_v7 = vpop.f32.mrf.mxu1  ;;  %v6106_v36 = vadd.f32 %v6105_v13, %v16697_v3  ;;  %v16700_v56 = vld [vmem:[#allocation93_spill] sm:$0xff] }
 0x87a   :  { %v8882_v61 = vadd.f32 %v8881_v20, %v8880_v19 }
 0x87b   :  { %v7610_v4 = vmul.f32 %v7482_v33, %v7088_v46  ;;  %v7091_v44 = vadd.f32 %v7090_v8, %v6762_v58  ;;  %v6435_v41 = vadd.f32 %v6434_v7, %v6106_v36  ;;  %v8496_v58 = vpop.permute.xlu0 %8495 }
 0x87d   :  { %v7738_v15 = vmul.f32 0.16666667, %v7610_v4  ;;  %v7227_v43 = vadd.f32 3.0, %v7091_v44 }
 0x87f   :  { %v8634_v47 = vmul.f32 %v8481_v5, %v7738_v15  ;;  %v7355_v63 = vmax.f32 %v7227_v43, 0.0 }
 0x880   :  { %v6763_v38 = vpop.f32.mrf.mxu2  ;;  %v6108_v35 = vpop.f32.mrf.mxu0 }
 0x881   :  { %v7092_v49 = vpop.f32.mrf.mxu3  ;;  %v8883_v57 = vsel %vm8641_vm1, %v8634_v47, 0.0  ;;  %v7483_v39 = vmin.f32 %v7355_v63, 6.0  ;;  %v6764_v42 = vadd.f32 %v6763_v38, %v6435_v41  ;;  %v6437_v51 = vpop.f32.mrf.mxu1  ;;  %v6109_v12 = vadd.f32 %v6108_v35, %v16698_v48  ;;  %v16701_v41 = vld [vmem:[#allocation94_spill] sm:$0xff] }
 0x882   :  { %v8884_v27 = vadd.f32 %v8883_v57, %v8882_v61 }
 0x883   :  { %v7611_v62 = vmul.f32 %v7483_v39, %v7091_v44  ;;  %v7093_v23 = vadd.f32 %v7092_v49, %v6764_v42  ;;  %v6438_v34 = vadd.f32 %v6437_v51, %v6109_v12  ;;  %v8501_v39 = vpop.permute.xlu1 %8500 }
 0x885   :  { %v7739_v25 = vmul.f32 0.16666667, %v7611_v62  ;;  %v7228_v18 = vadd.f32 3.0, %v7093_v23 }
 0x887   :  { %v8635_v10 = vmul.f32 %v8486_v30, %v7739_v25  ;;  %v7356_v52 = vmax.f32 %v7228_v18, 0.0 }
 0x888   :  { %v6766_v59 = vpop.f32.mrf.mxu2  ;;  %v6110_v2 = vpop.f32.mrf.mxu0 }
 0x889   :  { %v7095_v22 = vpop.f32.mrf.mxu3  ;;  %v8885_v11 = vsel %vm8641_vm1, %v8635_v10, 0.0  ;;  %v7484_v50 = vmin.f32 %v7356_v52, 6.0  ;;  %v6767_v21 = vadd.f32 %v6766_v59, %v6438_v34  ;;  %v6439_v0 = vpop.f32.mrf.mxu1  ;;  %v6111_v32 = vadd.f32 %v6110_v2, %v16699_v53 }
 0x88a   :  { %v8886_v37 = vadd.f32 %v8885_v11, %v8884_v27  ;;  %v8506_v59 = vpop.permute.xlu2 %8505 }
 0x88b   :  { %v7612_v16 = vmul.f32 %v7484_v50, %v7093_v23  ;;  %v7096_v9 = vadd.f32 %v7095_v22, %v6767_v21  ;;  %v6440_v19 = vadd.f32 %v6439_v0, %v6111_v32 }
 0x88d   :  { %v7740_v17 = vmul.f32 0.16666667, %v7612_v16  ;;  %v7229_v45 = vadd.f32 3.0, %v7096_v9  ;;  %v8511_v16 = vpop.permute.xlu0 %8510 }
 0x88f   :  { %v8636_v28 = vmul.f32 %v8491_v40, %v7740_v17  ;;  %v7357_v55 = vmax.f32 %v7229_v45, 0.0 }
 0x890   :  { %v6768_v54 = vpop.f32.mrf.mxu2  ;;  %v6113_v14 = vpop.f32.mrf.mxu0 }
 0x891   :  { %v7097_v46 = vpop.f32.mrf.mxu3  ;;  %v8887_v29 = vsel %vm8641_vm1, %v8636_v28, 0.0  ;;  %v7485_v6 = vmin.f32 %v7357_v55, 6.0  ;;  %v6769_v24 = vadd.f32 %v6768_v54, %v6440_v19  ;;  %v6114_v31 = vadd.f32 %v6113_v14, %v16700_v56  ;;  %v6442_v8 = vpop.f32.mrf.mxu1 }
 0x892   :  { %v8888_v60 = vadd.f32 %v8887_v29, %v8886_v37  ;;  %v8907_v55 = vpop.permute.xlu1 %8906 }
 0x893   :  { %v7613_v1 = vmul.f32 %v7485_v6, %v7096_v9  ;;  %v7098_v26 = vadd.f32 %v7097_v46, %v6769_v24  ;;  %v6443_v61 = vadd.f32 %v6442_v8, %v6114_v31  ;;  %v8909_v54 = vperm.slane %v8907_v55, 0 }
 0x895   :  { %v7741_v20 = vmul.f32 0.16666667, %v7613_v1  ;;  %v7230_v33 = vadd.f32 3.0, %v7098_v26 }
 0x897   :  { %v8637_v13 = vmul.f32 %v8496_v58, %v7741_v20  ;;  %v7358_v7 = vmax.f32 %v7230_v33, 0.0 }
 0x898   :  { %v6771_v4 = vpop.f32.mrf.mxu2  ;;  %v6115_v43 = vpop.f32.mrf.mxu0 }
 0x899   :  { %v7100_v44 = vpop.f32.mrf.mxu3  ;;  %v8889_v3 = vsel %vm8641_vm1, %v8637_v13, 0.0  ;;  %v7486_v36 = vmin.f32 %v7358_v7, 6.0  ;;  %v6772_v15 = vadd.f32 %v6771_v4, %v6443_v61  ;;  %v6116_v38 = vadd.f32 %v6115_v43, %v16701_v41  ;;  %v6444_v42 = vpop.f32.mrf.mxu1 }
 0x89a   :  { %v8890_v5 = vadd.f32 %v8889_v3, %v8888_v60 }
 0x89b   :  { %v7614_v47 = vmul.f32 %v7486_v36, %v7098_v26  ;;  %v7101_v63 = vadd.f32 %v7100_v44, %v6772_v15  ;;  %v6445_v27 = vadd.f32 %v6444_v42, %v6116_v38 }
 0x89d   :  { %v7742_v49 = vmul.f32 0.16666667, %v7614_v47  ;;  %v7231_v57 = vadd.f32 3.0, %v7101_v63 }
 0x89f   :  { %v8638_v35 = vmul.f32 %v8501_v39, %v7742_v49  ;;  %v7359_v51 = vmax.f32 %v7231_v57, 0.0 }
 0x8a0   :  { %v6773_v62 = vpop.f32.mrf.mxu2 }
 0x8a1   :  { %v8891_v23 = vsel %vm8641_vm1, %v8638_v35, 0.0  ;;  %v7487_v48 = vmin.f32 %v7359_v51, 6.0  ;;  %v6774_v12 = vadd.f32 %v6773_v62, %v6445_v27  ;;  %v7102_v18 = vpop.f32.mrf.mxu3 }
 0x8a2   :  { %v8892_v25 = vadd.f32 %v8891_v23, %v8890_v5 }
 0x8a3   :  { %v7615_v30 = vmul.f32 %v7487_v48, %v7101_v63  ;;  %v7103_v10 = vadd.f32 %v7102_v18, %v6774_v12 }
 0x8a5   :  { %v7743_v52 = vmul.f32 0.16666667, %v7615_v30  ;;  %v7232_v34 = vadd.f32 3.0, %v7103_v10 }
 0x8a7   :  { %v8639_v22 = vmul.f32 %v8506_v59, %v7743_v52  ;;  %v7360_v11 = vmax.f32 %v7232_v34, 0.0 }
 0x8a9   :  { %v8893_v50 = vsel %vm8641_vm1, %v8639_v22, 0.0  ;;  %v7488_v21 = vmin.f32 %v7360_v11, 6.0 }
 0x8aa   :  { %v8894_v2 = vadd.f32 %v8893_v50, %v8892_v25 }
 0x8ab   :  { %v7616_v37 = vmul.f32 %v7488_v21, %v7103_v10 }
 0x8ad   :  { %v7744_v0 = vmul.f32 0.16666667, %v7616_v37 }
 0x8af   :  { %v8640_v9 = vmul.f32 %v8511_v16, %v7744_v0 }
 0x8b1   :  { %v8895_v53 = vsel %vm8641_vm1, %v8640_v9, 0.0 }
 0x8b2   :  { %v8896_v32 = vadd.f32 %v8895_v53, %v8894_v2 }
 0x8b4   :  { %v8897_v17 = vrot.slane %v8896_v32, 4 }
 0x8b6   :  { %v8898_v45 = vadd.f32 %v8897_v17, %v8896_v32 }
 0x8b8   :  { %v8899_v40 = vrot.slane %v8898_v45, 2 }
 0x8ba   :  { %v8900_v28 = vadd.f32 %v8899_v40, %v8898_v45 }
 0x8bc   :  { %v8901_v19 = vrot.slane %v8900_v28, 1 }
 0x8be   :  { %v8902_v46 = vadd.f32 %v8901_v19, %v8900_v28 }
 0x8c0   :  { %v8910_v29 = vadd.f32 %v8909_v54, %v8902_v46 }
 0x8c2   :  { %8912 = vst.msk [vmem:[#allocation3] sm:$0x1] %vm8911_vm2, %v8910_v29 }
 0x8c3   :  { %8923 = dma.vmem_to_hbm [thread:$0]  %s8919_s6, 16, %s8921_s8, [#allocation4]  }
 0x8c4   :  { %11882 = dma.done.wait [#allocation4], 16  }
 0x8c5   :  { %11883 = vsyncadd [#allocation4], 4294967280 }
 0x8c6   :  { %8928 = vsyncpa [#allocation4], 1 }

</bundles_post_ra>
